<compile_context>
chip_gen: v7x
topology: tpu7x:2x2x1
jax: 0.10.0
libtpu: 0.0.40
codegen_flags: <defaults>
</compile_context>

<pallas_src>
import functools

import numpy as np
import jax
import jax.numpy as jnp
from jax import lax
from jax.experimental import pallas as pl
from jax.experimental.pallas import tpu as pltpu

HEADS = 4
BN_EPS = 1e-5
NEG_SLOPE = 0.01                                   # nn.LeakyReLU(0.01)
_BN_C = float(1.0 / np.sqrt(1.0 + BN_EPS))         # eval-mode BN scale

# Canonical per-block parameter ordering; host arg-builder and kernel unpacker
# both follow it, keyed by which entries a block actually owns.
_BLOCK_KEYS = ("w1", "b1", "wq", "bq", "wk", "bk", "wv", "bv", "pos", "w3",
               "wsc", "bsc")

# A @ B^T contraction (contract last dims of both operands): no in-kernel
# transposes needed.
_NT_DIMS = (((1,), (1,)), ((), ()))


# ------------------------------ in-kernel helpers ---------------------------

def _mm(a, b):
    """MXU matmul with bf16 operands and f32 accumulation."""
    return jnp.dot(a.astype(jnp.bfloat16), b.astype(jnp.bfloat16),
                   preferred_element_type=jnp.float32)


def _mm_nt(a, b):
    """A @ B^T with bf16 operands and f32 accumulation."""
    return lax.dot_general(a.astype(jnp.bfloat16), b.astype(jnp.bfloat16),
                           _NT_DIMS, preferred_element_type=jnp.float32)


def _leaky(x):
    return jnp.where(x >= 0.0, x, NEG_SLOPE * x)


def _maxpool_3s3p1(x, H, W):
    """MaxPool2d(kernel=3, stride=3, padding=1) on row-major (H*W, C) data.

    Window bounds are clamped statically (equivalent to -inf padding for max);
    each output row is a small max-tree over full-lane-width row slices.
    """
    if H == 1 and W == 1:
        return x
    oh = (H - 1) // 3 + 1
    ow = (W - 1) // 3 + 1
    rows = []
    for oi in range(oh):
        r0, r1 = max(0, 3 * oi - 1), min(H, 3 * oi + 2)
        for oj in range(ow):
            c0, c1 = max(0, 3 * oj - 1), min(W, 3 * oj + 2)
            acc = None
            for r in range(r0, r1):
                seg = jnp.max(x[r * W + c0:r * W + c1, :], axis=0,
                              keepdims=True)
                acc = seg if acc is None else jnp.maximum(acc, seg)
            rows.append(acc)
    return rows[0] if len(rows) == 1 else jnp.concatenate(rows, axis=0)


def _bottleneck(x, prm):
    """One Bottleneck block on (HW, Cin) rows; BN folded into the weights."""
    # conv1 (1x1) + BN1 + ReLU
    h1 = _mm(x, prm["w1"][...])
    if "b1" in prm:                        # only block1 (stem conv folded in)
        h1 = h1 + prm["b1"][...]
    h1 = jnp.maximum(h1, 0.0)              # (HW, P)

    if "wq" in prm:
        # Multi-head self-attention, head-major weight refs; per-head conv3
        # contributions are accumulated instead of concatenating heads.
        out = None
        for hh in range(HEADS):
            qh = _mm(h1, prm["wq"][hh]) + prm["bq"][hh]        # (HW, d)
            kh = _mm(h1, prm["wk"][hh]) + prm["bk"][hh]
            vh = _mm(h1, prm["wv"][hh]) + prm["bv"][hh]
            ph = prm["pos"][hh]                                # (HW, d)
            # energy = Q K^T + P Q^T  (matches the reference MHSA exactly)
            energy = _mm_nt(qh, kh) + _mm_nt(ph, qh)           # (HW, HW)
            m = jnp.max(energy, axis=-1, keepdims=True)
            e = jnp.exp(energy - m)
            attn = e / jnp.sum(e, axis=-1, keepdims=True)      # softmax(-1)
            ah = _mm(attn, vh)                                 # (HW, d)
            h2 = jnp.maximum(ah, 0.0)       # BN2 (positive scale) folded in w3
            contrib = _mm(h2, prm["w3"][hh])                   # (HW, 4P)
            out = contrib if out is None else out + contrib
    else:
        # 1x1 spatial: softmax over a single key is exactly 1, so the MHSA
        # output equals the value projection.
        v = jnp.maximum(_mm(h1, prm["wv"][...]) + prm["bv"][...], 0.0)
        out = _mm(v, prm["w3"][...])                           # (HW, 4P)

    # shortcut + residual add + ReLU
    if "wsc" in prm:
        sc = _mm(x, prm["wsc"][...]) + prm["bsc"][...]
    else:
        sc = x
    return jnp.maximum(out + sc, 0.0)


# ------------------------------ fused network kernel ------------------------

def _lfcc_kernel(*refs, plan):
    it = iter(refs)
    x_ref = next(it)
    block_refs = [{k: next(it) for k in cfg["keys"]} for cfg in plan]
    fc1_w, fc1_b, fc2_w, fc2_b = next(it), next(it), next(it), next(it)
    o_ref = next(it)

    h = x_ref[0]                                   # (H0*W0, 9) stem patches
    for cfg, prm in zip(plan, block_refs):
        h = _bottleneck(h, prm)
        if cfg["pool_after"]:
            h = _maxpool_3s3p1(h, cfg["h"], cfg["w"])

    # final BatchNorm (folded into fc1_w) + LeakyReLU + MaxPool
    h = _leaky(h)
    h = _maxpool_3s3p1(h, plan[-1]["h"], plan[-1]["w"])
    if h.shape[0] > 1:                             # flatten in NCHW order
        h = h.T.reshape(1, -1)
    # Dropout(0.5): inference mode -> identity.
    f1 = _leaky(_mm(h, fc1_w[...]) + fc1_b[...])   # fc1 + LeakyReLU
    logits = _mm(f1, fc2_w[...]) + fc2_b[...]      # (1, 2)
    m = jnp.max(logits, axis=-1, keepdims=True)
    o_ref[0] = logits - m - jnp.log(jnp.sum(jnp.exp(logits - m), axis=-1,
                                            keepdims=True))


def _run_fused(params, patches, sched):
    B, hw0, c0 = patches.shape
    args = [patches]
    specs = [pl.BlockSpec((1, hw0, c0), lambda b: (b, 0, 0))]

    def add_full(a):
        args.append(a)
        specs.append(pl.BlockSpec(a.shape, lambda b, nd=a.ndim: (0,) * nd))

    plan = []
    for cfg, prm in zip(sched, params["blocks"]):
        keys = tuple(k for k in _BLOCK_KEYS if k in prm)
        plan.append(dict(cfg, keys=keys))
        for k in keys:
            add_full(prm[k])
    for k in ("fc1_w", "fc1_b", "fc2_w", "fc2_b"):
        add_full(params[k])

    out = pl.pallas_call(
        functools.partial(_lfcc_kernel, plan=tuple(plan)),
        grid=(B,),
        in_specs=specs,
        out_specs=pl.BlockSpec((1, 1, 2), lambda b: (b, 0, 0)),
        out_shape=jax.ShapeDtypeStruct((B, 1, 2), jnp.float32),
        compiler_params=pltpu.CompilerParams(
            dimension_semantics=("parallel",)),
    )(*args)
    return out[:, 0, :]


# ------------------------------- parameters ---------------------------------

def _normal(key, shape, scale=0.1):
    return scale * jax.random.normal(key, shape, dtype=jnp.float32)


def _bf16(a):
    return a.astype(jnp.bfloat16)


def _init_block(key, in_c, planes, h, w, use_attn):
    """One Bottleneck block; BN1/BN2/BN3 (eval mode) folded into the weights."""
    d = planes // HEADS
    ks = jax.random.split(key, 10)
    p = {"w1": _bf16(_normal(ks[0], (in_c, planes)) * _BN_C)}   # conv1 (+BN1)
    if use_attn:
        p["wq"] = _bf16(_normal(ks[1], (HEADS, planes, d)))
        p["bq"] = _normal(ks[2], (HEADS, 1, d), 0.01)
        p["wk"] = _bf16(_normal(ks[3], (HEADS, planes, d)))
        p["bk"] = _normal(ks[4], (HEADS, 1, d), 0.01)
        p["wv"] = _bf16(_normal(ks[5], (HEADS, planes, d)))
        p["bv"] = _normal(ks[6], (HEADS, 1, d), 0.01)
        # rel_h + rel_w positional table (torch.randn), flattened (heads,HW,d)
        rel_h = jax.random.normal(ks[7], (HEADS, d, 1, w), dtype=jnp.float32)
        rel_w = jax.random.normal(ks[8], (HEADS, d, h, 1), dtype=jnp.float32)
        pos = (rel_h + rel_w).reshape(HEADS, d, h * w)
        p["pos"] = _bf16(jnp.transpose(pos, (0, 2, 1)))
        # conv3 laid out head-major so the kernel accumulates per-head
        # contributions; BN2 and BN3 folded (two positive scales).
        p["w3"] = _bf16(_normal(ks[9], (HEADS, d, 4 * planes)) *
                        (_BN_C * _BN_C))
    else:
        # 1x1 spatial: q/k/pos have no effect on the output, not materialized.
        p["wv"] = _bf16(_normal(ks[5], (planes, planes)))
        p["bv"] = _normal(ks[6], (1, planes), 0.01)
        p["w3"] = _bf16(_normal(ks[9], (planes, 4 * planes)) *
                        (_BN_C * _BN_C))
    return p


def _init_block1(key, planes, h, w):
    """Block1 with the 3x3 stem conv folded into conv1 and the shortcut conv."""
    ks = jax.random.split(key, 6)
    p = _init_block(ks[0], planes, planes, h, w, use_attn=h * w > 1)
    ws = _normal(ks[1], (9, planes))                 # stem conv (im2col form)
    bs = _normal(ks[2], (planes,), 0.01)
    w1_raw = _normal(ks[3], (planes, planes))
    p["w1"] = _bf16((ws @ w1_raw) * _BN_C)           # stem ∘ conv1 ∘ BN1
    p["b1"] = ((bs @ w1_raw) * _BN_C).reshape(1, planes)
    wsc_raw = _normal(ks[4], (planes, 4 * planes))   # shortcut conv1x1 (+BN)
    bsc_raw = _normal(ks[5], (4 * planes,), 0.01)
    p["wsc"] = _bf16((ws @ wsc_raw) * _BN_C)         # stem ∘ shortcut ∘ BN
    p["bsc"] = ((bs @ wsc_raw + bsc_raw) * _BN_C).reshape(1, 4 * planes)
    return p


def _pool_out(s):
    # nn.MaxPool2d(3, stride=3, padding=1) output spatial size
    return ((s[0] - 1) // 3 + 1, (s[1] - 1) // 3 + 1)


def _schedule(h0, w0):
    """Static per-block spatial / pooling schedule of LFCCBotNet.forward."""
    sched = []
    s = (h0, w0)
    for name, pool_after in (("block1", False), ("block3", True),
                             ("block5", True), ("block7", True),
                             ("block9", True), ("block11", False)):
        sched.append({"name": name, "h": s[0], "w": s[1],
                      "use_attn": s[0] * s[1] > 1, "pool_after": pool_after})
        if pool_after:
            s = _pool_out(s)
    return sched, _pool_out(s)     # final pool after the last BN + LeakyReLU


def init_lfcc_params(key, input_spatial):
    h0, w0 = input_spatial
    sched, final = _schedule(h0, w0)
    ks = jax.random.split(key, len(sched) + 4)
    blocks = []
    for i, cfg in enumerate(sched):
        if cfg["name"] == "block1":
            blocks.append(_init_block1(ks[i], 32, cfg["h"], cfg["w"]))
        else:
            blocks.append(_init_block(ks[i], 128, 32, cfg["h"], cfg["w"],
                                      cfg["use_attn"]))
    feat = 128 * final[0] * final[1]
    return {
        "blocks": blocks,
        # final BatchNorm2d (eval) folded into fc1_w (positive scale commutes
        # with LeakyReLU and MaxPool).
        "fc1_w": _bf16(_normal(ks[-4], (feat, 128)) * _BN_C),
        "fc1_b": _normal(ks[-3], (128,), 0.01).reshape(1, 128),
        "fc2_w": _bf16(_normal(ks[-2], (128, 2))),
        "fc2_b": _normal(ks[-1], (2,), 0.01).reshape(1, 2),
    }


# --------------------------------- forward ----------------------------------

def lfcc_botnet_forward(params, x):
    """x: (B, F, T) LFCC features; returns (B, 2) log-probabilities."""
    B, F, T = x.shape
    sched, _ = _schedule(F, T)
    xin = x.astype(jnp.float32)
    # im2col patches for the 3x3/pad-1 stem conv on the single input channel —
    # a tiny XLA op; the stem weights themselves are folded into block1.
    xp = jnp.pad(xin, ((0, 0), (1, 1), (1, 1)))
    pats = [xp[:, di:di + F, dj:dj + T] for di in range(3) for dj in range(3)]
    patches = jnp.stack(pats, axis=-1).reshape(B, F * T, 9)
    return _run_fused(params, patches, sched)


if __name__ == "__main__":
    key = jax.random.PRNGKey(0)
    kx, kp = jax.random.split(key)
    # batch=2, 6x6 spatial (the Bottleneck/MHSA default resolution=[6, 6]).
    B, F, T = 2, 6, 6
    x = jax.random.normal(kx, (B, F, T), dtype=jnp.float32)
    params = init_lfcc_params(kp, (F, T))

    fwd = jax.jit(lfcc_botnet_forward)
    out = jax.block_until_ready(fwd(params, x))

    assert out.shape == (B, 2)
    assert bool(jnp.all(jnp.isfinite(out)))
    # log-softmax rows must exponentiate-sum to ~1
    assert bool(jnp.allclose(jnp.sum(jnp.exp(out), axis=1), 1.0, atol=1e-3))
    print("KERNEL_OK")
</pallas_src>

<mosaic_0001>
module attributes {stable_mosaic.version = 11 : i64} {
  func.func @_lfcc_kernel(%arg0: i32, %arg1: memref<1x36x9xf32, #tpu.memory_space<vmem>>, %arg2: memref<9x32xbf16, #tpu.memory_space<vmem>>, %arg3: memref<1x32xf32, #tpu.memory_space<vmem>>, %arg4: memref<4x32x8xbf16, #tpu.memory_space<vmem>>, %arg5: memref<4x1x8xf32, #tpu.memory_space<vmem>>, %arg6: memref<4x32x8xbf16, #tpu.memory_space<vmem>>, %arg7: memref<4x1x8xf32, #tpu.memory_space<vmem>>, %arg8: memref<4x32x8xbf16, #tpu.memory_space<vmem>>, %arg9: memref<4x1x8xf32, #tpu.memory_space<vmem>>, %arg10: memref<4x36x8xbf16, #tpu.memory_space<vmem>>, %arg11: memref<4x8x128xbf16, #tpu.memory_space<vmem>>, %arg12: memref<9x128xbf16, #tpu.memory_space<vmem>>, %arg13: memref<1x128xf32, #tpu.memory_space<vmem>>, %arg14: memref<128x32xbf16, #tpu.memory_space<vmem>>, %arg15: memref<4x32x8xbf16, #tpu.memory_space<vmem>>, %arg16: memref<4x1x8xf32, #tpu.memory_space<vmem>>, %arg17: memref<4x32x8xbf16, #tpu.memory_space<vmem>>, %arg18: memref<4x1x8xf32, #tpu.memory_space<vmem>>, %arg19: memref<4x32x8xbf16, #tpu.memory_space<vmem>>, %arg20: memref<4x1x8xf32, #tpu.memory_space<vmem>>, %arg21: memref<4x36x8xbf16, #tpu.memory_space<vmem>>, %arg22: memref<4x8x128xbf16, #tpu.memory_space<vmem>>, %arg23: memref<128x32xbf16, #tpu.memory_space<vmem>>, %arg24: memref<4x32x8xbf16, #tpu.memory_space<vmem>>, %arg25: memref<4x1x8xf32, #tpu.memory_space<vmem>>, %arg26: memref<4x32x8xbf16, #tpu.memory_space<vmem>>, %arg27: memref<4x1x8xf32, #tpu.memory_space<vmem>>, %arg28: memref<4x32x8xbf16, #tpu.memory_space<vmem>>, %arg29: memref<4x1x8xf32, #tpu.memory_space<vmem>>, %arg30: memref<4x4x8xbf16, #tpu.memory_space<vmem>>, %arg31: memref<4x8x128xbf16, #tpu.memory_space<vmem>>, %arg32: memref<128x32xbf16, #tpu.memory_space<vmem>>, %arg33: memref<32x32xbf16, #tpu.memory_space<vmem>>, %arg34: memref<1x32xf32, #tpu.memory_space<vmem>>, %arg35: memref<32x128xbf16, #tpu.memory_space<vmem>>, %arg36: memref<128x32xbf16, #tpu.memory_space<vmem>>, %arg37: memref<32x32xbf16, #tpu.memory_space<vmem>>, %arg38: memref<1x32xf32, #tpu.memory_space<vmem>>, %arg39: memref<32x128xbf16, #tpu.memory_space<vmem>>, %arg40: memref<128x32xbf16, #tpu.memory_space<vmem>>, %arg41: memref<32x32xbf16, #tpu.memory_space<vmem>>, %arg42: memref<1x32xf32, #tpu.memory_space<vmem>>, %arg43: memref<32x128xbf16, #tpu.memory_space<vmem>>, %arg44: memref<128x128xbf16, #tpu.memory_space<vmem>>, %arg45: memref<1x128xf32, #tpu.memory_space<vmem>>, %arg46: memref<128x2xbf16, #tpu.memory_space<vmem>>, %arg47: memref<1x2xf32, #tpu.memory_space<vmem>>, %arg48: memref<1x1x2xf32, #tpu.memory_space<vmem>>) attributes {dimension_semantics = [#tpu.dimension_semantics<parallel>], iteration_bounds = array<i64: 2>, scalar_prefetch = 0 : i64, scratch_operands = 0 : i64, tpu.core_type = #tpu.core_type<tc>, window_params = [{transform_indices = @transform_0, window_bounds = array<i64: 1, 36, 9>}, {pipeline_mode = #tpu.pipeline_mode<synchronous>, transform_indices = @transform_1, window_bounds = array<i64: 9, 32>}, {pipeline_mode = #tpu.pipeline_mode<synchronous>, transform_indices = @transform_2, window_bounds = array<i64: 1, 32>}, {pipeline_mode = #tpu.pipeline_mode<synchronous>, transform_indices = @transform_3, window_bounds = array<i64: 4, 32, 8>}, {pipeline_mode = #tpu.pipeline_mode<synchronous>, transform_indices = @transform_4, window_bounds = array<i64: 4, 1, 8>}, {pipeline_mode = #tpu.pipeline_mode<synchronous>, transform_indices = @transform_5, window_bounds = array<i64: 4, 32, 8>}, {pipeline_mode = #tpu.pipeline_mode<synchronous>, transform_indices = @transform_6, window_bounds = array<i64: 4, 1, 8>}, {pipeline_mode = #tpu.pipeline_mode<synchronous>, transform_indices = @transform_7, window_bounds = array<i64: 4, 32, 8>}, {pipeline_mode = #tpu.pipeline_mode<synchronous>, transform_indices = @transform_8, window_bounds = array<i64: 4, 1, 8>}, {pipeline_mode = #tpu.pipeline_mode<synchronous>, transform_indices = @transform_9, window_bounds = array<i64: 4, 36, 8>}, {pipeline_mode = #tpu.pipeline_mode<synchronous>, transform_indices = @transform_10, window_bounds = array<i64: 4, 8, 128>}, {pipeline_mode = #tpu.pipeline_mode<synchronous>, transform_indices = @transform_11, window_bounds = array<i64: 9, 128>}, {pipeline_mode = #tpu.pipeline_mode<synchronous>, transform_indices = @transform_12, window_bounds = array<i64: 1, 128>}, {pipeline_mode = #tpu.pipeline_mode<synchronous>, transform_indices = @transform_13, window_bounds = array<i64: 128, 32>}, {pipeline_mode = #tpu.pipeline_mode<synchronous>, transform_indices = @transform_14, window_bounds = array<i64: 4, 32, 8>}, {pipeline_mode = #tpu.pipeline_mode<synchronous>, transform_indices = @transform_15, window_bounds = array<i64: 4, 1, 8>}, {pipeline_mode = #tpu.pipeline_mode<synchronous>, transform_indices = @transform_16, window_bounds = array<i64: 4, 32, 8>}, {pipeline_mode = #tpu.pipeline_mode<synchronous>, transform_indices = @transform_17, window_bounds = array<i64: 4, 1, 8>}, {pipeline_mode = #tpu.pipeline_mode<synchronous>, transform_indices = @transform_18, window_bounds = array<i64: 4, 32, 8>}, {pipeline_mode = #tpu.pipeline_mode<synchronous>, transform_indices = @transform_19, window_bounds = array<i64: 4, 1, 8>}, {pipeline_mode = #tpu.pipeline_mode<synchronous>, transform_indices = @transform_20, window_bounds = array<i64: 4, 36, 8>}, {pipeline_mode = #tpu.pipeline_mode<synchronous>, transform_indices = @transform_21, window_bounds = array<i64: 4, 8, 128>}, {pipeline_mode = #tpu.pipeline_mode<synchronous>, transform_indices = @transform_22, window_bounds = array<i64: 128, 32>}, {pipeline_mode = #tpu.pipeline_mode<synchronous>, transform_indices = @transform_23, window_bounds = array<i64: 4, 32, 8>}, {pipeline_mode = #tpu.pipeline_mode<synchronous>, transform_indices = @transform_24, window_bounds = array<i64: 4, 1, 8>}, {pipeline_mode = #tpu.pipeline_mode<synchronous>, transform_indices = @transform_25, window_bounds = array<i64: 4, 32, 8>}, {pipeline_mode = #tpu.pipeline_mode<synchronous>, transform_indices = @transform_26, window_bounds = array<i64: 4, 1, 8>}, {pipeline_mode = #tpu.pipeline_mode<synchronous>, transform_indices = @transform_27, window_bounds = array<i64: 4, 32, 8>}, {pipeline_mode = #tpu.pipeline_mode<synchronous>, transform_indices = @transform_28, window_bounds = array<i64: 4, 1, 8>}, {pipeline_mode = #tpu.pipeline_mode<synchronous>, transform_indices = @transform_29, window_bounds = array<i64: 4, 4, 8>}, {pipeline_mode = #tpu.pipeline_mode<synchronous>, transform_indices = @transform_30, window_bounds = array<i64: 4, 8, 128>}, {pipeline_mode = #tpu.pipeline_mode<synchronous>, transform_indices = @transform_31, window_bounds = array<i64: 128, 32>}, {pipeline_mode = #tpu.pipeline_mode<synchronous>, transform_indices = @transform_32, window_bounds = array<i64: 32, 32>}, {pipeline_mode = #tpu.pipeline_mode<synchronous>, transform_indices = @transform_33, window_bounds = array<i64: 1, 32>}, {pipeline_mode = #tpu.pipeline_mode<synchronous>, transform_indices = @transform_34, window_bounds = array<i64: 32, 128>}, {pipeline_mode = #tpu.pipeline_mode<synchronous>, transform_indices = @transform_35, window_bounds = array<i64: 128, 32>}, {pipeline_mode = #tpu.pipeline_mode<synchronous>, transform_indices = @transform_36, window_bounds = array<i64: 32, 32>}, {pipeline_mode = #tpu.pipeline_mode<synchronous>, transform_indices = @transform_37, window_bounds = array<i64: 1, 32>}, {pipeline_mode = #tpu.pipeline_mode<synchronous>, transform_indices = @transform_38, window_bounds = array<i64: 32, 128>}, {pipeline_mode = #tpu.pipeline_mode<synchronous>, transform_indices = @transform_39, window_bounds = array<i64: 128, 32>}, {pipeline_mode = #tpu.pipeline_mode<synchronous>, transform_indices = @transform_40, window_bounds = array<i64: 32, 32>}, {pipeline_mode = #tpu.pipeline_mode<synchronous>, transform_indices = @transform_41, window_bounds = array<i64: 1, 32>}, {pipeline_mode = #tpu.pipeline_mode<synchronous>, transform_indices = @transform_42, window_bounds = array<i64: 32, 128>}, {pipeline_mode = #tpu.pipeline_mode<synchronous>, transform_indices = @transform_43, window_bounds = array<i64: 128, 128>}, {pipeline_mode = #tpu.pipeline_mode<synchronous>, transform_indices = @transform_44, window_bounds = array<i64: 1, 128>}, {pipeline_mode = #tpu.pipeline_mode<synchronous>, transform_indices = @transform_45, window_bounds = array<i64: 128, 2>}, {pipeline_mode = #tpu.pipeline_mode<synchronous>, transform_indices = @transform_46, window_bounds = array<i64: 1, 2>}, {transform_indices = @transform_47, window_bounds = array<i64: 1, 1, 2>}]} {
    %c0 = arith.constant 0 : index
    %c0_0 = arith.constant 0 : index
    %c0_1 = arith.constant 0 : index
    %0 = vector.load %arg1[%c0, %c0_0, %c0_1] : memref<1x36x9xf32, #tpu.memory_space<vmem>>, vector<1x36x9xf32>
    %1 = vector.shape_cast %0 : vector<1x36x9xf32> to vector<36x9xf32>
    %c0_2 = arith.constant 0 : index
    %c0_3 = arith.constant 0 : index
    %2 = vector.load %arg2[%c0_2, %c0_3] : memref<9x32xbf16, #tpu.memory_space<vmem>>, vector<9x32xbf16>
    %3 = arith.truncf %1 : vector<36x9xf32> to vector<36x9xbf16>
    %cst = arith.constant dense<0.000000e+00> : vector<36x32xf32>
    %4 = tpu.matmul %3, %2, %cst {dimension_numbers = #tpu.dot_dimension_numbers<[1], [0], [0], [1], [0, 0, 1, 1], [], []>} : vector<36x9xbf16>, vector<9x32xbf16>, vector<36x32xf32> -> vector<36x32xf32>
    %c0_4 = arith.constant 0 : index
    %c0_5 = arith.constant 0 : index
    %5 = vector.load %arg3[%c0_4, %c0_5] : memref<1x32xf32, #tpu.memory_space<vmem>>, vector<1x32xf32>
    %6 = vector.broadcast %5 : vector<1x32xf32> to vector<36x32xf32>
    %7 = arith.addf %4, %6 : vector<36x32xf32>
    %cst_6 = arith.constant 0.000000e+00 : f32
    %8 = vector.broadcast %cst_6 : f32 to vector<36x32xf32>
    %9 = arith.maximumf %7, %8 : vector<36x32xf32>
    %c0_7 = arith.constant 0 : index
    %c0_8 = arith.constant 0 : index
    %c0_9 = arith.constant 0 : index
    %10 = vector.load %arg4[%c0_7, %c0_8, %c0_9] : memref<4x32x8xbf16, #tpu.memory_space<vmem>>, vector<1x32x8xbf16>
    %11 = vector.shape_cast %10 : vector<1x32x8xbf16> to vector<32x8xbf16>
    %12 = arith.truncf %9 : vector<36x32xf32> to vector<36x32xbf16>
    %cst_10 = arith.constant dense<0.000000e+00> : vector<36x8xf32>
    %13 = tpu.matmul %12, %11, %cst_10 {dimension_numbers = #tpu.dot_dimension_numbers<[1], [0], [0], [1], [0, 0, 1, 1], [], []>} : vector<36x32xbf16>, vector<32x8xbf16>, vector<36x8xf32> -> vector<36x8xf32>
    %c0_11 = arith.constant 0 : index
    %c0_12 = arith.constant 0 : index
    %c0_13 = arith.constant 0 : index
    %14 = vector.load %arg5[%c0_11, %c0_12, %c0_13] : memref<4x1x8xf32, #tpu.memory_space<vmem>>, vector<1x1x8xf32>
    %15 = vector.shape_cast %14 : vector<1x1x8xf32> to vector<1x8xf32>
    %16 = vector.broadcast %15 : vector<1x8xf32> to vector<36x8xf32>
    %17 = arith.addf %13, %16 : vector<36x8xf32>
    %c0_14 = arith.constant 0 : index
    %c0_15 = arith.constant 0 : index
    %c0_16 = arith.constant 0 : index
    %18 = vector.load %arg6[%c0_14, %c0_15, %c0_16] : memref<4x32x8xbf16, #tpu.memory_space<vmem>>, vector<1x32x8xbf16>
    %19 = vector.shape_cast %18 : vector<1x32x8xbf16> to vector<32x8xbf16>
    %20 = arith.truncf %9 : vector<36x32xf32> to vector<36x32xbf16>
    %cst_17 = arith.constant dense<0.000000e+00> : vector<36x8xf32>
    %21 = tpu.matmul %20, %19, %cst_17 {dimension_numbers = #tpu.dot_dimension_numbers<[1], [0], [0], [1], [0, 0, 1, 1], [], []>} : vector<36x32xbf16>, vector<32x8xbf16>, vector<36x8xf32> -> vector<36x8xf32>
    %c0_18 = arith.constant 0 : index
    %c0_19 = arith.constant 0 : index
    %c0_20 = arith.constant 0 : index
    %22 = vector.load %arg7[%c0_18, %c0_19, %c0_20] : memref<4x1x8xf32, #tpu.memory_space<vmem>>, vector<1x1x8xf32>
    %23 = vector.shape_cast %22 : vector<1x1x8xf32> to vector<1x8xf32>
    %24 = vector.broadcast %23 : vector<1x8xf32> to vector<36x8xf32>
    %25 = arith.addf %21, %24 : vector<36x8xf32>
    %c0_21 = arith.constant 0 : index
    %c0_22 = arith.constant 0 : index
    %c0_23 = arith.constant 0 : index
    %26 = vector.load %arg8[%c0_21, %c0_22, %c0_23] : memref<4x32x8xbf16, #tpu.memory_space<vmem>>, vector<1x32x8xbf16>
    %27 = vector.shape_cast %26 : vector<1x32x8xbf16> to vector<32x8xbf16>
    %28 = arith.truncf %9 : vector<36x32xf32> to vector<36x32xbf16>
    %cst_24 = arith.constant dense<0.000000e+00> : vector<36x8xf32>
    %29 = tpu.matmul %28, %27, %cst_24 {dimension_numbers = #tpu.dot_dimension_numbers<[1], [0], [0], [1], [0, 0, 1, 1], [], []>} : vector<36x32xbf16>, vector<32x8xbf16>, vector<36x8xf32> -> vector<36x8xf32>
    %c0_25 = arith.constant 0 : index
    %c0_26 = arith.constant 0 : index
    %c0_27 = arith.constant 0 : index
    %30 = vector.load %arg9[%c0_25, %c0_26, %c0_27] : memref<4x1x8xf32, #tpu.memory_space<vmem>>, vector<1x1x8xf32>
    %31 = vector.shape_cast %30 : vector<1x1x8xf32> to vector<1x8xf32>
    %32 = vector.broadcast %31 : vector<1x8xf32> to vector<36x8xf32>
    %33 = arith.addf %29, %32 : vector<36x8xf32>
    %c0_28 = arith.constant 0 : index
    %c0_29 = arith.constant 0 : index
    %c0_30 = arith.constant 0 : index
    %34 = vector.load %arg10[%c0_28, %c0_29, %c0_30] : memref<4x36x8xbf16, #tpu.memory_space<vmem>>, vector<1x36x8xbf16>
    %35 = vector.shape_cast %34 : vector<1x36x8xbf16> to vector<36x8xbf16>
    %36 = arith.truncf %17 : vector<36x8xf32> to vector<36x8xbf16>
    %37 = arith.truncf %25 : vector<36x8xf32> to vector<36x8xbf16>
    %cst_31 = arith.constant dense<0.000000e+00> : vector<36x36xf32>
    %38 = tpu.matmul %36, %37, %cst_31 {dimension_numbers = #tpu.dot_dimension_numbers<[1], [1], [0], [0], [0, 0, 1, 0], [], []>} : vector<36x8xbf16>, vector<36x8xbf16>, vector<36x36xf32> -> vector<36x36xf32>
    %39 = arith.truncf %17 : vector<36x8xf32> to vector<36x8xbf16>
    %cst_32 = arith.constant dense<0.000000e+00> : vector<36x36xf32>
    %40 = tpu.matmul %35, %39, %cst_32 {dimension_numbers = #tpu.dot_dimension_numbers<[1], [1], [0], [0], [0, 0, 1, 0], [], []>} : vector<36x8xbf16>, vector<36x8xbf16>, vector<36x36xf32> -> vector<36x36xf32>
    %41 = arith.addf %38, %40 : vector<36x36xf32>
    %cst_33 = arith.constant dense<0xFF800000> : vector<36xf32>
    %42 = vector.multi_reduction <maximumf>, %41, %cst_33 [1] : vector<36x36xf32> to vector<36xf32>
    %43 = vector.shape_cast %42 : vector<36xf32> to vector<36x1xf32>
    %44 = vector.broadcast %43 : vector<36x1xf32> to vector<36x36xf32>
    %45 = arith.subf %41, %44 : vector<36x36xf32>
    %46 = math.exp %45 : vector<36x36xf32>
    %cst_34 = arith.constant dense<0.000000e+00> : vector<36xf32>
    %47 = vector.multi_reduction <add>, %46, %cst_34 [1] : vector<36x36xf32> to vector<36xf32>
    %48 = vector.shape_cast %47 : vector<36xf32> to vector<36x1xf32>
    %49 = vector.broadcast %48 : vector<36x1xf32> to vector<36x36xf32>
    %50 = arith.divf %46, %49 : vector<36x36xf32>
    %51 = arith.truncf %50 : vector<36x36xf32> to vector<36x36xbf16>
    %52 = arith.truncf %33 : vector<36x8xf32> to vector<36x8xbf16>
    %cst_35 = arith.constant dense<0.000000e+00> : vector<36x8xf32>
    %53 = tpu.matmul %51, %52, %cst_35 {dimension_numbers = #tpu.dot_dimension_numbers<[1], [0], [0], [1], [0, 0, 1, 1], [], []>} : vector<36x36xbf16>, vector<36x8xbf16>, vector<36x8xf32> -> vector<36x8xf32>
    %cst_36 = arith.constant 0.000000e+00 : f32
    %54 = vector.broadcast %cst_36 : f32 to vector<36x8xf32>
    %55 = arith.maximumf %53, %54 : vector<36x8xf32>
    %c0_37 = arith.constant 0 : index
    %c0_38 = arith.constant 0 : index
    %c0_39 = arith.constant 0 : index
    %56 = vector.load %arg11[%c0_37, %c0_38, %c0_39] : memref<4x8x128xbf16, #tpu.memory_space<vmem>>, vector<1x8x128xbf16>
    %57 = vector.shape_cast %56 : vector<1x8x128xbf16> to vector<8x128xbf16>
    %58 = arith.truncf %55 : vector<36x8xf32> to vector<36x8xbf16>
    %cst_40 = arith.constant dense<0.000000e+00> : vector<36x128xf32>
    %59 = tpu.matmul %58, %57, %cst_40 {dimension_numbers = #tpu.dot_dimension_numbers<[1], [0], [0], [1], [0, 0, 1, 1], [], []>} : vector<36x8xbf16>, vector<8x128xbf16>, vector<36x128xf32> -> vector<36x128xf32>
    %c1 = arith.constant 1 : index
    %c0_41 = arith.constant 0 : index
    %c0_42 = arith.constant 0 : index
    %60 = vector.load %arg4[%c1, %c0_41, %c0_42] : memref<4x32x8xbf16, #tpu.memory_space<vmem>>, vector<1x32x8xbf16>
    %61 = vector.shape_cast %60 : vector<1x32x8xbf16> to vector<32x8xbf16>
    %62 = arith.truncf %9 : vector<36x32xf32> to vector<36x32xbf16>
    %cst_43 = arith.constant dense<0.000000e+00> : vector<36x8xf32>
    %63 = tpu.matmul %62, %61, %cst_43 {dimension_numbers = #tpu.dot_dimension_numbers<[1], [0], [0], [1], [0, 0, 1, 1], [], []>} : vector<36x32xbf16>, vector<32x8xbf16>, vector<36x8xf32> -> vector<36x8xf32>
    %c1_44 = arith.constant 1 : index
    %c0_45 = arith.constant 0 : index
    %c0_46 = arith.constant 0 : index
    %64 = vector.load %arg5[%c1_44, %c0_45, %c0_46] : memref<4x1x8xf32, #tpu.memory_space<vmem>>, vector<1x1x8xf32>
    %65 = vector.shape_cast %64 : vector<1x1x8xf32> to vector<1x8xf32>
    %66 = vector.broadcast %65 : vector<1x8xf32> to vector<36x8xf32>
    %67 = arith.addf %63, %66 : vector<36x8xf32>
    %c1_47 = arith.constant 1 : index
    %c0_48 = arith.constant 0 : index
    %c0_49 = arith.constant 0 : index
    %68 = vector.load %arg6[%c1_47, %c0_48, %c0_49] : memref<4x32x8xbf16, #tpu.memory_space<vmem>>, vector<1x32x8xbf16>
    %69 = vector.shape_cast %68 : vector<1x32x8xbf16> to vector<32x8xbf16>
    %70 = arith.truncf %9 : vector<36x32xf32> to vector<36x32xbf16>
    %cst_50 = arith.constant dense<0.000000e+00> : vector<36x8xf32>
    %71 = tpu.matmul %70, %69, %cst_50 {dimension_numbers = #tpu.dot_dimension_numbers<[1], [0], [0], [1], [0, 0, 1, 1], [], []>} : vector<36x32xbf16>, vector<32x8xbf16>, vector<36x8xf32> -> vector<36x8xf32>
    %c1_51 = arith.constant 1 : index
    %c0_52 = arith.constant 0 : index
    %c0_53 = arith.constant 0 : index
    %72 = vector.load %arg7[%c1_51, %c0_52, %c0_53] : memref<4x1x8xf32, #tpu.memory_space<vmem>>, vector<1x1x8xf32>
    %73 = vector.shape_cast %72 : vector<1x1x8xf32> to vector<1x8xf32>
    %74 = vector.broadcast %73 : vector<1x8xf32> to vector<36x8xf32>
    %75 = arith.addf %71, %74 : vector<36x8xf32>
    %c1_54 = arith.constant 1 : index
    %c0_55 = arith.constant 0 : index
    %c0_56 = arith.constant 0 : index
    %76 = vector.load %arg8[%c1_54, %c0_55, %c0_56] : memref<4x32x8xbf16, #tpu.memory_space<vmem>>, vector<1x32x8xbf16>
    %77 = vector.shape_cast %76 : vector<1x32x8xbf16> to vector<32x8xbf16>
    %78 = arith.truncf %9 : vector<36x32xf32> to vector<36x32xbf16>
    %cst_57 = arith.constant dense<0.000000e+00> : vector<36x8xf32>
    %79 = tpu.matmul %78, %77, %cst_57 {dimension_numbers = #tpu.dot_dimension_numbers<[1], [0], [0], [1], [0, 0, 1, 1], [], []>} : vector<36x32xbf16>, vector<32x8xbf16>, vector<36x8xf32> -> vector<36x8xf32>
    %c1_58 = arith.constant 1 : index
    %c0_59 = arith.constant 0 : index
    %c0_60 = arith.constant 0 : index
    %80 = vector.load %arg9[%c1_58, %c0_59, %c0_60] : memref<4x1x8xf32, #tpu.memory_space<vmem>>, vector<1x1x8xf32>
    %81 = vector.shape_cast %80 : vector<1x1x8xf32> to vector<1x8xf32>
    %82 = vector.broadcast %81 : vector<1x8xf32> to vector<36x8xf32>
    %83 = arith.addf %79, %82 : vector<36x8xf32>
    %c1_61 = arith.constant 1 : index
    %c0_62 = arith.constant 0 : index
    %c0_63 = arith.constant 0 : index
    %84 = vector.load %arg10[%c1_61, %c0_62, %c0_63] : memref<4x36x8xbf16, #tpu.memory_space<vmem>>, vector<1x36x8xbf16>
    %85 = vector.shape_cast %84 : vector<1x36x8xbf16> to vector<36x8xbf16>
    %86 = arith.truncf %67 : vector<36x8xf32> to vector<36x8xbf16>
    %87 = arith.truncf %75 : vector<36x8xf32> to vector<36x8xbf16>
    %cst_64 = arith.constant dense<0.000000e+00> : vector<36x36xf32>
    %88 = tpu.matmul %86, %87, %cst_64 {dimension_numbers = #tpu.dot_dimension_numbers<[1], [1], [0], [0], [0, 0, 1, 0], [], []>} : vector<36x8xbf16>, vector<36x8xbf16>, vector<36x36xf32> -> vector<36x36xf32>
    %89 = arith.truncf %67 : vector<36x8xf32> to vector<36x8xbf16>
    %cst_65 = arith.constant dense<0.000000e+00> : vector<36x36xf32>
    %90 = tpu.matmul %85, %89, %cst_65 {dimension_numbers = #tpu.dot_dimension_numbers<[1], [1], [0], [0], [0, 0, 1, 0], [], []>} : vector<36x8xbf16>, vector<36x8xbf16>, vector<36x36xf32> -> vector<36x36xf32>
    %91 = arith.addf %88, %90 : vector<36x36xf32>
    %cst_66 = arith.constant dense<0xFF800000> : vector<36xf32>
    %92 = vector.multi_reduction <maximumf>, %91, %cst_66 [1] : vector<36x36xf32> to vector<36xf32>
    %93 = vector.shape_cast %92 : vector<36xf32> to vector<36x1xf32>
    %94 = vector.broadcast %93 : vector<36x1xf32> to vector<36x36xf32>
    %95 = arith.subf %91, %94 : vector<36x36xf32>
    %96 = math.exp %95 : vector<36x36xf32>
    %cst_67 = arith.constant dense<0.000000e+00> : vector<36xf32>
    %97 = vector.multi_reduction <add>, %96, %cst_67 [1] : vector<36x36xf32> to vector<36xf32>
    %98 = vector.shape_cast %97 : vector<36xf32> to vector<36x1xf32>
    %99 = vector.broadcast %98 : vector<36x1xf32> to vector<36x36xf32>
    %100 = arith.divf %96, %99 : vector<36x36xf32>
    %101 = arith.truncf %100 : vector<36x36xf32> to vector<36x36xbf16>
    %102 = arith.truncf %83 : vector<36x8xf32> to vector<36x8xbf16>
    %cst_68 = arith.constant dense<0.000000e+00> : vector<36x8xf32>
    %103 = tpu.matmul %101, %102, %cst_68 {dimension_numbers = #tpu.dot_dimension_numbers<[1], [0], [0], [1], [0, 0, 1, 1], [], []>} : vector<36x36xbf16>, vector<36x8xbf16>, vector<36x8xf32> -> vector<36x8xf32>
    %cst_69 = arith.constant 0.000000e+00 : f32
    %104 = vector.broadcast %cst_69 : f32 to vector<36x8xf32>
    %105 = arith.maximumf %103, %104 : vector<36x8xf32>
    %c1_70 = arith.constant 1 : index
    %c0_71 = arith.constant 0 : index
    %c0_72 = arith.constant 0 : index
    %106 = vector.load %arg11[%c1_70, %c0_71, %c0_72] : memref<4x8x128xbf16, #tpu.memory_space<vmem>>, vector<1x8x128xbf16>
    %107 = vector.shape_cast %106 : vector<1x8x128xbf16> to vector<8x128xbf16>
    %108 = arith.truncf %105 : vector<36x8xf32> to vector<36x8xbf16>
    %cst_73 = arith.constant dense<0.000000e+00> : vector<36x128xf32>
    %109 = tpu.matmul %108, %107, %cst_73 {dimension_numbers = #tpu.dot_dimension_numbers<[1], [0], [0], [1], [0, 0, 1, 1], [], []>} : vector<36x8xbf16>, vector<8x128xbf16>, vector<36x128xf32> -> vector<36x128xf32>
    %110 = arith.addf %59, %109 : vector<36x128xf32>
    %c2 = arith.constant 2 : index
    %c0_74 = arith.constant 0 : index
    %c0_75 = arith.constant 0 : index
    %111 = vector.load %arg4[%c2, %c0_74, %c0_75] : memref<4x32x8xbf16, #tpu.memory_space<vmem>>, vector<1x32x8xbf16>
    %112 = vector.shape_cast %111 : vector<1x32x8xbf16> to vector<32x8xbf16>
    %113 = arith.truncf %9 : vector<36x32xf32> to vector<36x32xbf16>
    %cst_76 = arith.constant dense<0.000000e+00> : vector<36x8xf32>
    %114 = tpu.matmul %113, %112, %cst_76 {dimension_numbers = #tpu.dot_dimension_numbers<[1], [0], [0], [1], [0, 0, 1, 1], [], []>} : vector<36x32xbf16>, vector<32x8xbf16>, vector<36x8xf32> -> vector<36x8xf32>
    %c2_77 = arith.constant 2 : index
    %c0_78 = arith.constant 0 : index
    %c0_79 = arith.constant 0 : index
    %115 = vector.load %arg5[%c2_77, %c0_78, %c0_79] : memref<4x1x8xf32, #tpu.memory_space<vmem>>, vector<1x1x8xf32>
    %116 = vector.shape_cast %115 : vector<1x1x8xf32> to vector<1x8xf32>
    %117 = vector.broadcast %116 : vector<1x8xf32> to vector<36x8xf32>
    %118 = arith.addf %114, %117 : vector<36x8xf32>
    %c2_80 = arith.constant 2 : index
    %c0_81 = arith.constant 0 : index
    %c0_82 = arith.constant 0 : index
    %119 = vector.load %arg6[%c2_80, %c0_81, %c0_82] : memref<4x32x8xbf16, #tpu.memory_space<vmem>>, vector<1x32x8xbf16>
    %120 = vector.shape_cast %119 : vector<1x32x8xbf16> to vector<32x8xbf16>
    %121 = arith.truncf %9 : vector<36x32xf32> to vector<36x32xbf16>
    %cst_83 = arith.constant dense<0.000000e+00> : vector<36x8xf32>
    %122 = tpu.matmul %121, %120, %cst_83 {dimension_numbers = #tpu.dot_dimension_numbers<[1], [0], [0], [1], [0, 0, 1, 1], [], []>} : vector<36x32xbf16>, vector<32x8xbf16>, vector<36x8xf32> -> vector<36x8xf32>
    %c2_84 = arith.constant 2 : index
    %c0_85 = arith.constant 0 : index
    %c0_86 = arith.constant 0 : index
    %123 = vector.load %arg7[%c2_84, %c0_85, %c0_86] : memref<4x1x8xf32, #tpu.memory_space<vmem>>, vector<1x1x8xf32>
    %124 = vector.shape_cast %123 : vector<1x1x8xf32> to vector<1x8xf32>
    %125 = vector.broadcast %124 : vector<1x8xf32> to vector<36x8xf32>
    %126 = arith.addf %122, %125 : vector<36x8xf32>
    %c2_87 = arith.constant 2 : index
    %c0_88 = arith.constant 0 : index
    %c0_89 = arith.constant 0 : index
    %127 = vector.load %arg8[%c2_87, %c0_88, %c0_89] : memref<4x32x8xbf16, #tpu.memory_space<vmem>>, vector<1x32x8xbf16>
    %128 = vector.shape_cast %127 : vector<1x32x8xbf16> to vector<32x8xbf16>
    %129 = arith.truncf %9 : vector<36x32xf32> to vector<36x32xbf16>
    %cst_90 = arith.constant dense<0.000000e+00> : vector<36x8xf32>
    %130 = tpu.matmul %129, %128, %cst_90 {dimension_numbers = #tpu.dot_dimension_numbers<[1], [0], [0], [1], [0, 0, 1, 1], [], []>} : vector<36x32xbf16>, vector<32x8xbf16>, vector<36x8xf32> -> vector<36x8xf32>
    %c2_91 = arith.constant 2 : index
    %c0_92 = arith.constant 0 : index
    %c0_93 = arith.constant 0 : index
    %131 = vector.load %arg9[%c2_91, %c0_92, %c0_93] : memref<4x1x8xf32, #tpu.memory_space<vmem>>, vector<1x1x8xf32>
    %132 = vector.shape_cast %131 : vector<1x1x8xf32> to vector<1x8xf32>
    %133 = vector.broadcast %132 : vector<1x8xf32> to vector<36x8xf32>
    %134 = arith.addf %130, %133 : vector<36x8xf32>
    %c2_94 = arith.constant 2 : index
    %c0_95 = arith.constant 0 : index
    %c0_96 = arith.constant 0 : index
    %135 = vector.load %arg10[%c2_94, %c0_95, %c0_96] : memref<4x36x8xbf16, #tpu.memory_space<vmem>>, vector<1x36x8xbf16>
    %136 = vector.shape_cast %135 : vector<1x36x8xbf16> to vector<36x8xbf16>
    %137 = arith.truncf %118 : vector<36x8xf32> to vector<36x8xbf16>
    %138 = arith.truncf %126 : vector<36x8xf32> to vector<36x8xbf16>
    %cst_97 = arith.constant dense<0.000000e+00> : vector<36x36xf32>
    %139 = tpu.matmul %137, %138, %cst_97 {dimension_numbers = #tpu.dot_dimension_numbers<[1], [1], [0], [0], [0, 0, 1, 0], [], []>} : vector<36x8xbf16>, vector<36x8xbf16>, vector<36x36xf32> -> vector<36x36xf32>
    %140 = arith.truncf %118 : vector<36x8xf32> to vector<36x8xbf16>
    %cst_98 = arith.constant dense<0.000000e+00> : vector<36x36xf32>
    %141 = tpu.matmul %136, %140, %cst_98 {dimension_numbers = #tpu.dot_dimension_numbers<[1], [1], [0], [0], [0, 0, 1, 0], [], []>} : vector<36x8xbf16>, vector<36x8xbf16>, vector<36x36xf32> -> vector<36x36xf32>
    %142 = arith.addf %139, %141 : vector<36x36xf32>
    %cst_99 = arith.constant dense<0xFF800000> : vector<36xf32>
    %143 = vector.multi_reduction <maximumf>, %142, %cst_99 [1] : vector<36x36xf32> to vector<36xf32>
    %144 = vector.shape_cast %143 : vector<36xf32> to vector<36x1xf32>
    %145 = vector.broadcast %144 : vector<36x1xf32> to vector<36x36xf32>
    %146 = arith.subf %142, %145 : vector<36x36xf32>
    %147 = math.exp %146 : vector<36x36xf32>
    %cst_100 = arith.constant dense<0.000000e+00> : vector<36xf32>
    %148 = vector.multi_reduction <add>, %147, %cst_100 [1] : vector<36x36xf32> to vector<36xf32>
    %149 = vector.shape_cast %148 : vector<36xf32> to vector<36x1xf32>
    %150 = vector.broadcast %149 : vector<36x1xf32> to vector<36x36xf32>
    %151 = arith.divf %147, %150 : vector<36x36xf32>
    %152 = arith.truncf %151 : vector<36x36xf32> to vector<36x36xbf16>
    %153 = arith.truncf %134 : vector<36x8xf32> to vector<36x8xbf16>
    %cst_101 = arith.constant dense<0.000000e+00> : vector<36x8xf32>
    %154 = tpu.matmul %152, %153, %cst_101 {dimension_numbers = #tpu.dot_dimension_numbers<[1], [0], [0], [1], [0, 0, 1, 1], [], []>} : vector<36x36xbf16>, vector<36x8xbf16>, vector<36x8xf32> -> vector<36x8xf32>
    %cst_102 = arith.constant 0.000000e+00 : f32
    %155 = vector.broadcast %cst_102 : f32 to vector<36x8xf32>
    %156 = arith.maximumf %154, %155 : vector<36x8xf32>
    %c2_103 = arith.constant 2 : index
    %c0_104 = arith.constant 0 : index
    %c0_105 = arith.constant 0 : index
    %157 = vector.load %arg11[%c2_103, %c0_104, %c0_105] : memref<4x8x128xbf16, #tpu.memory_space<vmem>>, vector<1x8x128xbf16>
    %158 = vector.shape_cast %157 : vector<1x8x128xbf16> to vector<8x128xbf16>
    %159 = arith.truncf %156 : vector<36x8xf32> to vector<36x8xbf16>
    %cst_106 = arith.constant dense<0.000000e+00> : vector<36x128xf32>
    %160 = tpu.matmul %159, %158, %cst_106 {dimension_numbers = #tpu.dot_dimension_numbers<[1], [0], [0], [1], [0, 0, 1, 1], [], []>} : vector<36x8xbf16>, vector<8x128xbf16>, vector<36x128xf32> -> vector<36x128xf32>
    %161 = arith.addf %110, %160 : vector<36x128xf32>
    %c3 = arith.constant 3 : index
    %c0_107 = arith.constant 0 : index
    %c0_108 = arith.constant 0 : index
    %162 = vector.load %arg4[%c3, %c0_107, %c0_108] : memref<4x32x8xbf16, #tpu.memory_space<vmem>>, vector<1x32x8xbf16>
    %163 = vector.shape_cast %162 : vector<1x32x8xbf16> to vector<32x8xbf16>
    %164 = arith.truncf %9 : vector<36x32xf32> to vector<36x32xbf16>
    %cst_109 = arith.constant dense<0.000000e+00> : vector<36x8xf32>
    %165 = tpu.matmul %164, %163, %cst_109 {dimension_numbers = #tpu.dot_dimension_numbers<[1], [0], [0], [1], [0, 0, 1, 1], [], []>} : vector<36x32xbf16>, vector<32x8xbf16>, vector<36x8xf32> -> vector<36x8xf32>
    %c3_110 = arith.constant 3 : index
    %c0_111 = arith.constant 0 : index
    %c0_112 = arith.constant 0 : index
    %166 = vector.load %arg5[%c3_110, %c0_111, %c0_112] : memref<4x1x8xf32, #tpu.memory_space<vmem>>, vector<1x1x8xf32>
    %167 = vector.shape_cast %166 : vector<1x1x8xf32> to vector<1x8xf32>
    %168 = vector.broadcast %167 : vector<1x8xf32> to vector<36x8xf32>
    %169 = arith.addf %165, %168 : vector<36x8xf32>
    %c3_113 = arith.constant 3 : index
    %c0_114 = arith.constant 0 : index
    %c0_115 = arith.constant 0 : index
    %170 = vector.load %arg6[%c3_113, %c0_114, %c0_115] : memref<4x32x8xbf16, #tpu.memory_space<vmem>>, vector<1x32x8xbf16>
    %171 = vector.shape_cast %170 : vector<1x32x8xbf16> to vector<32x8xbf16>
    %172 = arith.truncf %9 : vector<36x32xf32> to vector<36x32xbf16>
    %cst_116 = arith.constant dense<0.000000e+00> : vector<36x8xf32>
    %173 = tpu.matmul %172, %171, %cst_116 {dimension_numbers = #tpu.dot_dimension_numbers<[1], [0], [0], [1], [0, 0, 1, 1], [], []>} : vector<36x32xbf16>, vector<32x8xbf16>, vector<36x8xf32> -> vector<36x8xf32>
    %c3_117 = arith.constant 3 : index
    %c0_118 = arith.constant 0 : index
    %c0_119 = arith.constant 0 : index
    %174 = vector.load %arg7[%c3_117, %c0_118, %c0_119] : memref<4x1x8xf32, #tpu.memory_space<vmem>>, vector<1x1x8xf32>
    %175 = vector.shape_cast %174 : vector<1x1x8xf32> to vector<1x8xf32>
    %176 = vector.broadcast %175 : vector<1x8xf32> to vector<36x8xf32>
    %177 = arith.addf %173, %176 : vector<36x8xf32>
    %c3_120 = arith.constant 3 : index
    %c0_121 = arith.constant 0 : index
    %c0_122 = arith.constant 0 : index
    %178 = vector.load %arg8[%c3_120, %c0_121, %c0_122] : memref<4x32x8xbf16, #tpu.memory_space<vmem>>, vector<1x32x8xbf16>
    %179 = vector.shape_cast %178 : vector<1x32x8xbf16> to vector<32x8xbf16>
    %180 = arith.truncf %9 : vector<36x32xf32> to vector<36x32xbf16>
    %cst_123 = arith.constant dense<0.000000e+00> : vector<36x8xf32>
    %181 = tpu.matmul %180, %179, %cst_123 {dimension_numbers = #tpu.dot_dimension_numbers<[1], [0], [0], [1], [0, 0, 1, 1], [], []>} : vector<36x32xbf16>, vector<32x8xbf16>, vector<36x8xf32> -> vector<36x8xf32>
    %c3_124 = arith.constant 3 : index
    %c0_125 = arith.constant 0 : index
    %c0_126 = arith.constant 0 : index
    %182 = vector.load %arg9[%c3_124, %c0_125, %c0_126] : memref<4x1x8xf32, #tpu.memory_space<vmem>>, vector<1x1x8xf32>
    %183 = vector.shape_cast %182 : vector<1x1x8xf32> to vector<1x8xf32>
    %184 = vector.broadcast %183 : vector<1x8xf32> to vector<36x8xf32>
    %185 = arith.addf %181, %184 : vector<36x8xf32>
    %c3_127 = arith.constant 3 : index
    %c0_128 = arith.constant 0 : index
    %c0_129 = arith.constant 0 : index
    %186 = vector.load %arg10[%c3_127, %c0_128, %c0_129] : memref<4x36x8xbf16, #tpu.memory_space<vmem>>, vector<1x36x8xbf16>
    %187 = vector.shape_cast %186 : vector<1x36x8xbf16> to vector<36x8xbf16>
    %188 = arith.truncf %169 : vector<36x8xf32> to vector<36x8xbf16>
    %189 = arith.truncf %177 : vector<36x8xf32> to vector<36x8xbf16>
    %cst_130 = arith.constant dense<0.000000e+00> : vector<36x36xf32>
    %190 = tpu.matmul %188, %189, %cst_130 {dimension_numbers = #tpu.dot_dimension_numbers<[1], [1], [0], [0], [0, 0, 1, 0], [], []>} : vector<36x8xbf16>, vector<36x8xbf16>, vector<36x36xf32> -> vector<36x36xf32>
    %191 = arith.truncf %169 : vector<36x8xf32> to vector<36x8xbf16>
    %cst_131 = arith.constant dense<0.000000e+00> : vector<36x36xf32>
    %192 = tpu.matmul %187, %191, %cst_131 {dimension_numbers = #tpu.dot_dimension_numbers<[1], [1], [0], [0], [0, 0, 1, 0], [], []>} : vector<36x8xbf16>, vector<36x8xbf16>, vector<36x36xf32> -> vector<36x36xf32>
    %193 = arith.addf %190, %192 : vector<36x36xf32>
    %cst_132 = arith.constant dense<0xFF800000> : vector<36xf32>
    %194 = vector.multi_reduction <maximumf>, %193, %cst_132 [1] : vector<36x36xf32> to vector<36xf32>
    %195 = vector.shape_cast %194 : vector<36xf32> to vector<36x1xf32>
    %196 = vector.broadcast %195 : vector<36x1xf32> to vector<36x36xf32>
    %197 = arith.subf %193, %196 : vector<36x36xf32>
    %198 = math.exp %197 : vector<36x36xf32>
    %cst_133 = arith.constant dense<0.000000e+00> : vector<36xf32>
    %199 = vector.multi_reduction <add>, %198, %cst_133 [1] : vector<36x36xf32> to vector<36xf32>
    %200 = vector.shape_cast %199 : vector<36xf32> to vector<36x1xf32>
    %201 = vector.broadcast %200 : vector<36x1xf32> to vector<36x36xf32>
    %202 = arith.divf %198, %201 : vector<36x36xf32>
    %203 = arith.truncf %202 : vector<36x36xf32> to vector<36x36xbf16>
    %204 = arith.truncf %185 : vector<36x8xf32> to vector<36x8xbf16>
    %cst_134 = arith.constant dense<0.000000e+00> : vector<36x8xf32>
    %205 = tpu.matmul %203, %204, %cst_134 {dimension_numbers = #tpu.dot_dimension_numbers<[1], [0], [0], [1], [0, 0, 1, 1], [], []>} : vector<36x36xbf16>, vector<36x8xbf16>, vector<36x8xf32> -> vector<36x8xf32>
    %cst_135 = arith.constant 0.000000e+00 : f32
    %206 = vector.broadcast %cst_135 : f32 to vector<36x8xf32>
    %207 = arith.maximumf %205, %206 : vector<36x8xf32>
    %c3_136 = arith.constant 3 : index
    %c0_137 = arith.constant 0 : index
    %c0_138 = arith.constant 0 : index
    %208 = vector.load %arg11[%c3_136, %c0_137, %c0_138] : memref<4x8x128xbf16, #tpu.memory_space<vmem>>, vector<1x8x128xbf16>
    %209 = vector.shape_cast %208 : vector<1x8x128xbf16> to vector<8x128xbf16>
    %210 = arith.truncf %207 : vector<36x8xf32> to vector<36x8xbf16>
    %cst_139 = arith.constant dense<0.000000e+00> : vector<36x128xf32>
    %211 = tpu.matmul %210, %209, %cst_139 {dimension_numbers = #tpu.dot_dimension_numbers<[1], [0], [0], [1], [0, 0, 1, 1], [], []>} : vector<36x8xbf16>, vector<8x128xbf16>, vector<36x128xf32> -> vector<36x128xf32>
    %212 = arith.addf %161, %211 : vector<36x128xf32>
    %c0_140 = arith.constant 0 : index
    %c0_141 = arith.constant 0 : index
    %213 = vector.load %arg12[%c0_140, %c0_141] : memref<9x128xbf16, #tpu.memory_space<vmem>>, vector<9x128xbf16>
    %214 = arith.truncf %1 : vector<36x9xf32> to vector<36x9xbf16>
    %cst_142 = arith.constant dense<0.000000e+00> : vector<36x128xf32>
    %215 = tpu.matmul %214, %213, %cst_142 {dimension_numbers = #tpu.dot_dimension_numbers<[1], [0], [0], [1], [0, 0, 1, 1], [], []>} : vector<36x9xbf16>, vector<9x128xbf16>, vector<36x128xf32> -> vector<36x128xf32>
    %c0_143 = arith.constant 0 : index
    %c0_144 = arith.constant 0 : index
    %216 = vector.load %arg13[%c0_143, %c0_144] : memref<1x128xf32, #tpu.memory_space<vmem>>, vector<1x128xf32>
    %217 = vector.broadcast %216 : vector<1x128xf32> to vector<36x128xf32>
    %218 = arith.addf %215, %217 : vector<36x128xf32>
    %219 = arith.addf %212, %218 : vector<36x128xf32>
    %cst_145 = arith.constant 0.000000e+00 : f32
    %220 = vector.broadcast %cst_145 : f32 to vector<36x128xf32>
    %221 = arith.maximumf %219, %220 : vector<36x128xf32>
    %c0_146 = arith.constant 0 : index
    %c0_147 = arith.constant 0 : index
    %222 = vector.load %arg14[%c0_146, %c0_147] : memref<128x32xbf16, #tpu.memory_space<vmem>>, vector<128x32xbf16>
    %223 = arith.truncf %221 : vector<36x128xf32> to vector<36x128xbf16>
    %cst_148 = arith.constant dense<0.000000e+00> : vector<36x32xf32>
    %224 = tpu.matmul %223, %222, %cst_148 {dimension_numbers = #tpu.dot_dimension_numbers<[1], [0], [0], [1], [0, 0, 1, 1], [], []>} : vector<36x128xbf16>, vector<128x32xbf16>, vector<36x32xf32> -> vector<36x32xf32>
    %cst_149 = arith.constant 0.000000e+00 : f32
    %225 = vector.broadcast %cst_149 : f32 to vector<36x32xf32>
    %226 = arith.maximumf %224, %225 : vector<36x32xf32>
    %c0_150 = arith.constant 0 : index
    %c0_151 = arith.constant 0 : index
    %c0_152 = arith.constant 0 : index
    %227 = vector.load %arg15[%c0_150, %c0_151, %c0_152] : memref<4x32x8xbf16, #tpu.memory_space<vmem>>, vector<1x32x8xbf16>
    %228 = vector.shape_cast %227 : vector<1x32x8xbf16> to vector<32x8xbf16>
    %229 = arith.truncf %226 : vector<36x32xf32> to vector<36x32xbf16>
    %cst_153 = arith.constant dense<0.000000e+00> : vector<36x8xf32>
    %230 = tpu.matmul %229, %228, %cst_153 {dimension_numbers = #tpu.dot_dimension_numbers<[1], [0], [0], [1], [0, 0, 1, 1], [], []>} : vector<36x32xbf16>, vector<32x8xbf16>, vector<36x8xf32> -> vector<36x8xf32>
    %c0_154 = arith.constant 0 : index
    %c0_155 = arith.constant 0 : index
    %c0_156 = arith.constant 0 : index
    %231 = vector.load %arg16[%c0_154, %c0_155, %c0_156] : memref<4x1x8xf32, #tpu.memory_space<vmem>>, vector<1x1x8xf32>
    %232 = vector.shape_cast %231 : vector<1x1x8xf32> to vector<1x8xf32>
    %233 = vector.broadcast %232 : vector<1x8xf32> to vector<36x8xf32>
    %234 = arith.addf %230, %233 : vector<36x8xf32>
    %c0_157 = arith.constant 0 : index
    %c0_158 = arith.constant 0 : index
    %c0_159 = arith.constant 0 : index
    %235 = vector.load %arg17[%c0_157, %c0_158, %c0_159] : memref<4x32x8xbf16, #tpu.memory_space<vmem>>, vector<1x32x8xbf16>
    %236 = vector.shape_cast %235 : vector<1x32x8xbf16> to vector<32x8xbf16>
    %237 = arith.truncf %226 : vector<36x32xf32> to vector<36x32xbf16>
    %cst_160 = arith.constant dense<0.000000e+00> : vector<36x8xf32>
    %238 = tpu.matmul %237, %236, %cst_160 {dimension_numbers = #tpu.dot_dimension_numbers<[1], [0], [0], [1], [0, 0, 1, 1], [], []>} : vector<36x32xbf16>, vector<32x8xbf16>, vector<36x8xf32> -> vector<36x8xf32>
    %c0_161 = arith.constant 0 : index
    %c0_162 = arith.constant 0 : index
    %c0_163 = arith.constant 0 : index
    %239 = vector.load %arg18[%c0_161, %c0_162, %c0_163] : memref<4x1x8xf32, #tpu.memory_space<vmem>>, vector<1x1x8xf32>
    %240 = vector.shape_cast %239 : vector<1x1x8xf32> to vector<1x8xf32>
    %241 = vector.broadcast %240 : vector<1x8xf32> to vector<36x8xf32>
    %242 = arith.addf %238, %241 : vector<36x8xf32>
    %c0_164 = arith.constant 0 : index
    %c0_165 = arith.constant 0 : index
    %c0_166 = arith.constant 0 : index
    %243 = vector.load %arg19[%c0_164, %c0_165, %c0_166] : memref<4x32x8xbf16, #tpu.memory_space<vmem>>, vector<1x32x8xbf16>
    %244 = vector.shape_cast %243 : vector<1x32x8xbf16> to vector<32x8xbf16>
    %245 = arith.truncf %226 : vector<36x32xf32> to vector<36x32xbf16>
    %cst_167 = arith.constant dense<0.000000e+00> : vector<36x8xf32>
    %246 = tpu.matmul %245, %244, %cst_167 {dimension_numbers = #tpu.dot_dimension_numbers<[1], [0], [0], [1], [0, 0, 1, 1], [], []>} : vector<36x32xbf16>, vector<32x8xbf16>, vector<36x8xf32> -> vector<36x8xf32>
    %c0_168 = arith.constant 0 : index
    %c0_169 = arith.constant 0 : index
    %c0_170 = arith.constant 0 : index
    %247 = vector.load %arg20[%c0_168, %c0_169, %c0_170] : memref<4x1x8xf32, #tpu.memory_space<vmem>>, vector<1x1x8xf32>
    %248 = vector.shape_cast %247 : vector<1x1x8xf32> to vector<1x8xf32>
    %249 = vector.broadcast %248 : vector<1x8xf32> to vector<36x8xf32>
    %250 = arith.addf %246, %249 : vector<36x8xf32>
    %c0_171 = arith.constant 0 : index
    %c0_172 = arith.constant 0 : index
    %c0_173 = arith.constant 0 : index
    %251 = vector.load %arg21[%c0_171, %c0_172, %c0_173] : memref<4x36x8xbf16, #tpu.memory_space<vmem>>, vector<1x36x8xbf16>
    %252 = vector.shape_cast %251 : vector<1x36x8xbf16> to vector<36x8xbf16>
    %253 = arith.truncf %234 : vector<36x8xf32> to vector<36x8xbf16>
    %254 = arith.truncf %242 : vector<36x8xf32> to vector<36x8xbf16>
    %cst_174 = arith.constant dense<0.000000e+00> : vector<36x36xf32>
    %255 = tpu.matmul %253, %254, %cst_174 {dimension_numbers = #tpu.dot_dimension_numbers<[1], [1], [0], [0], [0, 0, 1, 0], [], []>} : vector<36x8xbf16>, vector<36x8xbf16>, vector<36x36xf32> -> vector<36x36xf32>
    %256 = arith.truncf %234 : vector<36x8xf32> to vector<36x8xbf16>
    %cst_175 = arith.constant dense<0.000000e+00> : vector<36x36xf32>
    %257 = tpu.matmul %252, %256, %cst_175 {dimension_numbers = #tpu.dot_dimension_numbers<[1], [1], [0], [0], [0, 0, 1, 0], [], []>} : vector<36x8xbf16>, vector<36x8xbf16>, vector<36x36xf32> -> vector<36x36xf32>
    %258 = arith.addf %255, %257 : vector<36x36xf32>
    %cst_176 = arith.constant dense<0xFF800000> : vector<36xf32>
    %259 = vector.multi_reduction <maximumf>, %258, %cst_176 [1] : vector<36x36xf32> to vector<36xf32>
    %260 = vector.shape_cast %259 : vector<36xf32> to vector<36x1xf32>
    %261 = vector.broadcast %260 : vector<36x1xf32> to vector<36x36xf32>
    %262 = arith.subf %258, %261 : vector<36x36xf32>
    %263 = math.exp %262 : vector<36x36xf32>
    %cst_177 = arith.constant dense<0.000000e+00> : vector<36xf32>
    %264 = vector.multi_reduction <add>, %263, %cst_177 [1] : vector<36x36xf32> to vector<36xf32>
    %265 = vector.shape_cast %264 : vector<36xf32> to vector<36x1xf32>
    %266 = vector.broadcast %265 : vector<36x1xf32> to vector<36x36xf32>
    %267 = arith.divf %263, %266 : vector<36x36xf32>
    %268 = arith.truncf %267 : vector<36x36xf32> to vector<36x36xbf16>
    %269 = arith.truncf %250 : vector<36x8xf32> to vector<36x8xbf16>
    %cst_178 = arith.constant dense<0.000000e+00> : vector<36x8xf32>
    %270 = tpu.matmul %268, %269, %cst_178 {dimension_numbers = #tpu.dot_dimension_numbers<[1], [0], [0], [1], [0, 0, 1, 1], [], []>} : vector<36x36xbf16>, vector<36x8xbf16>, vector<36x8xf32> -> vector<36x8xf32>
    %cst_179 = arith.constant 0.000000e+00 : f32
    %271 = vector.broadcast %cst_179 : f32 to vector<36x8xf32>
    %272 = arith.maximumf %270, %271 : vector<36x8xf32>
    %c0_180 = arith.constant 0 : index
    %c0_181 = arith.constant 0 : index
    %c0_182 = arith.constant 0 : index
    %273 = vector.load %arg22[%c0_180, %c0_181, %c0_182] : memref<4x8x128xbf16, #tpu.memory_space<vmem>>, vector<1x8x128xbf16>
    %274 = vector.shape_cast %273 : vector<1x8x128xbf16> to vector<8x128xbf16>
    %275 = arith.truncf %272 : vector<36x8xf32> to vector<36x8xbf16>
    %cst_183 = arith.constant dense<0.000000e+00> : vector<36x128xf32>
    %276 = tpu.matmul %275, %274, %cst_183 {dimension_numbers = #tpu.dot_dimension_numbers<[1], [0], [0], [1], [0, 0, 1, 1], [], []>} : vector<36x8xbf16>, vector<8x128xbf16>, vector<36x128xf32> -> vector<36x128xf32>
    %c1_184 = arith.constant 1 : index
    %c0_185 = arith.constant 0 : index
    %c0_186 = arith.constant 0 : index
    %277 = vector.load %arg15[%c1_184, %c0_185, %c0_186] : memref<4x32x8xbf16, #tpu.memory_space<vmem>>, vector<1x32x8xbf16>
    %278 = vector.shape_cast %277 : vector<1x32x8xbf16> to vector<32x8xbf16>
    %279 = arith.truncf %226 : vector<36x32xf32> to vector<36x32xbf16>
    %cst_187 = arith.constant dense<0.000000e+00> : vector<36x8xf32>
    %280 = tpu.matmul %279, %278, %cst_187 {dimension_numbers = #tpu.dot_dimension_numbers<[1], [0], [0], [1], [0, 0, 1, 1], [], []>} : vector<36x32xbf16>, vector<32x8xbf16>, vector<36x8xf32> -> vector<36x8xf32>
    %c1_188 = arith.constant 1 : index
    %c0_189 = arith.constant 0 : index
    %c0_190 = arith.constant 0 : index
    %281 = vector.load %arg16[%c1_188, %c0_189, %c0_190] : memref<4x1x8xf32, #tpu.memory_space<vmem>>, vector<1x1x8xf32>
    %282 = vector.shape_cast %281 : vector<1x1x8xf32> to vector<1x8xf32>
    %283 = vector.broadcast %282 : vector<1x8xf32> to vector<36x8xf32>
    %284 = arith.addf %280, %283 : vector<36x8xf32>
    %c1_191 = arith.constant 1 : index
    %c0_192 = arith.constant 0 : index
    %c0_193 = arith.constant 0 : index
    %285 = vector.load %arg17[%c1_191, %c0_192, %c0_193] : memref<4x32x8xbf16, #tpu.memory_space<vmem>>, vector<1x32x8xbf16>
    %286 = vector.shape_cast %285 : vector<1x32x8xbf16> to vector<32x8xbf16>
    %287 = arith.truncf %226 : vector<36x32xf32> to vector<36x32xbf16>
    %cst_194 = arith.constant dense<0.000000e+00> : vector<36x8xf32>
    %288 = tpu.matmul %287, %286, %cst_194 {dimension_numbers = #tpu.dot_dimension_numbers<[1], [0], [0], [1], [0, 0, 1, 1], [], []>} : vector<36x32xbf16>, vector<32x8xbf16>, vector<36x8xf32> -> vector<36x8xf32>
    %c1_195 = arith.constant 1 : index
    %c0_196 = arith.constant 0 : index
    %c0_197 = arith.constant 0 : index
    %289 = vector.load %arg18[%c1_195, %c0_196, %c0_197] : memref<4x1x8xf32, #tpu.memory_space<vmem>>, vector<1x1x8xf32>
    %290 = vector.shape_cast %289 : vector<1x1x8xf32> to vector<1x8xf32>
    %291 = vector.broadcast %290 : vector<1x8xf32> to vector<36x8xf32>
    %292 = arith.addf %288, %291 : vector<36x8xf32>
    %c1_198 = arith.constant 1 : index
    %c0_199 = arith.constant 0 : index
    %c0_200 = arith.constant 0 : index
    %293 = vector.load %arg19[%c1_198, %c0_199, %c0_200] : memref<4x32x8xbf16, #tpu.memory_space<vmem>>, vector<1x32x8xbf16>
    %294 = vector.shape_cast %293 : vector<1x32x8xbf16> to vector<32x8xbf16>
    %295 = arith.truncf %226 : vector<36x32xf32> to vector<36x32xbf16>
    %cst_201 = arith.constant dense<0.000000e+00> : vector<36x8xf32>
    %296 = tpu.matmul %295, %294, %cst_201 {dimension_numbers = #tpu.dot_dimension_numbers<[1], [0], [0], [1], [0, 0, 1, 1], [], []>} : vector<36x32xbf16>, vector<32x8xbf16>, vector<36x8xf32> -> vector<36x8xf32>
    %c1_202 = arith.constant 1 : index
    %c0_203 = arith.constant 0 : index
    %c0_204 = arith.constant 0 : index
    %297 = vector.load %arg20[%c1_202, %c0_203, %c0_204] : memref<4x1x8xf32, #tpu.memory_space<vmem>>, vector<1x1x8xf32>
    %298 = vector.shape_cast %297 : vector<1x1x8xf32> to vector<1x8xf32>
    %299 = vector.broadcast %298 : vector<1x8xf32> to vector<36x8xf32>
    %300 = arith.addf %296, %299 : vector<36x8xf32>
    %c1_205 = arith.constant 1 : index
    %c0_206 = arith.constant 0 : index
    %c0_207 = arith.constant 0 : index
    %301 = vector.load %arg21[%c1_205, %c0_206, %c0_207] : memref<4x36x8xbf16, #tpu.memory_space<vmem>>, vector<1x36x8xbf16>
    %302 = vector.shape_cast %301 : vector<1x36x8xbf16> to vector<36x8xbf16>
    %303 = arith.truncf %284 : vector<36x8xf32> to vector<36x8xbf16>
    %304 = arith.truncf %292 : vector<36x8xf32> to vector<36x8xbf16>
    %cst_208 = arith.constant dense<0.000000e+00> : vector<36x36xf32>
    %305 = tpu.matmul %303, %304, %cst_208 {dimension_numbers = #tpu.dot_dimension_numbers<[1], [1], [0], [0], [0, 0, 1, 0], [], []>} : vector<36x8xbf16>, vector<36x8xbf16>, vector<36x36xf32> -> vector<36x36xf32>
    %306 = arith.truncf %284 : vector<36x8xf32> to vector<36x8xbf16>
    %cst_209 = arith.constant dense<0.000000e+00> : vector<36x36xf32>
    %307 = tpu.matmul %302, %306, %cst_209 {dimension_numbers = #tpu.dot_dimension_numbers<[1], [1], [0], [0], [0, 0, 1, 0], [], []>} : vector<36x8xbf16>, vector<36x8xbf16>, vector<36x36xf32> -> vector<36x36xf32>
    %308 = arith.addf %305, %307 : vector<36x36xf32>
    %cst_210 = arith.constant dense<0xFF800000> : vector<36xf32>
    %309 = vector.multi_reduction <maximumf>, %308, %cst_210 [1] : vector<36x36xf32> to vector<36xf32>
    %310 = vector.shape_cast %309 : vector<36xf32> to vector<36x1xf32>
    %311 = vector.broadcast %310 : vector<36x1xf32> to vector<36x36xf32>
    %312 = arith.subf %308, %311 : vector<36x36xf32>
    %313 = math.exp %312 : vector<36x36xf32>
    %cst_211 = arith.constant dense<0.000000e+00> : vector<36xf32>
    %314 = vector.multi_reduction <add>, %313, %cst_211 [1] : vector<36x36xf32> to vector<36xf32>
    %315 = vector.shape_cast %314 : vector<36xf32> to vector<36x1xf32>
    %316 = vector.broadcast %315 : vector<36x1xf32> to vector<36x36xf32>
    %317 = arith.divf %313, %316 : vector<36x36xf32>
    %318 = arith.truncf %317 : vector<36x36xf32> to vector<36x36xbf16>
    %319 = arith.truncf %300 : vector<36x8xf32> to vector<36x8xbf16>
    %cst_212 = arith.constant dense<0.000000e+00> : vector<36x8xf32>
    %320 = tpu.matmul %318, %319, %cst_212 {dimension_numbers = #tpu.dot_dimension_numbers<[1], [0], [0], [1], [0, 0, 1, 1], [], []>} : vector<36x36xbf16>, vector<36x8xbf16>, vector<36x8xf32> -> vector<36x8xf32>
    %cst_213 = arith.constant 0.000000e+00 : f32
    %321 = vector.broadcast %cst_213 : f32 to vector<36x8xf32>
    %322 = arith.maximumf %320, %321 : vector<36x8xf32>
    %c1_214 = arith.constant 1 : index
    %c0_215 = arith.constant 0 : index
    %c0_216 = arith.constant 0 : index
    %323 = vector.load %arg22[%c1_214, %c0_215, %c0_216] : memref<4x8x128xbf16, #tpu.memory_space<vmem>>, vector<1x8x128xbf16>
    %324 = vector.shape_cast %323 : vector<1x8x128xbf16> to vector<8x128xbf16>
    %325 = arith.truncf %322 : vector<36x8xf32> to vector<36x8xbf16>
    %cst_217 = arith.constant dense<0.000000e+00> : vector<36x128xf32>
    %326 = tpu.matmul %325, %324, %cst_217 {dimension_numbers = #tpu.dot_dimension_numbers<[1], [0], [0], [1], [0, 0, 1, 1], [], []>} : vector<36x8xbf16>, vector<8x128xbf16>, vector<36x128xf32> -> vector<36x128xf32>
    %327 = arith.addf %276, %326 : vector<36x128xf32>
    %c2_218 = arith.constant 2 : index
    %c0_219 = arith.constant 0 : index
    %c0_220 = arith.constant 0 : index
    %328 = vector.load %arg15[%c2_218, %c0_219, %c0_220] : memref<4x32x8xbf16, #tpu.memory_space<vmem>>, vector<1x32x8xbf16>
    %329 = vector.shape_cast %328 : vector<1x32x8xbf16> to vector<32x8xbf16>
    %330 = arith.truncf %226 : vector<36x32xf32> to vector<36x32xbf16>
    %cst_221 = arith.constant dense<0.000000e+00> : vector<36x8xf32>
    %331 = tpu.matmul %330, %329, %cst_221 {dimension_numbers = #tpu.dot_dimension_numbers<[1], [0], [0], [1], [0, 0, 1, 1], [], []>} : vector<36x32xbf16>, vector<32x8xbf16>, vector<36x8xf32> -> vector<36x8xf32>
    %c2_222 = arith.constant 2 : index
    %c0_223 = arith.constant 0 : index
    %c0_224 = arith.constant 0 : index
    %332 = vector.load %arg16[%c2_222, %c0_223, %c0_224] : memref<4x1x8xf32, #tpu.memory_space<vmem>>, vector<1x1x8xf32>
    %333 = vector.shape_cast %332 : vector<1x1x8xf32> to vector<1x8xf32>
    %334 = vector.broadcast %333 : vector<1x8xf32> to vector<36x8xf32>
    %335 = arith.addf %331, %334 : vector<36x8xf32>
    %c2_225 = arith.constant 2 : index
    %c0_226 = arith.constant 0 : index
    %c0_227 = arith.constant 0 : index
    %336 = vector.load %arg17[%c2_225, %c0_226, %c0_227] : memref<4x32x8xbf16, #tpu.memory_space<vmem>>, vector<1x32x8xbf16>
    %337 = vector.shape_cast %336 : vector<1x32x8xbf16> to vector<32x8xbf16>
    %338 = arith.truncf %226 : vector<36x32xf32> to vector<36x32xbf16>
    %cst_228 = arith.constant dense<0.000000e+00> : vector<36x8xf32>
    %339 = tpu.matmul %338, %337, %cst_228 {dimension_numbers = #tpu.dot_dimension_numbers<[1], [0], [0], [1], [0, 0, 1, 1], [], []>} : vector<36x32xbf16>, vector<32x8xbf16>, vector<36x8xf32> -> vector<36x8xf32>
    %c2_229 = arith.constant 2 : index
    %c0_230 = arith.constant 0 : index
    %c0_231 = arith.constant 0 : index
    %340 = vector.load %arg18[%c2_229, %c0_230, %c0_231] : memref<4x1x8xf32, #tpu.memory_space<vmem>>, vector<1x1x8xf32>
    %341 = vector.shape_cast %340 : vector<1x1x8xf32> to vector<1x8xf32>
    %342 = vector.broadcast %341 : vector<1x8xf32> to vector<36x8xf32>
    %343 = arith.addf %339, %342 : vector<36x8xf32>
    %c2_232 = arith.constant 2 : index
    %c0_233 = arith.constant 0 : index
    %c0_234 = arith.constant 0 : index
    %344 = vector.load %arg19[%c2_232, %c0_233, %c0_234] : memref<4x32x8xbf16, #tpu.memory_space<vmem>>, vector<1x32x8xbf16>
    %345 = vector.shape_cast %344 : vector<1x32x8xbf16> to vector<32x8xbf16>
    %346 = arith.truncf %226 : vector<36x32xf32> to vector<36x32xbf16>
    %cst_235 = arith.constant dense<0.000000e+00> : vector<36x8xf32>
    %347 = tpu.matmul %346, %345, %cst_235 {dimension_numbers = #tpu.dot_dimension_numbers<[1], [0], [0], [1], [0, 0, 1, 1], [], []>} : vector<36x32xbf16>, vector<32x8xbf16>, vector<36x8xf32> -> vector<36x8xf32>
    %c2_236 = arith.constant 2 : index
    %c0_237 = arith.constant 0 : index
    %c0_238 = arith.constant 0 : index
    %348 = vector.load %arg20[%c2_236, %c0_237, %c0_238] : memref<4x1x8xf32, #tpu.memory_space<vmem>>, vector<1x1x8xf32>
    %349 = vector.shape_cast %348 : vector<1x1x8xf32> to vector<1x8xf32>
    %350 = vector.broadcast %349 : vector<1x8xf32> to vector<36x8xf32>
    %351 = arith.addf %347, %350 : vector<36x8xf32>
    %c2_239 = arith.constant 2 : index
    %c0_240 = arith.constant 0 : index
    %c0_241 = arith.constant 0 : index
    %352 = vector.load %arg21[%c2_239, %c0_240, %c0_241] : memref<4x36x8xbf16, #tpu.memory_space<vmem>>, vector<1x36x8xbf16>
    %353 = vector.shape_cast %352 : vector<1x36x8xbf16> to vector<36x8xbf16>
    %354 = arith.truncf %335 : vector<36x8xf32> to vector<36x8xbf16>
    %355 = arith.truncf %343 : vector<36x8xf32> to vector<36x8xbf16>
    %cst_242 = arith.constant dense<0.000000e+00> : vector<36x36xf32>
    %356 = tpu.matmul %354, %355, %cst_242 {dimension_numbers = #tpu.dot_dimension_numbers<[1], [1], [0], [0], [0, 0, 1, 0], [], []>} : vector<36x8xbf16>, vector<36x8xbf16>, vector<36x36xf32> -> vector<36x36xf32>
    %357 = arith.truncf %335 : vector<36x8xf32> to vector<36x8xbf16>
    %cst_243 = arith.constant dense<0.000000e+00> : vector<36x36xf32>
    %358 = tpu.matmul %353, %357, %cst_243 {dimension_numbers = #tpu.dot_dimension_numbers<[1], [1], [0], [0], [0, 0, 1, 0], [], []>} : vector<36x8xbf16>, vector<36x8xbf16>, vector<36x36xf32> -> vector<36x36xf32>
    %359 = arith.addf %356, %358 : vector<36x36xf32>
    %cst_244 = arith.constant dense<0xFF800000> : vector<36xf32>
    %360 = vector.multi_reduction <maximumf>, %359, %cst_244 [1] : vector<36x36xf32> to vector<36xf32>
    %361 = vector.shape_cast %360 : vector<36xf32> to vector<36x1xf32>
    %362 = vector.broadcast %361 : vector<36x1xf32> to vector<36x36xf32>
    %363 = arith.subf %359, %362 : vector<36x36xf32>
    %364 = math.exp %363 : vector<36x36xf32>
    %cst_245 = arith.constant dense<0.000000e+00> : vector<36xf32>
    %365 = vector.multi_reduction <add>, %364, %cst_245 [1] : vector<36x36xf32> to vector<36xf32>
    %366 = vector.shape_cast %365 : vector<36xf32> to vector<36x1xf32>
    %367 = vector.broadcast %366 : vector<36x1xf32> to vector<36x36xf32>
    %368 = arith.divf %364, %367 : vector<36x36xf32>
    %369 = arith.truncf %368 : vector<36x36xf32> to vector<36x36xbf16>
    %370 = arith.truncf %351 : vector<36x8xf32> to vector<36x8xbf16>
    %cst_246 = arith.constant dense<0.000000e+00> : vector<36x8xf32>
    %371 = tpu.matmul %369, %370, %cst_246 {dimension_numbers = #tpu.dot_dimension_numbers<[1], [0], [0], [1], [0, 0, 1, 1], [], []>} : vector<36x36xbf16>, vector<36x8xbf16>, vector<36x8xf32> -> vector<36x8xf32>
    %cst_247 = arith.constant 0.000000e+00 : f32
    %372 = vector.broadcast %cst_247 : f32 to vector<36x8xf32>
    %373 = arith.maximumf %371, %372 : vector<36x8xf32>
    %c2_248 = arith.constant 2 : index
    %c0_249 = arith.constant 0 : index
    %c0_250 = arith.constant 0 : index
    %374 = vector.load %arg22[%c2_248, %c0_249, %c0_250] : memref<4x8x128xbf16, #tpu.memory_space<vmem>>, vector<1x8x128xbf16>
    %375 = vector.shape_cast %374 : vector<1x8x128xbf16> to vector<8x128xbf16>
    %376 = arith.truncf %373 : vector<36x8xf32> to vector<36x8xbf16>
    %cst_251 = arith.constant dense<0.000000e+00> : vector<36x128xf32>
    %377 = tpu.matmul %376, %375, %cst_251 {dimension_numbers = #tpu.dot_dimension_numbers<[1], [0], [0], [1], [0, 0, 1, 1], [], []>} : vector<36x8xbf16>, vector<8x128xbf16>, vector<36x128xf32> -> vector<36x128xf32>
    %378 = arith.addf %327, %377 : vector<36x128xf32>
    %c3_252 = arith.constant 3 : index
    %c0_253 = arith.constant 0 : index
    %c0_254 = arith.constant 0 : index
    %379 = vector.load %arg15[%c3_252, %c0_253, %c0_254] : memref<4x32x8xbf16, #tpu.memory_space<vmem>>, vector<1x32x8xbf16>
    %380 = vector.shape_cast %379 : vector<1x32x8xbf16> to vector<32x8xbf16>
    %381 = arith.truncf %226 : vector<36x32xf32> to vector<36x32xbf16>
    %cst_255 = arith.constant dense<0.000000e+00> : vector<36x8xf32>
    %382 = tpu.matmul %381, %380, %cst_255 {dimension_numbers = #tpu.dot_dimension_numbers<[1], [0], [0], [1], [0, 0, 1, 1], [], []>} : vector<36x32xbf16>, vector<32x8xbf16>, vector<36x8xf32> -> vector<36x8xf32>
    %c3_256 = arith.constant 3 : index
    %c0_257 = arith.constant 0 : index
    %c0_258 = arith.constant 0 : index
    %383 = vector.load %arg16[%c3_256, %c0_257, %c0_258] : memref<4x1x8xf32, #tpu.memory_space<vmem>>, vector<1x1x8xf32>
    %384 = vector.shape_cast %383 : vector<1x1x8xf32> to vector<1x8xf32>
    %385 = vector.broadcast %384 : vector<1x8xf32> to vector<36x8xf32>
    %386 = arith.addf %382, %385 : vector<36x8xf32>
    %c3_259 = arith.constant 3 : index
    %c0_260 = arith.constant 0 : index
    %c0_261 = arith.constant 0 : index
    %387 = vector.load %arg17[%c3_259, %c0_260, %c0_261] : memref<4x32x8xbf16, #tpu.memory_space<vmem>>, vector<1x32x8xbf16>
    %388 = vector.shape_cast %387 : vector<1x32x8xbf16> to vector<32x8xbf16>
    %389 = arith.truncf %226 : vector<36x32xf32> to vector<36x32xbf16>
    %cst_262 = arith.constant dense<0.000000e+00> : vector<36x8xf32>
    %390 = tpu.matmul %389, %388, %cst_262 {dimension_numbers = #tpu.dot_dimension_numbers<[1], [0], [0], [1], [0, 0, 1, 1], [], []>} : vector<36x32xbf16>, vector<32x8xbf16>, vector<36x8xf32> -> vector<36x8xf32>
    %c3_263 = arith.constant 3 : index
    %c0_264 = arith.constant 0 : index
    %c0_265 = arith.constant 0 : index
    %391 = vector.load %arg18[%c3_263, %c0_264, %c0_265] : memref<4x1x8xf32, #tpu.memory_space<vmem>>, vector<1x1x8xf32>
    %392 = vector.shape_cast %391 : vector<1x1x8xf32> to vector<1x8xf32>
    %393 = vector.broadcast %392 : vector<1x8xf32> to vector<36x8xf32>
    %394 = arith.addf %390, %393 : vector<36x8xf32>
    %c3_266 = arith.constant 3 : index
    %c0_267 = arith.constant 0 : index
    %c0_268 = arith.constant 0 : index
    %395 = vector.load %arg19[%c3_266, %c0_267, %c0_268] : memref<4x32x8xbf16, #tpu.memory_space<vmem>>, vector<1x32x8xbf16>
    %396 = vector.shape_cast %395 : vector<1x32x8xbf16> to vector<32x8xbf16>
    %397 = arith.truncf %226 : vector<36x32xf32> to vector<36x32xbf16>
    %cst_269 = arith.constant dense<0.000000e+00> : vector<36x8xf32>
    %398 = tpu.matmul %397, %396, %cst_269 {dimension_numbers = #tpu.dot_dimension_numbers<[1], [0], [0], [1], [0, 0, 1, 1], [], []>} : vector<36x32xbf16>, vector<32x8xbf16>, vector<36x8xf32> -> vector<36x8xf32>
    %c3_270 = arith.constant 3 : index
    %c0_271 = arith.constant 0 : index
    %c0_272 = arith.constant 0 : index
    %399 = vector.load %arg20[%c3_270, %c0_271, %c0_272] : memref<4x1x8xf32, #tpu.memory_space<vmem>>, vector<1x1x8xf32>
    %400 = vector.shape_cast %399 : vector<1x1x8xf32> to vector<1x8xf32>
    %401 = vector.broadcast %400 : vector<1x8xf32> to vector<36x8xf32>
    %402 = arith.addf %398, %401 : vector<36x8xf32>
    %c3_273 = arith.constant 3 : index
    %c0_274 = arith.constant 0 : index
    %c0_275 = arith.constant 0 : index
    %403 = vector.load %arg21[%c3_273, %c0_274, %c0_275] : memref<4x36x8xbf16, #tpu.memory_space<vmem>>, vector<1x36x8xbf16>
    %404 = vector.shape_cast %403 : vector<1x36x8xbf16> to vector<36x8xbf16>
    %405 = arith.truncf %386 : vector<36x8xf32> to vector<36x8xbf16>
    %406 = arith.truncf %394 : vector<36x8xf32> to vector<36x8xbf16>
    %cst_276 = arith.constant dense<0.000000e+00> : vector<36x36xf32>
    %407 = tpu.matmul %405, %406, %cst_276 {dimension_numbers = #tpu.dot_dimension_numbers<[1], [1], [0], [0], [0, 0, 1, 0], [], []>} : vector<36x8xbf16>, vector<36x8xbf16>, vector<36x36xf32> -> vector<36x36xf32>
    %408 = arith.truncf %386 : vector<36x8xf32> to vector<36x8xbf16>
    %cst_277 = arith.constant dense<0.000000e+00> : vector<36x36xf32>
    %409 = tpu.matmul %404, %408, %cst_277 {dimension_numbers = #tpu.dot_dimension_numbers<[1], [1], [0], [0], [0, 0, 1, 0], [], []>} : vector<36x8xbf16>, vector<36x8xbf16>, vector<36x36xf32> -> vector<36x36xf32>
    %410 = arith.addf %407, %409 : vector<36x36xf32>
    %cst_278 = arith.constant dense<0xFF800000> : vector<36xf32>
    %411 = vector.multi_reduction <maximumf>, %410, %cst_278 [1] : vector<36x36xf32> to vector<36xf32>
    %412 = vector.shape_cast %411 : vector<36xf32> to vector<36x1xf32>
    %413 = vector.broadcast %412 : vector<36x1xf32> to vector<36x36xf32>
    %414 = arith.subf %410, %413 : vector<36x36xf32>
    %415 = math.exp %414 : vector<36x36xf32>
    %cst_279 = arith.constant dense<0.000000e+00> : vector<36xf32>
    %416 = vector.multi_reduction <add>, %415, %cst_279 [1] : vector<36x36xf32> to vector<36xf32>
    %417 = vector.shape_cast %416 : vector<36xf32> to vector<36x1xf32>
    %418 = vector.broadcast %417 : vector<36x1xf32> to vector<36x36xf32>
    %419 = arith.divf %415, %418 : vector<36x36xf32>
    %420 = arith.truncf %419 : vector<36x36xf32> to vector<36x36xbf16>
    %421 = arith.truncf %402 : vector<36x8xf32> to vector<36x8xbf16>
    %cst_280 = arith.constant dense<0.000000e+00> : vector<36x8xf32>
    %422 = tpu.matmul %420, %421, %cst_280 {dimension_numbers = #tpu.dot_dimension_numbers<[1], [0], [0], [1], [0, 0, 1, 1], [], []>} : vector<36x36xbf16>, vector<36x8xbf16>, vector<36x8xf32> -> vector<36x8xf32>
    %cst_281 = arith.constant 0.000000e+00 : f32
    %423 = vector.broadcast %cst_281 : f32 to vector<36x8xf32>
    %424 = arith.maximumf %422, %423 : vector<36x8xf32>
    %c3_282 = arith.constant 3 : index
    %c0_283 = arith.constant 0 : index
    %c0_284 = arith.constant 0 : index
    %425 = vector.load %arg22[%c3_282, %c0_283, %c0_284] : memref<4x8x128xbf16, #tpu.memory_space<vmem>>, vector<1x8x128xbf16>
    %426 = vector.shape_cast %425 : vector<1x8x128xbf16> to vector<8x128xbf16>
    %427 = arith.truncf %424 : vector<36x8xf32> to vector<36x8xbf16>
    %cst_285 = arith.constant dense<0.000000e+00> : vector<36x128xf32>
    %428 = tpu.matmul %427, %426, %cst_285 {dimension_numbers = #tpu.dot_dimension_numbers<[1], [0], [0], [1], [0, 0, 1, 1], [], []>} : vector<36x8xbf16>, vector<8x128xbf16>, vector<36x128xf32> -> vector<36x128xf32>
    %429 = arith.addf %378, %428 : vector<36x128xf32>
    %430 = arith.addf %429, %221 : vector<36x128xf32>
    %cst_286 = arith.constant 0.000000e+00 : f32
    %431 = vector.broadcast %cst_286 : f32 to vector<36x128xf32>
    %432 = arith.maximumf %430, %431 : vector<36x128xf32>
    %433 = vector.extract_strided_slice %432 {offsets = [0, 0], sizes = [2, 128], strides = [1, 1]} : vector<36x128xf32> to vector<2x128xf32>
    %cst_287 = arith.constant dense<0xFF800000> : vector<128xf32>
    %434 = vector.multi_reduction <maximumf>, %433, %cst_287 [0] : vector<2x128xf32> to vector<128xf32>
    %435 = vector.shape_cast %434 : vector<128xf32> to vector<1x128xf32>
    %436 = vector.extract_strided_slice %432 {offsets = [6, 0], sizes = [2, 128], strides = [1, 1]} : vector<36x128xf32> to vector<2x128xf32>
    %cst_288 = arith.constant dense<0xFF800000> : vector<128xf32>
    %437 = vector.multi_reduction <maximumf>, %436, %cst_288 [0] : vector<2x128xf32> to vector<128xf32>
    %438 = vector.shape_cast %437 : vector<128xf32> to vector<1x128xf32>
    %439 = arith.maximumf %435, %438 : vector<1x128xf32>
    %440 = vector.extract_strided_slice %432 {offsets = [2, 0], sizes = [3, 128], strides = [1, 1]} : vector<36x128xf32> to vector<3x128xf32>
    %cst_289 = arith.constant dense<0xFF800000> : vector<128xf32>
    %441 = vector.multi_reduction <maximumf>, %440, %cst_289 [0] : vector<3x128xf32> to vector<128xf32>
    %442 = vector.shape_cast %441 : vector<128xf32> to vector<1x128xf32>
    %443 = vector.extract_strided_slice %432 {offsets = [8, 0], sizes = [3, 128], strides = [1, 1]} : vector<36x128xf32> to vector<3x128xf32>
    %cst_290 = arith.constant dense<0xFF800000> : vector<128xf32>
    %444 = vector.multi_reduction <maximumf>, %443, %cst_290 [0] : vector<3x128xf32> to vector<128xf32>
    %445 = vector.shape_cast %444 : vector<128xf32> to vector<1x128xf32>
    %446 = arith.maximumf %442, %445 : vector<1x128xf32>
    %447 = vector.extract_strided_slice %432 {offsets = [12, 0], sizes = [2, 128], strides = [1, 1]} : vector<36x128xf32> to vector<2x128xf32>
    %cst_291 = arith.constant dense<0xFF800000> : vector<128xf32>
    %448 = vector.multi_reduction <maximumf>, %447, %cst_291 [0] : vector<2x128xf32> to vector<128xf32>
    %449 = vector.shape_cast %448 : vector<128xf32> to vector<1x128xf32>
    %450 = vector.extract_strided_slice %432 {offsets = [18, 0], sizes = [2, 128], strides = [1, 1]} : vector<36x128xf32> to vector<2x128xf32>
    %cst_292 = arith.constant dense<0xFF800000> : vector<128xf32>
    %451 = vector.multi_reduction <maximumf>, %450, %cst_292 [0] : vector<2x128xf32> to vector<128xf32>
    %452 = vector.shape_cast %451 : vector<128xf32> to vector<1x128xf32>
    %453 = arith.maximumf %449, %452 : vector<1x128xf32>
    %454 = vector.extract_strided_slice %432 {offsets = [24, 0], sizes = [2, 128], strides = [1, 1]} : vector<36x128xf32> to vector<2x128xf32>
    %cst_293 = arith.constant dense<0xFF800000> : vector<128xf32>
    %455 = vector.multi_reduction <maximumf>, %454, %cst_293 [0] : vector<2x128xf32> to vector<128xf32>
    %456 = vector.shape_cast %455 : vector<128xf32> to vector<1x128xf32>
    %457 = arith.maximumf %453, %456 : vector<1x128xf32>
    %458 = vector.extract_strided_slice %432 {offsets = [14, 0], sizes = [3, 128], strides = [1, 1]} : vector<36x128xf32> to vector<3x128xf32>
    %cst_294 = arith.constant dense<0xFF800000> : vector<128xf32>
    %459 = vector.multi_reduction <maximumf>, %458, %cst_294 [0] : vector<3x128xf32> to vector<128xf32>
    %460 = vector.shape_cast %459 : vector<128xf32> to vector<1x128xf32>
    %461 = vector.extract_strided_slice %432 {offsets = [20, 0], sizes = [3, 128], strides = [1, 1]} : vector<36x128xf32> to vector<3x128xf32>
    %cst_295 = arith.constant dense<0xFF800000> : vector<128xf32>
    %462 = vector.multi_reduction <maximumf>, %461, %cst_295 [0] : vector<3x128xf32> to vector<128xf32>
    %463 = vector.shape_cast %462 : vector<128xf32> to vector<1x128xf32>
    %464 = arith.maximumf %460, %463 : vector<1x128xf32>
    %465 = vector.extract_strided_slice %432 {offsets = [26, 0], sizes = [3, 128], strides = [1, 1]} : vector<36x128xf32> to vector<3x128xf32>
    %cst_296 = arith.constant dense<0xFF800000> : vector<128xf32>
    %466 = vector.multi_reduction <maximumf>, %465, %cst_296 [0] : vector<3x128xf32> to vector<128xf32>
    %467 = vector.shape_cast %466 : vector<128xf32> to vector<1x128xf32>
    %468 = arith.maximumf %464, %467 : vector<1x128xf32>
    %469 = tpu.concatenate %439, %446, %457, %468 in 0 : vector<1x128xf32>, vector<1x128xf32>, vector<1x128xf32>, vector<1x128xf32> -> vector<4x128xf32>
    %c0_297 = arith.constant 0 : index
    %c0_298 = arith.constant 0 : index
    %470 = vector.load %arg23[%c0_297, %c0_298] : memref<128x32xbf16, #tpu.memory_space<vmem>>, vector<128x32xbf16>
    %471 = arith.truncf %469 : vector<4x128xf32> to vector<4x128xbf16>
    %cst_299 = arith.constant dense<0.000000e+00> : vector<4x32xf32>
    %472 = tpu.matmul %471, %470, %cst_299 {dimension_numbers = #tpu.dot_dimension_numbers<[1], [0], [0], [1], [0, 0, 1, 1], [], []>} : vector<4x128xbf16>, vector<128x32xbf16>, vector<4x32xf32> -> vector<4x32xf32>
    %cst_300 = arith.constant 0.000000e+00 : f32
    %473 = vector.broadcast %cst_300 : f32 to vector<4x32xf32>
    %474 = arith.maximumf %472, %473 : vector<4x32xf32>
    %c0_301 = arith.constant 0 : index
    %c0_302 = arith.constant 0 : index
    %c0_303 = arith.constant 0 : index
    %475 = vector.load %arg24[%c0_301, %c0_302, %c0_303] : memref<4x32x8xbf16, #tpu.memory_space<vmem>>, vector<1x32x8xbf16>
    %476 = vector.shape_cast %475 : vector<1x32x8xbf16> to vector<32x8xbf16>
    %477 = arith.truncf %474 : vector<4x32xf32> to vector<4x32xbf16>
    %cst_304 = arith.constant dense<0.000000e+00> : vector<4x8xf32>
    %478 = tpu.matmul %477, %476, %cst_304 {dimension_numbers = #tpu.dot_dimension_numbers<[1], [0], [0], [1], [0, 0, 1, 1], [], []>} : vector<4x32xbf16>, vector<32x8xbf16>, vector<4x8xf32> -> vector<4x8xf32>
    %c0_305 = arith.constant 0 : index
    %c0_306 = arith.constant 0 : index
    %c0_307 = arith.constant 0 : index
    %479 = vector.load %arg25[%c0_305, %c0_306, %c0_307] : memref<4x1x8xf32, #tpu.memory_space<vmem>>, vector<1x1x8xf32>
    %480 = vector.shape_cast %479 : vector<1x1x8xf32> to vector<1x8xf32>
    %481 = vector.broadcast %480 : vector<1x8xf32> to vector<4x8xf32>
    %482 = arith.addf %478, %481 : vector<4x8xf32>
    %c0_308 = arith.constant 0 : index
    %c0_309 = arith.constant 0 : index
    %c0_310 = arith.constant 0 : index
    %483 = vector.load %arg26[%c0_308, %c0_309, %c0_310] : memref<4x32x8xbf16, #tpu.memory_space<vmem>>, vector<1x32x8xbf16>
    %484 = vector.shape_cast %483 : vector<1x32x8xbf16> to vector<32x8xbf16>
    %485 = arith.truncf %474 : vector<4x32xf32> to vector<4x32xbf16>
    %cst_311 = arith.constant dense<0.000000e+00> : vector<4x8xf32>
    %486 = tpu.matmul %485, %484, %cst_311 {dimension_numbers = #tpu.dot_dimension_numbers<[1], [0], [0], [1], [0, 0, 1, 1], [], []>} : vector<4x32xbf16>, vector<32x8xbf16>, vector<4x8xf32> -> vector<4x8xf32>
    %c0_312 = arith.constant 0 : index
    %c0_313 = arith.constant 0 : index
    %c0_314 = arith.constant 0 : index
    %487 = vector.load %arg27[%c0_312, %c0_313, %c0_314] : memref<4x1x8xf32, #tpu.memory_space<vmem>>, vector<1x1x8xf32>
    %488 = vector.shape_cast %487 : vector<1x1x8xf32> to vector<1x8xf32>
    %489 = vector.broadcast %488 : vector<1x8xf32> to vector<4x8xf32>
    %490 = arith.addf %486, %489 : vector<4x8xf32>
    %c0_315 = arith.constant 0 : index
    %c0_316 = arith.constant 0 : index
    %c0_317 = arith.constant 0 : index
    %491 = vector.load %arg28[%c0_315, %c0_316, %c0_317] : memref<4x32x8xbf16, #tpu.memory_space<vmem>>, vector<1x32x8xbf16>
    %492 = vector.shape_cast %491 : vector<1x32x8xbf16> to vector<32x8xbf16>
    %493 = arith.truncf %474 : vector<4x32xf32> to vector<4x32xbf16>
    %cst_318 = arith.constant dense<0.000000e+00> : vector<4x8xf32>
    %494 = tpu.matmul %493, %492, %cst_318 {dimension_numbers = #tpu.dot_dimension_numbers<[1], [0], [0], [1], [0, 0, 1, 1], [], []>} : vector<4x32xbf16>, vector<32x8xbf16>, vector<4x8xf32> -> vector<4x8xf32>
    %c0_319 = arith.constant 0 : index
    %c0_320 = arith.constant 0 : index
    %c0_321 = arith.constant 0 : index
    %495 = vector.load %arg29[%c0_319, %c0_320, %c0_321] : memref<4x1x8xf32, #tpu.memory_space<vmem>>, vector<1x1x8xf32>
    %496 = vector.shape_cast %495 : vector<1x1x8xf32> to vector<1x8xf32>
    %497 = vector.broadcast %496 : vector<1x8xf32> to vector<4x8xf32>
    %498 = arith.addf %494, %497 : vector<4x8xf32>
    %c0_322 = arith.constant 0 : index
    %c0_323 = arith.constant 0 : index
    %c0_324 = arith.constant 0 : index
    %499 = vector.load %arg30[%c0_322, %c0_323, %c0_324] : memref<4x4x8xbf16, #tpu.memory_space<vmem>>, vector<1x4x8xbf16>
    %500 = vector.shape_cast %499 : vector<1x4x8xbf16> to vector<4x8xbf16>
    %501 = arith.truncf %482 : vector<4x8xf32> to vector<4x8xbf16>
    %502 = arith.truncf %490 : vector<4x8xf32> to vector<4x8xbf16>
    %cst_325 = arith.constant dense<0.000000e+00> : vector<4x4xf32>
    %503 = tpu.matmul %501, %502, %cst_325 {dimension_numbers = #tpu.dot_dimension_numbers<[1], [1], [0], [0], [0, 0, 1, 0], [], []>} : vector<4x8xbf16>, vector<4x8xbf16>, vector<4x4xf32> -> vector<4x4xf32>
    %504 = arith.truncf %482 : vector<4x8xf32> to vector<4x8xbf16>
    %cst_326 = arith.constant dense<0.000000e+00> : vector<4x4xf32>
    %505 = tpu.matmul %500, %504, %cst_326 {dimension_numbers = #tpu.dot_dimension_numbers<[1], [1], [0], [0], [0, 0, 1, 0], [], []>} : vector<4x8xbf16>, vector<4x8xbf16>, vector<4x4xf32> -> vector<4x4xf32>
    %506 = arith.addf %503, %505 : vector<4x4xf32>
    %cst_327 = arith.constant dense<0xFF800000> : vector<4xf32>
    %507 = vector.multi_reduction <maximumf>, %506, %cst_327 [1] : vector<4x4xf32> to vector<4xf32>
    %508 = vector.shape_cast %507 : vector<4xf32> to vector<4x1xf32>
    %509 = vector.broadcast %508 : vector<4x1xf32> to vector<4x4xf32>
    %510 = arith.subf %506, %509 : vector<4x4xf32>
    %511 = math.exp %510 : vector<4x4xf32>
    %cst_328 = arith.constant dense<0.000000e+00> : vector<4xf32>
    %512 = vector.multi_reduction <add>, %511, %cst_328 [1] : vector<4x4xf32> to vector<4xf32>
    %513 = vector.shape_cast %512 : vector<4xf32> to vector<4x1xf32>
    %514 = vector.broadcast %513 : vector<4x1xf32> to vector<4x4xf32>
    %515 = arith.divf %511, %514 : vector<4x4xf32>
    %516 = arith.truncf %515 : vector<4x4xf32> to vector<4x4xbf16>
    %517 = arith.truncf %498 : vector<4x8xf32> to vector<4x8xbf16>
    %cst_329 = arith.constant dense<0.000000e+00> : vector<4x8xf32>
    %518 = tpu.matmul %516, %517, %cst_329 {dimension_numbers = #tpu.dot_dimension_numbers<[1], [0], [0], [1], [0, 0, 1, 1], [], []>} : vector<4x4xbf16>, vector<4x8xbf16>, vector<4x8xf32> -> vector<4x8xf32>
    %cst_330 = arith.constant 0.000000e+00 : f32
    %519 = vector.broadcast %cst_330 : f32 to vector<4x8xf32>
    %520 = arith.maximumf %518, %519 : vector<4x8xf32>
    %c0_331 = arith.constant 0 : index
    %c0_332 = arith.constant 0 : index
    %c0_333 = arith.constant 0 : index
    %521 = vector.load %arg31[%c0_331, %c0_332, %c0_333] : memref<4x8x128xbf16, #tpu.memory_space<vmem>>, vector<1x8x128xbf16>
    %522 = vector.shape_cast %521 : vector<1x8x128xbf16> to vector<8x128xbf16>
    %523 = arith.truncf %520 : vector<4x8xf32> to vector<4x8xbf16>
    %cst_334 = arith.constant dense<0.000000e+00> : vector<4x128xf32>
    %524 = tpu.matmul %523, %522, %cst_334 {dimension_numbers = #tpu.dot_dimension_numbers<[1], [0], [0], [1], [0, 0, 1, 1], [], []>} : vector<4x8xbf16>, vector<8x128xbf16>, vector<4x128xf32> -> vector<4x128xf32>
    %c1_335 = arith.constant 1 : index
    %c0_336 = arith.constant 0 : index
    %c0_337 = arith.constant 0 : index
    %525 = vector.load %arg24[%c1_335, %c0_336, %c0_337] : memref<4x32x8xbf16, #tpu.memory_space<vmem>>, vector<1x32x8xbf16>
    %526 = vector.shape_cast %525 : vector<1x32x8xbf16> to vector<32x8xbf16>
    %527 = arith.truncf %474 : vector<4x32xf32> to vector<4x32xbf16>
    %cst_338 = arith.constant dense<0.000000e+00> : vector<4x8xf32>
    %528 = tpu.matmul %527, %526, %cst_338 {dimension_numbers = #tpu.dot_dimension_numbers<[1], [0], [0], [1], [0, 0, 1, 1], [], []>} : vector<4x32xbf16>, vector<32x8xbf16>, vector<4x8xf32> -> vector<4x8xf32>
    %c1_339 = arith.constant 1 : index
    %c0_340 = arith.constant 0 : index
    %c0_341 = arith.constant 0 : index
    %529 = vector.load %arg25[%c1_339, %c0_340, %c0_341] : memref<4x1x8xf32, #tpu.memory_space<vmem>>, vector<1x1x8xf32>
    %530 = vector.shape_cast %529 : vector<1x1x8xf32> to vector<1x8xf32>
    %531 = vector.broadcast %530 : vector<1x8xf32> to vector<4x8xf32>
    %532 = arith.addf %528, %531 : vector<4x8xf32>
    %c1_342 = arith.constant 1 : index
    %c0_343 = arith.constant 0 : index
    %c0_344 = arith.constant 0 : index
    %533 = vector.load %arg26[%c1_342, %c0_343, %c0_344] : memref<4x32x8xbf16, #tpu.memory_space<vmem>>, vector<1x32x8xbf16>
    %534 = vector.shape_cast %533 : vector<1x32x8xbf16> to vector<32x8xbf16>
    %535 = arith.truncf %474 : vector<4x32xf32> to vector<4x32xbf16>
    %cst_345 = arith.constant dense<0.000000e+00> : vector<4x8xf32>
    %536 = tpu.matmul %535, %534, %cst_345 {dimension_numbers = #tpu.dot_dimension_numbers<[1], [0], [0], [1], [0, 0, 1, 1], [], []>} : vector<4x32xbf16>, vector<32x8xbf16>, vector<4x8xf32> -> vector<4x8xf32>
    %c1_346 = arith.constant 1 : index
    %c0_347 = arith.constant 0 : index
    %c0_348 = arith.constant 0 : index
    %537 = vector.load %arg27[%c1_346, %c0_347, %c0_348] : memref<4x1x8xf32, #tpu.memory_space<vmem>>, vector<1x1x8xf32>
    %538 = vector.shape_cast %537 : vector<1x1x8xf32> to vector<1x8xf32>
    %539 = vector.broadcast %538 : vector<1x8xf32> to vector<4x8xf32>
    %540 = arith.addf %536, %539 : vector<4x8xf32>
    %c1_349 = arith.constant 1 : index
    %c0_350 = arith.constant 0 : index
    %c0_351 = arith.constant 0 : index
    %541 = vector.load %arg28[%c1_349, %c0_350, %c0_351] : memref<4x32x8xbf16, #tpu.memory_space<vmem>>, vector<1x32x8xbf16>
    %542 = vector.shape_cast %541 : vector<1x32x8xbf16> to vector<32x8xbf16>
    %543 = arith.truncf %474 : vector<4x32xf32> to vector<4x32xbf16>
    %cst_352 = arith.constant dense<0.000000e+00> : vector<4x8xf32>
    %544 = tpu.matmul %543, %542, %cst_352 {dimension_numbers = #tpu.dot_dimension_numbers<[1], [0], [0], [1], [0, 0, 1, 1], [], []>} : vector<4x32xbf16>, vector<32x8xbf16>, vector<4x8xf32> -> vector<4x8xf32>
    %c1_353 = arith.constant 1 : index
    %c0_354 = arith.constant 0 : index
    %c0_355 = arith.constant 0 : index
    %545 = vector.load %arg29[%c1_353, %c0_354, %c0_355] : memref<4x1x8xf32, #tpu.memory_space<vmem>>, vector<1x1x8xf32>
    %546 = vector.shape_cast %545 : vector<1x1x8xf32> to vector<1x8xf32>
    %547 = vector.broadcast %546 : vector<1x8xf32> to vector<4x8xf32>
    %548 = arith.addf %544, %547 : vector<4x8xf32>
    %c1_356 = arith.constant 1 : index
    %c0_357 = arith.constant 0 : index
    %c0_358 = arith.constant 0 : index
    %549 = vector.load %arg30[%c1_356, %c0_357, %c0_358] : memref<4x4x8xbf16, #tpu.memory_space<vmem>>, vector<1x4x8xbf16>
    %550 = vector.shape_cast %549 : vector<1x4x8xbf16> to vector<4x8xbf16>
    %551 = arith.truncf %532 : vector<4x8xf32> to vector<4x8xbf16>
    %552 = arith.truncf %540 : vector<4x8xf32> to vector<4x8xbf16>
    %cst_359 = arith.constant dense<0.000000e+00> : vector<4x4xf32>
    %553 = tpu.matmul %551, %552, %cst_359 {dimension_numbers = #tpu.dot_dimension_numbers<[1], [1], [0], [0], [0, 0, 1, 0], [], []>} : vector<4x8xbf16>, vector<4x8xbf16>, vector<4x4xf32> -> vector<4x4xf32>
    %554 = arith.truncf %532 : vector<4x8xf32> to vector<4x8xbf16>
    %cst_360 = arith.constant dense<0.000000e+00> : vector<4x4xf32>
    %555 = tpu.matmul %550, %554, %cst_360 {dimension_numbers = #tpu.dot_dimension_numbers<[1], [1], [0], [0], [0, 0, 1, 0], [], []>} : vector<4x8xbf16>, vector<4x8xbf16>, vector<4x4xf32> -> vector<4x4xf32>
    %556 = arith.addf %553, %555 : vector<4x4xf32>
    %cst_361 = arith.constant dense<0xFF800000> : vector<4xf32>
    %557 = vector.multi_reduction <maximumf>, %556, %cst_361 [1] : vector<4x4xf32> to vector<4xf32>
    %558 = vector.shape_cast %557 : vector<4xf32> to vector<4x1xf32>
    %559 = vector.broadcast %558 : vector<4x1xf32> to vector<4x4xf32>
    %560 = arith.subf %556, %559 : vector<4x4xf32>
    %561 = math.exp %560 : vector<4x4xf32>
    %cst_362 = arith.constant dense<0.000000e+00> : vector<4xf32>
    %562 = vector.multi_reduction <add>, %561, %cst_362 [1] : vector<4x4xf32> to vector<4xf32>
    %563 = vector.shape_cast %562 : vector<4xf32> to vector<4x1xf32>
    %564 = vector.broadcast %563 : vector<4x1xf32> to vector<4x4xf32>
    %565 = arith.divf %561, %564 : vector<4x4xf32>
    %566 = arith.truncf %565 : vector<4x4xf32> to vector<4x4xbf16>
    %567 = arith.truncf %548 : vector<4x8xf32> to vector<4x8xbf16>
    %cst_363 = arith.constant dense<0.000000e+00> : vector<4x8xf32>
    %568 = tpu.matmul %566, %567, %cst_363 {dimension_numbers = #tpu.dot_dimension_numbers<[1], [0], [0], [1], [0, 0, 1, 1], [], []>} : vector<4x4xbf16>, vector<4x8xbf16>, vector<4x8xf32> -> vector<4x8xf32>
    %cst_364 = arith.constant 0.000000e+00 : f32
    %569 = vector.broadcast %cst_364 : f32 to vector<4x8xf32>
    %570 = arith.maximumf %568, %569 : vector<4x8xf32>
    %c1_365 = arith.constant 1 : index
    %c0_366 = arith.constant 0 : index
    %c0_367 = arith.constant 0 : index
    %571 = vector.load %arg31[%c1_365, %c0_366, %c0_367] : memref<4x8x128xbf16, #tpu.memory_space<vmem>>, vector<1x8x128xbf16>
    %572 = vector.shape_cast %571 : vector<1x8x128xbf16> to vector<8x128xbf16>
    %573 = arith.truncf %570 : vector<4x8xf32> to vector<4x8xbf16>
    %cst_368 = arith.constant dense<0.000000e+00> : vector<4x128xf32>
    %574 = tpu.matmul %573, %572, %cst_368 {dimension_numbers = #tpu.dot_dimension_numbers<[1], [0], [0], [1], [0, 0, 1, 1], [], []>} : vector<4x8xbf16>, vector<8x128xbf16>, vector<4x128xf32> -> vector<4x128xf32>
    %575 = arith.addf %524, %574 : vector<4x128xf32>
    %c2_369 = arith.constant 2 : index
    %c0_370 = arith.constant 0 : index
    %c0_371 = arith.constant 0 : index
    %576 = vector.load %arg24[%c2_369, %c0_370, %c0_371] : memref<4x32x8xbf16, #tpu.memory_space<vmem>>, vector<1x32x8xbf16>
    %577 = vector.shape_cast %576 : vector<1x32x8xbf16> to vector<32x8xbf16>
    %578 = arith.truncf %474 : vector<4x32xf32> to vector<4x32xbf16>
    %cst_372 = arith.constant dense<0.000000e+00> : vector<4x8xf32>
    %579 = tpu.matmul %578, %577, %cst_372 {dimension_numbers = #tpu.dot_dimension_numbers<[1], [0], [0], [1], [0, 0, 1, 1], [], []>} : vector<4x32xbf16>, vector<32x8xbf16>, vector<4x8xf32> -> vector<4x8xf32>
    %c2_373 = arith.constant 2 : index
    %c0_374 = arith.constant 0 : index
    %c0_375 = arith.constant 0 : index
    %580 = vector.load %arg25[%c2_373, %c0_374, %c0_375] : memref<4x1x8xf32, #tpu.memory_space<vmem>>, vector<1x1x8xf32>
    %581 = vector.shape_cast %580 : vector<1x1x8xf32> to vector<1x8xf32>
    %582 = vector.broadcast %581 : vector<1x8xf32> to vector<4x8xf32>
    %583 = arith.addf %579, %582 : vector<4x8xf32>
    %c2_376 = arith.constant 2 : index
    %c0_377 = arith.constant 0 : index
    %c0_378 = arith.constant 0 : index
    %584 = vector.load %arg26[%c2_376, %c0_377, %c0_378] : memref<4x32x8xbf16, #tpu.memory_space<vmem>>, vector<1x32x8xbf16>
    %585 = vector.shape_cast %584 : vector<1x32x8xbf16> to vector<32x8xbf16>
    %586 = arith.truncf %474 : vector<4x32xf32> to vector<4x32xbf16>
    %cst_379 = arith.constant dense<0.000000e+00> : vector<4x8xf32>
    %587 = tpu.matmul %586, %585, %cst_379 {dimension_numbers = #tpu.dot_dimension_numbers<[1], [0], [0], [1], [0, 0, 1, 1], [], []>} : vector<4x32xbf16>, vector<32x8xbf16>, vector<4x8xf32> -> vector<4x8xf32>
    %c2_380 = arith.constant 2 : index
    %c0_381 = arith.constant 0 : index
    %c0_382 = arith.constant 0 : index
    %588 = vector.load %arg27[%c2_380, %c0_381, %c0_382] : memref<4x1x8xf32, #tpu.memory_space<vmem>>, vector<1x1x8xf32>
    %589 = vector.shape_cast %588 : vector<1x1x8xf32> to vector<1x8xf32>
    %590 = vector.broadcast %589 : vector<1x8xf32> to vector<4x8xf32>
    %591 = arith.addf %587, %590 : vector<4x8xf32>
    %c2_383 = arith.constant 2 : index
    %c0_384 = arith.constant 0 : index
    %c0_385 = arith.constant 0 : index
    %592 = vector.load %arg28[%c2_383, %c0_384, %c0_385] : memref<4x32x8xbf16, #tpu.memory_space<vmem>>, vector<1x32x8xbf16>
    %593 = vector.shape_cast %592 : vector<1x32x8xbf16> to vector<32x8xbf16>
    %594 = arith.truncf %474 : vector<4x32xf32> to vector<4x32xbf16>
    %cst_386 = arith.constant dense<0.000000e+00> : vector<4x8xf32>
    %595 = tpu.matmul %594, %593, %cst_386 {dimension_numbers = #tpu.dot_dimension_numbers<[1], [0], [0], [1], [0, 0, 1, 1], [], []>} : vector<4x32xbf16>, vector<32x8xbf16>, vector<4x8xf32> -> vector<4x8xf32>
    %c2_387 = arith.constant 2 : index
    %c0_388 = arith.constant 0 : index
    %c0_389 = arith.constant 0 : index
    %596 = vector.load %arg29[%c2_387, %c0_388, %c0_389] : memref<4x1x8xf32, #tpu.memory_space<vmem>>, vector<1x1x8xf32>
    %597 = vector.shape_cast %596 : vector<1x1x8xf32> to vector<1x8xf32>
    %598 = vector.broadcast %597 : vector<1x8xf32> to vector<4x8xf32>
    %599 = arith.addf %595, %598 : vector<4x8xf32>
    %c2_390 = arith.constant 2 : index
    %c0_391 = arith.constant 0 : index
    %c0_392 = arith.constant 0 : index
    %600 = vector.load %arg30[%c2_390, %c0_391, %c0_392] : memref<4x4x8xbf16, #tpu.memory_space<vmem>>, vector<1x4x8xbf16>
    %601 = vector.shape_cast %600 : vector<1x4x8xbf16> to vector<4x8xbf16>
    %602 = arith.truncf %583 : vector<4x8xf32> to vector<4x8xbf16>
    %603 = arith.truncf %591 : vector<4x8xf32> to vector<4x8xbf16>
    %cst_393 = arith.constant dense<0.000000e+00> : vector<4x4xf32>
    %604 = tpu.matmul %602, %603, %cst_393 {dimension_numbers = #tpu.dot_dimension_numbers<[1], [1], [0], [0], [0, 0, 1, 0], [], []>} : vector<4x8xbf16>, vector<4x8xbf16>, vector<4x4xf32> -> vector<4x4xf32>
    %605 = arith.truncf %583 : vector<4x8xf32> to vector<4x8xbf16>
    %cst_394 = arith.constant dense<0.000000e+00> : vector<4x4xf32>
    %606 = tpu.matmul %601, %605, %cst_394 {dimension_numbers = #tpu.dot_dimension_numbers<[1], [1], [0], [0], [0, 0, 1, 0], [], []>} : vector<4x8xbf16>, vector<4x8xbf16>, vector<4x4xf32> -> vector<4x4xf32>
    %607 = arith.addf %604, %606 : vector<4x4xf32>
    %cst_395 = arith.constant dense<0xFF800000> : vector<4xf32>
    %608 = vector.multi_reduction <maximumf>, %607, %cst_395 [1] : vector<4x4xf32> to vector<4xf32>
    %609 = vector.shape_cast %608 : vector<4xf32> to vector<4x1xf32>
    %610 = vector.broadcast %609 : vector<4x1xf32> to vector<4x4xf32>
    %611 = arith.subf %607, %610 : vector<4x4xf32>
    %612 = math.exp %611 : vector<4x4xf32>
    %cst_396 = arith.constant dense<0.000000e+00> : vector<4xf32>
    %613 = vector.multi_reduction <add>, %612, %cst_396 [1] : vector<4x4xf32> to vector<4xf32>
    %614 = vector.shape_cast %613 : vector<4xf32> to vector<4x1xf32>
    %615 = vector.broadcast %614 : vector<4x1xf32> to vector<4x4xf32>
    %616 = arith.divf %612, %615 : vector<4x4xf32>
    %617 = arith.truncf %616 : vector<4x4xf32> to vector<4x4xbf16>
    %618 = arith.truncf %599 : vector<4x8xf32> to vector<4x8xbf16>
    %cst_397 = arith.constant dense<0.000000e+00> : vector<4x8xf32>
    %619 = tpu.matmul %617, %618, %cst_397 {dimension_numbers = #tpu.dot_dimension_numbers<[1], [0], [0], [1], [0, 0, 1, 1], [], []>} : vector<4x4xbf16>, vector<4x8xbf16>, vector<4x8xf32> -> vector<4x8xf32>
    %cst_398 = arith.constant 0.000000e+00 : f32
    %620 = vector.broadcast %cst_398 : f32 to vector<4x8xf32>
    %621 = arith.maximumf %619, %620 : vector<4x8xf32>
    %c2_399 = arith.constant 2 : index
    %c0_400 = arith.constant 0 : index
    %c0_401 = arith.constant 0 : index
    %622 = vector.load %arg31[%c2_399, %c0_400, %c0_401] : memref<4x8x128xbf16, #tpu.memory_space<vmem>>, vector<1x8x128xbf16>
    %623 = vector.shape_cast %622 : vector<1x8x128xbf16> to vector<8x128xbf16>
    %624 = arith.truncf %621 : vector<4x8xf32> to vector<4x8xbf16>
    %cst_402 = arith.constant dense<0.000000e+00> : vector<4x128xf32>
    %625 = tpu.matmul %624, %623, %cst_402 {dimension_numbers = #tpu.dot_dimension_numbers<[1], [0], [0], [1], [0, 0, 1, 1], [], []>} : vector<4x8xbf16>, vector<8x128xbf16>, vector<4x128xf32> -> vector<4x128xf32>
    %626 = arith.addf %575, %625 : vector<4x128xf32>
    %c3_403 = arith.constant 3 : index
    %c0_404 = arith.constant 0 : index
    %c0_405 = arith.constant 0 : index
    %627 = vector.load %arg24[%c3_403, %c0_404, %c0_405] : memref<4x32x8xbf16, #tpu.memory_space<vmem>>, vector<1x32x8xbf16>
    %628 = vector.shape_cast %627 : vector<1x32x8xbf16> to vector<32x8xbf16>
    %629 = arith.truncf %474 : vector<4x32xf32> to vector<4x32xbf16>
    %cst_406 = arith.constant dense<0.000000e+00> : vector<4x8xf32>
    %630 = tpu.matmul %629, %628, %cst_406 {dimension_numbers = #tpu.dot_dimension_numbers<[1], [0], [0], [1], [0, 0, 1, 1], [], []>} : vector<4x32xbf16>, vector<32x8xbf16>, vector<4x8xf32> -> vector<4x8xf32>
    %c3_407 = arith.constant 3 : index
    %c0_408 = arith.constant 0 : index
    %c0_409 = arith.constant 0 : index
    %631 = vector.load %arg25[%c3_407, %c0_408, %c0_409] : memref<4x1x8xf32, #tpu.memory_space<vmem>>, vector<1x1x8xf32>
    %632 = vector.shape_cast %631 : vector<1x1x8xf32> to vector<1x8xf32>
    %633 = vector.broadcast %632 : vector<1x8xf32> to vector<4x8xf32>
    %634 = arith.addf %630, %633 : vector<4x8xf32>
    %c3_410 = arith.constant 3 : index
    %c0_411 = arith.constant 0 : index
    %c0_412 = arith.constant 0 : index
    %635 = vector.load %arg26[%c3_410, %c0_411, %c0_412] : memref<4x32x8xbf16, #tpu.memory_space<vmem>>, vector<1x32x8xbf16>
    %636 = vector.shape_cast %635 : vector<1x32x8xbf16> to vector<32x8xbf16>
    %637 = arith.truncf %474 : vector<4x32xf32> to vector<4x32xbf16>
    %cst_413 = arith.constant dense<0.000000e+00> : vector<4x8xf32>
    %638 = tpu.matmul %637, %636, %cst_413 {dimension_numbers = #tpu.dot_dimension_numbers<[1], [0], [0], [1], [0, 0, 1, 1], [], []>} : vector<4x32xbf16>, vector<32x8xbf16>, vector<4x8xf32> -> vector<4x8xf32>
    %c3_414 = arith.constant 3 : index
    %c0_415 = arith.constant 0 : index
    %c0_416 = arith.constant 0 : index
    %639 = vector.load %arg27[%c3_414, %c0_415, %c0_416] : memref<4x1x8xf32, #tpu.memory_space<vmem>>, vector<1x1x8xf32>
    %640 = vector.shape_cast %639 : vector<1x1x8xf32> to vector<1x8xf32>
    %641 = vector.broadcast %640 : vector<1x8xf32> to vector<4x8xf32>
    %642 = arith.addf %638, %641 : vector<4x8xf32>
    %c3_417 = arith.constant 3 : index
    %c0_418 = arith.constant 0 : index
    %c0_419 = arith.constant 0 : index
    %643 = vector.load %arg28[%c3_417, %c0_418, %c0_419] : memref<4x32x8xbf16, #tpu.memory_space<vmem>>, vector<1x32x8xbf16>
    %644 = vector.shape_cast %643 : vector<1x32x8xbf16> to vector<32x8xbf16>
    %645 = arith.truncf %474 : vector<4x32xf32> to vector<4x32xbf16>
    %cst_420 = arith.constant dense<0.000000e+00> : vector<4x8xf32>
    %646 = tpu.matmul %645, %644, %cst_420 {dimension_numbers = #tpu.dot_dimension_numbers<[1], [0], [0], [1], [0, 0, 1, 1], [], []>} : vector<4x32xbf16>, vector<32x8xbf16>, vector<4x8xf32> -> vector<4x8xf32>
    %c3_421 = arith.constant 3 : index
    %c0_422 = arith.constant 0 : index
    %c0_423 = arith.constant 0 : index
    %647 = vector.load %arg29[%c3_421, %c0_422, %c0_423] : memref<4x1x8xf32, #tpu.memory_space<vmem>>, vector<1x1x8xf32>
    %648 = vector.shape_cast %647 : vector<1x1x8xf32> to vector<1x8xf32>
    %649 = vector.broadcast %648 : vector<1x8xf32> to vector<4x8xf32>
    %650 = arith.addf %646, %649 : vector<4x8xf32>
    %c3_424 = arith.constant 3 : index
    %c0_425 = arith.constant 0 : index
    %c0_426 = arith.constant 0 : index
    %651 = vector.load %arg30[%c3_424, %c0_425, %c0_426] : memref<4x4x8xbf16, #tpu.memory_space<vmem>>, vector<1x4x8xbf16>
    %652 = vector.shape_cast %651 : vector<1x4x8xbf16> to vector<4x8xbf16>
    %653 = arith.truncf %634 : vector<4x8xf32> to vector<4x8xbf16>
    %654 = arith.truncf %642 : vector<4x8xf32> to vector<4x8xbf16>
    %cst_427 = arith.constant dense<0.000000e+00> : vector<4x4xf32>
    %655 = tpu.matmul %653, %654, %cst_427 {dimension_numbers = #tpu.dot_dimension_numbers<[1], [1], [0], [0], [0, 0, 1, 0], [], []>} : vector<4x8xbf16>, vector<4x8xbf16>, vector<4x4xf32> -> vector<4x4xf32>
    %656 = arith.truncf %634 : vector<4x8xf32> to vector<4x8xbf16>
    %cst_428 = arith.constant dense<0.000000e+00> : vector<4x4xf32>
    %657 = tpu.matmul %652, %656, %cst_428 {dimension_numbers = #tpu.dot_dimension_numbers<[1], [1], [0], [0], [0, 0, 1, 0], [], []>} : vector<4x8xbf16>, vector<4x8xbf16>, vector<4x4xf32> -> vector<4x4xf32>
    %658 = arith.addf %655, %657 : vector<4x4xf32>
    %cst_429 = arith.constant dense<0xFF800000> : vector<4xf32>
    %659 = vector.multi_reduction <maximumf>, %658, %cst_429 [1] : vector<4x4xf32> to vector<4xf32>
    %660 = vector.shape_cast %659 : vector<4xf32> to vector<4x1xf32>
    %661 = vector.broadcast %660 : vector<4x1xf32> to vector<4x4xf32>
    %662 = arith.subf %658, %661 : vector<4x4xf32>
    %663 = math.exp %662 : vector<4x4xf32>
    %cst_430 = arith.constant dense<0.000000e+00> : vector<4xf32>
    %664 = vector.multi_reduction <add>, %663, %cst_430 [1] : vector<4x4xf32> to vector<4xf32>
    %665 = vector.shape_cast %664 : vector<4xf32> to vector<4x1xf32>
    %666 = vector.broadcast %665 : vector<4x1xf32> to vector<4x4xf32>
    %667 = arith.divf %663, %666 : vector<4x4xf32>
    %668 = arith.truncf %667 : vector<4x4xf32> to vector<4x4xbf16>
    %669 = arith.truncf %650 : vector<4x8xf32> to vector<4x8xbf16>
    %cst_431 = arith.constant dense<0.000000e+00> : vector<4x8xf32>
    %670 = tpu.matmul %668, %669, %cst_431 {dimension_numbers = #tpu.dot_dimension_numbers<[1], [0], [0], [1], [0, 0, 1, 1], [], []>} : vector<4x4xbf16>, vector<4x8xbf16>, vector<4x8xf32> -> vector<4x8xf32>
    %cst_432 = arith.constant 0.000000e+00 : f32
    %671 = vector.broadcast %cst_432 : f32 to vector<4x8xf32>
    %672 = arith.maximumf %670, %671 : vector<4x8xf32>
    %c3_433 = arith.constant 3 : index
    %c0_434 = arith.constant 0 : index
    %c0_435 = arith.constant 0 : index
    %673 = vector.load %arg31[%c3_433, %c0_434, %c0_435] : memref<4x8x128xbf16, #tpu.memory_space<vmem>>, vector<1x8x128xbf16>
    %674 = vector.shape_cast %673 : vector<1x8x128xbf16> to vector<8x128xbf16>
    %675 = arith.truncf %672 : vector<4x8xf32> to vector<4x8xbf16>
    %cst_436 = arith.constant dense<0.000000e+00> : vector<4x128xf32>
    %676 = tpu.matmul %675, %674, %cst_436 {dimension_numbers = #tpu.dot_dimension_numbers<[1], [0], [0], [1], [0, 0, 1, 1], [], []>} : vector<4x8xbf16>, vector<8x128xbf16>, vector<4x128xf32> -> vector<4x128xf32>
    %677 = arith.addf %626, %676 : vector<4x128xf32>
    %678 = arith.addf %677, %469 : vector<4x128xf32>
    %cst_437 = arith.constant 0.000000e+00 : f32
    %679 = vector.broadcast %cst_437 : f32 to vector<4x128xf32>
    %680 = arith.maximumf %678, %679 : vector<4x128xf32>
    %681 = vector.extract_strided_slice %680 {offsets = [0, 0], sizes = [2, 128], strides = [1, 1]} : vector<4x128xf32> to vector<2x128xf32>
    %cst_438 = arith.constant dense<0xFF800000> : vector<128xf32>
    %682 = vector.multi_reduction <maximumf>, %681, %cst_438 [0] : vector<2x128xf32> to vector<128xf32>
    %683 = vector.shape_cast %682 : vector<128xf32> to vector<1x128xf32>
    %684 = vector.extract_strided_slice %680 {offsets = [2, 0], sizes = [2, 128], strides = [1, 1]} : vector<4x128xf32> to vector<2x128xf32>
    %cst_439 = arith.constant dense<0xFF800000> : vector<128xf32>
    %685 = vector.multi_reduction <maximumf>, %684, %cst_439 [0] : vector<2x128xf32> to vector<128xf32>
    %686 = vector.shape_cast %685 : vector<128xf32> to vector<1x128xf32>
    %687 = arith.maximumf %683, %686 : vector<1x128xf32>
    %c0_440 = arith.constant 0 : index
    %c0_441 = arith.constant 0 : index
    %688 = vector.load %arg32[%c0_440, %c0_441] : memref<128x32xbf16, #tpu.memory_space<vmem>>, vector<128x32xbf16>
    %689 = arith.truncf %687 : vector<1x128xf32> to vector<1x128xbf16>
    %cst_442 = arith.constant dense<0.000000e+00> : vector<1x32xf32>
    %690 = tpu.matmul %689, %688, %cst_442 {dimension_numbers = #tpu.dot_dimension_numbers<[1], [0], [0], [1], [0, 0, 1, 1], [], []>} : vector<1x128xbf16>, vector<128x32xbf16>, vector<1x32xf32> -> vector<1x32xf32>
    %cst_443 = arith.constant 0.000000e+00 : f32
    %691 = vector.broadcast %cst_443 : f32 to vector<1x32xf32>
    %692 = arith.maximumf %690, %691 : vector<1x32xf32>
    %c0_444 = arith.constant 0 : index
    %c0_445 = arith.constant 0 : index
    %693 = vector.load %arg33[%c0_444, %c0_445] : memref<32x32xbf16, #tpu.memory_space<vmem>>, vector<32x32xbf16>
    %694 = arith.truncf %692 : vector<1x32xf32> to vector<1x32xbf16>
    %cst_446 = arith.constant dense<0.000000e+00> : vector<1x32xf32>
    %695 = tpu.matmul %694, %693, %cst_446 {dimension_numbers = #tpu.dot_dimension_numbers<[1], [0], [0], [1], [0, 0, 1, 1], [], []>} : vector<1x32xbf16>, vector<32x32xbf16>, vector<1x32xf32> -> vector<1x32xf32>
    %c0_447 = arith.constant 0 : index
    %c0_448 = arith.constant 0 : index
    %696 = vector.load %arg34[%c0_447, %c0_448] : memref<1x32xf32, #tpu.memory_space<vmem>>, vector<1x32xf32>
    %697 = arith.addf %695, %696 : vector<1x32xf32>
    %cst_449 = arith.constant 0.000000e+00 : f32
    %698 = vector.broadcast %cst_449 : f32 to vector<1x32xf32>
    %699 = arith.maximumf %697, %698 : vector<1x32xf32>
    %c0_450 = arith.constant 0 : index
    %c0_451 = arith.constant 0 : index
    %700 = vector.load %arg35[%c0_450, %c0_451] : memref<32x128xbf16, #tpu.memory_space<vmem>>, vector<32x128xbf16>
    %701 = arith.truncf %699 : vector<1x32xf32> to vector<1x32xbf16>
    %cst_452 = arith.constant dense<0.000000e+00> : vector<1x128xf32>
    %702 = tpu.matmul %701, %700, %cst_452 {dimension_numbers = #tpu.dot_dimension_numbers<[1], [0], [0], [1], [0, 0, 1, 1], [], []>} : vector<1x32xbf16>, vector<32x128xbf16>, vector<1x128xf32> -> vector<1x128xf32>
    %703 = arith.addf %702, %687 : vector<1x128xf32>
    %cst_453 = arith.constant 0.000000e+00 : f32
    %704 = vector.broadcast %cst_453 : f32 to vector<1x128xf32>
    %705 = arith.maximumf %703, %704 : vector<1x128xf32>
    %c0_454 = arith.constant 0 : index
    %c0_455 = arith.constant 0 : index
    %706 = vector.load %arg36[%c0_454, %c0_455] : memref<128x32xbf16, #tpu.memory_space<vmem>>, vector<128x32xbf16>
    %707 = arith.truncf %705 : vector<1x128xf32> to vector<1x128xbf16>
    %cst_456 = arith.constant dense<0.000000e+00> : vector<1x32xf32>
    %708 = tpu.matmul %707, %706, %cst_456 {dimension_numbers = #tpu.dot_dimension_numbers<[1], [0], [0], [1], [0, 0, 1, 1], [], []>} : vector<1x128xbf16>, vector<128x32xbf16>, vector<1x32xf32> -> vector<1x32xf32>
    %cst_457 = arith.constant 0.000000e+00 : f32
    %709 = vector.broadcast %cst_457 : f32 to vector<1x32xf32>
    %710 = arith.maximumf %708, %709 : vector<1x32xf32>
    %c0_458 = arith.constant 0 : index
    %c0_459 = arith.constant 0 : index
    %711 = vector.load %arg37[%c0_458, %c0_459] : memref<32x32xbf16, #tpu.memory_space<vmem>>, vector<32x32xbf16>
    %712 = arith.truncf %710 : vector<1x32xf32> to vector<1x32xbf16>
    %cst_460 = arith.constant dense<0.000000e+00> : vector<1x32xf32>
    %713 = tpu.matmul %712, %711, %cst_460 {dimension_numbers = #tpu.dot_dimension_numbers<[1], [0], [0], [1], [0, 0, 1, 1], [], []>} : vector<1x32xbf16>, vector<32x32xbf16>, vector<1x32xf32> -> vector<1x32xf32>
    %c0_461 = arith.constant 0 : index
    %c0_462 = arith.constant 0 : index
    %714 = vector.load %arg38[%c0_461, %c0_462] : memref<1x32xf32, #tpu.memory_space<vmem>>, vector<1x32xf32>
    %715 = arith.addf %713, %714 : vector<1x32xf32>
    %cst_463 = arith.constant 0.000000e+00 : f32
    %716 = vector.broadcast %cst_463 : f32 to vector<1x32xf32>
    %717 = arith.maximumf %715, %716 : vector<1x32xf32>
    %c0_464 = arith.constant 0 : index
    %c0_465 = arith.constant 0 : index
    %718 = vector.load %arg39[%c0_464, %c0_465] : memref<32x128xbf16, #tpu.memory_space<vmem>>, vector<32x128xbf16>
    %719 = arith.truncf %717 : vector<1x32xf32> to vector<1x32xbf16>
    %cst_466 = arith.constant dense<0.000000e+00> : vector<1x128xf32>
    %720 = tpu.matmul %719, %718, %cst_466 {dimension_numbers = #tpu.dot_dimension_numbers<[1], [0], [0], [1], [0, 0, 1, 1], [], []>} : vector<1x32xbf16>, vector<32x128xbf16>, vector<1x128xf32> -> vector<1x128xf32>
    %721 = arith.addf %720, %705 : vector<1x128xf32>
    %cst_467 = arith.constant 0.000000e+00 : f32
    %722 = vector.broadcast %cst_467 : f32 to vector<1x128xf32>
    %723 = arith.maximumf %721, %722 : vector<1x128xf32>
    %c0_468 = arith.constant 0 : index
    %c0_469 = arith.constant 0 : index
    %724 = vector.load %arg40[%c0_468, %c0_469] : memref<128x32xbf16, #tpu.memory_space<vmem>>, vector<128x32xbf16>
    %725 = arith.truncf %723 : vector<1x128xf32> to vector<1x128xbf16>
    %cst_470 = arith.constant dense<0.000000e+00> : vector<1x32xf32>
    %726 = tpu.matmul %725, %724, %cst_470 {dimension_numbers = #tpu.dot_dimension_numbers<[1], [0], [0], [1], [0, 0, 1, 1], [], []>} : vector<1x128xbf16>, vector<128x32xbf16>, vector<1x32xf32> -> vector<1x32xf32>
    %cst_471 = arith.constant 0.000000e+00 : f32
    %727 = vector.broadcast %cst_471 : f32 to vector<1x32xf32>
    %728 = arith.maximumf %726, %727 : vector<1x32xf32>
    %c0_472 = arith.constant 0 : index
    %c0_473 = arith.constant 0 : index
    %729 = vector.load %arg41[%c0_472, %c0_473] : memref<32x32xbf16, #tpu.memory_space<vmem>>, vector<32x32xbf16>
    %730 = arith.truncf %728 : vector<1x32xf32> to vector<1x32xbf16>
    %cst_474 = arith.constant dense<0.000000e+00> : vector<1x32xf32>
    %731 = tpu.matmul %730, %729, %cst_474 {dimension_numbers = #tpu.dot_dimension_numbers<[1], [0], [0], [1], [0, 0, 1, 1], [], []>} : vector<1x32xbf16>, vector<32x32xbf16>, vector<1x32xf32> -> vector<1x32xf32>
    %c0_475 = arith.constant 0 : index
    %c0_476 = arith.constant 0 : index
    %732 = vector.load %arg42[%c0_475, %c0_476] : memref<1x32xf32, #tpu.memory_space<vmem>>, vector<1x32xf32>
    %733 = arith.addf %731, %732 : vector<1x32xf32>
    %cst_477 = arith.constant 0.000000e+00 : f32
    %734 = vector.broadcast %cst_477 : f32 to vector<1x32xf32>
    %735 = arith.maximumf %733, %734 : vector<1x32xf32>
    %c0_478 = arith.constant 0 : index
    %c0_479 = arith.constant 0 : index
    %736 = vector.load %arg43[%c0_478, %c0_479] : memref<32x128xbf16, #tpu.memory_space<vmem>>, vector<32x128xbf16>
    %737 = arith.truncf %735 : vector<1x32xf32> to vector<1x32xbf16>
    %cst_480 = arith.constant dense<0.000000e+00> : vector<1x128xf32>
    %738 = tpu.matmul %737, %736, %cst_480 {dimension_numbers = #tpu.dot_dimension_numbers<[1], [0], [0], [1], [0, 0, 1, 1], [], []>} : vector<1x32xbf16>, vector<32x128xbf16>, vector<1x128xf32> -> vector<1x128xf32>
    %739 = arith.addf %738, %723 : vector<1x128xf32>
    %cst_481 = arith.constant 0.000000e+00 : f32
    %740 = vector.broadcast %cst_481 : f32 to vector<1x128xf32>
    %741 = arith.maximumf %739, %740 : vector<1x128xf32>
    %cst_482 = arith.constant 0.000000e+00 : f32
    %742 = vector.broadcast %cst_482 : f32 to vector<1x128xf32>
    %743 = arith.cmpf oge, %741, %742 : vector<1x128xf32>
    %cst_483 = arith.constant 0.00999999977 : f32
    %744 = vector.broadcast %cst_483 : f32 to vector<1x128xf32>
    %745 = arith.mulf %744, %741 : vector<1x128xf32>
    %746 = arith.select %743, %741, %745 : vector<1x128xi1>, vector<1x128xf32>
    %c0_484 = arith.constant 0 : index
    %c0_485 = arith.constant 0 : index
    %747 = vector.load %arg44[%c0_484, %c0_485] : memref<128x128xbf16, #tpu.memory_space<vmem>>, vector<128x128xbf16>
    %748 = arith.truncf %746 : vector<1x128xf32> to vector<1x128xbf16>
    %cst_486 = arith.constant dense<0.000000e+00> : vector<1x128xf32>
    %749 = tpu.matmul %748, %747, %cst_486 {dimension_numbers = #tpu.dot_dimension_numbers<[1], [0], [0], [1], [0, 0, 1, 1], [], []>} : vector<1x128xbf16>, vector<128x128xbf16>, vector<1x128xf32> -> vector<1x128xf32>
    %c0_487 = arith.constant 0 : index
    %c0_488 = arith.constant 0 : index
    %750 = vector.load %arg45[%c0_487, %c0_488] : memref<1x128xf32, #tpu.memory_space<vmem>>, vector<1x128xf32>
    %751 = arith.addf %749, %750 : vector<1x128xf32>
    %cst_489 = arith.constant 0.000000e+00 : f32
    %752 = vector.broadcast %cst_489 : f32 to vector<1x128xf32>
    %753 = arith.cmpf oge, %751, %752 : vector<1x128xf32>
    %cst_490 = arith.constant 0.00999999977 : f32
    %754 = vector.broadcast %cst_490 : f32 to vector<1x128xf32>
    %755 = arith.mulf %754, %751 : vector<1x128xf32>
    %756 = arith.select %753, %751, %755 : vector<1x128xi1>, vector<1x128xf32>
    %c0_491 = arith.constant 0 : index
    %c0_492 = arith.constant 0 : index
    %757 = vector.load %arg46[%c0_491, %c0_492] : memref<128x2xbf16, #tpu.memory_space<vmem>>, vector<128x2xbf16>
    %758 = arith.truncf %756 : vector<1x128xf32> to vector<1x128xbf16>
    %cst_493 = arith.constant dense<0.000000e+00> : vector<1x2xf32>
    %759 = tpu.matmul %758, %757, %cst_493 {dimension_numbers = #tpu.dot_dimension_numbers<[1], [0], [0], [1], [0, 0, 1, 1], [], []>} : vector<1x128xbf16>, vector<128x2xbf16>, vector<1x2xf32> -> vector<1x2xf32>
    %c0_494 = arith.constant 0 : index
    %c0_495 = arith.constant 0 : index
    %760 = vector.load %arg47[%c0_494, %c0_495] : memref<1x2xf32, #tpu.memory_space<vmem>>, vector<1x2xf32>
    %761 = arith.addf %759, %760 : vector<1x2xf32>
    %cst_496 = arith.constant dense<0xFF800000> : vector<1xf32>
    %762 = vector.multi_reduction <maximumf>, %761, %cst_496 [1] : vector<1x2xf32> to vector<1xf32>
    %763 = vector.shape_cast %762 : vector<1xf32> to vector<1x1xf32>
    %764 = vector.broadcast %763 : vector<1x1xf32> to vector<1x2xf32>
    %765 = arith.subf %761, %764 : vector<1x2xf32>
    %766 = vector.broadcast %763 : vector<1x1xf32> to vector<1x2xf32>
    %767 = arith.subf %761, %766 : vector<1x2xf32>
    %768 = math.exp %767 : vector<1x2xf32>
    %cst_497 = arith.constant dense<0.000000e+00> : vector<1xf32>
    %769 = vector.multi_reduction <add>, %768, %cst_497 [1] : vector<1x2xf32> to vector<1xf32>
    %770 = vector.shape_cast %769 : vector<1xf32> to vector<1x1xf32>
    %771 = math.log %770 : vector<1x1xf32>
    %772 = vector.broadcast %771 : vector<1x1xf32> to vector<1x2xf32>
    %773 = arith.subf %765, %772 : vector<1x2xf32>
    %c0_498 = arith.constant 0 : index
    %c0_499 = arith.constant 0 : index
    %c0_500 = arith.constant 0 : index
    %774 = vector.load %arg48[%c0_498, %c0_499, %c0_500] : memref<1x1x2xf32, #tpu.memory_space<vmem>>, vector<1x1x2xf32>
    %775 = vector.shape_cast %774 : vector<1x1x2xf32> to vector<1x2xf32>
    %776 = vector.shape_cast %773 : vector<1x2xf32> to vector<1x1x2xf32>
    tpu.vector_store %arg48[%c0_498, %c0_499, %c0_500], %776 {strides = array<i32>} : memref<1x1x2xf32, #tpu.memory_space<vmem>>, vector<1x1x2xf32>,
    return
  }
  func.func @transform_0(%arg0: i32) -> (i32, i32, i32) {
    %c0_i32 = arith.constant 0 : i32
    %c0_i32_0 = arith.constant 0 : i32
    %c0_i32_1 = arith.constant 0 : i32
    return %arg0, %c0_i32, %c0_i32_0 : i32, i32, i32
  }
  func.func @transform_1(%arg0: i32) -> (i32, i32) {
    %c0_i32 = arith.constant 0 : i32
    %c0_i32_0 = arith.constant 0 : i32
    %c0_i32_1 = arith.constant 0 : i32
    return %c0_i32, %c0_i32_0 : i32, i32
  }
  func.func @transform_2(%arg0: i32) -> (i32, i32) {
    %c0_i32 = arith.constant 0 : i32
    %c0_i32_0 = arith.constant 0 : i32
    %c0_i32_1 = arith.constant 0 : i32
    return %c0_i32, %c0_i32_0 : i32, i32
  }
  func.func @transform_3(%arg0: i32) -> (i32, i32, i32) {
    %c0_i32 = arith.constant 0 : i32
    %c0_i32_0 = arith.constant 0 : i32
    %c0_i32_1 = arith.constant 0 : i32
    %c0_i32_2 = arith.constant 0 : i32
    return %c0_i32, %c0_i32_0, %c0_i32_1 : i32, i32, i32
  }
  func.func @transform_4(%arg0: i32) -> (i32, i32, i32) {
    %c0_i32 = arith.constant 0 : i32
    %c0_i32_0 = arith.constant 0 : i32
    %c0_i32_1 = arith.constant 0 : i32
    %c0_i32_2 = arith.constant 0 : i32
    return %c0_i32, %c0_i32_0, %c0_i32_1 : i32, i32, i32
  }
  func.func @transform_5(%arg0: i32) -> (i32, i32, i32) {
    %c0_i32 = arith.constant 0 : i32
    %c0_i32_0 = arith.constant 0 : i32
    %c0_i32_1 = arith.constant 0 : i32
    %c0_i32_2 = arith.constant 0 : i32
    return %c0_i32, %c0_i32_0, %c0_i32_1 : i32, i32, i32
  }
  func.func @transform_6(%arg0: i32) -> (i32, i32, i32) {
    %c0_i32 = arith.constant 0 : i32
    %c0_i32_0 = arith.constant 0 : i32
    %c0_i32_1 = arith.constant 0 : i32
    %c0_i32_2 = arith.constant 0 : i32
    return %c0_i32, %c0_i32_0, %c0_i32_1 : i32, i32, i32
  }
  func.func @transform_7(%arg0: i32) -> (i32, i32, i32) {
    %c0_i32 = arith.constant 0 : i32
    %c0_i32_0 = arith.constant 0 : i32
    %c0_i32_1 = arith.constant 0 : i32
    %c0_i32_2 = arith.constant 0 : i32
    return %c0_i32, %c0_i32_0, %c0_i32_1 : i32, i32, i32
  }
  func.func @transform_8(%arg0: i32) -> (i32, i32, i32) {
    %c0_i32 = arith.constant 0 : i32
    %c0_i32_0 = arith.constant 0 : i32
    %c0_i32_1 = arith.constant 0 : i32
    %c0_i32_2 = arith.constant 0 : i32
    return %c0_i32, %c0_i32_0, %c0_i32_1 : i32, i32, i32
  }
  func.func @transform_9(%arg0: i32) -> (i32, i32, i32) {
    %c0_i32 = arith.constant 0 : i32
    %c0_i32_0 = arith.constant 0 : i32
    %c0_i32_1 = arith.constant 0 : i32
    %c0_i32_2 = arith.constant 0 : i32
    return %c0_i32, %c0_i32_0, %c0_i32_1 : i32, i32, i32
  }
  func.func @transform_10(%arg0: i32) -> (i32, i32, i32) {
    %c0_i32 = arith.constant 0 : i32
    %c0_i32_0 = arith.constant 0 : i32
    %c0_i32_1 = arith.constant 0 : i32
    %c0_i32_2 = arith.constant 0 : i32
    return %c0_i32, %c0_i32_0, %c0_i32_1 : i32, i32, i32
  }
  func.func @transform_11(%arg0: i32) -> (i32, i32) {
    %c0_i32 = arith.constant 0 : i32
    %c0_i32_0 = arith.constant 0 : i32
    %c0_i32_1 = arith.constant 0 : i32
    return %c0_i32, %c0_i32_0 : i32, i32
  }
  func.func @transform_12(%arg0: i32) -> (i32, i32) {
    %c0_i32 = arith.constant 0 : i32
    %c0_i32_0 = arith.constant 0 : i32
    %c0_i32_1 = arith.constant 0 : i32
    return %c0_i32, %c0_i32_0 : i32, i32
  }
  func.func @transform_13(%arg0: i32) -> (i32, i32) {
    %c0_i32 = arith.constant 0 : i32
    %c0_i32_0 = arith.constant 0 : i32
    %c0_i32_1 = arith.constant 0 : i32
    return %c0_i32, %c0_i32_0 : i32, i32
  }
  func.func @transform_14(%arg0: i32) -> (i32, i32, i32) {
    %c0_i32 = arith.constant 0 : i32
    %c0_i32_0 = arith.constant 0 : i32
    %c0_i32_1 = arith.constant 0 : i32
    %c0_i32_2 = arith.constant 0 : i32
    return %c0_i32, %c0_i32_0, %c0_i32_1 : i32, i32, i32
  }
  func.func @transform_15(%arg0: i32) -> (i32, i32, i32) {
    %c0_i32 = arith.constant 0 : i32
    %c0_i32_0 = arith.constant 0 : i32
    %c0_i32_1 = arith.constant 0 : i32
    %c0_i32_2 = arith.constant 0 : i32
    return %c0_i32, %c0_i32_0, %c0_i32_1 : i32, i32, i32
  }
  func.func @transform_16(%arg0: i32) -> (i32, i32, i32) {
    %c0_i32 = arith.constant 0 : i32
    %c0_i32_0 = arith.constant 0 : i32
    %c0_i32_1 = arith.constant 0 : i32
    %c0_i32_2 = arith.constant 0 : i32
    return %c0_i32, %c0_i32_0, %c0_i32_1 : i32, i32, i32
  }
  func.func @transform_17(%arg0: i32) -> (i32, i32, i32) {
    %c0_i32 = arith.constant 0 : i32
    %c0_i32_0 = arith.constant 0 : i32
    %c0_i32_1 = arith.constant 0 : i32
    %c0_i32_2 = arith.constant 0 : i32
    return %c0_i32, %c0_i32_0, %c0_i32_1 : i32, i32, i32
  }
  func.func @transform_18(%arg0: i32) -> (i32, i32, i32) {
    %c0_i32 = arith.constant 0 : i32
    %c0_i32_0 = arith.constant 0 : i32
    %c0_i32_1 = arith.constant 0 : i32
    %c0_i32_2 = arith.constant 0 : i32
    return %c0_i32, %c0_i32_0, %c0_i32_1 : i32, i32, i32
  }
  func.func @transform_19(%arg0: i32) -> (i32, i32, i32) {
    %c0_i32 = arith.constant 0 : i32
    %c0_i32_0 = arith.constant 0 : i32
    %c0_i32_1 = arith.constant 0 : i32
    %c0_i32_2 = arith.constant 0 : i32
    return %c0_i32, %c0_i32_0, %c0_i32_1 : i32, i32, i32
  }
  func.func @transform_20(%arg0: i32) -> (i32, i32, i32) {
    %c0_i32 = arith.constant 0 : i32
    %c0_i32_0 = arith.constant 0 : i32
    %c0_i32_1 = arith.constant 0 : i32
    %c0_i32_2 = arith.constant 0 : i32
    return %c0_i32, %c0_i32_0, %c0_i32_1 : i32, i32, i32
  }
  func.func @transform_21(%arg0: i32) -> (i32, i32, i32) {
    %c0_i32 = arith.constant 0 : i32
    %c0_i32_0 = arith.constant 0 : i32
    %c0_i32_1 = arith.constant 0 : i32
    %c0_i32_2 = arith.constant 0 : i32
    return %c0_i32, %c0_i32_0, %c0_i32_1 : i32, i32, i32
  }
  func.func @transform_22(%arg0: i32) -> (i32, i32) {
    %c0_i32 = arith.constant 0 : i32
    %c0_i32_0 = arith.constant 0 : i32
    %c0_i32_1 = arith.constant 0 : i32
    return %c0_i32, %c0_i32_0 : i32, i32
  }
  func.func @transform_23(%arg0: i32) -> (i32, i32, i32) {
    %c0_i32 = arith.constant 0 : i32
    %c0_i32_0 = arith.constant 0 : i32
    %c0_i32_1 = arith.constant 0 : i32
    %c0_i32_2 = arith.constant 0 : i32
    return %c0_i32, %c0_i32_0, %c0_i32_1 : i32, i32, i32
  }
  func.func @transform_24(%arg0: i32) -> (i32, i32, i32) {
    %c0_i32 = arith.constant 0 : i32
    %c0_i32_0 = arith.constant 0 : i32
    %c0_i32_1 = arith.constant 0 : i32
    %c0_i32_2 = arith.constant 0 : i32
    return %c0_i32, %c0_i32_0, %c0_i32_1 : i32, i32, i32
  }
  func.func @transform_25(%arg0: i32) -> (i32, i32, i32) {
    %c0_i32 = arith.constant 0 : i32
    %c0_i32_0 = arith.constant 0 : i32
    %c0_i32_1 = arith.constant 0 : i32
    %c0_i32_2 = arith.constant 0 : i32
    return %c0_i32, %c0_i32_0, %c0_i32_1 : i32, i32, i32
  }
  func.func @transform_26(%arg0: i32) -> (i32, i32, i32) {
    %c0_i32 = arith.constant 0 : i32
    %c0_i32_0 = arith.constant 0 : i32
    %c0_i32_1 = arith.constant 0 : i32
    %c0_i32_2 = arith.constant 0 : i32
    return %c0_i32, %c0_i32_0, %c0_i32_1 : i32, i32, i32
  }
  func.func @transform_27(%arg0: i32) -> (i32, i32, i32) {
    %c0_i32 = arith.constant 0 : i32
    %c0_i32_0 = arith.constant 0 : i32
    %c0_i32_1 = arith.constant 0 : i32
    %c0_i32_2 = arith.constant 0 : i32
    return %c0_i32, %c0_i32_0, %c0_i32_1 : i32, i32, i32
  }
  func.func @transform_28(%arg0: i32) -> (i32, i32, i32) {
    %c0_i32 = arith.constant 0 : i32
    %c0_i32_0 = arith.constant 0 : i32
    %c0_i32_1 = arith.constant 0 : i32
    %c0_i32_2 = arith.constant 0 : i32
    return %c0_i32, %c0_i32_0, %c0_i32_1 : i32, i32, i32
  }
  func.func @transform_29(%arg0: i32) -> (i32, i32, i32) {
    %c0_i32 = arith.constant 0 : i32
    %c0_i32_0 = arith.constant 0 : i32
    %c0_i32_1 = arith.constant 0 : i32
    %c0_i32_2 = arith.constant 0 : i32
    return %c0_i32, %c0_i32_0, %c0_i32_1 : i32, i32, i32
  }
  func.func @transform_30(%arg0: i32) -> (i32, i32, i32) {
    %c0_i32 = arith.constant 0 : i32
    %c0_i32_0 = arith.constant 0 : i32
    %c0_i32_1 = arith.constant 0 : i32
    %c0_i32_2 = arith.constant 0 : i32
    return %c0_i32, %c0_i32_0, %c0_i32_1 : i32, i32, i32
  }
  func.func @transform_31(%arg0: i32) -> (i32, i32) {
    %c0_i32 = arith.constant 0 : i32
    %c0_i32_0 = arith.constant 0 : i32
    %c0_i32_1 = arith.constant 0 : i32
    return %c0_i32, %c0_i32_0 : i32, i32
  }
  func.func @transform_32(%arg0: i32) -> (i32, i32) {
    %c0_i32 = arith.constant 0 : i32
    %c0_i32_0 = arith.constant 0 : i32
    %c0_i32_1 = arith.constant 0 : i32
    return %c0_i32, %c0_i32_0 : i32, i32
  }
  func.func @transform_33(%arg0: i32) -> (i32, i32) {
    %c0_i32 = arith.constant 0 : i32
    %c0_i32_0 = arith.constant 0 : i32
    %c0_i32_1 = arith.constant 0 : i32
    return %c0_i32, %c0_i32_0 : i32, i32
  }
  func.func @transform_34(%arg0: i32) -> (i32, i32) {
    %c0_i32 = arith.constant 0 : i32
    %c0_i32_0 = arith.constant 0 : i32
    %c0_i32_1 = arith.constant 0 : i32
    return %c0_i32, %c0_i32_0 : i32, i32
  }
  func.func @transform_35(%arg0: i32) -> (i32, i32) {
    %c0_i32 = arith.constant 0 : i32
    %c0_i32_0 = arith.constant 0 : i32
    %c0_i32_1 = arith.constant 0 : i32
    return %c0_i32, %c0_i32_0 : i32, i32
  }
  func.func @transform_36(%arg0: i32) -> (i32, i32) {
    %c0_i32 = arith.constant 0 : i32
    %c0_i32_0 = arith.constant 0 : i32
    %c0_i32_1 = arith.constant 0 : i32
    return %c0_i32, %c0_i32_0 : i32, i32
  }
  func.func @transform_37(%arg0: i32) -> (i32, i32) {
    %c0_i32 = arith.constant 0 : i32
    %c0_i32_0 = arith.constant 0 : i32
    %c0_i32_1 = arith.constant 0 : i32
    return %c0_i32, %c0_i32_0 : i32, i32
  }
  func.func @transform_38(%arg0: i32) -> (i32, i32) {
    %c0_i32 = arith.constant 0 : i32
    %c0_i32_0 = arith.constant 0 : i32
    %c0_i32_1 = arith.constant 0 : i32
    return %c0_i32, %c0_i32_0 : i32, i32
  }
  func.func @transform_39(%arg0: i32) -> (i32, i32) {
    %c0_i32 = arith.constant 0 : i32
    %c0_i32_0 = arith.constant 0 : i32
    %c0_i32_1 = arith.constant 0 : i32
    return %c0_i32, %c0_i32_0 : i32, i32
  }
  func.func @transform_40(%arg0: i32) -> (i32, i32) {
    %c0_i32 = arith.constant 0 : i32
    %c0_i32_0 = arith.constant 0 : i32
    %c0_i32_1 = arith.constant 0 : i32
    return %c0_i32, %c0_i32_0 : i32, i32
  }
  func.func @transform_41(%arg0: i32) -> (i32, i32) {
    %c0_i32 = arith.constant 0 : i32
    %c0_i32_0 = arith.constant 0 : i32
    %c0_i32_1 = arith.constant 0 : i32
    return %c0_i32, %c0_i32_0 : i32, i32
  }
  func.func @transform_42(%arg0: i32) -> (i32, i32) {
    %c0_i32 = arith.constant 0 : i32
    %c0_i32_0 = arith.constant 0 : i32
    %c0_i32_1 = arith.constant 0 : i32
    return %c0_i32, %c0_i32_0 : i32, i32
  }
  func.func @transform_43(%arg0: i32) -> (i32, i32) {
    %c0_i32 = arith.constant 0 : i32
    %c0_i32_0 = arith.constant 0 : i32
    %c0_i32_1 = arith.constant 0 : i32
    return %c0_i32, %c0_i32_0 : i32, i32
  }
  func.func @transform_44(%arg0: i32) -> (i32, i32) {
    %c0_i32 = arith.constant 0 : i32
    %c0_i32_0 = arith.constant 0 : i32
    %c0_i32_1 = arith.constant 0 : i32
    return %c0_i32, %c0_i32_0 : i32, i32
  }
  func.func @transform_45(%arg0: i32) -> (i32, i32) {
    %c0_i32 = arith.constant 0 : i32
    %c0_i32_0 = arith.constant 0 : i32
    %c0_i32_1 = arith.constant 0 : i32
    return %c0_i32, %c0_i32_0 : i32, i32
  }
  func.func @transform_46(%arg0: i32) -> (i32, i32) {
    %c0_i32 = arith.constant 0 : i32
    %c0_i32_0 = arith.constant 0 : i32
    %c0_i32_1 = arith.constant 0 : i32
    return %c0_i32, %c0_i32_0 : i32, i32
  }
  func.func @transform_47(%arg0: i32) -> (i32, i32, i32) {
    %c0_i32 = arith.constant 0 : i32
    %c0_i32_0 = arith.constant 0 : i32
    %c0_i32_1 = arith.constant 0 : i32
    return %arg0, %c0_i32, %c0_i32_0 : i32, i32, i32
  }
}

</mosaic_0001>

<bundles_post_ra>
// kernel: lfcc_botnet_forward.1
= control target key start
LH: loop header
LB: loop body
LE: loop exit
PB: predicated region body
PF: predicated region fallthrough
CT: control target
= control target key end

     0   :  { %s12559_s6 = smov 1   ;;  %s12560_s10 = smov 2   ;;  %s14734_s0 = inlined_call_operand.smem [shape: u32[48], index: -1, kind: input, shape index: {}] }
   0x1   :  { %s12618_s5 = sld [smem:[%s14734_s0]]   ;;  %s12561_s14 = smov 3  }
   0x2   :  { %s12623_s9 = sld [smem:[%s14734_s0 + %s12559_s6]]   ;;  %s12562_s18 = smov 4  }
   0x3   :  { %s12628_s13 = sld [smem:[%s14734_s0 + %s12560_s10]]   ;;  %s12563_s22 = smov 5  }
   0x4   :  { %s12633_s17 = sld [smem:[%s14734_s0 + %s12561_s14]]   ;;  %s12564_s26 = smov 6  }
   0x5   :  { %s12638_s21 = sld [smem:[%s14734_s0 + %s12562_s18]]   ;;  %s12565_s30 = smov 7  }
   0x6   :  { %s12643_s25 = sld [smem:[%s14734_s0 + %s12563_s22]]   ;;  %s12566_s4 = smov 8  }
   0x7   :  { %14792 = sst [smem:[#allocation5_spill]] %s12618_s5  ;;  %s12567_s10 = smov 9  }
   0x8   :  { %14793 = sst [smem:[#allocation6_spill]] %s12623_s9  ;;  %s12568_s15 = smov 10  }
   0x9   :  { %s12648_s29 = sld [smem:[%s14734_s0 + %s12564_s26]]   ;;  %s12569_s20 = smov 11  }
   0xa   :  { %s12653_s3 = sld [smem:[%s14734_s0 + %s12565_s30]]   ;;  %s12570_s26 = smov 12  }
   0xb   :  { %s12658_s8 = sld [smem:[%s14734_s0 + %s12566_s4]]   ;;  %s12571_s1 = smov 13  }
   0xc   :  { %s12663_s14 = sld [smem:[%s14734_s0 + %s12567_s10]]   ;;  %s12572_s7 = smov 14  }
   0xd   :  { %s12668_s19 = sld [smem:[%s14734_s0 + %s12568_s15]]   ;;  %s12573_s15 = smov 15  }
   0xe   :  { %s12673_s24 = sld [smem:[%s14734_s0 + %s12569_s20]]   ;;  %s12574_s22 = smov 16  }
   0xf   :  { %s12678_s30 = sld [smem:[%s14734_s0 + %s12570_s26]]   ;;  %s12575_s28 = smov 17  }
  0x10   :  { %14794 = sst [smem:[#allocation7_spill]] %s12653_s3 }
  0x11   :  { %14795 = sst [smem:[#allocation8_spill]] %s12658_s8 }
  0x12   :  { %s12683_s6 = sld [smem:[%s14734_s0 + %s12571_s1]]  }
  0x13   :  { %s12688_s12 = sld [smem:[%s14734_s0 + %s12572_s7]]   ;;  %s12576_s7 = smov 18  }
  0x14   :  { %s12693_s20 = sld [smem:[%s14734_s0 + %s12573_s15]]   ;;  %s12577_s15 = smov 19  }
  0x15   :  { %s12698_s27 = sld [smem:[%s14734_s0 + %s12574_s22]]   ;;  %s12578_s22 = smov 20  }
  0x16   :  { %s12703_s4 = sld [smem:[%s14734_s0 + %s12575_s28]]   ;;  %s12579_s28 = smov 21  }
  0x18   :  { %14796 = sst [smem:[#allocation9_spill]] %s12683_s6 }
  0x19   :  { %14797 = sst [smem:[#allocation10_spill]] %s12688_s12 }
  0x1a   :  { %14798 = sst [smem:[#allocation11_spill]] %s12693_s20 }
  0x1b   :  { %14799 = sst [smem:[#allocation12_spill]] %s12698_s27 }
  0x1c   :  { %14800 = sst [smem:[#allocation13_spill]] %s12703_s4 }
  0x1d   :  { %s12708_s12 = sld [smem:[%s14734_s0 + %s12576_s7]]   ;;  %s12580_s7 = smov 22  }
  0x1e   :  { %s12713_s20 = sld [smem:[%s14734_s0 + %s12577_s15]]   ;;  %s12581_s15 = smov 23  }
  0x1f   :  { %s12718_s27 = sld [smem:[%s14734_s0 + %s12578_s22]]   ;;  %s12582_s22 = smov 24  }
  0x20   :  { %s12723_s4 = sld [smem:[%s14734_s0 + %s12579_s28]]   ;;  %s12583_s28 = smov 25  }
  0x23   :  { %14801 = sst [smem:[#allocation14_spill]] %s12708_s12 }
  0x24   :  { %14802 = sst [smem:[#allocation15_spill]] %s12713_s20 }
  0x25   :  { %14803 = sst [smem:[#allocation16_spill]] %s12718_s27 }
  0x26   :  { %14804 = sst [smem:[#allocation17_spill]] %s12723_s4 }
  0x27   :  { %s12728_s12 = sld [smem:[%s14734_s0 + %s12580_s7]]   ;;  %s12584_s7 = smov 26  }
  0x28   :  { %s12733_s20 = sld [smem:[%s14734_s0 + %s12581_s15]]   ;;  %s12585_s15 = smov 27  }
  0x29   :  { %s12738_s27 = sld [smem:[%s14734_s0 + %s12582_s22]]   ;;  %s12586_s22 = smov 28  }
  0x2a   :  { %s12743_s4 = sld [smem:[%s14734_s0 + %s12583_s28]]   ;;  %s12587_s28 = smov 29  }
  0x2d   :  { %14805 = sst [smem:[#allocation18_spill]] %s12728_s12 }
  0x2e   :  { %14806 = sst [smem:[#allocation19_spill]] %s12733_s20 }
  0x2f   :  { %14807 = sst [smem:[#allocation20_spill]] %s12738_s27 }
  0x30   :  { %14808 = sst [smem:[#allocation21_spill]] %s12743_s4 }
  0x31   :  { %s12748_s12 = sld [smem:[%s14734_s0 + %s12584_s7]]   ;;  %s12588_s7 = smov 30  }
  0x32   :  { %s12753_s20 = sld [smem:[%s14734_s0 + %s12585_s15]]   ;;  %s12589_s15 = smov 31  }
  0x33   :  { %s12758_s27 = sld [smem:[%s14734_s0 + %s12586_s22]]   ;;  %s12590_s22 = smov 32  }
  0x34   :  { %s12763_s4 = sld [smem:[%s14734_s0 + %s12587_s28]]   ;;  %s12591_s28 = smov 33  }
  0x37   :  { %14809 = sst [smem:[#allocation22_spill]] %s12748_s12 }
  0x38   :  { %14810 = sst [smem:[#allocation23_spill]] %s12753_s20 }
  0x39   :  { %14811 = sst [smem:[#allocation24_spill]] %s12758_s27 }
  0x3a   :  { %14812 = sst [smem:[#allocation25_spill]] %s12763_s4 }
  0x3b   :  { %s12768_s12 = sld [smem:[%s14734_s0 + %s12588_s7]]   ;;  %s12592_s7 = smov 34  }
  0x3c   :  { %s12773_s20 = sld [smem:[%s14734_s0 + %s12589_s15]]   ;;  %s12593_s15 = smov 35  }
  0x3d   :  { %s12778_s27 = sld [smem:[%s14734_s0 + %s12590_s22]]   ;;  %s12594_s22 = smov 36  }
  0x3e   :  { %s12783_s4 = sld [smem:[%s14734_s0 + %s12591_s28]]   ;;  %s12595_s28 = smov 37  }
  0x41   :  { %14813 = sst [smem:[#allocation26_spill]] %s12768_s12 }
  0x42   :  { %14814 = sst [smem:[#allocation27_spill]] %s12773_s20 }
  0x43   :  { %14815 = sst [smem:[#allocation28_spill]] %s12778_s27 }
  0x44   :  { %14816 = sst [smem:[#allocation29_spill]] %s12783_s4 }
  0x45   :  { %s12788_s12 = sld [smem:[%s14734_s0 + %s12592_s7]]   ;;  %s12596_s7 = smov 38  }
  0x46   :  { %s12793_s20 = sld [smem:[%s14734_s0 + %s12593_s15]]   ;;  %s12597_s15 = smov 39  }
  0x47   :  { %s12798_s27 = sld [smem:[%s14734_s0 + %s12594_s22]]   ;;  %s12598_s22 = smov 40  }
  0x48   :  { %s12803_s4 = sld [smem:[%s14734_s0 + %s12595_s28]]   ;;  %s12599_s28 = smov 41  }
  0x4b   :  { %14817 = sst [smem:[#allocation30_spill]] %s12788_s12 }
  0x4c   :  { %14818 = sst [smem:[#allocation31_spill]] %s12793_s20 }
  0x4d   :  { %14819 = sst [smem:[#allocation32_spill]] %s12798_s27 }
  0x4e   :  { %14820 = sst [smem:[#allocation33_spill]] %s12803_s4 }
  0x4f   :  { %s12808_s12 = sld [smem:[%s14734_s0 + %s12596_s7]]   ;;  %s12600_s7 = smov 42  }
  0x50   :  { %s12813_s20 = sld [smem:[%s14734_s0 + %s12597_s15]]   ;;  %s12601_s15 = smov 43  }
  0x51   :  { %s12818_s27 = sld [smem:[%s14734_s0 + %s12598_s22]]   ;;  %s12602_s22 = smov 44  }
  0x52   :  { %s12823_s4 = sld [smem:[%s14734_s0 + %s12599_s28]]   ;;  %s12603_s28 = smov 45  }
  0x55   :  { %14821 = sst [smem:[#allocation34_spill]] %s12808_s12 }
  0x56   :  { %14822 = sst [smem:[#allocation35_spill]] %s12813_s20 }
  0x57   :  { %14823 = sst [smem:[#allocation36_spill]] %s12818_s27 }
  0x58   :  { %14824 = sst [smem:[#allocation37_spill]] %s12823_s4 }
  0x59   :  { %s12828_s12 = sld [smem:[%s14734_s0 + %s12600_s7]]   ;;  %s12604_s7 = smov 46  }
  0x5a   :  { %s12833_s20 = sld [smem:[%s14734_s0 + %s12601_s15]]   ;;  %s12605_s15 = smov 47  }
  0x5b   :  { %s12838_s27 = sld [smem:[%s14734_s0 + %s12602_s22]]  }
  0x5c   :  { %s12843_s4 = sld [smem:[%s14734_s0 + %s12603_s28]]  }
  0x5f   :  { %14825 = sst [smem:[#allocation38_spill]] %s12828_s12 }
  0x60   :  { %14826 = sst [smem:[#allocation39_spill]] %s12833_s20 }
  0x61   :  { %s12848_s12 = sld [smem:[%s14734_s0 + %s12604_s7]]  }
  0x62   :  { %14827 = sst [smem:[#allocation40_spill]] %s12843_s4 }
  0x63   :  { %s12853_s20 = sld [smem:[%s14734_s0 + %s12605_s15]]  }
  0x64   :  { %100 = vsyncpa [#allocation3], 0 }
  0x65   :  { %102 = vsyncpa [#allocation3 + $0x1], 0  ;;  %s12855_s22 = smov 0   ;;  %s12857_s23 = smov 0  }
  0x66   :  { %s12859_s26 = smov 0   ;;  %s12861_s28 = smov 0  }
  0x67 LB: > { %s14828_s4 = sld [smem:[#allocation40_spill]]  ;;  %s14830_s6 = sld [smem:[#allocation9_spill]]  ;;  %s12557_s28 = sphi %s12861_s28, %s14869_s28   ;;  %s12553_s26 = sphi %s12859_s26, %s14868_s26   ;;  %s12549_s23 = sphi %s12857_s23, %s14867_s23   ;;  %s12545_s22 = sphi %s12855_s22, %s14866_s22  }
  0x68   : > { %s14829_s8 = sld [smem:[#allocation8_spill]]  ;;  %s14831_s3 = sld [smem:[#allocation7_spill]] }
  0x69   : > { %s12876_s0 = sadd.s32 4294967295, %s12557_s28   ;;  %s9496_s1 = sadd.s32 4294967294, %s12557_s28  }
  0x6a   : > { %s12880_s2 = sadd.s32 1, %s12557_s28   ;;  %s1107_s7 = sadd.s32 1, %s12553_s26 }
  0x6b   : > { %s1104_s10 = ssub.s32 %s12557_s28, %s12880_s2  ;;  %p1117_p0 = scmp.ne.s32.totalorder %s12553_s26, %s12549_s23 }
  0x6c   : > { %p1105_p1 = scmp.eq.s32.totalorder %s1104_s10, 0  ;;  %p1118_p2 = scmp.eq.s32.totalorder %s12876_s0, 1 }
  0x6d   : > { %p1123_p3 = scmp.ne.s32.totalorder %s12549_s23, %s12545_s22  ;;  %p1124_p4 = scmp.eq.s32.totalorder %s9496_s1, 1 }
  0x6e   : > { %s12891_s11 = scalar_select %p1105_p1, %s12553_s26, %s1107_s7  }
  0x6f   : > { %p12893_p5 = por %p1118_p2, %p1117_p0  ;;  %p12897_p6 = por %p1124_p4, %p1123_p3 }
  0x70   : > { %p9499_p7 = scmp.ge.s32.totalorder %s12557_s28, 1  ;;  %p1288_p8 = scmp.lt.s32.totalorder %s12557_s28, 3 }
  0x72   : > { %p1289_p9 = pnand %p9499_p7, %p1288_p8 }
  0x73   : > { %vm1437_vm0 = vcmask (!%p1289_p9), 1043456   ;;  %s14834_s9 = sld [smem:[#allocation6_spill]] (!%p1289_p9)  ;;  %v12606_v0 = vmov (!%p1289_p9), 0.0   ;;  %vm1438_vm1 = vcmask (!%p1289_p9), 1044480   ;;  %s14835_s5 = sld [smem:[#allocation5_spill]] (!%p1289_p9)  ;;  %v12607_v2 = vmov (!%p1289_p9), 65535  }
  0x74   : > { %1292 = sbr.rel (%p1289_p9) target bundleno = 15192 (0x3b58), region = 208  ;;  %10548 = vmatprep.subr.bf16.mxu0 (!%p1289_p9), %v12606_v0  ;;  %11892 = vmatprep.subr.bf16.mxu1 (!%p1289_p9), %v12606_v0  ;;  %v1439_v3 = vsel (!%p1289_p9), %vm1437_vm0, 4294967295, %v12607_v2  ;;  %vm12608_vm2 = vmmov (!%p1289_p9), 0   ;;  %p1399_p10 = scmp.lt.s32.totalorder (!%p1289_p9), %s12876_s0, 1  ;;  %vm1427_vm3 = vcmask (!%p1289_p9), 72704   ;;  %v12151_v14 = vld [vmem:[%s12633_s17] sm:$0xff] (!%p1289_p9)  }
  0x75   : > { %v12907_v4 = vsel (!%p1289_p9), %vm1438_vm1, %v1439_v3, 0  ;;  %10550 = vmatprep.mubr.msk.bf16.mxu0 (!%p1289_p9), %vm12608_vm2, %v12606_v0  ;;  %10558 = vmatprep.mubr.msk.bf16.mxu1 (!%p1289_p9), %vm12608_vm2, %v12606_v0  ;;  %v12152_v15 = vld [vmem:[%s12643_s25] sm:$0xff] (!%p1289_p9)   ;;  %v12153_v16 = vld [vmem:[%s12633_s17 + $0x8] sm:$0xff] (!%p1289_p9)   ;;  %vm1531_vm4 = vcmask (!%p1289_p9), 261120   ;;  %vm1779_vm5 = vcmask (!%p1289_p9), 64512   ;;  %vm1991_vm6 = vcmask (!%p1289_p9), 1041408  }
  0x76   : > { %v12154_v17 = vld [vmem:[%s12643_s25 + $0x8] sm:$0xff] (!%p1289_p9)   ;;  %v9501_v18 = vld [vmem:[%s12628_s13] ss:$0 sm:$0xff] (!%p1289_p9)  ;;  %vm1919_vm7 = vcmask (!%p1289_p9), 293888   ;;  %vm1932_vm8 = vcmask (!%p1289_p9), 289792   ;;  %s14836_s10 = sld [smem:[#allocation10_spill]] (!%p1289_p9) }
  0x77   : > { %v12155_v32 = vld [vmem:[%s14831_s3] sm:$0xff] (!%p1289_p9)   ;;  %v12156_v39 = vld [vmem:[%s14831_s3 + $0x8] sm:$0xff] (!%p1289_p9)   ;;  %vm6670_vm9 = vcmask (!%p1289_p9), 1047558   ;;  %vm6679_vm10 = vcmask (!%p1289_p9), 1044482   ;;  %vm6687_vm11 = vcmask (!%p1289_p9), 1042432   ;;  %vm6696_vm12 = vcmask (!%p1289_p9), 1045508  }
  0x78   : > { %v9506_v46 = vld [vmem:[%s12638_s21] ss:$0 sm:$0xff] (!%p1289_p9)  ;;  %vm6704_vm13 = vcmask (!%p1289_p9), 1043458   ;;  %vm6722_vm14 = vcmask (!%p1289_p9), 1040384   ;;  %vm6731_vm15 = vcmask (!%p1289_p9), 1046532   ;;  %vm7142_vm1 = vcmask (!%p1289_p9), 27648  }
  0x79   : > { %v12149_v1 = vld [vmem:[%s14834_s9] sm:$0x1f] (!%p1289_p9)   ;;  %s14851_s9 = sld [smem:[#allocation25_spill]] (!%p1289_p9) }
  0x7a   : > { %v1442_v5 = vand.u32 (!%p1289_p9), %v12149_v1, %v12907_v4  ;;  %v12994_v48 = vld [vmem:[%s12648_s29] ss:$0 sm:$0xff] (!%p1289_p9) }
  0x7b   : > { %s1400_s18 = scalar_select %p1399_p10, %s12876_s0, 1 }
  0x7c   : > { %10549 = vmatpush3.bf16.msra.mxu0 %v1442_v5  ;;  %11893 = vmatpush3.bf16.msra.mxu1 %v1442_v5 }
  0x7d   : > { %s12059_s1 = smul.u32 40, %s1400_s18  ;;  %10562 = vmatprep.subr.bf16.mxu1 %v12606_v0  ;;  %10578 = vmatprep.subr.bf16.mxu0 %v12606_v0  ;;  %s14837_s18 = sld [smem:[#allocation12_spill]] }
  0x7f   : > { %s1403_s7 = scalar_lea.vmem %s14835_s5, %s12059_s1  ;;  %s14838_s1 = sld [smem:[#allocation14_spill]] }
  0x80   : > { %v1405_v6 = vld [vmem:[%s1403_s7] sm:$0xff]  ;;  %v1406_v7 = vld [vmem:[%s1403_s7 + $0x8] sm:$0xff]  ;;  %v1407_v10 = vld [vmem:[%s1403_s7 + $0x10] sm:$0xff]  ;;  %s14841_s5 = sld [smem:[#allocation15_spill]] }
  0x81   : > { %v12919_v8 = vpack.c.bf16 %v1406_v7, %v1405_v6  ;;  %v1409_v9 = vld [vmem:[%s1403_s7 + $0x20] sm:$0xf]  ;;  %v1408_v11 = vld [vmem:[%s1403_s7 + $0x18] sm:$0xff]  ;;  %s14839_s7 = sld [smem:[#allocation11_spill]] }
  0x82   : > { %v12921_v12 = vpack.c.bf16 %v1409_v9, %v1409_v9  ;;  %v12931_v13 = vpack.c.bf16 %v1408_v11, %v1407_v10 }
  0x83   : > { %10551 = vmatmul.mubr.msk.bf16.vlgmr.msra.gmra.mrb[0].mxu0 %vm1427_vm3, %v12919_v8 }
  0x84   : > { %10554 = vmatprep.mubr.msk.bf16.mxu0 %vm12608_vm2, %v12606_v0  ;;  %10559 = vmatmul.mubr.msk.bf16.vlgmr.msra.gmra.mrb[0].mxu1 %vm1427_vm3, %v12921_v12 }
  0x85   : > { %10566 = vmatprep.mubr.msk.bf16.mxu1 %vm12608_vm2, %v12606_v0  ;;  %10563 = vmatpush3.bf16.msra.mxu1 %v12151_v14 }
  0x86   : > { %10579 = vmatpush3.bf16.msra.mxu0 %v12152_v15  ;;  %10564 = vmatprep.subr.bf16.mxu1 %v12606_v0 }
  0x87   : > { %10580 = vmatprep.subr.bf16.mxu0 %v12606_v0 }
  0x89   : > { %10565 = vmatpush3.bf16.msra.mxu1 %v12153_v16 }
  0x8a   : > { %10581 = vmatpush3.bf16.msra.mxu0 %v12154_v17  ;;  %10594 = vmatprep.subr.bf16.mxu1 %v12606_v0 }
  0x8b   : > { %10555 = vmatmul.mubr.msk.bf16.gmra.mrb[4].mxu0 %vm1427_vm3, %v12931_v13  ;;  %10610 = vmatprep.subr.bf16.mxu0 %v12606_v0 }
  0x8c   : > { %10582 = vmatprep.mubr.msk.bf16.mxu0 %vm12608_vm2, %v12606_v0 }
 0x156   : > { %v1478_v19 = vpop.f32.mrb[0].mxu0 }
 0x157   : > { %v1479_v20 = vadd.f32 %v9501_v18, %v1478_v19  ;;  %v10552_v21 = vpop.f32.mrb[1].mxu0  ;;  %v1494_v22 = vpop.f32.mrb[0].mxu1 }
 0x158   : > { %v1481_v23 = vpop.f32.mrb[2].mxu0  ;;  %v10560_v24 = vpop.f32.mrb[1].mxu1  ;;  %v1495_v42 = vadd.f32 %v9501_v18, %v1494_v22 }
 0x159   : > { %v1482_v25 = vadd.f32 %v9501_v18, %v1481_v23  ;;  %v10553_v26 = vpop.f32.mrb[3].mxu0  ;;  %v1497_v27 = vpop.f32.mrb[2].mxu1  ;;  %v1500_v29 = vmax.f32 %v1479_v20, 0.0 }
 0x15a   : > { %v10561_v28 = vpop.f32.mrb[3].mxu1  ;;  %v1504_v44 = vmax.f32 %v1495_v42, 0.0 }
 0x15b   : > { %v1501_v30 = vmax.f32 %v1482_v25, 0.0 }
 0x15c   : > { %v12970_v45 = vpack.c.bf16 %v1504_v44, %v1504_v44 }
 0x15d   : > { %v12946_v31 = vpack.c.bf16 %v1501_v30, %v1500_v29  ;;  %v9518_v30 = vld [vmem:[%s14829_s8] ss:$0 sm:$0xff] }
 0x15e   : > { %v1486_v33 = vpop.f32.mrb[4].mxu0 }
 0x15f   : > { %v1487_v34 = vadd.f32 %v9501_v18, %v1486_v33  ;;  %v10556_v35 = vpop.f32.mrb[5].mxu0  ;;  %10567 = vmatmul.mubr.msk.bf16.vlgmr.msra.gmra.mrb[4].mxu1 %vm1531_vm4, %v12946_v31  ;;  %10583 = vmatmul.mubr.msk.bf16.vlgmr.msra.gmra.mrb[8].mxu0 %vm1531_vm4, %v12946_v31 }
 0x160   : > { %v1489_v36 = vpop.f32.mrb[6].mxu0  ;;  %10570 = vmatprep.mubr.msk.bf16.mxu1 %vm12608_vm2, %v12606_v0  ;;  %10586 = vmatprep.mubr.msk.bf16.mxu0 %vm12608_vm2, %v12606_v0 }
 0x161   : > { %v1490_v37 = vadd.f32 %v9501_v18, %v1489_v36  ;;  %v10557_v38 = vpop.f32.mrb[7].mxu0  ;;  %10595 = vmatpush3.bf16.msra.mxu1 %v12155_v32  ;;  %v1502_v40 = vmax.f32 %v1487_v34, 0.0 }
 0x162   : > { %10596 = vmatprep.subr.bf16.mxu1 %v12606_v0  ;;  %v12157_v38 = vld [vmem:[%s12663_s14] sm:$0xff]  }
 0x163   : > { %v1503_v41 = vmax.f32 %v1490_v37, 0.0 }
 0x165   : > { %v12959_v43 = vpack.c.bf16 %v1503_v41, %v1502_v40  ;;  %10597 = vmatpush3.bf16.msra.mxu1 %v12156_v39 }
 0x166   : > { %10646 = vmatprep.subr.bf16.mxu1 %v12606_v0 }
 0x167   : > { %10571 = vmatmul.mubr.msk.bf16.gmra.mrb[8].mxu1 %vm1531_vm4, %v12959_v43  ;;  %10587 = vmatmul.mubr.msk.bf16.gmra.mrb[12].mxu0 %vm1531_vm4, %v12959_v43 }
 0x168   : > { %10574 = vmatprep.mubr.msk.bf16.mxu1 %vm12608_vm2, %v12606_v0  ;;  %10590 = vmatprep.mubr.msk.bf16.mxu0 %vm12608_vm2, %v12606_v0 }
 0x16f   : > { %10575 = vmatmul.mubr.msk.bf16.gmra.mrb[12].mxu1 %vm1531_vm4, %v12970_v45  ;;  %10591 = vmatmul.mubr.msk.bf16.gmra.mrb[16].mxu0 %vm1531_vm4, %v12970_v45 }
 0x170   : > { %10598 = vmatprep.mubr.msk.bf16.mxu1 %vm12608_vm2, %v12606_v0  ;;  %10616 = vmatprep.mubr.msk.bf16.mxu0 %vm12608_vm2, %v12606_v0 }
 0x177   : > { %10599 = vmatmul.mubr.msk.bf16.vlgmr.msra.gmra.mrb[16].mxu1 %vm1531_vm4, %v12946_v31 }
 0x178   : > { %10602 = vmatprep.mubr.msk.bf16.mxu1 %vm12608_vm2, %v12606_v0 }
 0x17f   : > { %10603 = vmatmul.mubr.msk.bf16.gmra.mrb[20].mxu1 %vm1531_vm4, %v12959_v43 }
 0x180   : > { %10606 = vmatprep.mubr.msk.bf16.mxu1 %vm12608_vm2, %v12606_v0 }
 0x187   : > { %10607 = vmatmul.mubr.msk.bf16.gmra.mrb[24].mxu1 %vm1531_vm4, %v12970_v45 }
 0x188   : > { %10652 = vmatprep.mubr.msk.bf16.mxu1 %vm12608_vm2, %v12606_v0 }
 0x232   : > { %v1575_v47 = vpop.f32.mrb[4].mxu1  ;;  %v1654_v49 = vpop.f32.mrb[8].mxu0 }
 0x233   : > { %v10568_v50 = vpop.f32.mrb[5].mxu1  ;;  %v10584_v51 = vpop.f32.mrb[9].mxu0  ;;  %v1576_v54 = vadd.f32 %v9506_v46, %v1575_v47  ;;  %v1655_v55 = vadd.f32 %v12994_v48, %v1654_v49 }
 0x234   : > { %v1578_v52 = vpop.f32.mrb[6].mxu1  ;;  %v1657_v53 = vpop.f32.mrb[10].mxu0  ;;  %v12158_v50 = vld [vmem:[%s12663_s14 + $0x8] sm:$0xff]  }
 0x235   : > { %v1579_v56 = vadd.f32 %v9506_v46, %v1578_v52  ;;  %v1658_v57 = vadd.f32 %v12994_v48, %v1657_v53  ;;  %v10569_v58 = vpop.f32.mrb[7].mxu1  ;;  %v10585_v59 = vpop.f32.mrb[11].mxu0 }
 0x237   : > { %v12998_v60 = vpack.c.bf16 %v1579_v56, %v1576_v54  ;;  %v1763_v61 = vpack.c.bf16 %v1658_v57, %v1655_v55 }
 0x239   : > { %v1790_v62 = vsel %vm1779_vm5, %v12998_v60, 0  ;;  %v1855_v40 = vsel %vm1779_vm5, %v1763_v61, 0  ;;  %v12159_v61 = vld [vmem:[%s12663_s14 + $0x10] ss:$0 sps:$4 sm:$0x33]  }
 0x23a   : > { %v1583_v63 = vpop.f32.mrb[8].mxu1  ;;  %v1662_v1 = vpop.f32.mrb[12].mxu0  ;;  %10611 = vmatpush3.bf16.xpose.msra.mxu0 %v1790_v62 }
 0x23b   : > { %v10572_v2 = vpop.f32.mrb[9].mxu1  ;;  %v10588_v3 = vpop.f32.mrb[13].mxu0  ;;  %10612 = vmatprep.subr.bf16.mxu0 %v12606_v0  ;;  %v1584_v7 = vadd.f32 %v9506_v46, %v1583_v63  ;;  %v1663_v9 = vadd.f32 %v12994_v48, %v1662_v1  ;;  %v12160_v1 = vld [vmem:[%s12643_s25 + $0x10] sm:$0xff]  }
 0x23c   : > { %v1586_v5 = vpop.f32.mrb[10].mxu1  ;;  %v1665_v6 = vpop.f32.mrb[14].mxu0  ;;  %v12161_v2 = vld [vmem:[%s12643_s25 + $0x18] sm:$0xff]  }
 0x23d   : > { %v1587_v10 = vadd.f32 %v9506_v46, %v1586_v5  ;;  %v1666_v11 = vadd.f32 %v12994_v48, %v1665_v6  ;;  %v10573_v14 = vpop.f32.mrb[11].mxu1  ;;  %v10589_v15 = vpop.f32.mrb[15].mxu0 }
 0x23f   : > { %v13005_v16 = vpack.c.bf16 %v1587_v10, %v1584_v7  ;;  %v1764_v17 = vpack.c.bf16 %v1666_v11, %v1663_v9 }
 0x241   : > { %v1793_v18 = vsel %vm1779_vm5, %v13005_v16, 0  ;;  %v1858_v53 = vsel %vm1779_vm5, %v1764_v17, 0 }
 0x242   : > { %v1591_v19 = vpop.f32.mrb[12].mxu1  ;;  %v1670_v20 = vpop.f32.mrb[16].mxu0  ;;  %10613 = vmatpush3.bf16.xpose.msra.mxu0 %v1793_v18 }
 0x243   : > { %v1592_v21 = vadd.f32 %v9506_v46, %v1591_v19  ;;  %v10576_v22 = vpop.f32.mrb[13].mxu1  ;;  %v10592_v23 = vpop.f32.mrb[17].mxu0  ;;  %10614 = vmatprep.subr.bf16.mxu0 %v12606_v0  ;;  %v1671_v52 = vadd.f32 %v12994_v48, %v1670_v20 }
 0x244   : > { %v1594_v24 = vpop.f32.mrb[14].mxu1  ;;  %v1673_v25 = vpop.f32.mrb[18].mxu0  ;;  %v13073_v23 = vld [vmem:[%s12648_s29 + $0x1] ss:$0 sm:$0xff] }
 0x245   : > { %v13010_v26 = vpack.c.bf16 %v1592_v21, %v1592_v21  ;;  %v10577_v27 = vpop.f32.mrb[15].mxu1  ;;  %v10593_v28 = vpop.f32.mrb[19].mxu0  ;;  %v1765_v48 = vpack.c.bf16 %v1671_v52, %v1671_v52 }
 0x247   : > { %v1796_v29 = vsel %vm1779_vm5, %v13010_v26, 0  ;;  %v1861_v63 = vsel %vm1779_vm5, %v1765_v48, 0 }
 0x24a   : > { %v1733_v32 = vpop.f32.mrb[16].mxu1  ;;  %10615 = vmatpush3.bf16.xpose.msra.mxu0 %v1796_v29 }
 0x24b   : > { %v10600_v33 = vpop.f32.mrb[17].mxu1  ;;  %10628 = vmatprep.subr.bf16.mxu0 %v12606_v0  ;;  %v1734_v35 = vadd.f32 %v9518_v30, %v1733_v32 }
 0x24c   : > { %v1736_v34 = vpop.f32.mrb[18].mxu1 }
 0x24d   : > { %v1737_v36 = vadd.f32 %v9518_v30, %v1736_v34  ;;  %v10601_v37 = vpop.f32.mrb[19].mxu1 }
 0x24f   : > { %v1979_v39 = vpack.c.bf16 %v1737_v36, %v1734_v35 }
 0x251   : > { %10617 = vmatmul.mubr.msk.bf16.vlgmr.msra.gmra.mrb[20].mxu0 %vm1779_vm5, %v12157_v38  ;;  %10647 = vmatpush3.bf16.msra.mxu1 %v1979_v39 }
 0x252   : > { %v1741_v41 = vpop.f32.mrb[20].mxu1  ;;  %10629 = vmatpush3.bf16.xpose.msra.mxu0 %v1855_v40  ;;  %10620 = vmatprep.mubr.msk.bf16.mxu0 %vm12608_vm2, %v12606_v0 }
 0x253   : > { %v10604_v42 = vpop.f32.mrb[21].mxu1  ;;  %10648 = vmatprep.subr.bf16.mxu1 %v12606_v0  ;;  %10630 = vmatprep.subr.bf16.mxu0 %v12606_v0  ;;  %v1742_v46 = vadd.f32 %v9518_v30, %v1741_v41 }
 0x254   : > { %v1744_v44 = vpop.f32.mrb[22].mxu1 }
 0x255   : > { %v1745_v47 = vadd.f32 %v9518_v30, %v1744_v44  ;;  %v10605_v49 = vpop.f32.mrb[23].mxu1 }
 0x257   : > { %v1980_v51 = vpack.c.bf16 %v1745_v47, %v1742_v46 }
 0x259   : > { %10621 = vmatmul.mubr.msk.bf16.gmra.mrb[24].mxu0 %vm1779_vm5, %v12158_v50  ;;  %10649 = vmatpush3.bf16.msra.mxu1 %v1980_v51 }
 0x25a   : > { %v1749_v54 = vpop.f32.mrb[24].mxu1  ;;  %10631 = vmatpush3.bf16.xpose.msra.mxu0 %v1858_v53  ;;  %10650 = vmatprep.subr.bf16.mxu1 %v12606_v0 }
 0x25b   : > { %v1750_v55 = vadd.f32 %v9518_v30, %v1749_v54  ;;  %v10608_v56 = vpop.f32.mrb[25].mxu1  ;;  %10624 = vmatprep.mubr.msk.bf16.mxu0 %vm12608_vm2, %v12606_v0  ;;  %10632 = vmatprep.subr.bf16.mxu0 %v12606_v0 }
 0x25c   : > { %v1752_v57 = vpop.f32.mrb[26].mxu1 }
 0x25d   : > { %v10609_v58 = vpop.f32.mrb[27].mxu1  ;;  %v1981_v59 = vpack.c.bf16 %v1750_v55, %v1750_v55 }
 0x25f   : > { %v1993_v62 = vsel %vm1991_vm6, %v1981_v59, 0 }
 0x260   : > { %10651 = vmatpush3.bf16.msra.mxu1 %v1993_v62 }
 0x261   : > { %10625 = vmatmul.mubr.msk.bf16.gmra.mrb[28].mxu0 %vm1779_vm5, %v12159_v61  ;;  %10664 = vmatprep.subr.bf16.mxu1 %v12606_v0 }
 0x262   : > { %10633 = vmatpush3.bf16.xpose.msra.mxu0 %v1861_v63  ;;  %10634 = vmatprep.mubr.msk.bf16.mxu0 %vm12608_vm2, %v12606_v0 }
 0x263   : > { %10680 = vmatprep.subr.bf16.mxu0 %v12606_v0 }
 0x269   : > { %10635 = vmatmul.mubr.msk.bf16.vlgmr.msra.gmra.mrb[20].mxu0 %vm1779_vm5, %v12998_v60 }
 0x26a   : > { %10638 = vmatprep.mubr.msk.bf16.mxu0 %vm12608_vm2, %v12606_v0  ;;  %10681 = vmatpush3.bf16.msra.mxu0 %v12160_v1 }
 0x26b   : > { %10682 = vmatprep.subr.bf16.mxu0 %v12606_v0 }
 0x26e   : > { %10683 = vmatpush3.bf16.msra.mxu0 %v12161_v2 }
 0x26f   : > { %10712 = vmatprep.subr.bf16.mxu0 %v12606_v0 }
 0x271   : > { %10639 = vmatmul.mubr.msk.bf16.gmra.mrb[24].mxu0 %vm1779_vm5, %v13005_v16 }
 0x272   : > { %10642 = vmatprep.mubr.msk.bf16.mxu0 %vm12608_vm2, %v12606_v0 }
 0x279   : > { %10643 = vmatmul.mubr.msk.bf16.gmra.mrb[28].mxu0 %vm1779_vm5, %v13010_v26 }
 0x27a   : > { %10684 = vmatprep.mubr.msk.bf16.mxu0 %vm12608_vm2, %v12606_v0 }
 0x281   : > { %10685 = vmatmul.mubr.msk.bf16.vlgmr.msra.gmra.mrb[32].mxu0 %vm1531_vm4, %v12946_v31 }
 0x282   : > { %10688 = vmatprep.mubr.msk.bf16.mxu0 %vm12608_vm2, %v12606_v0 }
 0x289   : > { %10689 = vmatmul.mubr.msk.bf16.gmra.mrb[36].mxu0 %vm1531_vm4, %v12959_v43 }
 0x28a   : > { %10692 = vmatprep.mubr.msk.bf16.mxu0 %vm12608_vm2, %v12606_v0 }
 0x291   : > { %10693 = vmatmul.mubr.msk.bf16.gmra.mrb[40].mxu0 %vm1531_vm4, %v12970_v45 }
 0x292   : > { %10718 = vmatprep.mubr.msk.bf16.mxu0 %vm12608_vm2, %v12606_v0 }
 0x33c   : > { %v1897_v60 = vpop.f32.mrb[20].mxu0 }
 0x33d   : > { %v10636_v3 = vpop.f32.mrb[21].mxu0  ;;  %v1920_v5 = vsel %vm1919_vm7, %v1897_v60, -inf }
 0x33e   : > { %1921 = vmax.xlane.f32.xlu0 %v1920_v5  ;;  %v1900_v6 = vpop.f32.mrb[22].mxu0 }
 0x33f   : > { %v10637_v7 = vpop.f32.mrb[23].mxu0  ;;  %v1923_v9 = vsel %vm1919_vm7, %v1900_v6, -inf }
 0x342   : > { %1924 = vmax.xlane.f32.xlu0 %v1923_v9 }
 0x344   : > { %v1905_v10 = vpop.f32.mrb[24].mxu0 }
 0x345   : > { %v10640_v11 = vpop.f32.mrb[25].mxu0  ;;  %v1926_v14 = vsel %vm1919_vm7, %v1905_v10, -inf }
 0x346   : > { %1927 = vmax.xlane.f32.xlu1 %v1926_v14  ;;  %v1908_v15 = vpop.f32.mrb[26].mxu0 }
 0x347   : > { %v10641_v16 = vpop.f32.mrb[27].mxu0  ;;  %v1929_v17 = vsel %vm1919_vm7, %v1908_v15, -inf }
 0x34a   : > { %1930 = vmax.xlane.f32.xlu1 %v1929_v17 }
 0x34c   : > { %v1913_v18 = vpop.f32.mrb[28].mxu0 }
 0x34d   : > { %v10644_v19 = vpop.f32.mrb[29].mxu0  ;;  %v1933_v20 = vsel %vm1932_vm8, %v1913_v18, -inf }
 0x34e   : > { %1934 = vmax.xlane.f32.xlu0 %v1933_v20  ;;  %v1916_v21 = vpop.f32.mrb[30].mxu0  ;;  %v12162_v20 = vld [vmem:[%s12633_s17 + $0x10] sm:$0xff]  }
 0x34f   : > { %v10645_v22 = vpop.f32.mrb[31].mxu0 }
 0x354   : > { %v2200_v24 = vpop.f32.mrb[32].mxu0 }
 0x355   : > { %v10686_v25 = vpop.f32.mrb[33].mxu0  ;;  %v13076_v27 = vadd.f32 %v13073_v23, %v2200_v24  ;;  %v12163_v24 = vld [vmem:[%s12633_s17 + $0x18] sm:$0xff]  }
 0x356   : > { %v2203_v26 = vpop.f32.mrb[34].mxu0 }
 0x357   : > { %v13079_v28 = vadd.f32 %v13073_v23, %v2203_v26  ;;  %v10687_v29 = vpop.f32.mrb[35].mxu0 }
 0x359   : > { %v2312_v30 = vpack.c.bf16 %v13079_v28, %v13076_v27 }
 0x35c   : > { %v2208_v32 = vpop.f32.mrb[36].mxu0 }
 0x35d   : > { %v10690_v33 = vpop.f32.mrb[37].mxu0  ;;  %v13084_v35 = vadd.f32 %v13073_v23, %v2208_v32 }
 0x35e   : > { %v2211_v34 = vpop.f32.mrb[38].mxu0 }
 0x35f   : > { %v13087_v36 = vadd.f32 %v13073_v23, %v2211_v34  ;;  %v10691_v37 = vpop.f32.mrb[39].mxu0 }
 0x361   : > { %v2313_v38 = vpack.c.bf16 %v13087_v36, %v13084_v35  ;;  %v12168_v35 = vld [vmem:[%s12663_s14 + $0x24] ss:$0 sps:$4 sm:$0x33]  }
 0x363   : > { %v2406_v28 = vsel %vm1779_vm5, %v2313_v38, 0 }
 0x364   : > { %v13091_v39 = vpop.f32.mrb[40].mxu0 }
 0x365   : > { %v10694_v40 = vpop.f32.mrb[41].mxu0  ;;  %v2217_v27 = vadd.f32 %v13073_v23, %v13091_v39 }
 0x366   : > { %v2219_v41 = vpop.f32.mrb[42].mxu0  ;;  %v12164_v40 = vld [vmem:[%s14831_s3 + $0x10] sm:$0xff]  }
 0x367   : > { %v10695_v42 = vpop.f32.mrb[43].mxu0  ;;  %v12165_v41 = vld [vmem:[%s14831_s3 + $0x18] sm:$0xff]   ;;  %v2314_v39 = vpack.c.bf16 %v2217_v27, %v2217_v27 }
 0x369   : > { %v2409_v38 = vsel %vm1779_vm5, %v2314_v39, 0 }
 0x3cb   : > { %v1922_v44 = vpop.xlane.xlu0 %1921 }
 0x3cc   : > { %v1936_v46 = vsub.f32 %v1897_v60, %v1922_v44 }
 0x3ce   : > { %v1941_v47 = vmul.f32 1.442695, %v1936_v46 }
 0x3cf   : > { %v1925_v49 = vpop.xlane.xlu0 %1924 }
 0x3d0   : > { %12315 = vpow2.f32 %v1941_v47  ;;  %v1937_v50 = vsub.f32 %v1900_v6, %v1925_v49 }
 0x3d2   : > { %v1943_v51 = vmul.f32 1.442695, %v1937_v50 }
 0x3d3   : > { %v1928_v52 = vpop.xlane.xlu1 %1927 }
 0x3d4   : > { %12317 = vpow2.f32 %v1943_v51  ;;  %v1938_v53 = vsub.f32 %v1905_v10, %v1928_v52 }
 0x3d6   : > { %v1945_v54 = vmul.f32 1.442695, %v1938_v53 }
 0x3d7   : > { %v1931_v55 = vpop.xlane.xlu1 %1930 }
 0x3d8   : > { %12319 = vpow2.f32 %v1945_v54  ;;  %v1939_v56 = vsub.f32 %v1908_v15, %v1931_v55 }
 0x3da   : > { %v12316_v57 = vpop.eup %12315  ;;  %v1947_v48 = vmul.f32 1.442695, %v1939_v56 }
 0x3db   : > { %v1935_v58 = vpop.xlane.xlu0 %1934  ;;  %v1951_v59 = vsel %vm1919_vm7, %v12316_v57, 0.0 }
 0x3dc   : > { %12321 = vpow2.f32 %v1947_v48  ;;  %v1940_v61 = vsub.f32 %v1913_v18, %v1935_v58  ;;  %1952 = vadd.xlane.f32.xlu1 %v1951_v59 }
 0x3de   : > { %v12318_v62 = vpop.eup %12317  ;;  %v1949_v63 = vmul.f32 1.442695, %v1940_v61 }
 0x3df   : > { %v1954_v1 = vsel %vm1919_vm7, %v12318_v62, 0.0 }
 0x3e0   : > { %12323 = vpow2.f32 %v1949_v63  ;;  %1955 = vadd.xlane.f32.xlu0 %v1954_v1  ;;  %v9541_v63 = vld [vmem:[%s12638_s21 + $0x1] ss:$0 sm:$0xff] }
 0x3e2   : > { %v12320_v2 = vpop.eup %12319 }
 0x3e3   : > { %v1957_v60 = vsel %vm1919_vm7, %v12320_v2, 0.0 }
 0x3e4   : > { %1958 = vadd.xlane.f32.xlu1 %v1957_v60 }
 0x3e6   : > { %v12322_v3 = vpop.eup %12321 }
 0x3e7   : > { %v1960_v5 = vsel %vm1919_vm7, %v12322_v3, 0.0 }
 0x3e8   : > { %1961 = vadd.xlane.f32.xlu0 %v1960_v5 }
 0x3ea   : > { %v12324_v6 = vpop.eup %12323 }
 0x3eb   : > { %v1963_v7 = vsel %vm1932_vm8, %v12324_v6, 0.0 }
 0x3ec   : > { %1964 = vadd.xlane.f32.xlu1 %v1963_v7 }
 0x469   : > { %v1953_v9 = vpop.xlane.xlu1 %1952 }
 0x46a   : > { %12325 = vrcp.f32 %v1953_v9 }
 0x46d   : > { %v1956_v10 = vpop.xlane.xlu0 %1955 }
 0x46e   : > { %12327 = vrcp.f32 %v1956_v10 }
 0x471   : > { %v1959_v11 = vpop.xlane.xlu1 %1958 }
 0x472   : > { %12329 = vrcp.f32 %v1959_v11 }
 0x474   : > { %v12326_v15 = vpop.eup %12325 }
 0x475   : > { %v1962_v14 = vpop.xlane.xlu0 %1961  ;;  %v1967_v17 = vmul.f32 %v12326_v15, %v12316_v57 }
 0x476   : > { %12331 = vrcp.f32 %v1962_v14 }
 0x478   : > { %v12328_v16 = vpop.eup %12327 }
 0x479   : > { %v1969_v18 = vmul.f32 %v12328_v16, %v12318_v62  ;;  %v1965_v19 = vpop.xlane.xlu1 %1964 }
 0x47a   : > { %12333 = vrcp.f32 %v1965_v19 }
 0x47b   : > { %v1976_v21 = vpack.c.bf16 %v1969_v18, %v1967_v17 }
 0x47c   : > { %v12330_v22 = vpop.eup %12329 }
 0x47d   : > { %10653 = vmatmul.mubr.msk.bf16.vlgmr.msra.gmra.mrb[28].mxu1 %vm1919_vm7, %v1976_v21  ;;  %v1971_v26 = vmul.f32 %v12330_v22, %v12320_v2 }
 0x47e   : > { %10665 = vmatpush3.bf16.msra.mxu1 %v12162_v20  ;;  %10656 = vmatprep.mubr.msk.bf16.mxu1 %vm12608_vm2, %v12606_v0 }
 0x47f   : > { %10666 = vmatprep.subr.bf16.mxu1 %v12606_v0 }
 0x480   : > { %v12332_v25 = vpop.eup %12331 }
 0x481   : > { %v1973_v29 = vmul.f32 %v12332_v25, %v12322_v3 }
 0x482   : > { %10667 = vmatpush3.bf16.msra.mxu1 %v12163_v24 }
 0x483   : > { %v1977_v32 = vpack.c.bf16 %v1973_v29, %v1971_v26  ;;  %10696 = vmatprep.subr.bf16.mxu1 %v12606_v0 }
 0x484   : > { %v12334_v33 = vpop.eup %12333 }
 0x485   : > { %10657 = vmatmul.mubr.msk.bf16.gmra.mrb[32].mxu1 %vm1919_vm7, %v1977_v32  ;;  %v1975_v34 = vmul.f32 %v12334_v33, %v12324_v6  ;;  %v9563_v32 = vld [vmem:[%s14829_s8 + $0x1] ss:$0 sm:$0xff] }
 0x486   : > { %10660 = vmatprep.mubr.msk.bf16.mxu1 %vm12608_vm2, %v12606_v0 }
 0x487   : > { %v1978_v37 = vpack.c.bf16 %v1975_v34, %v1975_v34 }
 0x48d   : > { %10661 = vmatmul.mubr.msk.bf16.gmra.mrb[36].mxu1 %vm1919_vm7, %v1978_v37 }
 0x48e   : > { %10668 = vmatprep.mubr.msk.bf16.mxu1 %vm12608_vm2, %v12606_v0 }
 0x495   : > { %10669 = vmatmul.mubr.msk.bf16.vlgmr.msra.gmra.mrb[40].mxu1 %vm1531_vm4, %v12946_v31 }
 0x496   : > { %10672 = vmatprep.mubr.msk.bf16.mxu1 %vm12608_vm2, %v12606_v0  ;;  %10697 = vmatpush3.bf16.msra.mxu1 %v12164_v40 }
 0x497   : > { %10698 = vmatprep.subr.bf16.mxu1 %v12606_v0 }
 0x49a   : > { %10699 = vmatpush3.bf16.msra.mxu1 %v12165_v41 }
 0x49b   : > { %10748 = vmatprep.subr.bf16.mxu1 %v12606_v0 }
 0x49d   : > { %10673 = vmatmul.mubr.msk.bf16.gmra.mrb[44].mxu1 %vm1531_vm4, %v12959_v43 }
 0x49e   : > { %10676 = vmatprep.mubr.msk.bf16.mxu1 %vm12608_vm2, %v12606_v0 }
 0x4a5   : > { %10677 = vmatmul.mubr.msk.bf16.gmra.mrb[48].mxu1 %vm1531_vm4, %v12970_v45 }
 0x4a6   : > { %10700 = vmatprep.mubr.msk.bf16.mxu1 %vm12608_vm2, %v12606_v0 }
 0x4ad   : > { %10701 = vmatmul.mubr.msk.bf16.vlgmr.msra.gmra.mrb[52].mxu1 %vm1531_vm4, %v12946_v31 }
 0x4ae   : > { %10704 = vmatprep.mubr.msk.bf16.mxu1 %vm12608_vm2, %v12606_v0 }
 0x4b5   : > { %10705 = vmatmul.mubr.msk.bf16.gmra.mrb[56].mxu1 %vm1531_vm4, %v12959_v43 }
 0x4b6   : > { %10708 = vmatprep.mubr.msk.bf16.mxu1 %vm12608_vm2, %v12606_v0 }
 0x4bd   : > { %10709 = vmatmul.mubr.msk.bf16.gmra.mrb[60].mxu1 %vm1531_vm4, %v12970_v45 }
 0x4be   : > { %10754 = vmatprep.mubr.msk.bf16.mxu1 %vm12608_vm2, %v12606_v0 }
 0x550   : > { %v2029_v42 = vpop.f32.mrb[28].mxu1 }
 0x551   : > { %v10654_v44 = vpop.f32.mrb[29].mxu1  ;;  %v2051_v47 = vmax.f32 %v2029_v42, 0.0 }
 0x552   : > { %v2032_v46 = vpop.f32.mrb[30].mxu1  ;;  %v12166_v44 = vld [vmem:[%s12663_s14 + $0x14] sm:$0xff]  }
 0x553   : > { %v2052_v49 = vmax.f32 %v2032_v46, 0.0  ;;  %v10655_v50 = vpop.f32.mrb[31].mxu1 }
 0x555   : > { %v13139_v51 = vpack.c.bf16 %v2052_v49, %v2051_v47  ;;  %v2403_v47 = vsel %vm1779_vm5, %v2312_v30, 0 }
 0x558   : > { %v2037_v52 = vpop.f32.mrb[32].mxu1 }
 0x559   : > { %v10658_v53 = vpop.f32.mrb[33].mxu1  ;;  %v2053_v55 = vmax.f32 %v2037_v52, 0.0 }
 0x55a   : > { %v2040_v54 = vpop.f32.mrb[34].mxu1 }
 0x55b   : > { %v2054_v56 = vmax.f32 %v2040_v54, 0.0  ;;  %v10659_v57 = vpop.f32.mrb[35].mxu1 }
 0x55d   : > { %v13141_v48 = vpack.c.bf16 %v2054_v56, %v2053_v55  ;;  %v12167_v56 = vld [vmem:[%s12663_s14 + $0x1c] sm:$0xff]  }
 0x560   : > { %v13143_v58 = vpop.f32.mrb[36].mxu1 }
 0x561   : > { %v10662_v59 = vpop.f32.mrb[37].mxu1 }
 0x562   : > { %v2048_v61 = vpop.f32.mrb[38].mxu1 }
 0x563   : > { %v10663_v62 = vpop.f32.mrb[39].mxu1 }
 0x568   : > { %v2119_v1 = vpop.f32.mrb[40].mxu1 }
 0x569   : > { %v10670_v2 = vpop.f32.mrb[41].mxu1  ;;  %v2120_v3 = vadd.f32 %v9541_v63, %v2119_v1  ;;  %v12169_v1 = vld [vmem:[%s12633_s17 + $0x20] sm:$0xff]  }
 0x56a   : > { %v2122_v60 = vpop.f32.mrb[42].mxu1  ;;  %v12170_v2 = vld [vmem:[%s12633_s17 + $0x28] sm:$0xff]  }
 0x56b   : > { %v2123_v5 = vadd.f32 %v9541_v63, %v2122_v60  ;;  %v10671_v6 = vpop.f32.mrb[43].mxu1  ;;  %v12171_v60 = vld [vmem:[%s12643_s25 + $0x20] sm:$0xff]  }
 0x56d   : > { %v13146_v7 = vpack.c.bf16 %v2123_v5, %v2120_v3  ;;  %v12172_v3 = vld [vmem:[%s12643_s25 + $0x28] sm:$0xff]  }
 0x56f   : > { %v2338_v9 = vsel %vm1779_vm5, %v13146_v7, 0 }
 0x570   : > { %v2127_v10 = vpop.f32.mrb[44].mxu1  ;;  %10713 = vmatpush3.bf16.xpose.msra.mxu0 %v2338_v9 }
 0x571   : > { %v10674_v11 = vpop.f32.mrb[45].mxu1  ;;  %10714 = vmatprep.subr.bf16.mxu0 %v12606_v0  ;;  %v2128_v15 = vadd.f32 %v9541_v63, %v2127_v10 }
 0x572   : > { %v2130_v14 = vpop.f32.mrb[46].mxu1 }
 0x573   : > { %v2131_v16 = vadd.f32 %v9541_v63, %v2130_v14  ;;  %v10675_v17 = vpop.f32.mrb[47].mxu1 }
 0x575   : > { %v13151_v18 = vpack.c.bf16 %v2131_v16, %v2128_v15 }
 0x577   : > { %v2341_v19 = vsel %vm1779_vm5, %v13151_v18, 0 }
 0x578   : > { %v2135_v20 = vpop.f32.mrb[48].mxu1  ;;  %10715 = vmatpush3.bf16.xpose.msra.mxu0 %v2341_v19 }
 0x579   : > { %v2136_v21 = vadd.f32 %v9541_v63, %v2135_v20  ;;  %v10678_v22 = vpop.f32.mrb[49].mxu1  ;;  %10716 = vmatprep.subr.bf16.mxu0 %v12606_v0 }
 0x57a   : > { %v2138_v24 = vpop.f32.mrb[50].mxu1 }
 0x57b   : > { %v13156_v25 = vpack.c.bf16 %v2136_v21, %v2136_v21  ;;  %v10679_v26 = vpop.f32.mrb[51].mxu1 }
 0x57c   : > { %v9598_v26 = vld [vmem:[%s12638_s21 + $0x2] ss:$0 sm:$0xff] }
 0x57d   : > { %v2344_v29 = vsel %vm1779_vm5, %v13156_v25, 0 }
 0x580   : > { %v2281_v33 = vpop.f32.mrb[52].mxu1  ;;  %10717 = vmatpush3.bf16.xpose.msra.mxu0 %v2344_v29 }
 0x581   : > { %v10702_v34 = vpop.f32.mrb[53].mxu1  ;;  %10730 = vmatprep.subr.bf16.mxu0 %v12606_v0  ;;  %v2282_v40 = vadd.f32 %v9563_v32, %v2281_v33 }
 0x582   : > { %v2284_v37 = vpop.f32.mrb[54].mxu1 }
 0x583   : > { %v2285_v41 = vadd.f32 %v9563_v32, %v2284_v37  ;;  %v10703_v42 = vpop.f32.mrb[55].mxu1 }
 0x585   : > { %v2525_v46 = vpack.c.bf16 %v2285_v41, %v2282_v40 }
 0x587   : > { %10719 = vmatmul.mubr.msk.bf16.vlgmr.msra.gmra.mrb[44].mxu0 %vm1779_vm5, %v12166_v44  ;;  %10749 = vmatpush3.bf16.msra.mxu1 %v2525_v46 }
 0x588   : > { %v2289_v49 = vpop.f32.mrb[56].mxu1  ;;  %10731 = vmatpush3.bf16.xpose.msra.mxu0 %v2403_v47  ;;  %10722 = vmatprep.mubr.msk.bf16.mxu0 %vm12608_vm2, %v12606_v0 }
 0x589   : > { %v10706_v50 = vpop.f32.mrb[57].mxu1  ;;  %10750 = vmatprep.subr.bf16.mxu1 %v12606_v0  ;;  %10732 = vmatprep.subr.bf16.mxu0 %v12606_v0  ;;  %v2290_v53 = vadd.f32 %v9563_v32, %v2289_v49 }
 0x58a   : > { %v2292_v52 = vpop.f32.mrb[58].mxu1 }
 0x58b   : > { %v2293_v54 = vadd.f32 %v9563_v32, %v2292_v52  ;;  %v10707_v55 = vpop.f32.mrb[59].mxu1 }
 0x58d   : > { %v2526_v57 = vpack.c.bf16 %v2293_v54, %v2290_v53 }
 0x58f   : > { %10723 = vmatmul.mubr.msk.bf16.gmra.mrb[48].mxu0 %vm1779_vm5, %v12167_v56  ;;  %10751 = vmatpush3.bf16.msra.mxu1 %v2526_v57 }
 0x590   : > { %v2297_v30 = vpop.f32.mrb[60].mxu1  ;;  %10733 = vmatpush3.bf16.xpose.msra.mxu0 %v2406_v28  ;;  %10752 = vmatprep.subr.bf16.mxu1 %v12606_v0 }
 0x591   : > { %v2298_v59 = vadd.f32 %v9563_v32, %v2297_v30  ;;  %v10710_v61 = vpop.f32.mrb[61].mxu1  ;;  %10726 = vmatprep.mubr.msk.bf16.mxu0 %vm12608_vm2, %v12606_v0  ;;  %10734 = vmatprep.subr.bf16.mxu0 %v12606_v0 }
 0x592   : > { %v2300_v23 = vpop.f32.mrb[62].mxu1  ;;  %v9609_v61 = vld [vmem:[%s12648_s29 + $0x2] ss:$0 sm:$0xff] }
 0x593   : > { %v2527_v62 = vpack.c.bf16 %v2298_v59, %v2298_v59  ;;  %v10711_v63 = vpop.f32.mrb[63].mxu1 }
 0x595   : > { %v2538_v36 = vsel %vm1991_vm6, %v2527_v62, 0 }
 0x596   : > { %10753 = vmatpush3.bf16.msra.mxu1 %v2538_v36 }
 0x597   : > { %10727 = vmatmul.mubr.msk.bf16.gmra.mrb[52].mxu0 %vm1779_vm5, %v12168_v35  ;;  %10766 = vmatprep.subr.bf16.mxu1 %v12606_v0 }
 0x598   : > { %10735 = vmatpush3.bf16.xpose.msra.mxu0 %v2409_v38  ;;  %10736 = vmatprep.mubr.msk.bf16.mxu0 %vm12608_vm2, %v12606_v0  ;;  %v12173_v38 = vld [vmem:[%s12663_s14 + $0x28] sm:$0xff]  }
 0x599   : > { %10794 = vmatprep.subr.bf16.mxu0 %v12606_v0 }
 0x59f   : > { %10737 = vmatmul.mubr.msk.bf16.vlgmr.msra.gmra.mrb[44].mxu0 %vm1779_vm5, %v13146_v7 }
 0x5a0   : > { %10740 = vmatprep.mubr.msk.bf16.mxu0 %vm12608_vm2, %v12606_v0  ;;  %10795 = vmatpush3.bf16.msra.mxu0 %v12169_v1 }
 0x5a1   : > { %10796 = vmatprep.subr.bf16.mxu0 %v12606_v0 }
 0x5a4   : > { %10797 = vmatpush3.bf16.msra.mxu0 %v12170_v2 }
 0x5a5   : > { %10810 = vmatprep.subr.bf16.mxu0 %v12606_v0 }
 0x5a7   : > { %10741 = vmatmul.mubr.msk.bf16.gmra.mrb[48].mxu0 %vm1779_vm5, %v13151_v18 }
 0x5a8   : > { %10744 = vmatprep.mubr.msk.bf16.mxu0 %vm12608_vm2, %v12606_v0 }
 0x5af   : > { %10745 = vmatmul.mubr.msk.bf16.gmra.mrb[52].mxu0 %vm1779_vm5, %v13156_v25 }
 0x5b0   : > { %10798 = vmatprep.mubr.msk.bf16.mxu0 %vm12608_vm2, %v12606_v0 }
 0x5b7   : > { %10799 = vmatmul.mubr.msk.bf16.vlgmr.msra.gmra.mrb[56].mxu0 %vm1531_vm4, %v12946_v31 }
 0x5b8   : > { %10802 = vmatprep.mubr.msk.bf16.mxu0 %vm12608_vm2, %v12606_v0  ;;  %10811 = vmatpush3.bf16.msra.mxu0 %v12171_v60 }
 0x5b9   : > { %10812 = vmatprep.subr.bf16.mxu0 %v12606_v0 }
 0x5bc   : > { %10813 = vmatpush3.bf16.msra.mxu0 %v12172_v3 }
 0x5bd   : > { %10842 = vmatprep.subr.bf16.mxu0 %v12606_v0 }
 0x5bf   : > { %10803 = vmatmul.mubr.msk.bf16.gmra.mrb[60].mxu0 %vm1531_vm4, %v12959_v43 }
 0x5c0   : > { %10806 = vmatprep.mubr.msk.bf16.mxu0 %vm12608_vm2, %v12606_v0 }
 0x5c7   : > { %10807 = vmatmul.mubr.msk.bf16.gmra.mrb[64].mxu0 %vm1531_vm4, %v12970_v45 }
 0x5c8   : > { %10814 = vmatprep.mubr.msk.bf16.mxu0 %vm12608_vm2, %v12606_v0 }
 0x5cf   : > { %10815 = vmatmul.mubr.msk.bf16.vlgmr.msra.gmra.mrb[68].mxu0 %vm1531_vm4, %v12946_v31 }
 0x5d0   : > { %10818 = vmatprep.mubr.msk.bf16.mxu0 %vm12608_vm2, %v12606_v0 }
 0x5d7   : > { %10819 = vmatmul.mubr.msk.bf16.gmra.mrb[72].mxu0 %vm1531_vm4, %v12959_v43 }
 0x5d8   : > { %10822 = vmatprep.mubr.msk.bf16.mxu0 %vm12608_vm2, %v12606_v0 }
 0x5df   : > { %10823 = vmatmul.mubr.msk.bf16.gmra.mrb[76].mxu0 %vm1531_vm4, %v12970_v45 }
 0x5e0   : > { %10848 = vmatprep.mubr.msk.bf16.mxu0 %vm12608_vm2, %v12606_v0 }
 0x672   : > { %v13236_v5 = vpop.f32.mrb[44].mxu0 }
 0x673   : > { %v10738_v6 = vpop.f32.mrb[45].mxu0  ;;  %v2467_v7 = vsel %vm1919_vm7, %v13236_v5, -inf }
 0x674   : > { %2468 = vmax.xlane.f32.xlu0 %v2467_v7  ;;  %v13240_v9 = vpop.f32.mrb[46].mxu0 }
 0x675   : > { %v10739_v10 = vpop.f32.mrb[47].mxu0  ;;  %v2470_v11 = vsel %vm1919_vm7, %v13240_v9, -inf }
 0x676   : > { %2471 = vmax.xlane.f32.xlu1 %v2470_v11 }
 0x67a   : > { %v13244_v14 = vpop.f32.mrb[48].mxu0 }
 0x67b   : > { %v10742_v15 = vpop.f32.mrb[49].mxu0  ;;  %v2473_v16 = vsel %vm1919_vm7, %v13244_v14, -inf }
 0x67c   : > { %2474 = vmax.xlane.f32.xlu0 %v2473_v16  ;;  %v13248_v17 = vpop.f32.mrb[50].mxu0  ;;  %v12174_v15 = vld [vmem:[%s12663_s14 + $0x30] sm:$0xff]  }
 0x67d   : > { %v10743_v18 = vpop.f32.mrb[51].mxu0  ;;  %v2476_v19 = vsel %vm1919_vm7, %v13248_v17, -inf }
 0x67e   : > { %2477 = vmax.xlane.f32.xlu1 %v2476_v19 }
 0x682   : > { %v13252_v20 = vpop.f32.mrb[52].mxu0 }
 0x683   : > { %v10746_v21 = vpop.f32.mrb[53].mxu0  ;;  %v2479_v22 = vsel %vm1932_vm8, %v13252_v20, -inf }
 0x684   : > { %2480 = vmax.xlane.f32.xlu0 %v2479_v22  ;;  %v2464_v24 = vpop.f32.mrb[54].mxu0 }
 0x685   : > { %v10747_v25 = vpop.f32.mrb[55].mxu0 }
 0x68a   : > { %v2801_v29 = vpop.f32.mrb[56].mxu0 }
 0x68b   : > { %v10800_v32 = vpop.f32.mrb[57].mxu0  ;;  %v2802_v34 = vadd.f32 %v9598_v26, %v2801_v29  ;;  %v12175_v29 = vld [vmem:[%s12663_s14 + $0x38] ss:$0 sps:$4 sm:$0x33]  }
 0x68c   : > { %v2804_v33 = vpop.f32.mrb[58].mxu0 }
 0x68d   : > { %v2805_v37 = vadd.f32 %v9598_v26, %v2804_v33  ;;  %v10801_v40 = vpop.f32.mrb[59].mxu0  ;;  %v12176_v33 = vld [vmem:[%s12633_s17 + $0x30] sm:$0xff]  }
 0x68e   : > { %v12179_v40 = vld [vmem:[%s14831_s3 + $0x38] sm:$0xff]  }
 0x68f   : > { %v13257_v41 = vpack.c.bf16 %v2805_v37, %v2802_v34  ;;  %v12177_v34 = vld [vmem:[%s12633_s17 + $0x38] sm:$0xff]   ;;  %v12178_v37 = vld [vmem:[%s14831_s3 + $0x30] sm:$0xff]  }
 0x691   : > { %v3020_v42 = vsel %vm1779_vm5, %v13257_v41, 0 }
 0x692   : > { %v2809_v44 = vpop.f32.mrb[60].mxu0  ;;  %10843 = vmatpush3.bf16.xpose.msra.mxu0 %v3020_v42 }
 0x693   : > { %v10804_v46 = vpop.f32.mrb[61].mxu0  ;;  %10844 = vmatprep.subr.bf16.mxu0 %v12606_v0  ;;  %v2810_v49 = vadd.f32 %v9598_v26, %v2809_v44 }
 0x694   : > { %v2812_v47 = vpop.f32.mrb[62].mxu0 }
 0x695   : > { %v2813_v50 = vadd.f32 %v9598_v26, %v2812_v47  ;;  %v10805_v52 = vpop.f32.mrb[63].mxu0 }
 0x697   : > { %v2992_v53 = vpack.c.bf16 %v2813_v50, %v2810_v49 }
 0x699   : > { %v3023_v54 = vsel %vm1779_vm5, %v2992_v53, 0 }
 0x69a   : > { %v2817_v55 = vpop.f32.mrb[64].mxu0  ;;  %10845 = vmatpush3.bf16.xpose.msra.mxu0 %v3023_v54 }
 0x69b   : > { %v2818_v56 = vadd.f32 %v9598_v26, %v2817_v55  ;;  %v10808_v57 = vpop.f32.mrb[65].mxu0  ;;  %10846 = vmatprep.subr.bf16.mxu0 %v12606_v0 }
 0x69c   : > { %v2820_v27 = vpop.f32.mrb[66].mxu0 }
 0x69d   : > { %v2993_v28 = vpack.c.bf16 %v2818_v56, %v2818_v56  ;;  %v10809_v30 = vpop.f32.mrb[67].mxu0 }
 0x69f   : > { %v3026_v59 = vsel %vm1779_vm5, %v2993_v28, 0 }
 0x6a2   : > { %v2882_v23 = vpop.f32.mrb[68].mxu0  ;;  %10847 = vmatpush3.bf16.xpose.msra.mxu0 %v3026_v59 }
 0x6a3   : > { %v10816_v39 = vpop.f32.mrb[69].mxu0  ;;  %10860 = vmatprep.subr.bf16.mxu0 %v12606_v0  ;;  %v2883_v63 = vadd.f32 %v9609_v61, %v2882_v23 }
 0x6a4   : > { %v2885_v62 = vpop.f32.mrb[70].mxu0 }
 0x6a5   : > { %v2886_v35 = vadd.f32 %v9609_v61, %v2885_v62  ;;  %v10817_v36 = vpop.f32.mrb[71].mxu0 }
 0x6a7   : > { %v2994_v1 = vpack.c.bf16 %v2886_v35, %v2883_v63 }
 0x6a9   : > { %10849 = vmatmul.mubr.msk.bf16.vlgmr.msra.gmra.mrb[80].mxu0 %vm1779_vm5, %v12173_v38  ;;  %v3085_v2 = vsel %vm1779_vm5, %v2994_v1, 0 }
 0x6aa   : > { %v2890_v60 = vpop.f32.mrb[72].mxu0  ;;  %10861 = vmatpush3.bf16.xpose.msra.mxu0 %v3085_v2  ;;  %10852 = vmatprep.mubr.msk.bf16.mxu0 %vm12608_vm2, %v12606_v0 }
 0x6ab   : > { %v10820_v3 = vpop.f32.mrb[73].mxu0  ;;  %10862 = vmatprep.subr.bf16.mxu0 %v12606_v0  ;;  %v2891_v7 = vadd.f32 %v9609_v61, %v2890_v60 }
 0x6ac   : > { %v2893_v6 = vpop.f32.mrb[74].mxu0 }
 0x6ad   : > { %v2894_v10 = vadd.f32 %v9609_v61, %v2893_v6  ;;  %v10821_v11 = vpop.f32.mrb[75].mxu0 }
 0x6af   : > { %v2995_v16 = vpack.c.bf16 %v2894_v10, %v2891_v7 }
 0x6b1   : > { %10853 = vmatmul.mubr.msk.bf16.gmra.mrb[84].mxu0 %vm1779_vm5, %v12174_v15  ;;  %v3088_v18 = vsel %vm1779_vm5, %v2995_v16, 0 }
 0x6b2   : > { %v2898_v19 = vpop.f32.mrb[76].mxu0  ;;  %10863 = vmatpush3.bf16.xpose.msra.mxu0 %v3088_v18  ;;  %10856 = vmatprep.mubr.msk.bf16.mxu0 %vm12608_vm2, %v12606_v0 }
 0x6b3   : > { %v2899_v21 = vadd.f32 %v9609_v61, %v2898_v19  ;;  %v10824_v22 = vpop.f32.mrb[77].mxu0  ;;  %10864 = vmatprep.subr.bf16.mxu0 %v12606_v0 }
 0x6b4   : > { %v2901_v24 = vpop.f32.mrb[78].mxu0 }
 0x6b5   : > { %v2996_v25 = vpack.c.bf16 %v2899_v21, %v2899_v21  ;;  %v10825_v26 = vpop.f32.mrb[79].mxu0 }
 0x6b7   : > { %v3091_v32 = vsel %vm1779_vm5, %v2996_v25, 0 }
 0x6b9   : > { %10857 = vmatmul.mubr.msk.bf16.gmra.mrb[88].mxu0 %vm1779_vm5, %v12175_v29 }
 0x6ba   : > { %10865 = vmatpush3.bf16.xpose.msra.mxu0 %v3091_v32  ;;  %10866 = vmatprep.mubr.msk.bf16.mxu0 %vm12608_vm2, %v12606_v0  ;;  %v13361_v32 = vld [vmem:[%s12638_s21 + $0x3] ss:$0 sm:$0xff] }
 0x6bb   : > { %10910 = vmatprep.subr.bf16.mxu0 %v12606_v0 }
 0x6c1   : > { %10867 = vmatmul.mubr.msk.bf16.vlgmr.msra.gmra.mrb[80].mxu0 %vm1779_vm5, %v13257_v41 }
 0x6c2   : > { %10870 = vmatprep.mubr.msk.bf16.mxu0 %vm12608_vm2, %v12606_v0  ;;  %10911 = vmatpush3.bf16.msra.mxu0 %v12176_v33 }
 0x6c3   : > { %10912 = vmatprep.subr.bf16.mxu0 %v12606_v0 }
 0x6c6   : > { %10913 = vmatpush3.bf16.msra.mxu0 %v12177_v34 }
 0x6c7   : > { %10942 = vmatprep.subr.bf16.mxu0 %v12606_v0 }
 0x6c9   : > { %10871 = vmatmul.mubr.msk.bf16.gmra.mrb[84].mxu0 %vm1779_vm5, %v2992_v53 }
 0x6ca   : > { %10874 = vmatprep.mubr.msk.bf16.mxu0 %vm12608_vm2, %v12606_v0 }
 0x6d1   : > { %10875 = vmatmul.mubr.msk.bf16.gmra.mrb[88].mxu0 %vm1779_vm5, %v2993_v28 }
 0x6d2   : > { %10914 = vmatprep.mubr.msk.bf16.mxu0 %vm12608_vm2, %v12606_v0 }
 0x6d9   : > { %10915 = vmatmul.mubr.msk.bf16.vlgmr.msra.gmra.mrb[92].mxu0 %vm1531_vm4, %v12946_v31 }
 0x6da   : > { %10918 = vmatprep.mubr.msk.bf16.mxu0 %vm12608_vm2, %v12606_v0  ;;  %10943 = vmatpush3.bf16.msra.mxu0 %v12178_v37 }
 0x6db   : > { %10944 = vmatprep.subr.bf16.mxu0 %v12606_v0 }
 0x6de   : > { %10945 = vmatpush3.bf16.msra.mxu0 %v12179_v40 }
 0x6df   : > { %10994 = vmatprep.subr.bf16.mxu0 %v12606_v0 }
 0x6e1   : > { %10919 = vmatmul.mubr.msk.bf16.gmra.mrb[96].mxu0 %vm1531_vm4, %v12959_v43 }
 0x6e2   : > { %10922 = vmatprep.mubr.msk.bf16.mxu0 %vm12608_vm2, %v12606_v0 }
 0x6e9   : > { %10923 = vmatmul.mubr.msk.bf16.gmra.mrb[100].mxu0 %vm1531_vm4, %v12970_v45 }
 0x6ea   : > { %10946 = vmatprep.mubr.msk.bf16.mxu0 %vm12608_vm2, %v12606_v0 }
 0x6f1   : > { %10947 = vmatmul.mubr.msk.bf16.vlgmr.msra.gmra.mrb[104].mxu0 %vm1531_vm4, %v12946_v31 }
 0x6f2   : > { %10950 = vmatprep.mubr.msk.bf16.mxu0 %vm12608_vm2, %v12606_v0 }
 0x6f9   : > { %10951 = vmatmul.mubr.msk.bf16.gmra.mrb[108].mxu0 %vm1531_vm4, %v12959_v43 }
 0x6fa   : > { %10954 = vmatprep.mubr.msk.bf16.mxu0 %vm12608_vm2, %v12606_v0 }
 0x701   : > { %v2469_v41 = vpop.xlane.xlu0 %2468  ;;  %10955 = vmatmul.mubr.msk.bf16.gmra.mrb[112].mxu0 %vm1531_vm4, %v12970_v45 }
 0x702   : > { %v2482_v42 = vsub.f32 %v13236_v5, %v2469_v41  ;;  %11000 = vmatprep.mubr.msk.bf16.mxu0 %vm12608_vm2, %v12606_v0 }
 0x703   : > { %v2472_v44 = vpop.xlane.xlu1 %2471 }
 0x704   : > { %v2487_v46 = vmul.f32 1.442695, %v2482_v42  ;;  %v2483_v47 = vsub.f32 %v13240_v9, %v2472_v44 }
 0x706   : > { %12335 = vpow2.f32 %v2487_v46  ;;  %v2489_v49 = vmul.f32 1.442695, %v2483_v47 }
 0x708   : > { %12337 = vpow2.f32 %v2489_v49 }
 0x709   : > { %v2475_v50 = vpop.xlane.xlu0 %2474 }
 0x70a   : > { %v2484_v52 = vsub.f32 %v13244_v14, %v2475_v50 }
 0x70b   : > { %v2478_v53 = vpop.xlane.xlu1 %2477 }
 0x70c   : > { %v2491_v54 = vmul.f32 1.442695, %v2484_v52  ;;  %v2485_v55 = vsub.f32 %v13248_v17, %v2478_v53 }
 0x70e   : > { %12339 = vpow2.f32 %v2491_v54  ;;  %v2493_v56 = vmul.f32 1.442695, %v2485_v55 }
 0x710   : > { %v12336_v5 = vpop.eup %12335  ;;  %12341 = vpow2.f32 %v2493_v56 }
 0x711   : > { %v2481_v57 = vpop.xlane.xlu0 %2480  ;;  %v2497_v27 = vsel %vm1919_vm7, %v12336_v5, 0.0 }
 0x712   : > { %v12338_v28 = vpop.eup %12337  ;;  %v2486_v9 = vsub.f32 %v13252_v20, %v2481_v57  ;;  %2498 = vadd.xlane.f32.xlu1 %v2497_v27 }
 0x713   : > { %v2500_v30 = vsel %vm1919_vm7, %v12338_v28, 0.0 }
 0x714   : > { %v2495_v59 = vmul.f32 1.442695, %v2486_v9  ;;  %2501 = vadd.xlane.f32.xlu0 %v2500_v30 }
 0x716   : > { %12343 = vpow2.f32 %v2495_v59 }
 0x718   : > { %v12340_v14 = vpop.eup %12339 }
 0x719   : > { %v2503_v61 = vsel %vm1919_vm7, %v12340_v14, 0.0 }
 0x71a   : > { %v12342_v17 = vpop.eup %12341  ;;  %2504 = vadd.xlane.f32.xlu1 %v2503_v61 }
 0x71b   : > { %v2506_v23 = vsel %vm1919_vm7, %v12342_v17, 0.0 }
 0x71c   : > { %2507 = vadd.xlane.f32.xlu0 %v2506_v23 }
 0x720   : > { %v13336_v39 = vpop.eup %12343 }
 0x721   : > { %v2509_v62 = vsel %vm1932_vm8, %v13336_v39, 0.0 }
 0x722   : > { %2510 = vadd.xlane.f32.xlu1 %v2509_v62 }
 0x794   : > { %v13340_v20 = vpop.f32.mrb[80].mxu0 }
 0x795   : > { %v10868_v63 = vpop.f32.mrb[81].mxu0  ;;  %v3149_v35 = vsel %vm1919_vm7, %v13340_v20, -inf }
 0x796   : > { %3150 = vmax.xlane.f32.xlu0 %v3149_v35  ;;  %v13344_v36 = vpop.f32.mrb[82].mxu0 }
 0x797   : > { %v10869_v38 = vpop.f32.mrb[83].mxu0  ;;  %v3152_v1 = vsel %vm1919_vm7, %v13344_v36, -inf }
 0x798   : > { %3153 = vmax.xlane.f32.xlu1 %v3152_v1  ;;  %v9674_v38 = vld [vmem:[%s14829_s8 + $0x3] ss:$0 sm:$0xff] }
 0x79c   : > { %v13348_v2 = vpop.f32.mrb[84].mxu0 }
 0x79d   : > { %v10872_v60 = vpop.f32.mrb[85].mxu0  ;;  %v3155_v3 = vsel %vm1919_vm7, %v13348_v2, -inf }
 0x79e   : > { %3156 = vmax.xlane.f32.xlu0 %v3155_v3  ;;  %v13352_v6 = vpop.f32.mrb[86].mxu0  ;;  %v9586_v60 = vld [vmem:[%s12668_s19 + $0x4] sm:$0xf] }
 0x79f   : > { %v2499_v7 = vpop.xlane.xlu1 %2498  ;;  %v10873_v10 = vpop.f32.mrb[87].mxu0  ;;  %v3158_v11 = vsel %vm1919_vm7, %v13352_v6, -inf }
 0x7a0   : > { %12345 = vrcp.f32 %v2499_v7  ;;  %3159 = vmax.xlane.f32.xlu1 %v3158_v11  ;;  %v2616_v7 = vsel %vm1437_vm0, %v9586_v60, 0 }
 0x7a1   : > { %v2502_v15 = vpop.xlane.xlu0 %2501 }
 0x7a2   : > { %12347 = vrcp.f32 %v2502_v15 }
 0x7a4   : > { %v13356_v16 = vpop.f32.mrb[88].mxu0 }
 0x7a5   : > { %v10876_v18 = vpop.f32.mrb[89].mxu0  ;;  %v3161_v19 = vsel %vm1932_vm8, %v13356_v16, -inf }
 0x7a6   : > { %3162 = vmax.xlane.f32.xlu0 %v3161_v19  ;;  %v3146_v21 = vpop.f32.mrb[90].mxu0 }
 0x7a7   : > { %v2505_v22 = vpop.xlane.xlu1 %2504  ;;  %v10877_v24 = vpop.f32.mrb[91].mxu0 }
 0x7a8   : > { %12349 = vrcp.f32 %v2505_v22 }
 0x7a9   : > { %v2508_v25 = vpop.xlane.xlu0 %2507 }
 0x7aa   : > { %v12346_v26 = vpop.eup %12345  ;;  %12351 = vrcp.f32 %v2508_v25 }
 0x7ab   : > { %v2513_v34 = vmul.f32 %v12346_v26, %v12336_v5 }
 0x7ac   : > { %v12348_v29 = vpop.eup %12347  ;;  %v3420_v33 = vpop.f32.mrb[92].mxu0 }
 0x7ad   : > { %v2515_v37 = vmul.f32 %v12348_v29, %v12338_v28  ;;  %v10916_v40 = vpop.f32.mrb[93].mxu0  ;;  %v3421_v44 = vadd.f32 %v13361_v32, %v3420_v33 }
 0x7ae   : > { %v3423_v41 = vpop.f32.mrb[94].mxu0 }
 0x7af   : > { %v2522_v42 = vpack.c.bf16 %v2515_v37, %v2513_v34  ;;  %v3424_v46 = vadd.f32 %v13361_v32, %v3423_v41  ;;  %v2511_v47 = vpop.xlane.xlu1 %2510  ;;  %v10917_v49 = vpop.f32.mrb[95].mxu0 }
 0x7b0   : > { %12353 = vrcp.f32 %v2511_v47 }
 0x7b1   : > { %10755 = vmatmul.mubr.msk.bf16.vlgmr.msra.gmra.mrb[64].mxu1 %vm1919_vm7, %v2522_v42  ;;  %v13366_v50 = vpack.c.bf16 %v3424_v46, %v3421_v44 }
 0x7b2   : > { %v12350_v52 = vpop.eup %12349  ;;  %10758 = vmatprep.mubr.msk.bf16.mxu1 %vm12608_vm2, %v12606_v0  ;;  %10767 = vmatpush3.bf16.msra.mxu1 %v2616_v7 }
 0x7b3   : > { %v2517_v56 = vmul.f32 %v12350_v52, %v12340_v14  ;;  %10780 = vmatprep.subr.bf16.mxu1 %v12606_v0 }
 0x7b4   : > { %v12352_v53 = vpop.eup %12351  ;;  %v3428_v54 = vpop.f32.mrb[96].mxu0 }
 0x7b5   : > { %v10920_v55 = vpop.f32.mrb[97].mxu0  ;;  %v2519_v5 = vmul.f32 %v12352_v53, %v12342_v17  ;;  %v3429_v27 = vadd.f32 %v13361_v32, %v3428_v54 }
 0x7b6   : > { %v3431_v57 = vpop.f32.mrb[98].mxu0 }
 0x7b7   : > { %v3432_v28 = vadd.f32 %v13361_v32, %v3431_v57  ;;  %v10921_v9 = vpop.f32.mrb[99].mxu0  ;;  %v2523_v30 = vpack.c.bf16 %v2519_v5, %v2517_v56 }
 0x7b9   : > { %10759 = vmatmul.mubr.msk.bf16.gmra.mrb[68].mxu1 %vm1919_vm7, %v2523_v30  ;;  %v13373_v59 = vpack.c.bf16 %v3432_v28, %v3429_v27 }
 0x7ba   : > { %v12354_v61 = vpop.eup %12353  ;;  %10762 = vmatprep.mubr.msk.bf16.mxu1 %vm12608_vm2, %v12606_v0 }
 0x7bb   : > { %v2521_v14 = vmul.f32 %v12354_v61, %v13336_v39 }
 0x7bc   : > { %v13378_v17 = vpop.f32.mrb[100].mxu0 }
 0x7bd   : > { %v10924_v23 = vpop.f32.mrb[101].mxu0  ;;  %v2524_v35 = vpack.c.bf16 %v2521_v14, %v2521_v14 }
 0x7be   : > { %v3439_v62 = vpop.f32.mrb[102].mxu0 }
 0x7bf   : > { %v10925_v63 = vpop.f32.mrb[103].mxu0 }
 0x7c1   : > { %10763 = vmatmul.mubr.msk.bf16.gmra.mrb[72].mxu1 %vm1919_vm7, %v2524_v35 }
 0x7c2   : > { %10768 = vmatprep.mubr.msk.bf16.mxu1 %vm12608_vm2, %v12606_v0 }
 0x7c4   : > { %v3582_v1 = vpop.f32.mrb[104].mxu0 }
 0x7c5   : > { %v10948_v3 = vpop.f32.mrb[105].mxu0  ;;  %v3583_v39 = vadd.f32 %v9674_v38, %v3582_v1 }
 0x7c6   : > { %v3585_v10 = vpop.f32.mrb[106].mxu0  ;;  %v2056_v3 = vld [vmem:[%s12668_s19] sm:$0xf] }
 0x7c7   : > { %v3586_v11 = vadd.f32 %v9674_v38, %v3585_v10  ;;  %v10949_v15 = vpop.f32.mrb[107].mxu0 }
 0x7c8   : > { %v2684_v15 = vsel %vm1437_vm0, %v2056_v3, 0 }
 0x7c9   : > { %v3826_v18 = vpack.c.bf16 %v3586_v11, %v3583_v39 }
 0x7cb   : > { %10995 = vmatpush3.bf16.msra.mxu0 %v3826_v18 }
 0x7cc   : > { %v3590_v19 = vpop.f32.mrb[108].mxu0  ;;  %10996 = vmatprep.subr.bf16.mxu0 %v12606_v0 }
 0x7cd   : > { %v10952_v21 = vpop.f32.mrb[109].mxu0  ;;  %v3591_v24 = vadd.f32 %v9674_v38, %v3590_v19 }
 0x7ce   : > { %v3593_v22 = vpop.f32.mrb[110].mxu0 }
 0x7cf   : > { %v3594_v25 = vadd.f32 %v9674_v38, %v3593_v22  ;;  %v10953_v26 = vpop.f32.mrb[111].mxu0 }
 0x7d1   : > { %v3827_v29 = vpack.c.bf16 %v3594_v25, %v3591_v24 }
 0x7d3   : > { %10997 = vmatpush3.bf16.msra.mxu0 %v3827_v29 }
 0x7d4   : > { %v3598_v33 = vpop.f32.mrb[112].mxu0  ;;  %10998 = vmatprep.subr.bf16.mxu0 %v12606_v0 }
 0x7d5   : > { %v3599_v34 = vadd.f32 %v9674_v38, %v3598_v33  ;;  %v10956_v37 = vpop.f32.mrb[113].mxu0 }
 0x7d6   : > { %v3601_v40 = vpop.f32.mrb[114].mxu0 }
 0x7d7   : > { %v3828_v41 = vpack.c.bf16 %v3599_v34, %v3599_v34  ;;  %v10957_v42 = vpop.f32.mrb[115].mxu0 }
 0x7d8   : > { %v12180_v42 = vld [vmem:[%s14831_s3 + $0x20] sm:$0xff]  }
 0x7d9   : > { %v3839_v44 = vsel %vm1991_vm6, %v3828_v41, 0 }
 0x7da   : > { %10999 = vmatpush3.bf16.msra.mxu0 %v3839_v44  ;;  %v12181_v44 = vld [vmem:[%s14831_s3 + $0x28] sm:$0xff]   ;;  %s14840_s3 = sld [smem:[#allocation13_spill]] }
 0x7db   : > { %11040 = vmatprep.subr.bf16.mxu0 %v12606_v0 }
 0x823   : > { %v3151_v46 = vpop.xlane.xlu0 %3150 }
 0x824   : > { %v3164_v47 = vsub.f32 %v13340_v20, %v3151_v46  ;;  %v2055_v46 = vmax.f32 %v13143_v58, 0.0 }
 0x825   : > { %v3154_v49 = vpop.xlane.xlu1 %3153 }
 0x826   : > { %v3169_v52 = vmul.f32 1.442695, %v3164_v47  ;;  %v3165_v53 = vsub.f32 %v13344_v36, %v3154_v49 }
 0x828   : > { %12355 = vpow2.f32 %v3169_v52  ;;  %v3171_v54 = vmul.f32 1.442695, %v3165_v53 }
 0x82a   : > { %12357 = vpow2.f32 %v3171_v54 }
 0x82b   : > { %v3157_v55 = vpop.xlane.xlu0 %3156 }
 0x82c   : > { %v3166_v56 = vsub.f32 %v13348_v2, %v3157_v55 }
 0x82d   : > { %v3160_v5 = vpop.xlane.xlu1 %3159 }
 0x82e   : > { %v3173_v57 = vmul.f32 1.442695, %v3166_v56  ;;  %v3167_v27 = vsub.f32 %v13352_v6, %v3160_v5 }
 0x830   : > { %12359 = vpow2.f32 %v3173_v57  ;;  %v3175_v28 = vmul.f32 1.442695, %v3167_v27 }
 0x832   : > { %v13395_v9 = vpop.eup %12355  ;;  %12361 = vpow2.f32 %v3175_v28 }
 0x833   : > { %v3163_v20 = vpop.xlane.xlu0 %3162  ;;  %v3179_v30 = vsel %vm1919_vm7, %v13395_v9, 0.0 }
 0x834   : > { %v13399_v36 = vpop.eup %12357  ;;  %v3168_v61 = vsub.f32 %v13356_v16, %v3163_v20  ;;  %3180 = vadd.xlane.f32.xlu1 %v3179_v30 }
 0x835   : > { %v3182_v2 = vsel %vm1919_vm7, %v13399_v36, 0.0 }
 0x836   : > { %v3177_v14 = vmul.f32 1.442695, %v3168_v61  ;;  %3183 = vadd.xlane.f32.xlu0 %v3182_v2 }
 0x838   : > { %12363 = vpow2.f32 %v3177_v14 }
 0x83a   : > { %v13404_v6 = vpop.eup %12359 }
 0x83b   : > { %v3185_v23 = vsel %vm1919_vm7, %v13404_v6, 0.0 }
 0x83c   : > { %v13408_v62 = vpop.eup %12361  ;;  %3186 = vadd.xlane.f32.xlu1 %v3185_v23 }
 0x83d   : > { %v3188_v63 = vsel %vm1919_vm7, %v13408_v62, 0.0 }
 0x83e   : > { %3189 = vadd.xlane.f32.xlu0 %v3188_v63 }
 0x842   : > { %v13412_v16 = vpop.eup %12363 }
 0x843   : > { %v3191_v35 = vsel %vm1932_vm8, %v13412_v16, 0.0 }
 0x844   : > { %3192 = vadd.xlane.f32.xlu1 %v3191_v35 }
 0x884   : > { %v2574_v38 = vpop.f32.mrb[64].mxu1 }
 0x885   : > { %v10756_v1 = vpop.f32.mrb[65].mxu1  ;;  %v2596_v7 = vmax.f32 %v2574_v38, 0.0 }
 0x886   : > { %v2577_v60 = vpop.f32.mrb[66].mxu1 }
 0x887   : > { %v2597_v10 = vmax.f32 %v2577_v60, 0.0  ;;  %v10757_v39 = vpop.f32.mrb[67].mxu1 }
 0x889   : > { %v2603_v11 = vpack.c.bf16 %v2597_v10, %v2596_v7 }
 0x88b   : > { %10769 = vmatmul.mubr.msk.bf16.vlgmr.msra.gmra.mrb[76].mxu1 %vm1779_vm5, %v2603_v11 }
 0x88c   : > { %v2582_v18 = vpop.f32.mrb[68].mxu1  ;;  %10781 = vmatpush3.bf16.msra.mxu1 %v2684_v15  ;;  %10772 = vmatprep.mubr.msk.bf16.mxu1 %vm12608_vm2, %v12606_v0  ;;  %v9643_v15 = vld [vmem:[%s12668_s19 + $0x8] sm:$0xf] }
 0x88d   : > { %v10760_v19 = vpop.f32.mrb[69].mxu1  ;;  %10826 = vmatprep.subr.bf16.mxu1 %v12606_v0  ;;  %v2598_v22 = vmax.f32 %v2582_v18, 0.0 }
 0x88e   : > { %v2585_v21 = vpop.f32.mrb[70].mxu1 }
 0x88f   : > { %v2599_v24 = vmax.f32 %v2585_v21, 0.0  ;;  %v10761_v25 = vpop.f32.mrb[71].mxu1 }
 0x891   : > { %v2604_v26 = vpack.c.bf16 %v2599_v24, %v2598_v22  ;;  %v3298_v22 = vsel %vm1437_vm0, %v9643_v15, 0 }
 0x893   : > { %10773 = vmatmul.mubr.msk.bf16.gmra.mrb[80].mxu1 %vm1779_vm5, %v2604_v26 }
 0x894   : > { %v2590_v29 = vpop.f32.mrb[72].mxu1  ;;  %10776 = vmatprep.mubr.msk.bf16.mxu1 %vm12608_vm2, %v12606_v0 }
 0x895   : > { %v2600_v33 = vmax.f32 %v2590_v29, 0.0  ;;  %v10764_v34 = vpop.f32.mrb[73].mxu1 }
 0x896   : > { %v2593_v37 = vpop.f32.mrb[74].mxu1 }
 0x897   : > { %v10765_v40 = vpop.f32.mrb[75].mxu1  ;;  %v2605_v41 = vpack.c.bf16 %v2600_v33, %v2600_v33 }
 0x89b   : > { %10777 = vmatmul.mubr.msk.bf16.gmra.mrb[84].mxu1 %vm1779_vm5, %v2605_v41 }
 0x89c   : > { %10782 = vmatprep.mubr.msk.bf16.mxu1 %vm12608_vm2, %v12606_v0 }
 0x8a3   : > { %10783 = vmatmul.mubr.msk.bf16.vlgmr.msra.gmra.mrb[76].mxu1 %vm1779_vm5, %v13139_v51  ;;  %v2059_v51 = vpack.c.bf16 %v2055_v46, %v2055_v46 }
 0x8a4   : > { %10827 = vmatpush3.bf16.msra.mxu1 %v12180_v42  ;;  %10786 = vmatprep.mubr.msk.bf16.mxu1 %vm12608_vm2, %v12606_v0 }
 0x8a5   : > { %10828 = vmatprep.subr.bf16.mxu1 %v12606_v0 }
 0x8a8   : > { %10829 = vmatpush3.bf16.msra.mxu1 %v12181_v44  ;;  %v12182_v44 = vld [vmem:[%s12643_s25 + $0x30] sm:$0xff]  }
 0x8a9   : > { %10878 = vmatprep.subr.bf16.mxu1 %v12606_v0 }
 0x8ab   : > { %10787 = vmatmul.mubr.msk.bf16.gmra.mrb[80].mxu1 %vm1779_vm5, %v13141_v48  ;;  %v9620_v48 = vld [vmem:[%s14829_s8 + $0x2] ss:$0 sm:$0xff]  ;;  %s14843_s8 = sld [smem:[#allocation17_spill]] }
 0x8ac   : > { %10790 = vmatprep.mubr.msk.bf16.mxu1 %vm12608_vm2, %v12606_v0 }
 0x8b3   : > { %10791 = vmatmul.mubr.msk.bf16.gmra.mrb[84].mxu1 %vm1779_vm5, %v2059_v51 }
 0x8b4   : > { %10830 = vmatprep.mubr.msk.bf16.mxu1 %vm12608_vm2, %v12606_v0 }
 0x8bb   : > { %10831 = vmatmul.mubr.msk.bf16.vlgmr.msra.gmra.mrb[88].mxu1 %vm1531_vm4, %v12946_v31 }
 0x8bc   : > { %10834 = vmatprep.mubr.msk.bf16.mxu1 %vm12608_vm2, %v12606_v0 }
 0x8c1   : > { %v3181_v56 = vpop.xlane.xlu1 %3180 }
 0x8c3   : > { %10835 = vmatmul.mubr.msk.bf16.gmra.mrb[92].mxu1 %vm1531_vm4, %v12959_v43  ;;  %v3184_v52 = vpop.xlane.xlu0 %3183 }
 0x8c4   : > { %10838 = vmatprep.mubr.msk.bf16.mxu1 %vm12608_vm2, %v12606_v0  ;;  %12365 = vrcp.f32 %v3184_v52 }
 0x8c5   : > { %12367 = vrcp.f32 %v3181_v56 }
 0x8c9   : > { %v3187_v14 = vpop.xlane.xlu1 %3186 }
 0x8cb   : > { %10839 = vmatmul.mubr.msk.bf16.gmra.mrb[96].mxu1 %vm1531_vm4, %v12970_v45  ;;  %v3190_v20 = vpop.xlane.xlu0 %3189 }
 0x8cc   : > { %10884 = vmatprep.mubr.msk.bf16.mxu1 %vm12608_vm2, %v12606_v0  ;;  %12369 = vrcp.f32 %v3190_v20  ;;  %v3437_v20 = vadd.f32 %v13361_v32, %v13378_v17  ;;  %v12185_v17 = vld [vmem:[%s12663_s14 + $0x44] sm:$0xff]  }
 0x8cd   : > { %12371 = vrcp.f32 %v3187_v14 }
 0x8ce   : > { %v12366_v63 = vpop.eup %12365 }
 0x8cf   : > { %v12368_v60 = vpop.eup %12367  ;;  %v3197_v7 = vmul.f32 %v12366_v63, %v13399_v36 }
 0x8d0   : > { %v3195_v18 = vmul.f32 %v12368_v60, %v13395_v9 }
 0x8d1   : > { %v3193_v10 = vpop.xlane.xlu1 %3192 }
 0x8d2   : > { %12373 = vrcp.f32 %v3193_v10  ;;  %v3204_v21 = vpack.c.bf16 %v3197_v7, %v3195_v18 }
 0x8d6   : > { %v12370_v24 = vpop.eup %12369 }
 0x8d7   : > { %v12372_v25 = vpop.eup %12371  ;;  %v3201_v36 = vmul.f32 %v12370_v24, %v13408_v62 }
 0x8d8   : > { %v3199_v9 = vmul.f32 %v12372_v25, %v13404_v6 }
 0x8da   : > { %v3205_v26 = vpack.c.bf16 %v3201_v36, %v3199_v9 }
 0x8dc   : > { %v12374_v29 = vpop.eup %12373 }
 0x8dd   : > { %v3203_v33 = vmul.f32 %v12374_v29, %v13412_v16  ;;  %v12183_v16 = vld [vmem:[%s12643_s25 + $0x38] sm:$0xff]  }
 0x8df   : > { %v3206_v34 = vpack.c.bf16 %v3203_v33, %v3203_v33 }
 0x98e   : > { %v2963_v58 = vpop.f32.mrb[88].mxu1 }
 0x98f   : > { %v10832_v47 = vpop.f32.mrb[89].mxu1  ;;  %v2964_v53 = vadd.f32 %v9620_v48, %v2963_v58 }
 0x990   : > { %v2966_v49 = vpop.f32.mrb[90].mxu1 }
 0x991   : > { %v2967_v54 = vadd.f32 %v9620_v48, %v2966_v49  ;;  %v10833_v55 = vpop.f32.mrb[91].mxu1 }
 0x993   : > { %v3207_v5 = vpack.c.bf16 %v2967_v54, %v2964_v53 }
 0x995   : > { %10879 = vmatpush3.bf16.msra.mxu1 %v3207_v5 }
 0x996   : > { %v2971_v57 = vpop.f32.mrb[92].mxu1  ;;  %10880 = vmatprep.subr.bf16.mxu1 %v12606_v0 }
 0x997   : > { %v10836_v27 = vpop.f32.mrb[93].mxu1  ;;  %v2972_v30 = vadd.f32 %v9620_v48, %v2971_v57 }
 0x998   : > { %v2974_v28 = vpop.f32.mrb[94].mxu1 }
 0x999   : > { %v2975_v61 = vadd.f32 %v9620_v48, %v2974_v28  ;;  %v10837_v2 = vpop.f32.mrb[95].mxu1  ;;  %v3639_v28 = vsel %vm1779_vm5, %v13366_v50, 0 }
 0x99b   : > { %v3208_v23 = vpack.c.bf16 %v2975_v61, %v2972_v30  ;;  %v3612_v30 = vpack.c.bf16 %v3437_v20, %v3437_v20  ;;  %v9663_v61 = vld [vmem:[%s12648_s29 + $0x3] ss:$0 sm:$0xff] }
 0x99d   : > { %10881 = vmatpush3.bf16.msra.mxu1 %v3208_v23  ;;  %v3645_v32 = vsel %vm1779_vm5, %v3612_v30, 0 }
 0x99e   : > { %v2979_v35 = vpop.f32.mrb[96].mxu1  ;;  %10882 = vmatprep.subr.bf16.mxu1 %v12606_v0 }
 0x99f   : > { %v2980_v38 = vadd.f32 %v9620_v48, %v2979_v35  ;;  %v10840_v1 = vpop.f32.mrb[97].mxu1 }
 0x9a0   : > { %v2982_v3 = vpop.f32.mrb[98].mxu1 }
 0x9a1   : > { %v3209_v39 = vpack.c.bf16 %v2980_v38, %v2980_v38  ;;  %v10841_v11 = vpop.f32.mrb[99].mxu1 }
 0x9a3   : > { %v3220_v19 = vsel %vm1991_vm6, %v3209_v39, 0 }
 0x9a4   : > { %10883 = vmatpush3.bf16.msra.mxu1 %v3220_v19 }
 0x9a5   : > { %10896 = vmatprep.subr.bf16.mxu1 %v12606_v0 }
 0x9a7   : > { %10885 = vmatmul.mubr.msk.bf16.vlgmr.msra.gmra.mrb[100].mxu1 %vm1919_vm7, %v3204_v21 }
 0x9a8   : > { %10888 = vmatprep.mubr.msk.bf16.mxu1 %vm12608_vm2, %v12606_v0  ;;  %10897 = vmatpush3.bf16.msra.mxu1 %v3298_v22 }
 0x9a9   : > { %10926 = vmatprep.subr.bf16.mxu1 %v12606_v0 }
 0x9af   : > { %10889 = vmatmul.mubr.msk.bf16.gmra.mrb[104].mxu1 %vm1919_vm7, %v3205_v26 }
 0x9b0   : > { %10892 = vmatprep.mubr.msk.bf16.mxu1 %vm12608_vm2, %v12606_v0 }
 0x9b7   : > { %10893 = vmatmul.mubr.msk.bf16.gmra.mrb[108].mxu1 %vm1919_vm7, %v3206_v34 }
 0x9b8   : > { %10898 = vmatprep.mubr.msk.bf16.mxu1 %vm12608_vm2, %v12606_v0 }
 0xa7a   : > { %v3256_v62 = vpop.f32.mrb[100].mxu1 }
 0xa7b   : > { %v10886_v37 = vpop.f32.mrb[101].mxu1  ;;  %v3278_v6 = vmax.f32 %v3256_v62, 0.0 }
 0xa7c   : > { %v3259_v40 = vpop.f32.mrb[102].mxu1 }
 0xa7d   : > { %v3279_v41 = vmax.f32 %v3259_v40, 0.0  ;;  %v10887_v42 = vpop.f32.mrb[103].mxu1 }
 0xa7f   : > { %v3285_v46 = vpack.c.bf16 %v3279_v41, %v3278_v6 }
 0xa81   : > { %10899 = vmatmul.mubr.msk.bf16.vlgmr.msra.gmra.mrb[76].mxu1 %vm1779_vm5, %v3285_v46 }
 0xa82   : > { %v3264_v51 = vpop.f32.mrb[104].mxu1  ;;  %10927 = vmatpush3.bf16.msra.mxu1 %v12182_v44  ;;  %10902 = vmatprep.mubr.msk.bf16.mxu1 %vm12608_vm2, %v12606_v0 }
 0xa83   : > { %v10890_v48 = vpop.f32.mrb[105].mxu1  ;;  %10928 = vmatprep.subr.bf16.mxu1 %v12606_v0  ;;  %v3280_v47 = vmax.f32 %v3264_v51, 0.0 }
 0xa84   : > { %v3267_v58 = vpop.f32.mrb[106].mxu1 }
 0xa85   : > { %v3281_v49 = vmax.f32 %v3267_v58, 0.0  ;;  %v10891_v52 = vpop.f32.mrb[107].mxu1 }
 0xa86   : > { %10929 = vmatpush3.bf16.msra.mxu1 %v12183_v16 }
 0xa87   : > { %v3286_v53 = vpack.c.bf16 %v3281_v49, %v3280_v47  ;;  %10958 = vmatprep.subr.bf16.mxu1 %v12606_v0 }
 0xa89   : > { %10903 = vmatmul.mubr.msk.bf16.gmra.mrb[80].mxu1 %vm1779_vm5, %v3286_v53 }
 0xa8a   : > { %v3272_v54 = vpop.f32.mrb[108].mxu1  ;;  %10906 = vmatprep.mubr.msk.bf16.mxu1 %vm12608_vm2, %v12606_v0 }
 0xa8b   : > { %v3282_v55 = vmax.f32 %v3272_v54, 0.0  ;;  %v10894_v56 = vpop.f32.mrb[109].mxu1 }
 0xa8c   : > { %v3275_v5 = vpop.f32.mrb[110].mxu1 }
 0xa8d   : > { %v10895_v57 = vpop.f32.mrb[111].mxu1  ;;  %v3287_v27 = vpack.c.bf16 %v3282_v55, %v3282_v55 }
 0xa91   : > { %10907 = vmatmul.mubr.msk.bf16.gmra.mrb[84].mxu1 %vm1779_vm5, %v3287_v27 }
 0xa92   : > { %10930 = vmatprep.mubr.msk.bf16.mxu1 %vm12608_vm2, %v12606_v0 }
 0xa99   : > { %10931 = vmatmul.mubr.msk.bf16.vlgmr.msra.gmra.mrb[112].mxu1 %vm1531_vm4, %v12946_v31  ;;  %v3642_v31 = vsel %vm1779_vm5, %v13373_v59, 0 }
 0xa9a   : > { %10959 = vmatpush3.bf16.xpose.msra.mxu1 %v3639_v28  ;;  %10934 = vmatprep.mubr.msk.bf16.mxu1 %vm12608_vm2, %v12606_v0 }
 0xa9b   : > { %10960 = vmatprep.subr.bf16.mxu1 %v12606_v0 }
 0xaa1   : > { %10935 = vmatmul.mubr.msk.bf16.gmra.mrb[116].mxu1 %vm1531_vm4, %v12959_v43  ;;  %v12184_v43 = vld [vmem:[%s12663_s14 + $0x3c] sm:$0xff]  }
 0xaa2   : > { %10961 = vmatpush3.bf16.xpose.msra.mxu1 %v3642_v31  ;;  %10938 = vmatprep.mubr.msk.bf16.mxu1 %vm12608_vm2, %v12606_v0 }
 0xaa3   : > { %10962 = vmatprep.subr.bf16.mxu1 %v12606_v0 }
 0xaa9   : > { %10939 = vmatmul.mubr.msk.bf16.gmra.mrb[120].mxu1 %vm1531_vm4, %v12970_v45  ;;  %v12186_v45 = vld [vmem:[%s12663_s14 + $0x4c] ss:$0 sps:$4 sm:$0x33]  }
 0xaaa   : > { %10963 = vmatpush3.bf16.xpose.msra.mxu1 %v3645_v32  ;;  %10964 = vmatprep.mubr.msk.bf16.mxu1 %vm12608_vm2, %v12606_v0 }
 0xaab   : > { %10976 = vmatprep.subr.bf16.mxu1 %v12606_v0 }
 0xab1   : > { %10965 = vmatmul.mubr.msk.bf16.vlgmr.msra.gmra.mrb[124].mxu1 %vm1779_vm5, %v12184_v43 }
 0xab2   : > { %10968 = vmatprep.mubr.msk.bf16.mxu1 %vm12608_vm2, %v12606_v0 }
 0xab9   : > { %10969 = vmatmul.mubr.msk.bf16.gmra.mrb[128].mxu1 %vm1779_vm5, %v12185_v17 }
 0xaba   : > { %10972 = vmatprep.mubr.msk.bf16.mxu1 %vm12608_vm2, %v12606_v0 }
 0xac1   : > { %10973 = vmatmul.mubr.msk.bf16.gmra.mrb[132].mxu1 %vm1779_vm5, %v12186_v45 }
 0xac2   : > { %10982 = vmatprep.mubr.msk.bf16.mxu1 %vm12608_vm2, %v12606_v0 }
 0xb6c   : > { %v3501_v2 = vpop.f32.mrb[112].mxu1 }
 0xb6d   : > { %v10932_v14 = vpop.f32.mrb[113].mxu1  ;;  %v3502_v63 = vadd.f32 %v9663_v61, %v3501_v2 }
 0xb6e   : > { %v3504_v23 = vpop.f32.mrb[114].mxu1 }
 0xb6f   : > { %v3505_v35 = vadd.f32 %v9663_v61, %v3504_v23  ;;  %v10933_v38 = vpop.f32.mrb[115].mxu1 }
 0xb71   : > { %v3613_v1 = vpack.c.bf16 %v3505_v35, %v3502_v63 }
 0xb73   : > { %v3704_v60 = vsel %vm1779_vm5, %v3613_v1, 0  ;;  %v9697_v1 = vld [vmem:[%s12668_s19 + $0xc] sm:$0xf] }
 0xb74   : > { %v3509_v3 = vpop.f32.mrb[116].mxu1  ;;  %10977 = vmatpush3.bf16.xpose.msra.mxu1 %v3704_v60  ;;  %v3917_v60 = vsel %vm1437_vm0, %v9697_v1, 0 }
 0xb75   : > { %v10936_v7 = vpop.f32.mrb[117].mxu1  ;;  %10978 = vmatprep.subr.bf16.mxu1 %v12606_v0  ;;  %v3510_v39 = vadd.f32 %v9663_v61, %v3509_v3 }
 0xb76   : > { %v3512_v10 = vpop.f32.mrb[118].mxu1 }
 0xb77   : > { %v3513_v11 = vadd.f32 %v9663_v61, %v3512_v10  ;;  %v10937_v15 = vpop.f32.mrb[119].mxu1 }
 0xb79   : > { %v3614_v18 = vpack.c.bf16 %v3513_v11, %v3510_v39 }
 0xb7b   : > { %v3707_v19 = vsel %vm1779_vm5, %v3614_v18, 0 }
 0xb7c   : > { %v3517_v21 = vpop.f32.mrb[120].mxu1  ;;  %10979 = vmatpush3.bf16.xpose.msra.mxu1 %v3707_v19 }
 0xb7d   : > { %v3518_v22 = vadd.f32 %v9663_v61, %v3517_v21  ;;  %v10940_v24 = vpop.f32.mrb[121].mxu1  ;;  %10980 = vmatprep.subr.bf16.mxu1 %v12606_v0 }
 0xb7e   : > { %v3520_v25 = vpop.f32.mrb[122].mxu1 }
 0xb7f   : > { %v3615_v36 = vpack.c.bf16 %v3518_v22, %v3518_v22  ;;  %v10941_v9 = vpop.f32.mrb[123].mxu1 }
 0xb81   : > { %v3710_v26 = vsel %vm1779_vm5, %v3615_v36, 0 }
 0xb84   : > { %10981 = vmatpush3.bf16.xpose.msra.mxu1 %v3710_v26 }
 0xb85   : > { %11012 = vmatprep.subr.bf16.mxu1 %v12606_v0 }
 0xb8b   : > { %10983 = vmatmul.mubr.msk.bf16.vlgmr.msra.gmra.mrb[124].mxu1 %vm1779_vm5, %v13366_v50 }
 0xb8c   : > { %10986 = vmatprep.mubr.msk.bf16.mxu1 %vm12608_vm2, %v12606_v0  ;;  %11013 = vmatpush3.bf16.msra.mxu1 %v3917_v60 }
 0xb8d   : > { %11026 = vmatprep.subr.bf16.mxu1 %v12606_v0 }
 0xb93   : > { %10987 = vmatmul.mubr.msk.bf16.gmra.mrb[128].mxu1 %vm1779_vm5, %v13373_v59 }
 0xb94   : > { %10990 = vmatprep.mubr.msk.bf16.mxu1 %vm12608_vm2, %v12606_v0 }
 0xb9b   : > { %10991 = vmatmul.mubr.msk.bf16.gmra.mrb[132].mxu1 %vm1779_vm5, %v3612_v30 }
 0xb9c   : > { %11014 = vmatprep.mubr.msk.bf16.mxu1 %vm12608_vm2, %v12606_v0 }
 0xc5e   : > { %v3746_v29 = vpop.f32.mrb[124].mxu1 }
 0xc5f   : > { %v10984_v33 = vpop.f32.mrb[125].mxu1  ;;  %v3768_v34 = vsel %vm1919_vm7, %v3746_v29, -inf }
 0xc60   : > { %3769 = vmax.xlane.f32.xlu0 %v3768_v34  ;;  %v3749_v50 = vpop.f32.mrb[126].mxu1 }
 0xc61   : > { %v10985_v62 = vpop.f32.mrb[127].mxu1  ;;  %v3771_v37 = vsel %vm1919_vm7, %v3749_v50, -inf }
 0xc62   : > { %3772 = vmax.xlane.f32.xlu1 %v3771_v37  ;;  %v12188_v62 = vld [vmem:[%s14830_s6 + $0x8] sm:$0xff]   ;;  %v12189_v37 = vld [vmem:[%s14830_s6 + $0x10] sm:$0xff]  }
 0xc66   : > { %v3754_v40 = vpop.f32.mrb[128].mxu1 }
 0xc67   : > { %v10988_v59 = vpop.f32.mrb[129].mxu1  ;;  %v3774_v6 = vsel %vm1919_vm7, %v3754_v40, -inf }
 0xc68   : > { %3775 = vmax.xlane.f32.xlu0 %v3774_v6  ;;  %v3757_v41 = vpop.f32.mrb[130].mxu1  ;;  %v12191_v59 = vld [vmem:[%s14830_s6 + $0x20] sm:$0xff]   ;;  %v12192_v6 = vld [vmem:[%s14830_s6 + $0x28] sm:$0xff]  }
 0xc69   : > { %v10989_v42 = vpop.f32.mrb[131].mxu1  ;;  %v3777_v44 = vsel %vm1919_vm7, %v3757_v41, -inf }
 0xc6a   : > { %3778 = vmax.xlane.f32.xlu1 %v3777_v44 }
 0xc6e   : > { %v3762_v46 = vpop.f32.mrb[132].mxu1 }
 0xc6f   : > { %v10992_v51 = vpop.f32.mrb[133].mxu1  ;;  %v3780_v16 = vsel %vm1932_vm8, %v3762_v46, -inf }
 0xc70   : > { %3781 = vmax.xlane.f32.xlu0 %v3780_v16  ;;  %v3765_v48 = vpop.f32.mrb[134].mxu1 }
 0xc71   : > { %v10993_v58 = vpop.f32.mrb[135].mxu1 }
 0xced   : > { %v3770_v47 = vpop.xlane.xlu0 %3769 }
 0xcee   : > { %v3783_v49 = vsub.f32 %v3746_v29, %v3770_v47 }
 0xcef   : > { %v3773_v52 = vpop.xlane.xlu1 %3772 }
 0xcf0   : > { %v3788_v53 = vmul.f32 1.442695, %v3783_v49  ;;  %v3784_v54 = vsub.f32 %v3749_v50, %v3773_v52  ;;  %v12187_v50 = vld [vmem:[%s14830_s6] sm:$0xff]  }
 0xcf2   : > { %12375 = vpow2.f32 %v3788_v53  ;;  %v3790_v55 = vmul.f32 1.442695, %v3784_v54 }
 0xcf4   : > { %12377 = vpow2.f32 %v3790_v55 }
 0xcf5   : > { %v3776_v56 = vpop.xlane.xlu0 %3775 }
 0xcf6   : > { %v3785_v5 = vsub.f32 %v3754_v40, %v3776_v56  ;;  %v12190_v40 = vld [vmem:[%s14830_s6 + $0x18] sm:$0xff]  }
 0xcf7   : > { %v3779_v57 = vpop.xlane.xlu1 %3778 }
 0xcf8   : > { %v3792_v27 = vmul.f32 1.442695, %v3785_v5  ;;  %v3786_v28 = vsub.f32 %v3757_v41, %v3779_v57  ;;  %v12150_v41 = vld [vmem:[%s12673_s24] sm:$0x1f]  }
 0xcf9   : > { %v3995_v58 = vand.u32 %v12150_v41, %v12907_v4 }
 0xcfa   : > { %12379 = vpow2.f32 %v3792_v27  ;;  %v3794_v20 = vmul.f32 1.442695, %v3786_v28 }
 0xcfc   : > { %v12376_v31 = vpop.eup %12375  ;;  %12381 = vpow2.f32 %v3794_v20 }
 0xcfd   : > { %v3782_v30 = vpop.xlane.xlu0 %3781  ;;  %v3798_v32 = vsel %vm1919_vm7, %v12376_v31, 0.0 }
 0xcfe   : > { %v12378_v43 = vpop.eup %12377  ;;  %v3787_v17 = vsub.f32 %v3762_v46, %v3782_v30  ;;  %3799 = vadd.xlane.f32.xlu1 %v3798_v32  ;;  %v12193_v30 = vld [vmem:[%s14830_s6 + $0x30] sm:$0xff]   ;;  %v9701_v32 = vld [vmem:[%s12678_s30] ss:$0 sm:$0xff] }
 0xcff   : > { %v3801_v45 = vsel %vm1919_vm7, %v12378_v43, 0.0 }
 0xd00   : > { %v3796_v61 = vmul.f32 1.442695, %v3787_v17  ;;  %3802 = vadd.xlane.f32.xlu0 %v3801_v45 }
 0xd02   : > { %12383 = vpow2.f32 %v3796_v61 }
 0xd04   : > { %v12380_v2 = vpop.eup %12379 }
 0xd05   : > { %v3804_v14 = vsel %vm1919_vm7, %v12380_v2, 0.0 }
 0xd06   : > { %v12382_v23 = vpop.eup %12381  ;;  %3805 = vadd.xlane.f32.xlu1 %v3804_v14 }
 0xd07   : > { %v3807_v63 = vsel %vm1919_vm7, %v12382_v23, 0.0 }
 0xd08   : > { %3808 = vadd.xlane.f32.xlu0 %v3807_v63 }
 0xd0c   : > { %v12384_v35 = vpop.eup %12383 }
 0xd0d   : > { %v3810_v38 = vsel %vm1932_vm8, %v12384_v35, 0.0 }
 0xd0e   : > { %3811 = vadd.xlane.f32.xlu1 %v3810_v38 }
 0xd8b   : > { %v3800_v3 = vpop.xlane.xlu1 %3799 }
 0xd8c   : > { %12385 = vrcp.f32 %v3800_v3 }
 0xd8d   : > { %v3803_v7 = vpop.xlane.xlu0 %3802 }
 0xd8e   : > { %12387 = vrcp.f32 %v3803_v7 }
 0xd93   : > { %v3806_v10 = vpop.xlane.xlu1 %3805 }
 0xd94   : > { %12389 = vrcp.f32 %v3806_v10 }
 0xd95   : > { %v3809_v39 = vpop.xlane.xlu0 %3808 }
 0xd96   : > { %v12386_v11 = vpop.eup %12385  ;;  %12391 = vrcp.f32 %v3809_v39 }
 0xd97   : > { %v3814_v18 = vmul.f32 %v12386_v11, %v12376_v31 }
 0xd98   : > { %v12388_v15 = vpop.eup %12387 }
 0xd99   : > { %v3816_v19 = vmul.f32 %v12388_v15, %v12378_v43 }
 0xd9b   : > { %v3823_v21 = vpack.c.bf16 %v3816_v19, %v3814_v18  ;;  %v3812_v22 = vpop.xlane.xlu1 %3811 }
 0xd9c   : > { %12393 = vrcp.f32 %v3812_v22 }
 0xd9d   : > { %11001 = vmatmul.mubr.msk.bf16.vlgmr.msra.gmra.mrb[116].mxu0 %vm1919_vm7, %v3823_v21 }
 0xd9e   : > { %v12390_v24 = vpop.eup %12389  ;;  %11004 = vmatprep.mubr.msk.bf16.mxu0 %vm12608_vm2, %v12606_v0  ;;  %11041 = vmatpush3.bf16.msra.mxu0 %v12187_v50 }
 0xd9f   : > { %v3818_v36 = vmul.f32 %v12390_v24, %v12380_v2  ;;  %11042 = vmatprep.subr.bf16.mxu0 %v12606_v0 }
 0xda0   : > { %v12392_v25 = vpop.eup %12391 }
 0xda1   : > { %v3820_v9 = vmul.f32 %v12392_v25, %v12382_v23  ;;  %v12195_v23 = vld [vmem:[%s14836_s10] sm:$0xff]  }
 0xda2   : > { %11043 = vmatpush3.bf16.msra.mxu0 %v12188_v62 }
 0xda3   : > { %v3824_v26 = vpack.c.bf16 %v3820_v9, %v3818_v36  ;;  %11044 = vmatprep.subr.bf16.mxu0 %v12606_v0  ;;  %v12196_v36 = vld [vmem:[%s14837_s18] sm:$0xff]   ;;  %v12197_v9 = vld [vmem:[%s14836_s10 + $0x8] sm:$0xff]  }
 0xda5   : > { %11005 = vmatmul.mubr.msk.bf16.gmra.mrb[120].mxu0 %vm1919_vm7, %v3824_v26  ;;  %v12198_v26 = vld [vmem:[%s14837_s18 + $0x8] sm:$0xff]  }
 0xda6   : > { %v12394_v29 = vpop.eup %12393  ;;  %11008 = vmatprep.mubr.msk.bf16.mxu0 %vm12608_vm2, %v12606_v0  ;;  %11045 = vmatpush3.bf16.msra.mxu0 %v12189_v37 }
 0xda7   : > { %v3822_v33 = vmul.f32 %v12394_v29, %v12384_v35  ;;  %11046 = vmatprep.subr.bf16.mxu0 %v12606_v0 }
 0xda9   : > { %v3825_v34 = vpack.c.bf16 %v3822_v33, %v3822_v33 }
 0xdaa   : > { %11047 = vmatpush3.bf16.msra.mxu0 %v12190_v40 }
 0xdab   : > { %11048 = vmatprep.subr.bf16.mxu0 %v12606_v0 }
 0xdad   : > { %11009 = vmatmul.mubr.msk.bf16.gmra.mrb[124].mxu0 %vm1919_vm7, %v3825_v34 }
 0xdae   : > { %11056 = vmatprep.mubr.msk.bf16.mxu0 %vm12608_vm2, %v12606_v0  ;;  %11049 = vmatpush3.bf16.msra.mxu0 %v12191_v59  ;;  %v12199_v59 = vld [vmem:[%s14838_s1] sm:$0xff]  }
 0xdaf   : > { %11050 = vmatprep.subr.bf16.mxu0 %v12606_v0 }
 0xdb2   : > { %11051 = vmatpush3.bf16.msra.mxu0 %v12192_v6 }
 0xdb3   : > { %11052 = vmatprep.subr.bf16.mxu0 %v12606_v0 }
 0xdb6   : > { %11053 = vmatpush3.bf16.msra.mxu0 %v12193_v30 }
 0xdb7   : > { %11054 = vmatprep.subr.bf16.mxu0 %v12606_v0 }
 0xe70   : > { %v3875_v42 = vpop.f32.mrb[116].mxu0 }
 0xe71   : > { %v11002_v44 = vpop.f32.mrb[117].mxu0  ;;  %v3897_v51 = vmax.f32 %v3875_v42, 0.0  ;;  %v12200_v42 = vld [vmem:[%s14838_s1 + $0x8] sm:$0xff]  }
 0xe72   : > { %v3878_v46 = vpop.f32.mrb[118].mxu0 }
 0xe73   : > { %v3898_v16 = vmax.f32 %v3878_v46, 0.0  ;;  %v11003_v48 = vpop.f32.mrb[119].mxu0 }
 0xe75   : > { %v3904_v47 = vpack.c.bf16 %v3898_v16, %v3897_v51 }
 0xe77   : > { %11015 = vmatmul.mubr.msk.bf16.vlgmr.msra.gmra.mrb[76].mxu1 %vm1779_vm5, %v3904_v47 }
 0xe78   : > { %v3883_v49 = vpop.f32.mrb[120].mxu0  ;;  %11027 = vmatpush3.bf16.msra.mxu1 %v3995_v58  ;;  %11018 = vmatprep.mubr.msk.bf16.mxu1 %vm12608_vm2, %v12606_v0 }
 0xe79   : > { %v11006_v52 = vpop.f32.mrb[121].mxu0  ;;  %11084 = vmatprep.subr.bf16.mxu1 %v12606_v0  ;;  %v3899_v54 = vmax.f32 %v3883_v49, 0.0 }
 0xe7a   : > { %v3886_v53 = vpop.f32.mrb[122].mxu0 }
 0xe7b   : > { %v3900_v55 = vmax.f32 %v3886_v53, 0.0  ;;  %v11007_v56 = vpop.f32.mrb[123].mxu0 }
 0xe7d   : > { %v3905_v5 = vpack.c.bf16 %v3900_v55, %v3899_v54  ;;  %v9714_v55 = vld [vmem:[%s14839_s7] ss:$0 sm:$0xff] }
 0xe7f   : > { %11019 = vmatmul.mubr.msk.bf16.gmra.mrb[80].mxu1 %vm1779_vm5, %v3905_v5  ;;  %v13688_v5 = vld [vmem:[%s14840_s3] ss:$0 sm:$0xff] }
 0xe80   : > { %v3891_v4 = vpop.f32.mrb[124].mxu0  ;;  %11022 = vmatprep.mubr.msk.bf16.mxu1 %vm12608_vm2, %v12606_v0 }
 0xe81   : > { %v3901_v57 = vmax.f32 %v3891_v4, 0.0  ;;  %v11010_v27 = vpop.f32.mrb[125].mxu0 }
 0xe82   : > { %v3894_v28 = vpop.f32.mrb[126].mxu0 }
 0xe83   : > { %v11011_v20 = vpop.f32.mrb[127].mxu0  ;;  %v3906_v31 = vpack.c.bf16 %v3901_v57, %v3901_v57 }
 0xe87   : > { %11023 = vmatmul.mubr.msk.bf16.gmra.mrb[84].mxu1 %vm1779_vm5, %v3906_v31 }
 0xe88   : > { %11028 = vmatprep.mubr.msk.bf16.mxu1 %vm12608_vm2, %v12606_v0 }
 0xe8f   : > { %11029 = vmatmul.mubr.msk.bf16.vlgmr.msra.gmra.mrb[76].mxu1 %vm1427_vm3, %v12919_v8  ;;  %v12194_v8 = vld [vmem:[%s14830_s6 + $0x38] sm:$0xff]   ;;  %s14842_s6 = sld [smem:[#allocation16_spill]] }
 0xe90   : > { %11032 = vmatprep.mubr.msk.bf16.mxu1 %vm12608_vm2, %v12606_v0  ;;  %11055 = vmatpush3.bf16.msra.mxu0 %v12194_v8 }
 0xe91   : > { %11068 = vmatprep.subr.bf16.mxu0 %v12606_v0  ;;  %11085 = vmatpush3.bf16.msra.mxu1 %v12196_v36 }
 0xe92   : > { %11086 = vmatprep.subr.bf16.mxu1 %v12606_v0 }
 0xe95   : > { %11087 = vmatpush3.bf16.msra.mxu1 %v12198_v26 }
 0xe96   : > { %11116 = vmatprep.subr.bf16.mxu1 %v12606_v0 }
 0xe97   : > { %11033 = vmatmul.mubr.msk.bf16.gmra.mrb[80].mxu1 %vm1427_vm3, %v12931_v13 }
 0xe98   : > { %11036 = vmatprep.mubr.msk.bf16.mxu1 %vm12608_vm2, %v12606_v0 }
 0xe9f   : > { %11037 = vmatmul.mubr.msk.bf16.gmra.mrb[84].mxu1 %vm1427_vm3, %v12921_v12  ;;  %vm7156_vm3 = vcmask 31744  }
 0xea0   : > { %11088 = vmatprep.mubr.msk.bf16.mxu1 %vm12608_vm2, %v12606_v0 }
 0xf62   : > { %v4031_v13 = vpop.f32.mrb[76].mxu1 }
 0xf63   : > { %v13606_v43 = vadd.f32 %v9701_v32, %v4031_v13  ;;  %v11030_v17 = vpop.f32.mrb[77].mxu1 }
 0xf64   : > { %v4034_v45 = vpop.f32.mrb[78].mxu1 }
 0xf65   : > { %v13608_v61 = vadd.f32 %v9701_v32, %v4034_v45  ;;  %v11031_v12 = vpop.f32.mrb[79].mxu1  ;;  %v4058_v2 = vmax.f32 %v13606_v43, 0.0 }
 0xf67   : > { %v4059_v14 = vmax.f32 %v13608_v61, 0.0 }
 0xf69   : > { %v4079_v63 = vpack.c.bf16 %v4059_v14, %v4058_v2 }
 0xf6a   : > { %v4039_v35 = vpop.f32.mrb[80].mxu1 }
 0xf6b   : > { %v13617_v38 = vadd.f32 %v9701_v32, %v4039_v35  ;;  %v11034_v1 = vpop.f32.mrb[81].mxu1  ;;  %11057 = vmatmul.mubr.bf16.vlgmr.msra.gmra.mrb[128].mxu0 %v4079_v63 }
 0xf6c   : > { %v4042_v60 = vpop.f32.mrb[82].mxu1  ;;  %11060 = vmatprep.mubr.msk.bf16.mxu0 %vm12608_vm2, %v12606_v0  ;;  %11069 = vmatpush3.bf16.msra.mxu0 %v12195_v23 }
 0xf6d   : > { %v13621_v3 = vadd.f32 %v9701_v32, %v4042_v60  ;;  %v11035_v7 = vpop.f32.mrb[83].mxu1  ;;  %11070 = vmatprep.subr.bf16.mxu0 %v12606_v0  ;;  %v4060_v10 = vmax.f32 %v13617_v38, 0.0 }
 0xf6f   : > { %v4061_v39 = vmax.f32 %v13621_v3, 0.0 }
 0xf70   : > { %11071 = vmatpush3.bf16.msra.mxu0 %v12197_v9 }
 0xf71   : > { %v4080_v11 = vpack.c.bf16 %v4061_v39, %v4060_v10  ;;  %11100 = vmatprep.subr.bf16.mxu0 %v12606_v0 }
 0xf72   : > { %v4047_v15 = vpop.f32.mrb[84].mxu1 }
 0xf73   : > { %v4048_v18 = vadd.f32 %v9701_v32, %v4047_v15  ;;  %v11038_v19 = vpop.f32.mrb[85].mxu1  ;;  %11061 = vmatmul.mubr.bf16.gmra.mrb[132].mxu0 %v4080_v11 }
 0xf74   : > { %v4050_v21 = vpop.f32.mrb[86].mxu1  ;;  %11064 = vmatprep.mubr.msk.bf16.mxu0 %vm12608_vm2, %v12606_v0 }
 0xf75   : > { %v4062_v22 = vmax.f32 %v4048_v18, 0.0  ;;  %v11039_v24 = vpop.f32.mrb[87].mxu1 }
 0xf77   : > { %v4081_v25 = vpack.c.bf16 %v4062_v22, %v4062_v22 }
 0xf7b   : > { %11065 = vmatmul.mubr.bf16.gmra.mrb[136].mxu0 %v4081_v25 }
 0xf7c   : > { %11072 = vmatprep.mubr.msk.bf16.mxu0 %vm12608_vm2, %v12606_v0 }
0x103e   : > { %v4164_v29 = vpop.f32.mrb[128].mxu0 }
0x103f   : > { %v11058_v33 = vpop.f32.mrb[129].mxu0  ;;  %v4186_v50 = vmax.f32 %v4164_v29, 0.0 }
0x1040   : > { %v4167_v34 = vpop.f32.mrb[130].mxu0 }
0x1041   : > { %v4187_v62 = vmax.f32 %v4167_v34, 0.0  ;;  %v11059_v37 = vpop.f32.mrb[131].mxu0 }
0x1043   : > { %v13640_v40 = vpack.c.bf16 %v4187_v62, %v4186_v50 }
0x1045   : > { %11073 = vmatmul.mubr.msk.bf16.vlgmr.msra.gmra.mrb[140].mxu0 %vm1531_vm4, %v13640_v40  ;;  %11089 = vmatmul.mubr.msk.bf16.vlgmr.msra.gmra.mrb[136].mxu1 %vm1531_vm4, %v13640_v40 }
0x1046   : > { %v4172_v6 = vpop.f32.mrb[132].mxu0  ;;  %11076 = vmatprep.mubr.msk.bf16.mxu0 %vm12608_vm2, %v12606_v0  ;;  %11092 = vmatprep.mubr.msk.bf16.mxu1 %vm12608_vm2, %v12606_v0 }
0x1047   : > { %v11062_v41 = vpop.f32.mrb[133].mxu0  ;;  %11101 = vmatpush3.bf16.msra.mxu0 %v12199_v59  ;;  %v4188_v46 = vmax.f32 %v4172_v6, 0.0 }
0x1048   : > { %v4175_v44 = vpop.f32.mrb[134].mxu0  ;;  %11102 = vmatprep.subr.bf16.mxu0 %v12606_v0 }
0x1049   : > { %v4189_v51 = vmax.f32 %v4175_v44, 0.0  ;;  %v11063_v16 = vpop.f32.mrb[135].mxu0  ;;  %v9726_v44 = vld [vmem:[%s14841_s5] ss:$0 sm:$0xff] }
0x104b   : > { %v13653_v48 = vpack.c.bf16 %v4189_v51, %v4188_v46  ;;  %11103 = vmatpush3.bf16.msra.mxu0 %v12200_v42 }
0x104c   : > { %11152 = vmatprep.subr.bf16.mxu0 %v12606_v0 }
0x104d   : > { %11077 = vmatmul.mubr.msk.bf16.gmra.mrb[144].mxu0 %vm1531_vm4, %v13653_v48  ;;  %11093 = vmatmul.mubr.msk.bf16.gmra.mrb[140].mxu1 %vm1531_vm4, %v13653_v48 }
0x104e   : > { %v4180_v58 = vpop.f32.mrb[136].mxu0  ;;  %11080 = vmatprep.mubr.msk.bf16.mxu0 %vm12608_vm2, %v12606_v0  ;;  %11096 = vmatprep.mubr.msk.bf16.mxu1 %vm12608_vm2, %v12606_v0 }
0x104f   : > { %v4190_v47 = vmax.f32 %v4180_v58, 0.0  ;;  %v11066_v49 = vpop.f32.mrb[137].mxu0 }
0x1050   : > { %v4183_v52 = vpop.f32.mrb[138].mxu0 }
0x1051   : > { %v11067_v53 = vpop.f32.mrb[139].mxu0  ;;  %v13664_v54 = vpack.c.bf16 %v4190_v47, %v4190_v47  ;;  %v12201_v52 = vld [vmem:[%s14842_s6] sm:$0xff]  }
0x1055   : > { %11081 = vmatmul.mubr.msk.bf16.gmra.mrb[148].mxu0 %vm1531_vm4, %v13664_v54  ;;  %11097 = vmatmul.mubr.msk.bf16.gmra.mrb[144].mxu1 %vm1531_vm4, %v13664_v54 }
0x1056   : > { %11104 = vmatprep.mubr.msk.bf16.mxu0 %vm12608_vm2, %v12606_v0  ;;  %11122 = vmatprep.mubr.msk.bf16.mxu1 %vm12608_vm2, %v12606_v0 }
0x105d   : > { %11105 = vmatmul.mubr.msk.bf16.vlgmr.msra.gmra.mrb[152].mxu0 %vm1531_vm4, %v13640_v40 }
0x105e   : > { %11108 = vmatprep.mubr.msk.bf16.mxu0 %vm12608_vm2, %v12606_v0 }
0x1065   : > { %11109 = vmatmul.mubr.msk.bf16.gmra.mrb[156].mxu0 %vm1531_vm4, %v13653_v48 }
0x1066   : > { %11112 = vmatprep.mubr.msk.bf16.mxu0 %vm12608_vm2, %v12606_v0 }
0x106d   : > { %11113 = vmatmul.mubr.msk.bf16.gmra.mrb[160].mxu0 %vm1531_vm4, %v13664_v54 }
0x106e   : > { %11158 = vmatprep.mubr.msk.bf16.mxu0 %vm12608_vm2, %v12606_v0 }
0x1118   : > { %v4260_v56 = vpop.f32.mrb[140].mxu0  ;;  %v4339_v4 = vpop.f32.mrb[136].mxu1 }
0x1119   : > { %v11074_v57 = vpop.f32.mrb[141].mxu0  ;;  %v11090_v27 = vpop.f32.mrb[137].mxu1  ;;  %v4261_v31 = vadd.f32 %v9714_v55, %v4260_v56  ;;  %v4340_v30 = vadd.f32 %v13688_v5, %v4339_v4 }
0x111a   : > { %v4263_v28 = vpop.f32.mrb[142].mxu0  ;;  %v4342_v20 = vpop.f32.mrb[138].mxu1 }
0x111b   : > { %v4264_v8 = vadd.f32 %v9714_v55, %v4263_v28  ;;  %v4343_v32 = vadd.f32 %v13688_v5, %v4342_v20  ;;  %v11075_v13 = vpop.f32.mrb[143].mxu0  ;;  %v11091_v17 = vpop.f32.mrb[139].mxu1 }
0x111d   : > { %v13692_v45 = vpack.c.bf16 %v4264_v8, %v4261_v31  ;;  %v4448_v12 = vpack.c.bf16 %v4343_v32, %v4340_v30  ;;  %v12202_v31 = vld [vmem:[%s14842_s6 + $0x8] sm:$0xff]  }
0x111f   : > { %v4474_v23 = vsel %vm1779_vm5, %v13692_v45, 0 }
0x1120   : > { %v4268_v63 = vpop.f32.mrb[144].mxu0  ;;  %v4347_v35 = vpop.f32.mrb[140].mxu1  ;;  %11117 = vmatpush3.bf16.xpose.msra.mxu1 %v4474_v23 }
0x1121   : > { %v11078_v1 = vpop.f32.mrb[145].mxu0  ;;  %v11094_v60 = vpop.f32.mrb[141].mxu1  ;;  %11118 = vmatprep.subr.bf16.mxu1 %v12606_v0  ;;  %v4269_v15 = vadd.f32 %v9714_v55, %v4268_v63  ;;  %v4348_v18 = vadd.f32 %v13688_v5, %v4347_v35 }
0x1122   : > { %v4271_v7 = vpop.f32.mrb[146].mxu0  ;;  %v4350_v11 = vpop.f32.mrb[142].mxu1  ;;  %v12203_v1 = vld [vmem:[%s14842_s6 + $0x10] ss:$0 sps:$4 sm:$0x33]  }
0x1123   : > { %v4272_v19 = vadd.f32 %v9714_v55, %v4271_v7  ;;  %v4351_v21 = vadd.f32 %v13688_v5, %v4350_v11  ;;  %v11079_v22 = vpop.f32.mrb[147].mxu0  ;;  %v11095_v24 = vpop.f32.mrb[143].mxu1  ;;  %v12204_v11 = vld [vmem:[%s14837_s18 + $0x10] sm:$0xff]  }
0x1125   : > { %v13699_v25 = vpack.c.bf16 %v4272_v19, %v4269_v15  ;;  %v4449_v36 = vpack.c.bf16 %v4351_v21, %v4348_v18  ;;  %v12205_v15 = vld [vmem:[%s14837_s18 + $0x18] sm:$0xff]  }
0x1127   : > { %v4477_v9 = vsel %vm1779_vm5, %v13699_v25, 0  ;;  %v4542_v32 = vsel %vm1779_vm5, %v4449_v36, 0 }
0x1128   : > { %v4276_v26 = vpop.f32.mrb[148].mxu0  ;;  %v4355_v29 = vpop.f32.mrb[144].mxu1  ;;  %11119 = vmatpush3.bf16.xpose.msra.mxu1 %v4477_v9 }
0x1129   : > { %v4277_v33 = vadd.f32 %v9714_v55, %v4276_v26  ;;  %v11082_v34 = vpop.f32.mrb[149].mxu0  ;;  %v11098_v50 = vpop.f32.mrb[145].mxu1  ;;  %11120 = vmatprep.subr.bf16.mxu1 %v12606_v0  ;;  %v4539_v55 = vsel %vm1779_vm5, %v4448_v12, 0  ;;  %v4356_v8 = vadd.f32 %v13688_v5, %v4355_v29 }
0x112a   : > { %v4279_v62 = vpop.f32.mrb[150].mxu0  ;;  %v4358_v37 = vpop.f32.mrb[146].mxu1 }
0x112b   : > { %v13704_v59 = vpack.c.bf16 %v4277_v33, %v4277_v33  ;;  %v11083_v6 = vpop.f32.mrb[151].mxu0  ;;  %v11099_v41 = vpop.f32.mrb[147].mxu1  ;;  %v4450_v63 = vpack.c.bf16 %v4356_v8, %v4356_v8 }
0x112c   : > { %v13767_v6 = vld [vmem:[%s14840_s3 + $0x1] ss:$0 sm:$0xff] }
0x112d   : > { %v4480_v42 = vsel %vm1779_vm5, %v13704_v59, 0  ;;  %v4545_v7 = vsel %vm1779_vm5, %v4450_v63, 0 }
0x1130   : > { %v4418_v46 = vpop.f32.mrb[152].mxu0  ;;  %11121 = vmatpush3.bf16.xpose.msra.mxu1 %v4480_v42 }
0x1131   : > { %v11106_v51 = vpop.f32.mrb[153].mxu0  ;;  %11134 = vmatprep.subr.bf16.mxu1 %v12606_v0  ;;  %v4419_v58 = vadd.f32 %v9726_v44, %v4418_v46 }
0x1132   : > { %v4421_v16 = vpop.f32.mrb[154].mxu0 }
0x1133   : > { %v4422_v47 = vadd.f32 %v9726_v44, %v4421_v16  ;;  %v11107_v49 = vpop.f32.mrb[155].mxu0 }
0x1135   : > { %v4661_v53 = vpack.c.bf16 %v4422_v47, %v4419_v58 }
0x1137   : > { %11123 = vmatmul.mubr.msk.bf16.vlgmr.msra.gmra.mrb[148].mxu1 %vm1779_vm5, %v12201_v52  ;;  %11153 = vmatpush3.bf16.msra.mxu0 %v4661_v53 }
0x1138   : > { %v4426_v56 = vpop.f32.mrb[156].mxu0  ;;  %11135 = vmatpush3.bf16.xpose.msra.mxu1 %v4539_v55  ;;  %11126 = vmatprep.mubr.msk.bf16.mxu1 %vm12608_vm2, %v12606_v0 }
0x1139   : > { %v11110_v4 = vpop.f32.mrb[157].mxu0  ;;  %11154 = vmatprep.subr.bf16.mxu0 %v12606_v0  ;;  %11136 = vmatprep.subr.bf16.mxu1 %v12606_v0  ;;  %v4427_v27 = vadd.f32 %v9726_v44, %v4426_v56 }
0x113a   : > { %v4429_v57 = vpop.f32.mrb[158].mxu0 }
0x113b   : > { %v4430_v28 = vadd.f32 %v9726_v44, %v4429_v57  ;;  %v11111_v20 = vpop.f32.mrb[159].mxu0 }
0x113d   : > { %v4662_v30 = vpack.c.bf16 %v4430_v28, %v4427_v27 }
0x113f   : > { %11127 = vmatmul.mubr.msk.bf16.gmra.mrb[152].mxu1 %vm1779_vm5, %v12202_v31  ;;  %11155 = vmatpush3.bf16.msra.mxu0 %v4662_v30 }
0x1140   : > { %v4434_v13 = vpop.f32.mrb[160].mxu0  ;;  %11137 = vmatpush3.bf16.xpose.msra.mxu1 %v4542_v32  ;;  %11156 = vmatprep.subr.bf16.mxu0 %v12606_v0 }
0x1141   : > { %v4435_v17 = vadd.f32 %v9726_v44, %v4434_v13  ;;  %v11114_v12 = vpop.f32.mrb[161].mxu0  ;;  %11130 = vmatprep.mubr.msk.bf16.mxu1 %vm12608_vm2, %v12606_v0  ;;  %11138 = vmatprep.subr.bf16.mxu1 %v12606_v0 }
0x1142   : > { %v4437_v23 = vpop.f32.mrb[162].mxu0 }
0x1143   : > { %v4663_v5 = vpack.c.bf16 %v4435_v17, %v4435_v17  ;;  %v11115_v35 = vpop.f32.mrb[163].mxu0 }
0x1145   : > { %v4674_v60 = vsel %vm1991_vm6, %v4663_v5, 0 }
0x1146   : > { %11157 = vmatpush3.bf16.msra.mxu0 %v4674_v60 }
0x1147   : > { %11131 = vmatmul.mubr.msk.bf16.gmra.mrb[156].mxu1 %vm1779_vm5, %v12203_v1  ;;  %11170 = vmatprep.subr.bf16.mxu0 %v12606_v0 }
0x1148   : > { %11139 = vmatpush3.bf16.xpose.msra.mxu1 %v4545_v7  ;;  %11140 = vmatprep.mubr.msk.bf16.mxu1 %vm12608_vm2, %v12606_v0 }
0x1149   : > { %11186 = vmatprep.subr.bf16.mxu1 %v12606_v0 }
0x114f   : > { %11141 = vmatmul.mubr.msk.bf16.vlgmr.msra.gmra.mrb[148].mxu1 %vm1779_vm5, %v13692_v45 }
0x1150   : > { %11144 = vmatprep.mubr.msk.bf16.mxu1 %vm12608_vm2, %v12606_v0  ;;  %11187 = vmatpush3.bf16.msra.mxu1 %v12204_v11 }
0x1151   : > { %11188 = vmatprep.subr.bf16.mxu1 %v12606_v0 }
0x1154   : > { %11189 = vmatpush3.bf16.msra.mxu1 %v12205_v15 }
0x1155   : > { %11218 = vmatprep.subr.bf16.mxu1 %v12606_v0 }
0x1157   : > { %11145 = vmatmul.mubr.msk.bf16.gmra.mrb[152].mxu1 %vm1779_vm5, %v13699_v25 }
0x1158   : > { %11148 = vmatprep.mubr.msk.bf16.mxu1 %vm12608_vm2, %v12606_v0 }
0x115f   : > { %11149 = vmatmul.mubr.msk.bf16.gmra.mrb[156].mxu1 %vm1779_vm5, %v13704_v59 }
0x1160   : > { %11190 = vmatprep.mubr.msk.bf16.mxu1 %vm12608_vm2, %v12606_v0 }
0x1167   : > { %11191 = vmatmul.mubr.msk.bf16.vlgmr.msra.gmra.mrb[160].mxu1 %vm1531_vm4, %v13640_v40 }
0x1168   : > { %11194 = vmatprep.mubr.msk.bf16.mxu1 %vm12608_vm2, %v12606_v0 }
0x116f   : > { %11195 = vmatmul.mubr.msk.bf16.gmra.mrb[164].mxu1 %vm1531_vm4, %v13653_v48 }
0x1170   : > { %11198 = vmatprep.mubr.msk.bf16.mxu1 %vm12608_vm2, %v12606_v0 }
0x1177   : > { %11199 = vmatmul.mubr.msk.bf16.gmra.mrb[168].mxu1 %vm1531_vm4, %v13664_v54 }
0x1178   : > { %11224 = vmatprep.mubr.msk.bf16.mxu1 %vm12608_vm2, %v12606_v0 }
0x1222   : > { %v4581_v45 = vpop.f32.mrb[148].mxu1 }
0x1223   : > { %v11142_v18 = vpop.f32.mrb[149].mxu1  ;;  %v4603_v19 = vsel %vm1919_vm7, %v4581_v45, -inf }
0x1224   : > { %4604 = vmax.xlane.f32.xlu0 %v4603_v19  ;;  %v4584_v21 = vpop.f32.mrb[150].mxu1 }
0x1225   : > { %v11143_v22 = vpop.f32.mrb[151].mxu1  ;;  %v4606_v24 = vsel %vm1919_vm7, %v4584_v21, -inf }
0x1226   : > { %4607 = vmax.xlane.f32.xlu1 %v4606_v24 }
0x122a   : > { %v4589_v25 = vpop.f32.mrb[152].mxu1 }
0x122b   : > { %v11146_v36 = vpop.f32.mrb[153].mxu1  ;;  %v4609_v9 = vsel %vm1919_vm7, %v4589_v25, -inf }
0x122c   : > { %4610 = vmax.xlane.f32.xlu0 %v4609_v9  ;;  %v4592_v26 = vpop.f32.mrb[154].mxu1 }
0x122d   : > { %v11147_v29 = vpop.f32.mrb[155].mxu1  ;;  %v4612_v33 = vsel %vm1919_vm7, %v4592_v26, -inf }
0x122e   : > { %4613 = vmax.xlane.f32.xlu1 %v4612_v33 }
0x1232   : > { %v4597_v34 = vpop.f32.mrb[156].mxu1 }
0x1233   : > { %v11150_v50 = vpop.f32.mrb[157].mxu1  ;;  %v4615_v62 = vsel %vm1932_vm8, %v4597_v34, -inf }
0x1234   : > { %4616 = vmax.xlane.f32.xlu0 %v4615_v62  ;;  %v4600_v37 = vpop.f32.mrb[158].mxu1 }
0x1235   : > { %v11151_v59 = vpop.f32.mrb[159].mxu1 }
0x123a   : > { %v4881_v41 = vpop.f32.mrb[160].mxu1 }
0x123b   : > { %v11192_v42 = vpop.f32.mrb[161].mxu1  ;;  %v13770_v46 = vadd.f32 %v13767_v6, %v4881_v41  ;;  %v12206_v41 = vld [vmem:[%s14836_s10 + $0x10] sm:$0xff]  }
0x123c   : > { %v4884_v44 = vpop.f32.mrb[162].mxu1 }
0x123d   : > { %v13773_v51 = vadd.f32 %v13767_v6, %v4884_v44  ;;  %v11193_v16 = vpop.f32.mrb[163].mxu1 }
0x123f   : > { %v4993_v58 = vpack.c.bf16 %v13773_v51, %v13770_v46 }
0x1242   : > { %v4889_v47 = vpop.f32.mrb[164].mxu1 }
0x1243   : > { %v11196_v49 = vpop.f32.mrb[165].mxu1  ;;  %v13778_v53 = vadd.f32 %v13767_v6, %v4889_v47  ;;  %v12207_v47 = vld [vmem:[%s14836_s10 + $0x18] sm:$0xff]  }
0x1244   : > { %v4892_v52 = vpop.f32.mrb[166].mxu1 }
0x1245   : > { %v13781_v55 = vadd.f32 %v13767_v6, %v4892_v52  ;;  %v11197_v56 = vpop.f32.mrb[167].mxu1 }
0x1247   : > { %v4994_v4 = vpack.c.bf16 %v13781_v55, %v13778_v53 }
0x1249   : > { %v5087_v51 = vsel %vm1779_vm5, %v4994_v4, 0  ;;  %v4737_v4 = vld [vmem:[%s14843_s8] sm:$0xf] }
0x124a   : > { %v13785_v57 = vpop.f32.mrb[168].mxu1 }
0x124b   : > { %v11200_v27 = vpop.f32.mrb[169].mxu1  ;;  %v4898_v46 = vadd.f32 %v13767_v6, %v13785_v57 }
0x124c   : > { %v4900_v28 = vpop.f32.mrb[170].mxu1 }
0x124d   : > { %v11201_v20 = vpop.f32.mrb[171].mxu1  ;;  %v4995_v57 = vpack.c.bf16 %v4898_v46, %v4898_v46 }
0x124f   : > { %v5090_v55 = vsel %vm1779_vm5, %v4995_v57, 0 }
0x12b1   : > { %v4605_v31 = vpop.xlane.xlu0 %4604 }
0x12b2   : > { %v4618_v30 = vsub.f32 %v4581_v45, %v4605_v31 }
0x12b3   : > { %v4608_v8 = vpop.xlane.xlu1 %4607 }
0x12b4   : > { %v4623_v32 = vmul.f32 1.442695, %v4618_v30  ;;  %v4619_v13 = vsub.f32 %v4584_v21, %v4608_v8  ;;  %v12208_v30 = vld [vmem:[%s14838_s1 + $0x10] sm:$0xff]   ;;  %v12209_v8 = vld [vmem:[%s14838_s1 + $0x18] sm:$0xff]  }
0x12b6   : > { %12395 = vpow2.f32 %v4623_v32  ;;  %v4625_v17 = vmul.f32 1.442695, %v4619_v13 }
0x12b8   : > { %12397 = vpow2.f32 %v4625_v17 }
0x12b9   : > { %v4611_v12 = vpop.xlane.xlu0 %4610 }
0x12ba   : > { %v4620_v23 = vsub.f32 %v4589_v25, %v4611_v12 }
0x12bb   : > { %v4614_v63 = vpop.xlane.xlu1 %4613 }
0x12bc   : > { %v4627_v5 = vmul.f32 1.442695, %v4620_v23  ;;  %v4621_v35 = vsub.f32 %v4592_v26, %v4614_v63 }
0x12be   : > { %12399 = vpow2.f32 %v4627_v5  ;;  %v4629_v1 = vmul.f32 1.442695, %v4621_v35 }
0x12c0   : > { %v12396_v60 = vpop.eup %12395  ;;  %12401 = vpow2.f32 %v4629_v1 }
0x12c1   : > { %v4617_v7 = vpop.xlane.xlu0 %4616  ;;  %v4633_v11 = vsel %vm1919_vm7, %v12396_v60, 0.0 }
0x12c2   : > { %v12398_v15 = vpop.eup %12397  ;;  %v4622_v45 = vsub.f32 %v4597_v34, %v4617_v7  ;;  %4634 = vadd.xlane.f32.xlu1 %v4633_v11 }
0x12c3   : > { %v4636_v18 = vsel %vm1919_vm7, %v12398_v15, 0.0 }
0x12c4   : > { %v4631_v19 = vmul.f32 1.442695, %v4622_v45  ;;  %4637 = vadd.xlane.f32.xlu0 %v4636_v18 }
0x12c6   : > { %12403 = vpow2.f32 %v4631_v19 }
0x12c8   : > { %v12400_v21 = vpop.eup %12399 }
0x12c9   : > { %v4639_v22 = vsel %vm1919_vm7, %v12400_v21, 0.0 }
0x12ca   : > { %v12402_v24 = vpop.eup %12401  ;;  %4640 = vadd.xlane.f32.xlu1 %v4639_v22 }
0x12cb   : > { %v4642_v25 = vsel %vm1919_vm7, %v12402_v24, 0.0 }
0x12cc   : > { %4643 = vadd.xlane.f32.xlu0 %v4642_v25 }
0x12d0   : > { %v12404_v36 = vpop.eup %12403 }
0x12d1   : > { %v4645_v9 = vsel %vm1932_vm8, %v12404_v36, 0.0 }
0x12d2   : > { %4646 = vadd.xlane.f32.xlu1 %v4645_v9 }
0x134f   : > { %v4635_v26 = vpop.xlane.xlu1 %4634 }
0x1350   : > { %12405 = vrcp.f32 %v4635_v26 }
0x1351   : > { %v4638_v29 = vpop.xlane.xlu0 %4637 }
0x1352   : > { %12407 = vrcp.f32 %v4638_v29 }
0x1357   : > { %v4641_v33 = vpop.xlane.xlu1 %4640 }
0x1358   : > { %12409 = vrcp.f32 %v4641_v33 }
0x1359   : > { %v4644_v34 = vpop.xlane.xlu0 %4643 }
0x135a   : > { %v12406_v50 = vpop.eup %12405  ;;  %12411 = vrcp.f32 %v4644_v34 }
0x135b   : > { %v4649_v37 = vmul.f32 %v12406_v50, %v12396_v60 }
0x135c   : > { %v12408_v62 = vpop.eup %12407 }
0x135d   : > { %v4651_v59 = vmul.f32 %v12408_v62, %v12398_v15 }
0x135f   : > { %v4658_v42 = vpack.c.bf16 %v4651_v59, %v4649_v37  ;;  %v4647_v44 = vpop.xlane.xlu1 %4646 }
0x1360   : > { %12413 = vrcp.f32 %v4647_v44 }
0x1361   : > { %11159 = vmatmul.mubr.msk.bf16.vlgmr.msra.gmra.mrb[164].mxu0 %vm1919_vm7, %v4658_v42 }
0x1362   : > { %v12410_v16 = vpop.eup %12409  ;;  %11171 = vmatpush3.bf16.msra.mxu0 %v12206_v41  ;;  %11162 = vmatprep.mubr.msk.bf16.mxu0 %vm12608_vm2, %v12606_v0 }
0x1363   : > { %11172 = vmatprep.subr.bf16.mxu0 %v12606_v0  ;;  %v4653_v52 = vmul.f32 %v12410_v16, %v12400_v21 }
0x1364   : > { %v12412_v49 = vpop.eup %12411 }
0x1365   : > { %v4655_v56 = vmul.f32 %v12412_v49, %v12402_v24  ;;  %v9749_v24 = vld [vmem:[%s14839_s7 + $0x1] ss:$0 sm:$0xff] }
0x1366   : > { %11173 = vmatpush3.bf16.msra.mxu0 %v12207_v47 }
0x1367   : > { %v4659_v27 = vpack.c.bf16 %v4655_v56, %v4653_v52  ;;  %11202 = vmatprep.subr.bf16.mxu0 %v12606_v0 }
0x1369   : > { %11163 = vmatmul.mubr.msk.bf16.gmra.mrb[168].mxu0 %vm1919_vm7, %v4659_v27 }
0x136a   : > { %v12414_v28 = vpop.eup %12413  ;;  %11166 = vmatprep.mubr.msk.bf16.mxu0 %vm12608_vm2, %v12606_v0 }
0x136b   : > { %v4657_v20 = vmul.f32 %v12414_v28, %v12404_v36 }
0x136d   : > { %v4660_v31 = vpack.c.bf16 %v4657_v20, %v4657_v20 }
0x1371   : > { %11167 = vmatmul.mubr.msk.bf16.gmra.mrb[172].mxu0 %vm1919_vm7, %v4660_v31 }
0x1372   : > { %11174 = vmatprep.mubr.msk.bf16.mxu0 %vm12608_vm2, %v12606_v0 }
0x1379   : > { %11175 = vmatmul.mubr.msk.bf16.vlgmr.msra.gmra.mrb[176].mxu0 %vm1531_vm4, %v13640_v40 }
0x137a   : > { %11178 = vmatprep.mubr.msk.bf16.mxu0 %vm12608_vm2, %v12606_v0  ;;  %11203 = vmatpush3.bf16.msra.mxu0 %v12208_v30  ;;  %v9771_v30 = vld [vmem:[%s14841_s5 + $0x1] ss:$0 sm:$0xff] }
0x137b   : > { %11204 = vmatprep.subr.bf16.mxu0 %v12606_v0 }
0x137e   : > { %11205 = vmatpush3.bf16.msra.mxu0 %v12209_v8 }
0x137f   : > { %11254 = vmatprep.subr.bf16.mxu0 %v12606_v0 }
0x1381   : > { %11179 = vmatmul.mubr.msk.bf16.gmra.mrb[180].mxu0 %vm1531_vm4, %v13653_v48 }
0x1382   : > { %11182 = vmatprep.mubr.msk.bf16.mxu0 %vm12608_vm2, %v12606_v0 }
0x1389   : > { %11183 = vmatmul.mubr.msk.bf16.gmra.mrb[184].mxu0 %vm1531_vm4, %v13664_v54 }
0x138a   : > { %11206 = vmatprep.mubr.msk.bf16.mxu0 %vm12608_vm2, %v12606_v0 }
0x1391   : > { %11207 = vmatmul.mubr.msk.bf16.vlgmr.msra.gmra.mrb[188].mxu0 %vm1531_vm4, %v13640_v40 }
0x1392   : > { %11210 = vmatprep.mubr.msk.bf16.mxu0 %vm12608_vm2, %v12606_v0 }
0x1399   : > { %11211 = vmatmul.mubr.msk.bf16.gmra.mrb[192].mxu0 %vm1531_vm4, %v13653_v48 }
0x139a   : > { %11214 = vmatprep.mubr.msk.bf16.mxu0 %vm12608_vm2, %v12606_v0 }
0x13a1   : > { %11215 = vmatmul.mubr.msk.bf16.gmra.mrb[196].mxu0 %vm1531_vm4, %v13664_v54 }
0x13a2   : > { %11260 = vmatprep.mubr.msk.bf16.mxu0 %vm12608_vm2, %v12606_v0 }
0x1434   : > { %v4710_v32 = vpop.f32.mrb[164].mxu0 }
0x1435   : > { %v11160_v13 = vpop.f32.mrb[165].mxu0  ;;  %v4732_v12 = vmax.f32 %v4710_v32, 0.0 }
0x1436   : > { %v4713_v17 = vpop.f32.mrb[166].mxu0 }
0x1437   : > { %v4733_v23 = vmax.f32 %v4713_v17, 0.0  ;;  %v11161_v63 = vpop.f32.mrb[167].mxu0 }
0x1438   : > { %v12210_v63 = vld [vmem:[%s14842_s6 + $0x14] sm:$0xff]  }
0x1439   : > { %v13833_v5 = vpack.c.bf16 %v4733_v23, %v4732_v12 }
0x143c   : > { %v4718_v35 = vpop.f32.mrb[168].mxu0 }
0x143d   : > { %v11164_v1 = vpop.f32.mrb[169].mxu0  ;;  %v4734_v7 = vmax.f32 %v4718_v35, 0.0 }
0x143e   : > { %v4721_v60 = vpop.f32.mrb[170].mxu0  ;;  %v5084_v1 = vsel %vm1779_vm5, %v4993_v58, 0 }
0x143f   : > { %v4735_v11 = vmax.f32 %v4721_v60, 0.0  ;;  %v11165_v15 = vpop.f32.mrb[171].mxu0 }
0x1441   : > { %v13835_v45 = vpack.c.bf16 %v4735_v11, %v4734_v7 }
0x1444   : > { %v13837_v18 = vpop.f32.mrb[172].mxu0 }
0x1445   : > { %v11168_v19 = vpop.f32.mrb[173].mxu0 }
0x1446   : > { %v4729_v21 = vpop.f32.mrb[174].mxu0 }
0x1447   : > { %v11169_v22 = vpop.f32.mrb[175].mxu0 }
0x1448   : > { %v12211_v22 = vld [vmem:[%s14842_s6 + $0x1c] sm:$0xff]  }
0x144c   : > { %v4800_v25 = vpop.f32.mrb[176].mxu0 }
0x144d   : > { %v11176_v36 = vpop.f32.mrb[177].mxu0  ;;  %v4801_v26 = vadd.f32 %v9749_v24, %v4800_v25 }
0x144e   : > { %v4803_v9 = vpop.f32.mrb[178].mxu0 }
0x144f   : > { %v4804_v29 = vadd.f32 %v9749_v24, %v4803_v9  ;;  %v11177_v33 = vpop.f32.mrb[179].mxu0 }
0x1450   : > { %v5364_v33 = vsel %vm1437_vm0, %v4737_v4, 0 }
0x1451   : > { %v13840_v34 = vpack.c.bf16 %v4804_v29, %v4801_v26  ;;  %v12212_v29 = vld [vmem:[%s14842_s6 + $0x24] ss:$0 sps:$4 sm:$0x33]  }
0x1453   : > { %v5019_v50 = vsel %vm1779_vm5, %v13840_v34, 0 }
0x1454   : > { %v4808_v62 = vpop.f32.mrb[180].mxu0  ;;  %11219 = vmatpush3.bf16.xpose.msra.mxu1 %v5019_v50  ;;  %v12213_v50 = vld [vmem:[%s14837_s18 + $0x20] sm:$0xff]  }
0x1455   : > { %v11180_v37 = vpop.f32.mrb[181].mxu0  ;;  %11220 = vmatprep.subr.bf16.mxu1 %v12606_v0  ;;  %v4809_v41 = vadd.f32 %v9749_v24, %v4808_v62  ;;  %v4736_v62 = vmax.f32 %v13837_v18, 0.0 }
0x1456   : > { %v4811_v59 = vpop.f32.mrb[182].mxu0 }
0x1457   : > { %v4812_v42 = vadd.f32 %v9749_v24, %v4811_v59  ;;  %v11181_v44 = vpop.f32.mrb[183].mxu0  ;;  %v4740_v37 = vpack.c.bf16 %v4736_v62, %v4736_v62 }
0x1459   : > { %v13845_v16 = vpack.c.bf16 %v4812_v42, %v4809_v41 }
0x145b   : > { %v5022_v47 = vsel %vm1779_vm5, %v13845_v16, 0 }
0x145c   : > { %v4816_v49 = vpop.f32.mrb[184].mxu0  ;;  %11221 = vmatpush3.bf16.xpose.msra.mxu1 %v5022_v47 }
0x145d   : > { %v4817_v52 = vadd.f32 %v9749_v24, %v4816_v49  ;;  %v11184_v56 = vpop.f32.mrb[185].mxu0  ;;  %11222 = vmatprep.subr.bf16.mxu1 %v12606_v0 }
0x145e   : > { %v4819_v27 = vpop.f32.mrb[186].mxu0 }
0x145f   : > { %v4992_v28 = vpack.c.bf16 %v4817_v52, %v4817_v52  ;;  %v11185_v20 = vpop.f32.mrb[187].mxu0 }
0x1461   : > { %v5025_v31 = vsel %vm1779_vm5, %v4992_v28, 0 }
0x1464   : > { %v4962_v8 = vpop.f32.mrb[188].mxu0  ;;  %11223 = vmatpush3.bf16.xpose.msra.mxu1 %v5025_v31 }
0x1465   : > { %v11208_v32 = vpop.f32.mrb[189].mxu0  ;;  %11236 = vmatprep.subr.bf16.mxu1 %v12606_v0  ;;  %v4963_v17 = vadd.f32 %v9771_v30, %v4962_v8 }
0x1466   : > { %v4965_v13 = vpop.f32.mrb[190].mxu0 }
0x1467   : > { %v4966_v12 = vadd.f32 %v9771_v30, %v4965_v13  ;;  %v11209_v23 = vpop.f32.mrb[191].mxu0 }
0x1469   : > { %v5206_v35 = vpack.c.bf16 %v4966_v12, %v4963_v17 }
0x146b   : > { %11225 = vmatmul.mubr.msk.bf16.vlgmr.msra.gmra.mrb[172].mxu1 %vm1779_vm5, %v12210_v63  ;;  %11255 = vmatpush3.bf16.msra.mxu0 %v5206_v35 }
0x146c   : > { %v4970_v60 = vpop.f32.mrb[192].mxu0  ;;  %11237 = vmatpush3.bf16.xpose.msra.mxu1 %v5084_v1  ;;  %11228 = vmatprep.mubr.msk.bf16.mxu1 %vm12608_vm2, %v12606_v0 }
0x146d   : > { %v11212_v7 = vpop.f32.mrb[193].mxu0  ;;  %11256 = vmatprep.subr.bf16.mxu0 %v12606_v0  ;;  %11238 = vmatprep.subr.bf16.mxu1 %v12606_v0  ;;  %v4971_v15 = vadd.f32 %v9771_v30, %v4970_v60 }
0x146e   : > { %v4973_v11 = vpop.f32.mrb[194].mxu0 }
0x146f   : > { %v4974_v19 = vadd.f32 %v9771_v30, %v4973_v11  ;;  %v11213_v21 = vpop.f32.mrb[195].mxu0 }
0x1471   : > { %v5207_v24 = vpack.c.bf16 %v4974_v19, %v4971_v15  ;;  %v13939_v15 = vld [vmem:[%s14840_s3 + $0x2] ss:$0 sm:$0xff] }
0x1473   : > { %11229 = vmatmul.mubr.msk.bf16.gmra.mrb[176].mxu1 %vm1779_vm5, %v12211_v22  ;;  %11257 = vmatpush3.bf16.msra.mxu0 %v5207_v24 }
0x1474   : > { %v4978_v58 = vpop.f32.mrb[196].mxu0  ;;  %11239 = vmatpush3.bf16.xpose.msra.mxu1 %v5087_v51  ;;  %11258 = vmatprep.subr.bf16.mxu0 %v12606_v0 }
0x1475   : > { %v4979_v25 = vadd.f32 %v9771_v30, %v4978_v58  ;;  %v11216_v36 = vpop.f32.mrb[197].mxu0  ;;  %11232 = vmatprep.mubr.msk.bf16.mxu1 %vm12608_vm2, %v12606_v0  ;;  %11240 = vmatprep.subr.bf16.mxu1 %v12606_v0 }
0x1476   : > { %v4981_v6 = vpop.f32.mrb[198].mxu0 }
0x1477   : > { %v5208_v9 = vpack.c.bf16 %v4979_v25, %v4979_v25  ;;  %v11217_v26 = vpop.f32.mrb[199].mxu0 }
0x1479   : > { %v5219_v53 = vsel %vm1991_vm6, %v5208_v9, 0 }
0x147a   : > { %11259 = vmatpush3.bf16.msra.mxu0 %v5219_v53 }
0x147b   : > { %11233 = vmatmul.mubr.msk.bf16.gmra.mrb[180].mxu1 %vm1779_vm5, %v12212_v29  ;;  %11272 = vmatprep.subr.bf16.mxu0 %v12606_v0 }
0x147c   : > { %11241 = vmatpush3.bf16.xpose.msra.mxu1 %v5090_v55  ;;  %11242 = vmatprep.mubr.msk.bf16.mxu1 %vm12608_vm2, %v12606_v0 }
0x147d   : > { %11286 = vmatprep.subr.bf16.mxu1 %v12606_v0 }
0x1483   : > { %11243 = vmatmul.mubr.msk.bf16.vlgmr.msra.gmra.mrb[172].mxu1 %vm1779_vm5, %v13840_v34  ;;  %v12214_v34 = vld [vmem:[%s14837_s18 + $0x28] sm:$0xff]  }
0x1484   : > { %11246 = vmatprep.mubr.msk.bf16.mxu1 %vm12608_vm2, %v12606_v0  ;;  %11287 = vmatpush3.bf16.msra.mxu1 %v5364_v33 }
0x1485   : > { %11316 = vmatprep.subr.bf16.mxu1 %v12606_v0 }
0x148b   : > { %11247 = vmatmul.mubr.msk.bf16.gmra.mrb[176].mxu1 %vm1779_vm5, %v13845_v16 }
0x148c   : > { %11250 = vmatprep.mubr.msk.bf16.mxu1 %vm12608_vm2, %v12606_v0 }
0x1493   : > { %11251 = vmatmul.mubr.msk.bf16.gmra.mrb[180].mxu1 %vm1779_vm5, %v4992_v28 }
0x1494   : > { %11288 = vmatprep.mubr.msk.bf16.mxu1 %vm12608_vm2, %v12606_v0 }
0x149b   : > { %11289 = vmatmul.mubr.msk.bf16.vlgmr.msra.gmra.mrb[184].mxu1 %vm1779_vm5, %v13833_v5 }
0x149c   : > { %11292 = vmatprep.mubr.msk.bf16.mxu1 %vm12608_vm2, %v12606_v0  ;;  %11317 = vmatpush3.bf16.msra.mxu1 %v12213_v50 }
0x149d   : > { %11318 = vmatprep.subr.bf16.mxu1 %v12606_v0 }
0x14a0   : > { %11319 = vmatpush3.bf16.msra.mxu1 %v12214_v34 }
0x14a1   : > { %11348 = vmatprep.subr.bf16.mxu1 %v12606_v0 }
0x14a3   : > { %11293 = vmatmul.mubr.msk.bf16.gmra.mrb[188].mxu1 %vm1779_vm5, %v13835_v45 }
0x14a4   : > { %11296 = vmatprep.mubr.msk.bf16.mxu1 %vm12608_vm2, %v12606_v0 }
0x14ab   : > { %11297 = vmatmul.mubr.msk.bf16.gmra.mrb[192].mxu1 %vm1779_vm5, %v4740_v37 }
0x14ac   : > { %11320 = vmatprep.mubr.msk.bf16.mxu1 %vm12608_vm2, %v12606_v0 }
0x14b3   : > { %11321 = vmatmul.mubr.msk.bf16.vlgmr.msra.gmra.mrb[196].mxu1 %vm1531_vm4, %v13640_v40 }
0x14b4   : > { %11324 = vmatprep.mubr.msk.bf16.mxu1 %vm12608_vm2, %v12606_v0 }
0x14bb   : > { %11325 = vmatmul.mubr.msk.bf16.gmra.mrb[200].mxu1 %vm1531_vm4, %v13653_v48 }
0x14bc   : > { %11328 = vmatprep.mubr.msk.bf16.mxu1 %vm12608_vm2, %v12606_v0 }
0x14c3   : > { %11329 = vmatmul.mubr.msk.bf16.gmra.mrb[204].mxu1 %vm1531_vm4, %v13664_v54 }
0x14c4   : > { %11354 = vmatprep.mubr.msk.bf16.mxu1 %vm12608_vm2, %v12606_v0 }
0x1556   : > { %v5126_v5 = vpop.f32.mrb[172].mxu1 }
0x1557   : > { %v11244_v45 = vpop.f32.mrb[173].mxu1  ;;  %v5148_v18 = vsel %vm1919_vm7, %v5126_v5, -inf }
0x1558   : > { %5149 = vmax.xlane.f32.xlu0 %v5148_v18  ;;  %v5129_v59 = vpop.f32.mrb[174].mxu1 }
0x1559   : > { %v11245_v41 = vpop.f32.mrb[175].mxu1  ;;  %v5151_v42 = vsel %vm1919_vm7, %v5129_v59, -inf }
0x155a   : > { %5152 = vmax.xlane.f32.xlu1 %v5151_v42 }
0x155e   : > { %v5134_v44 = vpop.f32.mrb[176].mxu1 }
0x155f   : > { %v11248_v16 = vpop.f32.mrb[177].mxu1  ;;  %v5154_v47 = vsel %vm1919_vm7, %v5134_v44, -inf }
0x1560   : > { %5155 = vmax.xlane.f32.xlu0 %v5154_v47  ;;  %v5137_v49 = vpop.f32.mrb[178].mxu1 }
0x1561   : > { %v11249_v52 = vpop.f32.mrb[179].mxu1  ;;  %v5157_v56 = vsel %vm1919_vm7, %v5137_v49, -inf }
0x1562   : > { %5158 = vmax.xlane.f32.xlu1 %v5157_v56 }
0x1566   : > { %v5142_v27 = vpop.f32.mrb[180].mxu1 }
0x1567   : > { %v11252_v28 = vpop.f32.mrb[181].mxu1  ;;  %v5160_v20 = vsel %vm1932_vm8, %v5142_v27, -inf }
0x1568   : > { %5161 = vmax.xlane.f32.xlu0 %v5160_v20  ;;  %v5145_v31 = vpop.f32.mrb[182].mxu1 }
0x1569   : > { %v11253_v30 = vpop.f32.mrb[183].mxu1 }
0x156e   : > { %v13930_v8 = vpop.f32.mrb[184].mxu1 }
0x156f   : > { %v11290_v32 = vpop.f32.mrb[185].mxu1 }
0x1570   : > { %v13932_v13 = vpop.f32.mrb[186].mxu1 }
0x1571   : > { %v11291_v17 = vpop.f32.mrb[187].mxu1 }
0x1576   : > { %v13934_v12 = vpop.f32.mrb[188].mxu1 }
0x1577   : > { %v11294_v23 = vpop.f32.mrb[189].mxu1 }
0x1578   : > { %v13936_v63 = vpop.f32.mrb[190].mxu1 }
0x1579   : > { %v11295_v35 = vpop.f32.mrb[191].mxu1 }
0x157e   : > { %v5416_v1 = vpop.f32.mrb[192].mxu1 }
0x157f   : > { %v11298_v60 = vpop.f32.mrb[193].mxu1 }
0x1580   : > { %v5418_v7 = vpop.f32.mrb[194].mxu1 }
0x1581   : > { %v11299_v11 = vpop.f32.mrb[195].mxu1 }
0x1586   : > { %v5561_v19 = vpop.f32.mrb[196].mxu1 }
0x1587   : > { %v11322_v21 = vpop.f32.mrb[197].mxu1  ;;  %v13942_v24 = vadd.f32 %v13939_v15, %v5561_v19 }
0x1588   : > { %v5564_v22 = vpop.f32.mrb[198].mxu1 }
0x1589   : > { %v13945_v46 = vadd.f32 %v13939_v15, %v5564_v22  ;;  %v11323_v51 = vpop.f32.mrb[199].mxu1  ;;  %v9794_v22 = vld [vmem:[%s14843_s8 + $0x4] sm:$0xf] }
0x158b   : > { %v5673_v58 = vpack.c.bf16 %v13945_v46, %v13942_v24 }
0x158e   : > { %v5569_v25 = vpop.f32.mrb[200].mxu1 }
0x158f   : > { %v11326_v36 = vpop.f32.mrb[201].mxu1  ;;  %v13950_v57 = vadd.f32 %v13939_v15, %v5569_v25 }
0x1590   : > { %v5572_v6 = vpop.f32.mrb[202].mxu1 }
0x1591   : > { %v13953_v9 = vadd.f32 %v13939_v15, %v5572_v6  ;;  %v11327_v26 = vpop.f32.mrb[203].mxu1 }
0x1592   : > { %v5297_v26 = vsel %vm1437_vm0, %v9794_v22, 0 }
0x1593   : > { %v5674_v29 = vpack.c.bf16 %v13953_v9, %v13950_v57  ;;  %v12221_v57 = vld [vmem:[%s14842_s6 + $0x38] ss:$0 sps:$4 sm:$0x33]  }
0x1595   : > { %v5767_v46 = vsel %vm1779_vm5, %v5674_v29, 0 }
0x1596   : > { %v13957_v53 = vpop.f32.mrb[204].mxu1 }
0x1597   : > { %v11330_v55 = vpop.f32.mrb[205].mxu1  ;;  %v5578_v24 = vadd.f32 %v13939_v15, %v13957_v53 }
0x1598   : > { %v5580_v4 = vpop.f32.mrb[206].mxu1 }
0x1599   : > { %v11331_v33 = vpop.f32.mrb[207].mxu1  ;;  %v5675_v53 = vpack.c.bf16 %v5578_v24, %v5578_v24 }
0x159b   : > { %v5770_v29 = vsel %vm1779_vm5, %v5675_v53, 0 }
0x15e5   : > { %v5150_v50 = vpop.xlane.xlu0 %5149 }
0x15e6   : > { %v5163_v34 = vsub.f32 %v5126_v5, %v5150_v50 }
0x15e7   : > { %v5153_v62 = vpop.xlane.xlu1 %5152 }
0x15e8   : > { %v5168_v37 = vmul.f32 1.442695, %v5163_v34  ;;  %v5164_v45 = vsub.f32 %v5129_v59, %v5153_v62 }
0x15ea   : > { %12415 = vpow2.f32 %v5168_v37  ;;  %v5170_v18 = vmul.f32 1.442695, %v5164_v45 }
0x15ec   : > { %12417 = vpow2.f32 %v5170_v18 }
0x15ed   : > { %v5156_v41 = vpop.xlane.xlu0 %5155 }
0x15ee   : > { %v5165_v42 = vsub.f32 %v5134_v44, %v5156_v41 }
0x15ef   : > { %v5159_v16 = vpop.xlane.xlu1 %5158 }
0x15f0   : > { %v5172_v47 = vmul.f32 1.442695, %v5165_v42  ;;  %v5166_v52 = vsub.f32 %v5137_v49, %v5159_v16 }
0x15f2   : > { %12419 = vpow2.f32 %v5172_v47  ;;  %v5174_v56 = vmul.f32 1.442695, %v5166_v52 }
0x15f4   : > { %v12416_v28 = vpop.eup %12415  ;;  %12421 = vpow2.f32 %v5174_v56  ;;  %v12215_v56 = vld [vmem:[%s14836_s10 + $0x20] sm:$0xff]  }
0x15f5   : > { %v5162_v20 = vpop.xlane.xlu0 %5161  ;;  %v5178_v31 = vsel %vm1919_vm7, %v12416_v28, 0.0 }
0x15f6   : > { %v12418_v30 = vpop.eup %12417  ;;  %v5167_v5 = vsub.f32 %v5142_v27, %v5162_v20  ;;  %5179 = vadd.xlane.f32.xlu1 %v5178_v31  ;;  %v12216_v31 = vld [vmem:[%s14836_s10 + $0x28] sm:$0xff]  }
0x15f7   : > { %v5181_v59 = vsel %vm1919_vm7, %v12418_v30, 0.0 }
0x15f8   : > { %v5176_v32 = vmul.f32 1.442695, %v5167_v5  ;;  %5182 = vadd.xlane.f32.xlu0 %v5181_v59 }
0x15fa   : > { %12423 = vpow2.f32 %v5176_v32 }
0x15fc   : > { %v12420_v17 = vpop.eup %12419 }
0x15fd   : > { %v5184_v44 = vsel %vm1919_vm7, %v12420_v17, 0.0 }
0x15fe   : > { %v12422_v23 = vpop.eup %12421  ;;  %5185 = vadd.xlane.f32.xlu1 %v5184_v44 }
0x15ff   : > { %v5187_v49 = vsel %vm1919_vm7, %v12422_v23, 0.0 }
0x1600   : > { %5188 = vadd.xlane.f32.xlu0 %v5187_v49 }
0x1604   : > { %v12424_v35 = vpop.eup %12423 }
0x1605   : > { %v5190_v1 = vsel %vm1932_vm8, %v12424_v35, 0.0 }
0x1606   : > { %5191 = vadd.xlane.f32.xlu1 %v5190_v1 }
0x1683   : > { %v5180_v27 = vpop.xlane.xlu1 %5179 }
0x1684   : > { %12425 = vrcp.f32 %v5180_v27 }
0x1685   : > { %v5183_v60 = vpop.xlane.xlu0 %5182 }
0x1686   : > { %12427 = vrcp.f32 %v5183_v60 }
0x168b   : > { %v5186_v7 = vpop.xlane.xlu1 %5185 }
0x168c   : > { %12429 = vrcp.f32 %v5186_v7  ;;  %v12217_v7 = vld [vmem:[%s14838_s1 + $0x20] sm:$0xff]  }
0x168d   : > { %v5189_v11 = vpop.xlane.xlu0 %5188 }
0x168e   : > { %v12426_v19 = vpop.eup %12425  ;;  %12431 = vrcp.f32 %v5189_v11  ;;  %v12218_v11 = vld [vmem:[%s14838_s1 + $0x28] sm:$0xff]  }
0x168f   : > { %v5194_v51 = vmul.f32 %v12426_v19, %v12416_v28 }
0x1690   : > { %v12428_v21 = vpop.eup %12427 }
0x1691   : > { %v5196_v25 = vmul.f32 %v12428_v21, %v12418_v30 }
0x1693   : > { %v5203_v36 = vpack.c.bf16 %v5196_v25, %v5194_v51  ;;  %v5192_v6 = vpop.xlane.xlu1 %5191 }
0x1694   : > { %12433 = vrcp.f32 %v5192_v6 }
0x1695   : > { %11261 = vmatmul.mubr.msk.bf16.vlgmr.msra.gmra.mrb[200].mxu0 %vm1919_vm7, %v5203_v36 }
0x1696   : > { %v12430_v55 = vpop.eup %12429  ;;  %11264 = vmatprep.mubr.msk.bf16.mxu0 %vm12608_vm2, %v12606_v0  ;;  %11273 = vmatpush3.bf16.msra.mxu0 %v5297_v26 }
0x1697   : > { %11300 = vmatprep.subr.bf16.mxu0 %v12606_v0  ;;  %v5198_v33 = vmul.f32 %v12430_v55, %v12420_v17 }
0x1698   : > { %v12432_v4 = vpop.eup %12431 }
0x1699   : > { %v5200_v50 = vmul.f32 %v12432_v4, %v12422_v23 }
0x169b   : > { %v5204_v34 = vpack.c.bf16 %v5200_v50, %v5198_v33 }
0x169d   : > { %11265 = vmatmul.mubr.msk.bf16.gmra.mrb[204].mxu0 %vm1919_vm7, %v5204_v34 }
0x169e   : > { %v12434_v62 = vpop.eup %12433  ;;  %11268 = vmatprep.mubr.msk.bf16.mxu0 %vm12608_vm2, %v12606_v0 }
0x169f   : > { %v5202_v37 = vmul.f32 %v12434_v62, %v12424_v35 }
0x16a1   : > { %v5205_v45 = vpack.c.bf16 %v5202_v37, %v5202_v37 }
0x16a5   : > { %11269 = vmatmul.mubr.msk.bf16.gmra.mrb[208].mxu0 %vm1919_vm7, %v5205_v45  ;;  %v9806_v45 = vld [vmem:[%s14839_s7 + $0x2] ss:$0 sm:$0xff] }
0x16a6   : > { %11274 = vmatprep.mubr.msk.bf16.mxu0 %vm12608_vm2, %v12606_v0 }
0x1768   : > { %v5255_v18 = vpop.f32.mrb[200].mxu0 }
0x1769   : > { %v11262_v41 = vpop.f32.mrb[201].mxu0  ;;  %v5277_v16 = vmax.f32 %v5255_v18, 0.0 }
0x176a   : > { %v5258_v42 = vpop.f32.mrb[202].mxu0 }
0x176b   : > { %v5278_v47 = vmax.f32 %v5258_v42, 0.0  ;;  %v11263_v52 = vpop.f32.mrb[203].mxu0 }
0x176d   : > { %v5284_v28 = vpack.c.bf16 %v5278_v47, %v5277_v16 }
0x176f   : > { %11275 = vmatmul.mubr.msk.bf16.vlgmr.msra.gmra.mrb[212].mxu0 %vm1779_vm5, %v5284_v28 }
0x1770   : > { %v5263_v20 = vpop.f32.mrb[204].mxu0  ;;  %11301 = vmatpush3.bf16.msra.mxu0 %v12215_v56  ;;  %11278 = vmatprep.mubr.msk.bf16.mxu0 %vm12608_vm2, %v12606_v0 }
0x1771   : > { %v11266_v30 = vpop.f32.mrb[205].mxu0  ;;  %11302 = vmatprep.subr.bf16.mxu0 %v12606_v0  ;;  %v5279_v59 = vmax.f32 %v5263_v20, 0.0 }
0x1772   : > { %v5266_v5 = vpop.f32.mrb[206].mxu0 }
0x1773   : > { %v5280_v32 = vmax.f32 %v5266_v5, 0.0  ;;  %v11267_v17 = vpop.f32.mrb[207].mxu0 }
0x1774   : > { %11303 = vmatpush3.bf16.msra.mxu0 %v12216_v31 }
0x1775   : > { %v5285_v44 = vpack.c.bf16 %v5280_v32, %v5279_v59  ;;  %11332 = vmatprep.subr.bf16.mxu0 %v12606_v0 }
0x1777   : > { %11279 = vmatmul.mubr.msk.bf16.gmra.mrb[216].mxu0 %vm1779_vm5, %v5285_v44 }
0x1778   : > { %v5271_v23 = vpop.f32.mrb[208].mxu0  ;;  %11282 = vmatprep.mubr.msk.bf16.mxu0 %vm12608_vm2, %v12606_v0 }
0x1779   : > { %v5281_v49 = vmax.f32 %v5271_v23, 0.0  ;;  %v11270_v35 = vpop.f32.mrb[209].mxu0 }
0x177a   : > { %v5274_v1 = vpop.f32.mrb[210].mxu0 }
0x177b   : > { %v11271_v27 = vpop.f32.mrb[211].mxu0  ;;  %v5286_v60 = vpack.c.bf16 %v5281_v49, %v5281_v49 }
0x177c   : > { %v9828_v27 = vld [vmem:[%s14841_s5 + $0x2] ss:$0 sm:$0xff] }
0x177f   : > { %11283 = vmatmul.mubr.msk.bf16.gmra.mrb[220].mxu0 %vm1779_vm5, %v5286_v60 }
0x1780   : > { %11304 = vmatprep.mubr.msk.bf16.mxu0 %vm12608_vm2, %v12606_v0 }
0x1787   : > { %11305 = vmatmul.mubr.msk.bf16.vlgmr.msra.gmra.mrb[224].mxu0 %vm1531_vm4, %v13640_v40 }
0x1788   : > { %11308 = vmatprep.mubr.msk.bf16.mxu0 %vm12608_vm2, %v12606_v0  ;;  %11333 = vmatpush3.bf16.msra.mxu0 %v12217_v7 }
0x1789   : > { %11334 = vmatprep.subr.bf16.mxu0 %v12606_v0 }
0x178c   : > { %11335 = vmatpush3.bf16.msra.mxu0 %v12218_v11 }
0x178d   : > { %11384 = vmatprep.subr.bf16.mxu0 %v12606_v0 }
0x178f   : > { %11309 = vmatmul.mubr.msk.bf16.gmra.mrb[228].mxu0 %vm1531_vm4, %v13653_v48 }
0x1790   : > { %11312 = vmatprep.mubr.msk.bf16.mxu0 %vm12608_vm2, %v12606_v0 }
0x1797   : > { %11313 = vmatmul.mubr.msk.bf16.gmra.mrb[232].mxu0 %vm1531_vm4, %v13664_v54 }
0x1798   : > { %11336 = vmatprep.mubr.msk.bf16.mxu0 %vm12608_vm2, %v12606_v0 }
0x179f   : > { %11337 = vmatmul.mubr.msk.bf16.vlgmr.msra.gmra.mrb[236].mxu0 %vm1531_vm4, %v13640_v40 }
0x17a0   : > { %11340 = vmatprep.mubr.msk.bf16.mxu0 %vm12608_vm2, %v12606_v0 }
0x17a7   : > { %11341 = vmatmul.mubr.msk.bf16.gmra.mrb[240].mxu0 %vm1531_vm4, %v13653_v48 }
0x17a8   : > { %11344 = vmatprep.mubr.msk.bf16.mxu0 %vm12608_vm2, %v12606_v0 }
0x17af   : > { %11345 = vmatmul.mubr.msk.bf16.gmra.mrb[244].mxu0 %vm1531_vm4, %v13664_v54 }
0x17b0   : > { %11390 = vmatprep.mubr.msk.bf16.mxu0 %vm12608_vm2, %v12606_v0 }
0x1842   : > { %v5333_v19 = vpop.f32.mrb[212].mxu0 }
0x1843   : > { %v14018_v21 = vadd.f32 %v13930_v8, %v5333_v19  ;;  %v11276_v22 = vpop.f32.mrb[213].mxu0 }
0x1844   : > { %v5336_v51 = vpop.f32.mrb[214].mxu0 }
0x1845   : > { %v14021_v25 = vadd.f32 %v13932_v13, %v5336_v51  ;;  %v11277_v36 = vpop.f32.mrb[215].mxu0 }
0x1846   : > { %v12219_v36 = vld [vmem:[%s14842_s6 + $0x28] sm:$0xff]  }
0x184a   : > { %v5341_v6 = vpop.f32.mrb[216].mxu0 }
0x184b   : > { %v14024_v26 = vadd.f32 %v13934_v12, %v5341_v6  ;;  %v11280_v55 = vpop.f32.mrb[217].mxu0 }
0x184c   : > { %v5344_v4 = vpop.f32.mrb[218].mxu0  ;;  %v5764_v55 = vsel %vm1779_vm5, %v5673_v58, 0 }
0x184d   : > { %v14027_v33 = vadd.f32 %v13936_v63, %v5344_v4  ;;  %v11281_v50 = vpop.f32.mrb[219].mxu0 }
0x1852   : > { %v5349_v34 = vpop.f32.mrb[220].mxu0 }
0x1853   : > { %v11284_v62 = vpop.f32.mrb[221].mxu0 }
0x1854   : > { %v5351_v8 = vpop.f32.mrb[222].mxu0 }
0x1855   : > { %v11285_v37 = vpop.f32.mrb[223].mxu0 }
0x185a   : > { %v5480_v18 = vpop.f32.mrb[224].mxu0 }
0x185b   : > { %v11306_v41 = vpop.f32.mrb[225].mxu0  ;;  %v5481_v42 = vadd.f32 %v9806_v45, %v5480_v18 }
0x185c   : > { %v5483_v13 = vpop.f32.mrb[226].mxu0 }
0x185d   : > { %v5484_v16 = vadd.f32 %v9806_v45, %v5483_v13  ;;  %v11307_v47 = vpop.f32.mrb[227].mxu0 }
0x185e   : > { %v12222_v47 = vld [vmem:[%s14836_s10 + $0x30] sm:$0xff]  }
0x185f   : > { %v14030_v52 = vpack.c.bf16 %v5484_v16, %v5481_v42 }
0x1861   : > { %v5699_v12 = vsel %vm1779_vm5, %v14030_v52, 0 }
0x1862   : > { %v5488_v56 = vpop.f32.mrb[228].mxu0  ;;  %11349 = vmatpush3.bf16.xpose.msra.mxu1 %v5699_v12  ;;  %v12223_v12 = vld [vmem:[%s14836_s10 + $0x38] sm:$0xff]   ;;  %s14852_s10 = sld [smem:[#allocation26_spill]] }
0x1863   : > { %v11310_v63 = vpop.f32.mrb[229].mxu0  ;;  %11350 = vmatprep.subr.bf16.mxu1 %v12606_v0  ;;  %v5489_v20 = vadd.f32 %v9806_v45, %v5488_v56  ;;  %v12225_v56 = vld [vmem:[%s14838_s1 + $0x38] sm:$0xff]  }
0x1864   : > { %v5491_v28 = vpop.f32.mrb[230].mxu0 }
0x1865   : > { %v5492_v31 = vadd.f32 %v9806_v45, %v5491_v28  ;;  %v11311_v30 = vpop.f32.mrb[231].mxu0 }
0x1867   : > { %v14035_v5 = vpack.c.bf16 %v5492_v31, %v5489_v20 }
0x1869   : > { %v5702_v59 = vsel %vm1779_vm5, %v14035_v5, 0 }
0x186a   : > { %v5496_v32 = vpop.f32.mrb[232].mxu0  ;;  %11351 = vmatpush3.bf16.xpose.msra.mxu1 %v5702_v59 }
0x186b   : > { %v5497_v17 = vadd.f32 %v9806_v45, %v5496_v32  ;;  %v11314_v44 = vpop.f32.mrb[233].mxu0  ;;  %11352 = vmatprep.subr.bf16.mxu1 %v12606_v0  ;;  %v12220_v45 = vld [vmem:[%s14842_s6 + $0x30] sm:$0xff]  }
0x186c   : > { %v5499_v23 = vpop.f32.mrb[234].mxu0 }
0x186d   : > { %v14040_v49 = vpack.c.bf16 %v5497_v17, %v5497_v17  ;;  %v11315_v35 = vpop.f32.mrb[235].mxu0 }
0x186f   : > { %v5705_v1 = vsel %vm1779_vm5, %v14040_v49, 0 }
0x1872   : > { %v5642_v60 = vpop.f32.mrb[236].mxu0  ;;  %11353 = vmatpush3.bf16.xpose.msra.mxu1 %v5705_v1 }
0x1873   : > { %v11338_v7 = vpop.f32.mrb[237].mxu0  ;;  %11366 = vmatprep.subr.bf16.mxu1 %v12606_v0  ;;  %v5643_v19 = vadd.f32 %v9828_v27, %v5642_v60 }
0x1874   : > { %v5645_v11 = vpop.f32.mrb[238].mxu0 }
0x1875   : > { %v5646_v22 = vadd.f32 %v9828_v27, %v5645_v11  ;;  %v11339_v51 = vpop.f32.mrb[239].mxu0  ;;  %v14141_v11 = vld [vmem:[%s14839_s7 + $0x3] ss:$0 sm:$0xff]  ;;  %s14849_s7 = sld [smem:[#allocation22_spill]] }
0x1877   : > { %v5886_v6 = vpack.c.bf16 %v5646_v22, %v5643_v19 }
0x1879   : > { %11355 = vmatmul.mubr.msk.bf16.vlgmr.msra.gmra.mrb[208].mxu1 %vm1779_vm5, %v12219_v36  ;;  %11385 = vmatpush3.bf16.msra.mxu0 %v5886_v6 }
0x187a   : > { %v5650_v4 = vpop.f32.mrb[240].mxu0  ;;  %11367 = vmatpush3.bf16.xpose.msra.mxu1 %v5764_v55  ;;  %11358 = vmatprep.mubr.msk.bf16.mxu1 %vm12608_vm2, %v12606_v0 }
0x187b   : > { %v11342_v50 = vpop.f32.mrb[241].mxu0  ;;  %11386 = vmatprep.subr.bf16.mxu0 %v12606_v0  ;;  %11368 = vmatprep.subr.bf16.mxu1 %v12606_v0  ;;  %v5651_v62 = vadd.f32 %v9828_v27, %v5650_v4 }
0x187c   : > { %v5653_v34 = vpop.f32.mrb[242].mxu0 }
0x187d   : > { %v5654_v8 = vadd.f32 %v9828_v27, %v5653_v34  ;;  %v11343_v37 = vpop.f32.mrb[243].mxu0 }
0x187f   : > { %v5887_v18 = vpack.c.bf16 %v5654_v8, %v5651_v62 }
0x1881   : > { %11359 = vmatmul.mubr.msk.bf16.gmra.mrb[212].mxu1 %vm1779_vm5, %v12220_v45  ;;  %11387 = vmatpush3.bf16.msra.mxu0 %v5887_v18 }
0x1882   : > { %v5658_v58 = vpop.f32.mrb[244].mxu0  ;;  %11369 = vmatpush3.bf16.xpose.msra.mxu1 %v5767_v46  ;;  %11388 = vmatprep.subr.bf16.mxu0 %v12606_v0 }
0x1883   : > { %v5659_v41 = vadd.f32 %v9828_v27, %v5658_v58  ;;  %v11346_v13 = vpop.f32.mrb[245].mxu0  ;;  %11362 = vmatprep.mubr.msk.bf16.mxu1 %vm12608_vm2, %v12606_v0  ;;  %11370 = vmatprep.subr.bf16.mxu1 %v12606_v0 }
0x1884   : > { %v5661_v15 = vpop.f32.mrb[246].mxu0  ;;  %v9882_v13 = vld [vmem:[%s14841_s5 + $0x3] ss:$0 sm:$0xff]  ;;  %s14847_s5 = sld [smem:[#allocation23_spill]] }
0x1885   : > { %v5888_v42 = vpack.c.bf16 %v5659_v41, %v5659_v41  ;;  %v11347_v16 = vpop.f32.mrb[247].mxu0 }
0x1887   : > { %v5899_v9 = vsel %vm1991_vm6, %v5888_v42, 0 }
0x1888   : > { %11389 = vmatpush3.bf16.msra.mxu0 %v5899_v9 }
0x1889   : > { %11363 = vmatmul.mubr.msk.bf16.gmra.mrb[216].mxu1 %vm1779_vm5, %v12221_v57  ;;  %11402 = vmatprep.subr.bf16.mxu0 %v12606_v0 }
0x188a   : > { %11371 = vmatpush3.bf16.xpose.msra.mxu1 %v5770_v29  ;;  %11372 = vmatprep.mubr.msk.bf16.mxu1 %vm12608_vm2, %v12606_v0 }
0x188b   : > { %11416 = vmatprep.subr.bf16.mxu1 %v12606_v0 }
0x1891   : > { %11373 = vmatmul.mubr.msk.bf16.vlgmr.msra.gmra.mrb[208].mxu1 %vm1779_vm5, %v14030_v52  ;;  %v12224_v52 = vld [vmem:[%s14838_s1 + $0x30] sm:$0xff]   ;;  %s14844_s1 = sld [smem:[#allocation18_spill]] }
0x1892   : > { %11376 = vmatprep.mubr.msk.bf16.mxu1 %vm12608_vm2, %v12606_v0  ;;  %11417 = vmatpush3.bf16.msra.mxu1 %v12222_v47 }
0x1893   : > { %11418 = vmatprep.subr.bf16.mxu1 %v12606_v0 }
0x1896   : > { %11419 = vmatpush3.bf16.msra.mxu1 %v12223_v12 }
0x1897   : > { %11448 = vmatprep.subr.bf16.mxu1 %v12606_v0 }
0x1899   : > { %11377 = vmatmul.mubr.msk.bf16.gmra.mrb[212].mxu1 %vm1779_vm5, %v14035_v5 }
0x189a   : > { %11380 = vmatprep.mubr.msk.bf16.mxu1 %vm12608_vm2, %v12606_v0 }
0x18a1   : > { %11381 = vmatmul.mubr.msk.bf16.gmra.mrb[216].mxu1 %vm1779_vm5, %v14040_v49 }
0x18a2   : > { %11420 = vmatprep.mubr.msk.bf16.mxu1 %vm12608_vm2, %v12606_v0 }
0x18a9   : > { %11421 = vmatmul.mubr.msk.bf16.vlgmr.msra.gmra.mrb[220].mxu1 %vm1531_vm4, %v13640_v40 }
0x18aa   : > { %11424 = vmatprep.mubr.msk.bf16.mxu1 %vm12608_vm2, %v12606_v0  ;;  %11449 = vmatpush3.bf16.msra.mxu1 %v12224_v52 }
0x18ab   : > { %11450 = vmatprep.subr.bf16.mxu1 %v12606_v0 }
0x18ae   : > { %11451 = vmatpush3.bf16.msra.mxu1 %v12225_v56 }
0x18af   : > { %11500 = vmatprep.subr.bf16.mxu1 %v12606_v0 }
0x18b1   : > { %11425 = vmatmul.mubr.msk.bf16.gmra.mrb[224].mxu1 %vm1531_vm4, %v13653_v48 }
0x18b2   : > { %11428 = vmatprep.mubr.msk.bf16.mxu1 %vm12608_vm2, %v12606_v0 }
0x18b9   : > { %11429 = vmatmul.mubr.msk.bf16.gmra.mrb[228].mxu1 %vm1531_vm4, %v13664_v54 }
0x18ba   : > { %11452 = vmatprep.mubr.msk.bf16.mxu1 %vm12608_vm2, %v12606_v0 }
0x18c1   : > { %11453 = vmatmul.mubr.msk.bf16.vlgmr.msra.gmra.mrb[232].mxu1 %vm1531_vm4, %v13640_v40 }
0x18c2   : > { %11456 = vmatprep.mubr.msk.bf16.mxu1 %vm12608_vm2, %v12606_v0 }
0x18c9   : > { %11457 = vmatmul.mubr.msk.bf16.gmra.mrb[236].mxu1 %vm1531_vm4, %v13653_v48 }
0x18ca   : > { %11460 = vmatprep.mubr.msk.bf16.mxu1 %vm12608_vm2, %v12606_v0 }
0x18d1   : > { %11461 = vmatmul.mubr.msk.bf16.gmra.mrb[240].mxu1 %vm1531_vm4, %v13664_v54 }
0x18d2   : > { %11506 = vmatprep.mubr.msk.bf16.mxu1 %vm12608_vm2, %v12606_v0 }
0x1964   : > { %v14120_v63 = vpop.f32.mrb[208].mxu1 }
0x1965   : > { %v11374_v28 = vpop.f32.mrb[209].mxu1  ;;  %v5828_v20 = vsel %vm1919_vm7, %v14120_v63, -inf }
0x1966   : > { %5829 = vmax.xlane.f32.xlu0 %v5828_v20  ;;  %v14124_v31 = vpop.f32.mrb[210].mxu1 }
0x1967   : > { %v11375_v30 = vpop.f32.mrb[211].mxu1  ;;  %v5831_v5 = vsel %vm1919_vm7, %v14124_v31, -inf }
0x1968   : > { %5832 = vmax.xlane.f32.xlu1 %v5831_v5 }
0x196c   : > { %v14128_v59 = vpop.f32.mrb[212].mxu1 }
0x196d   : > { %v11378_v32 = vpop.f32.mrb[213].mxu1  ;;  %v5834_v17 = vsel %vm1919_vm7, %v14128_v59, -inf }
0x196e   : > { %5835 = vmax.xlane.f32.xlu0 %v5834_v17  ;;  %v14132_v44 = vpop.f32.mrb[214].mxu1 }
0x196f   : > { %v11379_v23 = vpop.f32.mrb[215].mxu1  ;;  %v5837_v49 = vsel %vm1919_vm7, %v14132_v44, -inf }
0x1970   : > { %5838 = vmax.xlane.f32.xlu1 %v5837_v49 }
0x1974   : > { %v14136_v35 = vpop.f32.mrb[216].mxu1 }
0x1975   : > { %v11382_v1 = vpop.f32.mrb[217].mxu1  ;;  %v5840_v27 = vsel %vm1932_vm8, %v14136_v35, -inf }
0x1976   : > { %5841 = vmax.xlane.f32.xlu0 %v5840_v27  ;;  %v5825_v60 = vpop.f32.mrb[218].mxu1 }
0x1977   : > { %v11383_v7 = vpop.f32.mrb[219].mxu1 }
0x197c   : > { %v6097_v19 = vpop.f32.mrb[220].mxu1 }
0x197d   : > { %v11422_v22 = vpop.f32.mrb[221].mxu1  ;;  %v6098_v36 = vadd.f32 %v14141_v11, %v6097_v19 }
0x197e   : > { %v6100_v51 = vpop.f32.mrb[222].mxu1 }
0x197f   : > { %v6101_v6 = vadd.f32 %v14141_v11, %v6100_v51  ;;  %v11423_v55 = vpop.f32.mrb[223].mxu1 }
0x1981   : > { %v14145_v4 = vpack.c.bf16 %v6101_v6, %v6098_v36 }
0x1984   : > { %v6105_v50 = vpop.f32.mrb[224].mxu1 }
0x1985   : > { %v11426_v34 = vpop.f32.mrb[225].mxu1  ;;  %v6106_v8 = vadd.f32 %v14141_v11, %v6105_v50 }
0x1986   : > { %v6108_v62 = vpop.f32.mrb[226].mxu1 }
0x1987   : > { %v6109_v37 = vadd.f32 %v14141_v11, %v6108_v62  ;;  %v11427_v45 = vpop.f32.mrb[227].mxu1 }
0x1989   : > { %v14149_v18 = vpack.c.bf16 %v6109_v37, %v6106_v8 }
0x198c   : > { %v14151_v24 = vpop.f32.mrb[228].mxu1 }
0x198d   : > { %v11430_v46 = vpop.f32.mrb[229].mxu1 }
0x198e   : > { %v6116_v58 = vpop.f32.mrb[230].mxu1 }
0x198f   : > { %v11431_v41 = vpop.f32.mrb[231].mxu1 }
0x1994   : > { %v6259_v15 = vpop.f32.mrb[232].mxu1 }
0x1995   : > { %v11454_v53 = vpop.f32.mrb[233].mxu1  ;;  %v6260_v16 = vadd.f32 %v9882_v13, %v6259_v15 }
0x1996   : > { %v6262_v42 = vpop.f32.mrb[234].mxu1 }
0x1997   : > { %v6263_v57 = vadd.f32 %v9882_v13, %v6262_v42  ;;  %v11455_v9 = vpop.f32.mrb[235].mxu1 }
0x1999   : > { %v6503_v29 = vpack.c.bf16 %v6263_v57, %v6260_v16 }
0x199b   : > { %11501 = vmatpush3.bf16.msra.mxu1 %v6503_v29 }
0x199c   : > { %v6267_v47 = vpop.f32.mrb[236].mxu1  ;;  %11502 = vmatprep.subr.bf16.mxu1 %v12606_v0 }
0x199d   : > { %v11458_v12 = vpop.f32.mrb[237].mxu1  ;;  %v6268_v56 = vadd.f32 %v9882_v13, %v6267_v47 }
0x199e   : > { %v6270_v52 = vpop.f32.mrb[238].mxu1  ;;  %v9851_v12 = vld [vmem:[%s14843_s8 + $0x8] sm:$0xf] }
0x199f   : > { %v6271_v28 = vadd.f32 %v9882_v13, %v6270_v52  ;;  %v11459_v20 = vpop.f32.mrb[239].mxu1 }
0x19a1   : > { %v6504_v30 = vpack.c.bf16 %v6271_v28, %v6268_v56 }
0x19a3   : > { %11503 = vmatpush3.bf16.msra.mxu1 %v6504_v30  ;;  %v5977_v30 = vsel %vm1437_vm0, %v9851_v12, 0 }
0x19a4   : > { %v6275_v5 = vpop.f32.mrb[240].mxu1  ;;  %11504 = vmatprep.subr.bf16.mxu1 %v12606_v0 }
0x19a5   : > { %v6276_v32 = vadd.f32 %v9882_v13, %v6275_v5  ;;  %v11462_v17 = vpop.f32.mrb[241].mxu1 }
0x19a6   : > { %v6278_v23 = vpop.f32.mrb[242].mxu1 }
0x19a7   : > { %v6505_v49 = vpack.c.bf16 %v6276_v32, %v6276_v32  ;;  %v11463_v1 = vpop.f32.mrb[243].mxu1 }
0x19a9   : > { %v6516_v27 = vsel %vm1991_vm6, %v6505_v49, 0 }
0x19aa   : > { %11505 = vmatpush3.bf16.msra.mxu1 %v6516_v27 }
0x19ab   : > { %11518 = vmatprep.subr.bf16.mxu1 %v12606_v0 }
0x19f3   : > { %v5830_v60 = vpop.xlane.xlu0 %5829 }
0x19f4   : > { %v5843_v7 = vsub.f32 %v14120_v63, %v5830_v60 }
0x19f5   : > { %v5833_v19 = vpop.xlane.xlu1 %5832 }
0x19f6   : > { %v5848_v22 = vmul.f32 1.442695, %v5843_v7  ;;  %v5844_v51 = vsub.f32 %v14124_v31, %v5833_v19 }
0x19f8   : > { %12435 = vpow2.f32 %v5848_v22  ;;  %v5850_v36 = vmul.f32 1.442695, %v5844_v51 }
0x19fa   : > { %12437 = vpow2.f32 %v5850_v36 }
0x19fb   : > { %v5836_v6 = vpop.xlane.xlu0 %5835 }
0x19fc   : > { %v5845_v55 = vsub.f32 %v14128_v59, %v5836_v6 }
0x19fd   : > { %v5839_v50 = vpop.xlane.xlu1 %5838 }
0x19fe   : > { %v5852_v34 = vmul.f32 1.442695, %v5845_v55  ;;  %v5846_v62 = vsub.f32 %v14132_v44, %v5839_v50  ;;  %v12226_v55 = vld [vmem:[%s14837_s18 + $0x30] sm:$0xff]  }
0x1a00   : > { %12439 = vpow2.f32 %v5852_v34  ;;  %v5854_v8 = vmul.f32 1.442695, %v5846_v62  ;;  %v12227_v62 = vld [vmem:[%s14837_s18 + $0x38] sm:$0xff]  }
0x1a02   : > { %v12436_v37 = vpop.eup %12435  ;;  %12441 = vpow2.f32 %v5854_v8 }
0x1a03   : > { %v5842_v45 = vpop.xlane.xlu0 %5841  ;;  %v5858_v63 = vsel %vm1919_vm7, %v12436_v37, 0.0 }
0x1a04   : > { %v12438_v46 = vpop.eup %12437  ;;  %v5847_v31 = vsub.f32 %v14136_v35, %v5842_v45  ;;  %5859 = vadd.xlane.f32.xlu1 %v5858_v63 }
0x1a05   : > { %v5861_v58 = vsel %vm1919_vm7, %v12438_v46, 0.0 }
0x1a06   : > { %v5856_v41 = vmul.f32 1.442695, %v5847_v31  ;;  %5862 = vadd.xlane.f32.xlu0 %v5861_v58 }
0x1a08   : > { %12443 = vpow2.f32 %v5856_v41 }
0x1a0a   : > { %v12440_v59 = vpop.eup %12439 }
0x1a0b   : > { %v5864_v13 = vsel %vm1919_vm7, %v12440_v59, 0.0 }
0x1a0c   : > { %v12442_v44 = vpop.eup %12441  ;;  %5865 = vadd.xlane.f32.xlu1 %v5864_v13 }
0x1a0d   : > { %v5867_v15 = vsel %vm1919_vm7, %v12442_v44, 0.0 }
0x1a0e   : > { %5868 = vadd.xlane.f32.xlu0 %v5867_v15 }
0x1a12   : > { %v12444_v53 = vpop.eup %12443 }
0x1a13   : > { %v5870_v42 = vsel %vm1932_vm8, %v12444_v53, 0.0 }
0x1a14   : > { %5871 = vadd.xlane.f32.xlu1 %v5870_v42  ;;  %v6114_v42 = vadd.f32 %v14141_v11, %v14151_v24  ;;  %v12229_v11 = vld [vmem:[%s14842_s6 + $0x44] sm:$0xff]   ;;  %v12230_v24 = vld [vmem:[%s14842_s6 + $0x4c] ss:$0 sps:$4 sm:$0x33]  }
0x1a91   : > { %v5860_v35 = vpop.xlane.xlu1 %5859 }
0x1a92   : > { %12445 = vrcp.f32 %v5860_v35  ;;  %v14209_v35 = vpack.c.bf16 %v6114_v42, %v6114_v42 }
0x1a93   : > { %v5863_v16 = vpop.xlane.xlu0 %5862 }
0x1a94   : > { %12447 = vrcp.f32 %v5863_v16  ;;  %v6322_v16 = vsel %vm1779_vm5, %v14209_v35, 0 }
0x1a99   : > { %v5866_v57 = vpop.xlane.xlu1 %5865 }
0x1a9a   : > { %12449 = vrcp.f32 %v5866_v57 }
0x1a9b   : > { %v5869_v9 = vpop.xlane.xlu0 %5868 }
0x1a9c   : > { %v12446_v29 = vpop.eup %12445  ;;  %12451 = vrcp.f32 %v5869_v9 }
0x1a9d   : > { %v5874_v52 = vmul.f32 %v12446_v29, %v12436_v37 }
0x1a9e   : > { %v12448_v47 = vpop.eup %12447 }
0x1a9f   : > { %v5876_v56 = vmul.f32 %v12448_v47, %v12438_v46 }
0x1aa1   : > { %v5883_v28 = vpack.c.bf16 %v5876_v56, %v5874_v52  ;;  %v5872_v20 = vpop.xlane.xlu1 %5871 }
0x1aa2   : > { %12453 = vrcp.f32 %v5872_v20 }
0x1aa3   : > { %11391 = vmatmul.mubr.msk.bf16.vlgmr.msra.gmra.mrb[248].mxu0 %vm1919_vm7, %v5883_v28 }
0x1aa4   : > { %v12450_v5 = vpop.eup %12449  ;;  %11394 = vmatprep.mubr.msk.bf16.mxu0 %vm12608_vm2, %v12606_v0  ;;  %11403 = vmatpush3.bf16.msra.mxu0 %v5977_v30 }
0x1aa5   : > { %11432 = vmatprep.subr.bf16.mxu0 %v12606_v0  ;;  %v5878_v17 = vmul.f32 %v12450_v5, %v12440_v59 }
0x1aa6   : > { %v12452_v32 = vpop.eup %12451 }
0x1aa7   : > { %v5880_v23 = vmul.f32 %v12452_v32, %v12442_v44 }
0x1aa9   : > { %v5884_v49 = vpack.c.bf16 %v5880_v23, %v5878_v17 }
0x1aab   : > { %11395 = vmatmul.mubr.msk.bf16.gmra.mrb[252].mxu0 %vm1919_vm7, %v5884_v49  ;;  %v9871_v49 = vld [vmem:[%s14840_s3 + $0x3] ss:$0 sm:$0xff]  ;;  %s14846_s3 = sld [smem:[#allocation21_spill]] }
0x1aac   : > { %v12454_v1 = vpop.eup %12453  ;;  %11398 = vmatprep.mubr.msk.bf16.mxu0 %vm12608_vm2, %v12606_v0 }
0x1aad   : > { %v5882_v27 = vmul.f32 %v12454_v1, %v12444_v53  ;;  %v6316_v53 = vsel %vm1779_vm5, %v14145_v4, 0 }
0x1aaf   : > { %v5885_v60 = vpack.c.bf16 %v5882_v27, %v5882_v27 }
0x1ab3   : > { %11399 = vmatmul.mubr.msk.bf16.gmra.mrb[0].mxu0 %vm1919_vm7, %v5885_v60 }
0x1ab4   : > { %11404 = vmatprep.mubr.msk.bf16.mxu0 %vm12608_vm2, %v12606_v0 }
0x1b76   : > { %v5935_v7 = vpop.f32.mrb[248].mxu0 }
0x1b77   : > { %v11392_v19 = vpop.f32.mrb[249].mxu0  ;;  %v5957_v51 = vmax.f32 %v5935_v7, 0.0 }
0x1b78   : > { %v5938_v22 = vpop.f32.mrb[250].mxu0 }
0x1b79   : > { %v5958_v36 = vmax.f32 %v5938_v22, 0.0  ;;  %v11393_v6 = vpop.f32.mrb[251].mxu0 }
0x1b7b   : > { %v5964_v50 = vpack.c.bf16 %v5958_v36, %v5957_v51 }
0x1b7d   : > { %11405 = vmatmul.mubr.msk.bf16.vlgmr.msra.gmra.mrb[4].mxu0 %vm1779_vm5, %v5964_v50 }
0x1b7e   : > { %v5943_v34 = vpop.f32.mrb[252].mxu0  ;;  %11433 = vmatpush3.bf16.msra.mxu0 %v12226_v55  ;;  %11408 = vmatprep.mubr.msk.bf16.mxu0 %vm12608_vm2, %v12606_v0 }
0x1b7f   : > { %v11396_v8 = vpop.f32.mrb[253].mxu0  ;;  %11434 = vmatprep.subr.bf16.mxu0 %v12606_v0  ;;  %v5959_v45 = vmax.f32 %v5943_v34, 0.0 }
0x1b80   : > { %v5946_v37 = vpop.f32.mrb[254].mxu0 }
0x1b81   : > { %v5960_v63 = vmax.f32 %v5946_v37, 0.0  ;;  %v11397_v46 = vpop.f32.mrb[255].mxu0 }
0x1b82   : > { %11435 = vmatpush3.bf16.msra.mxu0 %v12227_v62 }
0x1b83   : > { %v5965_v31 = vpack.c.bf16 %v5960_v63, %v5959_v45  ;;  %11464 = vmatprep.subr.bf16.mxu0 %v12606_v0 }
0x1b85   : > { %11409 = vmatmul.mubr.msk.bf16.gmra.mrb[8].mxu0 %vm1779_vm5, %v5965_v31 }
0x1b86   : > { %v5951_v58 = vpop.f32.mrb[0].mxu0  ;;  %11412 = vmatprep.mubr.msk.bf16.mxu0 %vm12608_vm2, %v12606_v0 }
0x1b87   : > { %v5961_v41 = vmax.f32 %v5951_v58, 0.0  ;;  %v11400_v59 = vpop.f32.mrb[1].mxu0 }
0x1b88   : > { %v5954_v13 = vpop.f32.mrb[2].mxu0 }
0x1b89   : > { %v11401_v44 = vpop.f32.mrb[3].mxu0  ;;  %v5966_v15 = vpack.c.bf16 %v5961_v41, %v5961_v41 }
0x1b8d   : > { %11413 = vmatmul.mubr.msk.bf16.gmra.mrb[12].mxu0 %vm1779_vm5, %v5966_v15 }
0x1b8e   : > { %11436 = vmatprep.mubr.msk.bf16.mxu0 %vm12608_vm2, %v12606_v0 }
0x1b95   : > { %11437 = vmatmul.mubr.msk.bf16.vlgmr.msra.gmra.mrb[16].mxu0 %vm1531_vm4, %v13640_v40  ;;  %v6319_v40 = vsel %vm1779_vm5, %v14149_v18, 0 }
0x1b96   : > { %11465 = vmatpush3.bf16.xpose.msra.mxu0 %v6316_v53  ;;  %11440 = vmatprep.mubr.msk.bf16.mxu0 %vm12608_vm2, %v12606_v0 }
0x1b97   : > { %11466 = vmatprep.subr.bf16.mxu0 %v12606_v0 }
0x1b9d   : > { %11441 = vmatmul.mubr.msk.bf16.gmra.mrb[20].mxu0 %vm1531_vm4, %v13653_v48  ;;  %v12228_v48 = vld [vmem:[%s14842_s6 + $0x3c] sm:$0xff]   ;;  %s14848_s6 = sld [smem:[#allocation20_spill]] }
0x1b9e   : > { %11467 = vmatpush3.bf16.xpose.msra.mxu0 %v6319_v40  ;;  %11444 = vmatprep.mubr.msk.bf16.mxu0 %vm12608_vm2, %v12606_v0 }
0x1b9f   : > { %11468 = vmatprep.subr.bf16.mxu0 %v12606_v0 }
0x1ba5   : > { %11445 = vmatmul.mubr.msk.bf16.gmra.mrb[24].mxu0 %vm1531_vm4, %v13664_v54 }
0x1ba6   : > { %11469 = vmatpush3.bf16.xpose.msra.mxu0 %v6322_v16  ;;  %11470 = vmatprep.mubr.msk.bf16.mxu0 %vm12608_vm2, %v12606_v0 }
0x1ba7   : > { %11482 = vmatprep.subr.bf16.mxu0 %v12606_v0 }
0x1bad   : > { %11471 = vmatmul.mubr.msk.bf16.vlgmr.msra.gmra.mrb[28].mxu0 %vm1779_vm5, %v12228_v48 }
0x1bae   : > { %11474 = vmatprep.mubr.msk.bf16.mxu0 %vm12608_vm2, %v12606_v0 }
0x1bb5   : > { %11475 = vmatmul.mubr.msk.bf16.gmra.mrb[32].mxu0 %vm1779_vm5, %v12229_v11 }
0x1bb6   : > { %11478 = vmatprep.mubr.msk.bf16.mxu0 %vm12608_vm2, %v12606_v0 }
0x1bbd   : > { %11479 = vmatmul.mubr.msk.bf16.gmra.mrb[36].mxu0 %vm1779_vm5, %v12230_v24 }
0x1bbe   : > { %11488 = vmatprep.mubr.msk.bf16.mxu0 %vm12608_vm2, %v12606_v0 }
0x1c50   : > { %v6013_v54 = vpop.f32.mrb[4].mxu0 }
0x1c51   : > { %v14231_v57 = vadd.f32 %v6013_v54, %v14018_v21  ;;  %v11406_v9 = vpop.f32.mrb[5].mxu0 }
0x1c52   : > { %v6016_v29 = vpop.f32.mrb[6].mxu0 }
0x1c53   : > { %v14234_v47 = vadd.f32 %v6016_v29, %v14021_v25  ;;  %v11407_v12 = vpop.f32.mrb[7].mxu0 }
0x1c58   : > { %v6021_v52 = vpop.f32.mrb[8].mxu0 }
0x1c59   : > { %v14237_v56 = vadd.f32 %v6021_v52, %v14024_v26  ;;  %v11410_v28 = vpop.f32.mrb[9].mxu0 }
0x1c5a   : > { %v6024_v20 = vpop.f32.mrb[10].mxu0 }
0x1c5b   : > { %v14240_v30 = vadd.f32 %v6024_v20, %v14027_v33  ;;  %v11411_v5 = vpop.f32.mrb[11].mxu0 }
0x1c60   : > { %v6029_v32 = vpop.f32.mrb[12].mxu0 }
0x1c61   : > { %v11414_v17 = vpop.f32.mrb[13].mxu0 }
0x1c62   : > { %v6031_v21 = vpop.f32.mrb[14].mxu0 }
0x1c63   : > { %v11415_v23 = vpop.f32.mrb[15].mxu0 }
0x1c68   : > { %v6178_v1 = vpop.f32.mrb[16].mxu0 }
0x1c69   : > { %v11438_v27 = vpop.f32.mrb[17].mxu0  ;;  %v6179_v60 = vadd.f32 %v9871_v49, %v6178_v1 }
0x1c6a   : > { %v6181_v25 = vpop.f32.mrb[18].mxu0 }
0x1c6b   : > { %v6182_v7 = vadd.f32 %v9871_v49, %v6181_v25  ;;  %v11439_v19 = vpop.f32.mrb[19].mxu0 }
0x1c6d   : > { %v6290_v22 = vpack.c.bf16 %v6182_v7, %v6179_v60 }
0x1c6f   : > { %v6381_v26 = vsel %vm1779_vm5, %v6290_v22, 0 }
0x1c70   : > { %v6186_v51 = vpop.f32.mrb[20].mxu0  ;;  %11483 = vmatpush3.bf16.xpose.msra.mxu0 %v6381_v26 }
0x1c71   : > { %v11442_v36 = vpop.f32.mrb[21].mxu0  ;;  %11484 = vmatprep.subr.bf16.mxu0 %v12606_v0  ;;  %v6187_v6 = vadd.f32 %v9871_v49, %v6186_v51 }
0x1c72   : > { %v6189_v33 = vpop.f32.mrb[22].mxu0 }
0x1c73   : > { %v6190_v55 = vadd.f32 %v9871_v49, %v6189_v33  ;;  %v11443_v50 = vpop.f32.mrb[23].mxu0 }
0x1c75   : > { %v6291_v34 = vpack.c.bf16 %v6190_v55, %v6187_v6 }
0x1c77   : > { %v6384_v62 = vsel %vm1779_vm5, %v6291_v34, 0 }
0x1c78   : > { %v6194_v8 = vpop.f32.mrb[24].mxu0  ;;  %11485 = vmatpush3.bf16.xpose.msra.mxu0 %v6384_v62 }
0x1c79   : > { %v6195_v37 = vadd.f32 %v9871_v49, %v6194_v8  ;;  %v11446_v45 = vpop.f32.mrb[25].mxu0  ;;  %11486 = vmatprep.subr.bf16.mxu0 %v12606_v0 }
0x1c7a   : > { %v6197_v63 = vpop.f32.mrb[26].mxu0 }
0x1c7b   : > { %v6292_v46 = vpack.c.bf16 %v6195_v37, %v6195_v37  ;;  %v11447_v31 = vpop.f32.mrb[27].mxu0 }
0x1c7d   : > { %v6387_v58 = vsel %vm1779_vm5, %v6292_v46, 0 }
0x1c80   : > { %11487 = vmatpush3.bf16.xpose.msra.mxu0 %v6387_v58 }
0x1c81   : > { %11532 = vmatprep.subr.bf16.mxu0 %v12606_v0 }
0x1c87   : > { %11489 = vmatmul.mubr.msk.bf16.vlgmr.msra.gmra.mrb[28].mxu0 %vm1779_vm5, %v14145_v4 }
0x1c88   : > { %11492 = vmatprep.mubr.msk.bf16.mxu0 %vm12608_vm2, %v12606_v0 }
0x1c8f   : > { %11493 = vmatmul.mubr.msk.bf16.gmra.mrb[32].mxu0 %vm1779_vm5, %v14149_v18 }
0x1c90   : > { %11496 = vmatprep.mubr.msk.bf16.mxu0 %vm12608_vm2, %v12606_v0 }
0x1c97   : > { %11497 = vmatmul.mubr.msk.bf16.gmra.mrb[36].mxu0 %vm1779_vm5, %v14209_v35 }
0x1c98   : > { %11548 = vmatprep.mubr.msk.bf16.mxu0 %vm12608_vm2, %v12606_v0 }
0x1d5a   : > { %v6423_v41 = vpop.f32.mrb[28].mxu0 }
0x1d5b   : > { %v11490_v59 = vpop.f32.mrb[29].mxu0  ;;  %v6445_v13 = vsel %vm1919_vm7, %v6423_v41, -inf }
0x1d5c   : > { %6446 = vmax.xlane.f32.xlu0 %v6445_v13  ;;  %v6426_v4 = vpop.f32.mrb[30].mxu0 }
0x1d5d   : > { %v11491_v44 = vpop.f32.mrb[31].mxu0  ;;  %v6448_v15 = vsel %vm1919_vm7, %v6426_v4, -inf }
0x1d5e   : > { %6449 = vmax.xlane.f32.xlu1 %v6448_v15  ;;  %v9905_v15 = vld [vmem:[%s14843_s8 + $0xc] sm:$0xf]  ;;  %s14850_s8 = sld [smem:[#allocation24_spill]] }
0x1d62   : > { %v6431_v18 = vpop.f32.mrb[32].mxu0 }
0x1d63   : > { %v11494_v53 = vpop.f32.mrb[33].mxu0  ;;  %v6451_v42 = vsel %vm1919_vm7, %v6431_v18, -inf }
0x1d64   : > { %6452 = vmax.xlane.f32.xlu0 %v6451_v42  ;;  %v6434_v40 = vpop.f32.mrb[34].mxu0 }
0x1d65   : > { %v11495_v35 = vpop.f32.mrb[35].mxu0  ;;  %v6454_v16 = vsel %vm1919_vm7, %v6434_v40, -inf }
0x1d66   : > { %6455 = vmax.xlane.f32.xlu1 %v6454_v16 }
0x1d6a   : > { %v6439_v48 = vpop.f32.mrb[36].mxu0 }
0x1d6b   : > { %v11498_v11 = vpop.f32.mrb[37].mxu0  ;;  %v6457_v51 = vsel %vm1932_vm8, %v6439_v48, -inf }
0x1d6c   : > { %v6442_v24 = vpop.f32.mrb[38].mxu0 }
0x1d6d   : > { %v11499_v54 = vpop.f32.mrb[39].mxu0 }
0x1de9   : > { %v6447_v9 = vpop.xlane.xlu0 %6446 }
0x1dea   : > { %v6460_v29 = vsub.f32 %v6423_v41, %v6447_v9 }
0x1deb   : > { %v6450_v12 = vpop.xlane.xlu1 %6449 }
0x1dec   : > { %v6465_v52 = vmul.f32 1.442695, %v6460_v29  ;;  %v6461_v28 = vsub.f32 %v6426_v4, %v6450_v12 }
0x1dee   : > { %12455 = vpow2.f32 %v6465_v52  ;;  %v6467_v20 = vmul.f32 1.442695, %v6461_v28 }
0x1df0   : > { %12457 = vpow2.f32 %v6467_v20 }
0x1df1   : > { %v6453_v5 = vpop.xlane.xlu0 %6452 }
0x1df2   : > { %v6462_v32 = vsub.f32 %v6431_v18, %v6453_v5  ;;  %v6594_v18 = vsel %vm1437_vm0, %v9905_v15, 0 }
0x1df3   : > { %v6456_v17 = vpop.xlane.xlu1 %6455 }
0x1df4   : > { %v6469_v21 = vmul.f32 1.442695, %v6462_v32  ;;  %v6463_v23 = vsub.f32 %v6434_v40, %v6456_v17 }
0x1df6   : > { %12459 = vpow2.f32 %v6469_v21  ;;  %v6471_v49 = vmul.f32 1.442695, %v6463_v23  ;;  %v12231_v21 = vld [vmem:[%s14844_s1] sm:$0xff]   ;;  %v12232_v23 = vld [vmem:[%s14844_s1 + $0x8] sm:$0xff]  }
0x1df7   : > { %11533 = vmatpush3.bf16.msra.mxu0 %v12231_v21 }
0x1df8   : > { %v12456_v1 = vpop.eup %12455  ;;  %12461 = vpow2.f32 %v6471_v49  ;;  %11534 = vmatprep.subr.bf16.mxu0 %v12606_v0  ;;  %v12233_v49 = vld [vmem:[%s14844_s1 + $0x10] sm:$0xff]  }
0x1df9   : > { %v6475_v27 = vsel %vm1919_vm7, %v12456_v1, 0.0 }
0x1dfa   : > { %v12458_v25 = vpop.eup %12457  ;;  %6476 = vadd.xlane.f32.xlu0 %v6475_v27  ;;  %v12235_v27 = vld [vmem:[%s14844_s1 + $0x20] sm:$0xff]  }
0x1dfb   : > { %v6478_v60 = vsel %vm1919_vm7, %v12458_v25, 0.0  ;;  %11535 = vmatpush3.bf16.msra.mxu0 %v12232_v23 }
0x1dfc   : > { %6479 = vadd.xlane.f32.xlu1 %v6478_v60  ;;  %11536 = vmatprep.subr.bf16.mxu0 %v12606_v0  ;;  %v12237_v60 = vld [vmem:[%s14844_s1 + $0x30] sm:$0xff]  }
0x1dff   : > { %11537 = vmatpush3.bf16.msra.mxu0 %v12233_v49 }
0x1e00   : > { %v12460_v7 = vpop.eup %12459  ;;  %11538 = vmatprep.subr.bf16.mxu0 %v12606_v0 }
0x1e01   : > { %v6481_v19 = vsel %vm1919_vm7, %v12460_v7, 0.0 }
0x1e02   : > { %v12462_v22 = vpop.eup %12461  ;;  %6482 = vadd.xlane.f32.xlu0 %v6481_v19 }
0x1e03   : > { %v6484_v26 = vsel %vm1919_vm7, %v12462_v22, 0.0 }
0x1e04   : > { %6485 = vadd.xlane.f32.xlu1 %v6484_v26 }
0x1e06   : > { %6458 = vmax.xlane.f32.xlu0 %v6457_v51 }
0x1e87   : > { %v6477_v36 = vpop.xlane.xlu0 %6476 }
0x1e88   : > { %12463 = vrcp.f32 %v6477_v36 }
0x1e89   : > { %v6480_v33 = vpop.xlane.xlu1 %6479 }
0x1e8a   : > { %12465 = vrcp.f32 %v6480_v33 }
0x1e8f   : > { %v6483_v6 = vpop.xlane.xlu0 %6482 }
0x1e90   : > { %12467 = vrcp.f32 %v6483_v6 }
0x1e91   : > { %v6486_v55 = vpop.xlane.xlu1 %6485 }
0x1e92   : > { %v12464_v50 = vpop.eup %12463  ;;  %12469 = vrcp.f32 %v6486_v55 }
0x1e93   : > { %v6459_v34 = vpop.xlane.xlu0 %6458  ;;  %v6491_v37 = vmul.f32 %v12464_v50, %v12456_v1  ;;  %v12234_v1 = vld [vmem:[%s14844_s1 + $0x18] sm:$0xff]  }
0x1e94   : > { %v12466_v62 = vpop.eup %12465  ;;  %v6464_v8 = vsub.f32 %v6439_v48, %v6459_v34  ;;  %11539 = vmatpush3.bf16.msra.mxu0 %v12234_v1 }
0x1e95   : > { %v6493_v45 = vmul.f32 %v12466_v62, %v12458_v25  ;;  %11540 = vmatprep.subr.bf16.mxu0 %v12606_v0  ;;  %v12236_v25 = vld [vmem:[%s14844_s1 + $0x28] sm:$0xff]  }
0x1e96   : > { %v6473_v63 = vmul.f32 1.442695, %v6464_v8 }
0x1e97   : > { %v6500_v46 = vpack.c.bf16 %v6493_v45, %v6491_v37 }
0x1e98   : > { %12471 = vpow2.f32 %v6473_v63  ;;  %11541 = vmatpush3.bf16.msra.mxu0 %v12235_v27 }
0x1e99   : > { %11507 = vmatmul.mubr.msk.bf16.vlgmr.msra.gmra.mrb[244].mxu1 %vm1919_vm7, %v6500_v46  ;;  %11542 = vmatprep.subr.bf16.mxu0 %v12606_v0 }
0x1e9a   : > { %v12468_v31 = vpop.eup %12467  ;;  %11510 = vmatprep.mubr.msk.bf16.mxu1 %vm12608_vm2, %v12606_v0  ;;  %11519 = vmatpush3.bf16.msra.mxu1 %v6594_v18 }
0x1e9b   : > { %v6495_v41 = vmul.f32 %v12468_v31, %v12460_v7  ;;  %11560 = vmatprep.subr.bf16.mxu1 %v12606_v0  ;;  %v12238_v7 = vld [vmem:[%s14844_s1 + $0x38] sm:$0xff]   ;;  %s14845_s1 = sld [smem:[#allocation19_spill]] }
0x1e9c   : > { %v12470_v58 = vpop.eup %12469  ;;  %11543 = vmatpush3.bf16.msra.mxu0 %v12236_v25 }
0x1e9d   : > { %v6497_v59 = vmul.f32 %v12470_v58, %v12462_v22  ;;  %11544 = vmatprep.subr.bf16.mxu0 %v12606_v0 }
0x1e9f   : > { %v6501_v13 = vpack.c.bf16 %v6497_v59, %v6495_v41 }
0x1ea0   : > { %11545 = vmatpush3.bf16.msra.mxu0 %v12237_v60 }
0x1ea1   : > { %11511 = vmatmul.mubr.msk.bf16.gmra.mrb[248].mxu1 %vm1919_vm7, %v6501_v13  ;;  %11546 = vmatprep.subr.bf16.mxu0 %v12606_v0 }
0x1ea2   : > { %v12472_v4 = vpop.eup %12471  ;;  %11514 = vmatprep.mubr.msk.bf16.mxu1 %vm12608_vm2, %v12606_v0 }
0x1ea3   : > { %v6487_v44 = vsel %vm1932_vm8, %v12472_v4, 0.0 }
0x1ea4   : > { %6488 = vadd.xlane.f32.xlu1 %v6487_v44  ;;  %11547 = vmatpush3.bf16.msra.mxu0 %v12238_v7 }
0x1ea5   : > { %11552 = vmatprep.subr.bf16.mxu0 %v12606_v0 }
0x1f31   : > { %v6489_v53 = vpop.xlane.xlu1 %6488 }
0x1f32   : > { %12473 = vrcp.f32 %v6489_v53 }
0x1f3c   : > { %v12474_v42 = vpop.eup %12473 }
0x1f3d   : > { %v6499_v40 = vmul.f32 %v12474_v42, %v12472_v4 }
0x1f3f   : > { %v6502_v35 = vpack.c.bf16 %v6499_v40, %v6499_v40 }
0x1f41   : > { %11515 = vmatmul.mubr.msk.bf16.gmra.mrb[252].mxu1 %vm1919_vm7, %v6502_v35 }
0x1f42   : > { %11520 = vmatprep.mubr.msk.bf16.mxu1 %vm12608_vm2, %v12606_v0 }
0x1f6c   : > { %v6552_v16 = vpop.f32.mrb[244].mxu1 }
0x1f6d   : > { %v11508_v48 = vpop.f32.mrb[245].mxu1  ;;  %v6574_v24 = vmax.f32 %v6552_v16, 0.0 }
0x1f6e   : > { %v6555_v11 = vpop.f32.mrb[246].mxu1 }
0x1f6f   : > { %v6575_v54 = vmax.f32 %v6555_v11, 0.0  ;;  %v11509_v9 = vpop.f32.mrb[247].mxu1 }
0x1f71   : > { %v6581_v29 = vpack.c.bf16 %v6575_v54, %v6574_v24 }
0x1f73   : > { %11521 = vmatmul.mubr.msk.bf16.vlgmr.msra.gmra.mrb[0].mxu1 %vm1779_vm5, %v6581_v29 }
0x1f74   : > { %v6560_v12 = vpop.f32.mrb[248].mxu1  ;;  %11524 = vmatprep.mubr.msk.bf16.mxu1 %vm12608_vm2, %v12606_v0 }
0x1f75   : > { %v11512_v52 = vpop.f32.mrb[249].mxu1  ;;  %v6576_v20 = vmax.f32 %v6560_v12, 0.0 }
0x1f76   : > { %v6563_v28 = vpop.f32.mrb[250].mxu1 }
0x1f77   : > { %v6577_v5 = vmax.f32 %v6563_v28, 0.0  ;;  %v11513_v32 = vpop.f32.mrb[251].mxu1 }
0x1f79   : > { %v6582_v17 = vpack.c.bf16 %v6577_v5, %v6576_v20 }
0x1f7b   : > { %11525 = vmatmul.mubr.msk.bf16.gmra.mrb[4].mxu1 %vm1779_vm5, %v6582_v17 }
0x1f7c   : > { %11528 = vmatprep.mubr.msk.bf16.mxu1 %vm12608_vm2, %v12606_v0 }
0x2014   : > { %v6568_v19 = vpop.f32.mrb[252].mxu1 }
0x2015   : > { %v6578_v22 = vmax.f32 %v6568_v19, 0.0  ;;  %v11516_v26 = vpop.f32.mrb[253].mxu1 }
0x2016   : > { %v6571_v51 = vpop.f32.mrb[254].mxu1 }
0x2017   : > { %v6583_v36 = vpack.c.bf16 %v6578_v22, %v6578_v22  ;;  %v11517_v33 = vpop.f32.mrb[255].mxu1 }
0x2019   : > { %11529 = vmatmul.mubr.msk.bf16.gmra.mrb[8].mxu1 %vm1779_vm5, %v6583_v36 }
0x201a   : > { %11564 = vmatprep.mubr.msk.bf16.mxu1 %vm12608_vm2, %v12606_v0 }
0x2046   : > { %v6630_v6 = vpop.f32.mrb[0].mxu1 }
0x2047   : > { %v6651_v55 = vadd.f32 %v6630_v6, %v14231_v57  ;;  %v11522_v50 = vpop.f32.mrb[1].mxu1 }
0x2048   : > { %v6633_v34 = vpop.f32.mrb[2].mxu1 }
0x2049   : > { %v6655_v62 = vadd.f32 %v6651_v55, %v4058_v2  ;;  %v6652_v8 = vadd.f32 %v6633_v34, %v14234_v47  ;;  %v11523_v37 = vpop.f32.mrb[3].mxu1 }
0x204b   : > { %v6659_v45 = vmax.f32 %v6655_v62, 0.0  ;;  %v6656_v63 = vadd.f32 %v6652_v8, %v4059_v14 }
0x204d   : > { %v6663_v46 = vsel %vm1991_vm6, %v6659_v45, -inf  ;;  %v6671_v57 = vsel %vm6670_vm9, %v6659_v45, -inf  ;;  %v6660_v31 = vmax.f32 %v6656_v63, 0.0  ;;  %v6680_v58 = vsel %vm6679_vm10, %v6659_v45, -inf }
0x204e   : > { %v6664_v43 = vrot.slane %v6663_v46, 4  ;;  %v6672_v2 = vrot.slane %v6671_v57, 4  ;;  %v6638_v41 = vpop.f32.mrb[4].mxu1  ;;  %v6681_v47 = vrot.slane %v6680_v58, 4 }
0x204f   : > { %v6688_v59 = vsel %vm6687_vm11, %v6660_v31, -inf  ;;  %v6697_v13 = vsel %vm6696_vm12, %v6660_v31, -inf  ;;  %v6653_v61 = vadd.f32 %v6638_v41, %v14237_v56  ;;  %v11526_v14 = vpop.f32.mrb[5].mxu1  ;;  %v6721_v38 = vsel %vm6670_vm9, %v6660_v31, -inf }
0x2050   : > { %v6665_v4 = vmax.f32 %v6663_v46, %v6664_v43  ;;  %v6673_v44 = vmax.f32 %v6671_v57, %v6672_v2  ;;  %v6689_v15 = vrot.slane %v6688_v59, 4  ;;  %v6698_v18 = vrot.slane %v6697_v13, 4  ;;  %v6641_v53 = vpop.f32.mrb[6].mxu1 }
0x2051   : > { %v6657_v42 = vadd.f32 %v6653_v61, %v4060_v10  ;;  %v6654_v40 = vadd.f32 %v6641_v53, %v14240_v30  ;;  %v6682_v35 = vmax.f32 %v6680_v58, %v6681_v47  ;;  %v11527_v16 = vpop.f32.mrb[7].mxu1 }
0x2052   : > { %v6666_v48 = vrot.slane %v6665_v4, 2  ;;  %v6674_v11 = vrot.slane %v6673_v44, 2  ;;  %v6690_v24 = vmax.f32 %v6688_v59, %v6689_v15  ;;  %v6699_v54 = vmax.f32 %v6697_v13, %v6698_v18 }
0x2053   : > { %v6661_v56 = vmax.f32 %v6657_v42, 0.0  ;;  %v6658_v9 = vadd.f32 %v6654_v40, %v4061_v39  ;;  %v6683_v29 = vrot.slane %v6682_v35, 2 }
0x2054   : > { %v6667_v12 = vmax.f32 %v6665_v4, %v6666_v48  ;;  %v6675_v52 = vmax.f32 %v6673_v44, %v6674_v11  ;;  %v6691_v28 = vrot.slane %v6690_v24, 2  ;;  %v6700_v20 = vrot.slane %v6699_v54, 2 }
0x2055   : > { %v6705_v10 = vsel %vm6704_vm13, %v6661_v56, -inf  ;;  %v6723_v30 = vsel %vm6722_vm14, %v6661_v56, -inf  ;;  %v6732_v5 = vsel %vm6731_vm15, %v6661_v56, -inf  ;;  %v6662_v23 = vmax.f32 %v6658_v9, 0.0 }
0x2056   : > { %v6668_v32 = vrot.slane %v6667_v12, 1  ;;  %v6676_v17 = vrot.slane %v6675_v52, 1  ;;  %v6692_v21 = vmax.f32 %v6690_v24, %v6691_v28  ;;  %v6706_v49 = vrot.slane %v6705_v10, 4  ;;  %v12239_v28 = vld [vmem:[%s14845_s1] sm:$0xff]  }
0x2057   : > { %v6724_v3 = vmax.f32 %v6721_v38, %v6723_v30  ;;  %v6733_v39 = vrot.slane %v6732_v5, 4  ;;  %v6684_v1 = vmax.f32 %v6682_v35, %v6683_v29  ;;  %v6701_v7 = vmax.f32 %v6699_v54, %v6700_v20  ;;  %v12240_v20 = vld [vmem:[%s14846_s3] sm:$0xff]   ;;  %v12241_v38 = vld [vmem:[%s14845_s1 + $0x8] sm:$0xff]  }
0x2058   : > { %v6669_v27 = vmax.f32 %v6667_v12, %v6668_v32  ;;  %v6677_v25 = vmax.f32 %v6675_v52, %v6676_v17  ;;  %v6693_v60 = vrot.slane %v6692_v21, 1  ;;  %v6707_v19 = vmax.f32 %v6705_v10, %v6706_v49  ;;  %11561 = vmatpush3.bf16.msra.mxu1 %v12240_v20  ;;  %v12242_v10 = vld [vmem:[%s14846_s3 + $0x8] sm:$0xff]   ;;  %v12249_v20 = vld [vmem:[%s14847_s5 + $0x10] sm:$0xff]  }
0x2059   : > { %v6725_v22 = vrot.slane %v6724_v3, 4  ;;  %v6734_v26 = vmax.f32 %v6732_v5, %v6733_v39  ;;  %v6685_v51 = vrot.slane %v6684_v1, 1  ;;  %v6713_v33 = vsel %vm1991_vm6, %v6662_v23, -inf  ;;  %11562 = vmatprep.subr.bf16.mxu1 %v12606_v0  ;;  %v12243_v39 = vld [vmem:[%s14847_s5] sm:$0xff]  }
0x205a   : > { %v6694_v36 = vmax.f32 %v6692_v21, %v6693_v60  ;;  %v6708_v6 = vrot.slane %v6707_v19, 2  ;;  %v6678_v62 = vmax.f32 %v6669_v27, %v6677_v25  ;;  %v6702_v8 = vrot.slane %v6701_v7, 1  ;;  %v12244_v25 = vld [vmem:[%s14847_s5 + $0x8] sm:$0xff]   ;;  %v9917_v60 = vld [vmem:[%s14848_s6] ss:$0 sm:$0xff] }
0x205b   : > { %v6726_v55 = vmax.f32 %v6724_v3, %v6725_v22  ;;  %v6735_v50 = vrot.slane %v6734_v26, 2  ;;  %v6686_v34 = vmax.f32 %v6684_v1, %v6685_v51  ;;  %v6714_v37 = vrot.slane %v6713_v33, 4 }
0x205c   : > { %v6740_v45 = vsel %vm6679_vm10, %v6662_v23, -inf  ;;  %v6709_v63 = vmax.f32 %v6707_v19, %v6708_v6  ;;  %v6703_v14 = vmax.f32 %v6701_v7, %v6702_v8  ;;  %11563 = vmatpush3.bf16.msra.mxu1 %v12242_v10 }
0x205d   : > { %v6727_v46 = vrot.slane %v6726_v55, 2  ;;  %v6736_v57 = vmax.f32 %v6734_v26, %v6735_v50  ;;  %v6695_v31 = vmax.f32 %v6686_v34, %v6694_v36  ;;  %v6715_v58 = vmax.f32 %v6713_v33, %v6714_v37  ;;  %11576 = vmatprep.subr.bf16.mxu1 %v12606_v0  ;;  %v9921_v36 = vld [vmem:[%s14849_s7] ss:$0 sm:$0xff] }
0x205e   : > { %v6741_v43 = vrot.slane %v6740_v45, 4  ;;  %v6710_v2 = vrot.slane %v6709_v63, 1  ;;  %v9925_v37 = vld [vmem:[%s14850_s8] ss:$0 sm:$0xff] }
0x205f   : > { %v6728_v41 = vmax.f32 %v6726_v55, %v6727_v46  ;;  %v6737_v47 = vrot.slane %v6736_v57, 1  ;;  %v6748_v59 = vsel %vm6722_vm14, %v6678_v62, %v6695_v31  ;;  %v6716_v13 = vrot.slane %v6715_v58, 2 }
0x2060   : > { %v6742_v61 = vmax.f32 %v6740_v45, %v6741_v43  ;;  %v6711_v4 = vmax.f32 %v6709_v63, %v6710_v2 }
0x2061   : > { %v6729_v44 = vrot.slane %v6728_v41, 1  ;;  %v6717_v15 = vmax.f32 %v6715_v58, %v6716_v13  ;;  %v6738_v42 = vmax.f32 %v6736_v57, %v6737_v47  ;;  %v7050_v58 = vld [vmem:[%s14851_s9] sm:$0x3]  ;;  %v12246_v13 = vld [vmem:[%s14846_s3 + $0x18] sm:$0xff]  }
0x2062   : > { %v6743_v18 = vrot.slane %v6742_v61, 2  ;;  %v6712_v40 = vmax.f32 %v6703_v14, %v6711_v4 }
0x2063   : > { %v6730_v53 = vmax.f32 %v6728_v41, %v6729_v44  ;;  %v6718_v35 = vrot.slane %v6717_v15, 1 }
0x2064   : > { %v6744_v16 = vmax.f32 %v6742_v61, %v6743_v18 }
0x2065   : > { %v6739_v48 = vmax.f32 %v6730_v53, %v6738_v42  ;;  %v6719_v11 = vmax.f32 %v6717_v15, %v6718_v35 }
0x2066   : > { %v6745_v24 = vrot.slane %v6744_v16, 1 }
0x2067   : > { %v6720_v54 = vmax.f32 %v6712_v40, %v6719_v11 }
0x2068   : > { %v6746_v56 = vmax.f32 %v6744_v16, %v6745_v24 }
0x2069   : > { %v6749_v29 = vsel %vm1991_vm6, %v6748_v59, %v6720_v54  ;;  %v12245_v59 = vld [vmem:[%s14846_s3 + $0x10] sm:$0xff]  }
0x206a   : > { %v6747_v9 = vmax.f32 %v6739_v48, %v6746_v56 }
0x206c   : > { %v14333_v12 = vsel %vm6687_vm11, %v6749_v29, %v6747_v9  ;;  %v12247_v29 = vld [vmem:[%s14845_s1 + $0x10] sm:$0xff]  }
0x206d   : > { %v6767_v52 = vpack.c.bf16 %v14333_v12, %v14333_v12 }
0x206f   : > { %11549 = vmatmul.mubr.bf16.vlgmr.msra.gmra.mrb[40].mxu0 %v6767_v52 }
0x2070   : > { %11556 = vmatprep.mubr.msk.bf16.mxu0 %vm12608_vm2, %v12606_v0  ;;  %11553 = vmatpush3.bf16.msra.mxu0 %v12239_v28  ;;  %v12248_v28 = vld [vmem:[%s14845_s1 + $0x18] sm:$0xff]  }
0x2071   : > { %11554 = vmatprep.subr.bf16.mxu0 %v12606_v0 }
0x2074   : > { %11555 = vmatpush3.bf16.msra.mxu0 %v12241_v38  ;;  %v12250_v38 = vld [vmem:[%s14847_s5 + $0x18] sm:$0xff]  }
0x2075   : > { %11568 = vmatprep.subr.bf16.mxu0 %v12606_v0 }
0x20ec   : > { %v6646_v30 = vpop.f32.mrb[8].mxu1 }
0x20ed   : > { %v11530_v5 = vpop.f32.mrb[9].mxu1 }
0x20ee   : > { %v6648_v32 = vpop.f32.mrb[10].mxu1 }
0x20ef   : > { %v11531_v17 = vpop.f32.mrb[11].mxu1 }
0x20f0   : > { %v9937_v17 = vld [vmem:[%s14848_s6 + $0x1] ss:$0 sm:$0xff] }
0x2142   : > { %v6850_v21 = vpop.f32.mrb[40].mxu0 }
0x2143   : > { %v6856_v23 = vmax.f32 %v6850_v21, 0.0  ;;  %v11550_v49 = vpop.f32.mrb[41].mxu0 }
0x2144   : > { %v6853_v3 = vpop.f32.mrb[42].mxu0 }
0x2145   : > { %v14348_v1 = vpack.c.bf16 %v6856_v23, %v6856_v23  ;;  %v11551_v27 = vpop.f32.mrb[43].mxu0  ;;  %v9946_v3 = vld [vmem:[%s14849_s7 + $0x1] ss:$0 sm:$0xff] }
0x2147   : > { %11557 = vmatmul.mubr.msk.bf16.vlgmr.msra.gmra.mrb[44].mxu0 %vm1531_vm4, %v14348_v1  ;;  %11565 = vmatmul.mubr.msk.bf16.vlgmr.msra.gmra.mrb[12].mxu1 %vm1531_vm4, %v14348_v1 }
0x2148   : > { %11569 = vmatpush3.bf16.msra.mxu0 %v12243_v39  ;;  %11572 = vmatprep.mubr.msk.bf16.mxu0 %vm12608_vm2, %v12606_v0 }
0x2149   : > { %11570 = vmatprep.subr.bf16.mxu0 %v12606_v0  ;;  %11578 = vmatprep.mubr.msk.bf16.mxu1 %vm12608_vm2, %v12606_v0 }
0x214c   : > { %11571 = vmatpush3.bf16.msra.mxu0 %v12244_v25 }
0x214d   : > { %11588 = vmatprep.subr.bf16.mxu0 %v12606_v0 }
0x214f   : > { %11573 = vmatmul.mubr.msk.bf16.vlgmr.msra.gmra.mrb[48].mxu0 %vm1531_vm4, %v14348_v1 }
0x2150   : > { %11590 = vmatprep.mubr.msk.bf16.mxu0 %vm12608_vm2, %v12606_v0 }
0x221a   : > { %v6918_v7 = vpop.f32.mrb[44].mxu0  ;;  %v6981_v19 = vpop.f32.mrb[12].mxu1 }
0x221b   : > { %v6919_v22 = vadd.f32 %v9917_v60, %v6918_v7  ;;  %v11558_v26 = vpop.f32.mrb[45].mxu0  ;;  %v11566_v51 = vpop.f32.mrb[13].mxu1  ;;  %v6982_v8 = vadd.f32 %v9921_v36, %v6981_v19  ;;  %v9955_v19 = vld [vmem:[%s14850_s8 + $0x1] ss:$0 sm:$0xff] }
0x221c   : > { %v6921_v33 = vpop.f32.mrb[46].mxu0  ;;  %v6984_v6 = vpop.f32.mrb[14].mxu1 }
0x221d   : > { %v7051_v55 = vpack.c.bf16 %v6919_v22, %v6919_v22  ;;  %v11559_v50 = vpop.f32.mrb[47].mxu0  ;;  %v11567_v34 = vpop.f32.mrb[15].mxu1  ;;  %v7052_v63 = vpack.c.bf16 %v6982_v8, %v6982_v8  ;;  %v9959_v6 = vld [vmem:[%s14851_s9 + $0x2] sm:$0x3] }
0x221e   : > { %v7204_v8 = vld [vmem:[%s14852_s10] sm:$0xf] }
0x221f   : > { %v7057_v62 = vsel %vm1779_vm5, %v7051_v55, 0  ;;  %v7100_v41 = vsel %vm1779_vm5, %v7052_v63, 0  ;;  %v12251_v63 = vld [vmem:[%s14846_s3 + $0x20] sm:$0xff]  }
0x2220   : > { %11577 = vmatpush3.bf16.xpose.msra.mxu1 %v7057_v62 }
0x2221   : > { %11582 = vmatprep.subr.bf16.mxu1 %v12606_v0 }
0x2222   : > { %v7044_v45 = vpop.f32.mrb[48].mxu0 }
0x2223   : > { %v7045_v46 = vadd.f32 %v9925_v37, %v7044_v45  ;;  %v11574_v57 = vpop.f32.mrb[49].mxu0  ;;  %v7607_v37 = vsel %vm1437_vm0, %v7204_v8, 0  ;;  %v9993_v8 = vld [vmem:[%s14851_s9 + $0x4] sm:$0x3] }
0x2224   : > { %v7047_v31 = vpop.f32.mrb[50].mxu0  ;;  %v12252_v57 = vld [vmem:[%s14846_s3 + $0x28] sm:$0xff]  }
0x2225   : > { %v7155_v43 = vpack.c.bf16 %v7045_v46, %v7045_v46  ;;  %v11575_v2 = vpop.f32.mrb[51].mxu0 }
0x2227   : > { %v7161_v47 = vsel %vm1991_vm6, %v7155_v43, 0  ;;  %11579 = vmatmul.mubr.msk.bf16.vlgmr.msra.gmra.mrb[16].mxu1 %vm1779_vm5, %v7050_v58 }
0x2228   : > { %11583 = vmatpush3.bf16.xpose.msra.mxu1 %v7100_v41  ;;  %11589 = vmatpush3.bf16.msra.mxu0 %v7161_v47 }
0x2229   : > { %11584 = vmatprep.mubr.msk.bf16.mxu1 %vm12608_vm2, %v12606_v0  ;;  %11602 = vmatprep.subr.bf16.mxu1 %v12606_v0 }
0x222a   : > { %11594 = vmatprep.subr.bf16.mxu0 %v12606_v0 }
0x2233   : > { %11585 = vmatmul.mubr.msk.bf16.vlgmr.msra.gmra.mrb[16].mxu1 %vm1779_vm5, %v7051_v55 }
0x2234   : > { %11603 = vmatpush3.bf16.msra.mxu1 %v12245_v59  ;;  %11606 = vmatprep.mubr.msk.bf16.mxu1 %vm12608_vm2, %v12606_v0 }
0x2235   : > { %11604 = vmatprep.subr.bf16.mxu1 %v12606_v0 }
0x2238   : > { %11605 = vmatpush3.bf16.msra.mxu1 %v12246_v13 }
0x2239   : > { %11618 = vmatprep.subr.bf16.mxu1 %v12606_v0 }
0x223b   : > { %11607 = vmatmul.mubr.msk.bf16.vlgmr.msra.gmra.mrb[20].mxu1 %vm1531_vm4, %v14348_v1 }
0x223c   : > { %11620 = vmatprep.mubr.msk.bf16.mxu1 %vm12608_vm2, %v12606_v0 }
0x2306   : > { %v7136_v61 = vpop.f32.mrb[16].mxu1 }
0x2307   : > { %v11586_v14 = vpop.f32.mrb[17].mxu1  ;;  %v7143_v4 = vsel %vm7142_vm1, %v7136_v61, -inf }
0x2308   : > { %7144 = vmax.xlane.f32.xlu0 %v7143_v4  ;;  %v7139_v44 = vpop.f32.mrb[18].mxu1 }
0x2309   : > { %v11587_v15 = vpop.f32.mrb[19].mxu1 }
0x230e   : > { %v7330_v18 = vpop.f32.mrb[20].mxu1 }
0x230f   : > { %v11608_v53 = vpop.f32.mrb[21].mxu1  ;;  %v7331_v60 = vadd.f32 %v9946_v3, %v7330_v18 }
0x2310   : > { %v7333_v42 = vpop.f32.mrb[22].mxu1 }
0x2311   : > { %v11609_v40 = vpop.f32.mrb[23].mxu1  ;;  %v7404_v26 = vpack.c.bf16 %v7331_v60, %v7331_v60 }
0x2313   : > { %v7452_v34 = vsel %vm1779_vm5, %v7404_v26, 0 }
0x2395   : > { %v7145_v35 = vpop.xlane.xlu0 %7144 }
0x2396   : > { %v7146_v16 = vsub.f32 %v7136_v61, %v7145_v35 }
0x2398   : > { %v7147_v48 = vmul.f32 1.442695, %v7146_v16 }
0x239a   : > { %12475 = vpow2.f32 %v7147_v48 }
0x23a4   : > { %v12476_v11 = vpop.eup %12475 }
0x23a5   : > { %v7149_v24 = vsel %vm7142_vm1, %v12476_v11, 0.0 }
0x23a6   : > { %7150 = vadd.xlane.f32.xlu1 %v7149_v24 }
0x2433   : > { %v7151_v54 = vpop.xlane.xlu1 %7150 }
0x2434   : > { %12477 = vrcp.f32 %v7151_v54  ;;  %v9963_v54 = vld [vmem:[%s14852_s10 + $0x4] sm:$0xf] }
0x243e   : > { %v12478_v56 = vpop.eup %12477 }
0x243f   : > { %v7153_v9 = vmul.f32 %v12478_v56, %v12476_v11  ;;  %v7561_v56 = vsel %vm1437_vm0, %v9963_v54, 0 }
0x2441   : > { %v7154_v52 = vpack.c.bf16 %v7153_v9, %v7153_v9 }
0x2443   : > { %11591 = vmatmul.mubr.msk.bf16.vlgmr.msra.gmra.mrb[52].mxu0 %vm7156_vm3, %v7154_v52 }
0x2444   : > { %11595 = vmatpush3.bf16.msra.mxu0 %v12247_v29  ;;  %11598 = vmatprep.mubr.msk.bf16.mxu0 %vm12608_vm2, %v12606_v0 }
0x2445   : > { %11596 = vmatprep.subr.bf16.mxu0 %v12606_v0 }
0x2448   : > { %11597 = vmatpush3.bf16.msra.mxu0 %v12248_v28 }
0x2449   : > { %11610 = vmatprep.subr.bf16.mxu0 %v12606_v0 }
0x244b   : > { %11599 = vmatmul.mubr.msk.bf16.vlgmr.msra.gmra.mrb[56].mxu0 %vm1531_vm4, %v14348_v1 }
0x244c   : > { %11611 = vmatpush3.bf16.msra.mxu0 %v12249_v20  ;;  %11614 = vmatprep.mubr.msk.bf16.mxu0 %vm12608_vm2, %v12606_v0  ;;  %v12253_v20 = vld [vmem:[%s14845_s1 + $0x20] sm:$0xff]  }
0x244d   : > { %11612 = vmatprep.subr.bf16.mxu0 %v12606_v0 }
0x2450   : > { %11613 = vmatpush3.bf16.msra.mxu0 %v12250_v38 }
0x2451   : > { %11630 = vmatprep.subr.bf16.mxu0 %v12606_v0 }
0x2453   : > { %11615 = vmatmul.mubr.msk.bf16.vlgmr.msra.gmra.mrb[60].mxu0 %vm1531_vm4, %v14348_v1 }
0x2454   : > { %11632 = vmatprep.mubr.msk.bf16.mxu0 %vm12608_vm2, %v12606_v0 }
0x2516   : > { %v7197_v10 = vpop.f32.mrb[52].mxu0 }
0x2517   : > { %v11592_v30 = vpop.f32.mrb[53].mxu0  ;;  %v7203_v45 = vmax.f32 %v7197_v10, 0.0 }
0x2518   : > { %v7200_v5 = vpop.f32.mrb[54].mxu0  ;;  %v12254_v30 = vld [vmem:[%s14845_s1 + $0x28] sm:$0xff]  }
0x2519   : > { %v11593_v32 = vpop.f32.mrb[55].mxu0  ;;  %v7205_v46 = vpack.c.bf16 %v7203_v45, %v7203_v45  ;;  %v12255_v5 = vld [vmem:[%s14847_s5 + $0x20] sm:$0xff]  }
0x251a   : > { %v12256_v32 = vld [vmem:[%s14847_s5 + $0x28] sm:$0xff]  }
0x251e   : > { %v7265_v21 = vpop.f32.mrb[56].mxu0 }
0x251f   : > { %v7266_v23 = vadd.f32 %v9937_v17, %v7265_v21  ;;  %v11600_v49 = vpop.f32.mrb[57].mxu0 }
0x2520   : > { %v7268_v39 = vpop.f32.mrb[58].mxu0 }
0x2521   : > { %v7403_v27 = vpack.c.bf16 %v7266_v23, %v7266_v23  ;;  %v11601_v25 = vpop.f32.mrb[59].mxu0  ;;  %v9971_v39 = vld [vmem:[%s14848_s6 + $0x2] ss:$0 sm:$0xff] }
0x2523   : > { %v7409_v7 = vsel %vm1779_vm5, %v7403_v27, 0 }
0x2524   : > { %11619 = vmatpush3.bf16.xpose.msra.mxu1 %v7409_v7  ;;  %v9980_v7 = vld [vmem:[%s14849_s7 + $0x2] ss:$0 sm:$0xff] }
0x2525   : > { %11624 = vmatprep.subr.bf16.mxu1 %v12606_v0 }
0x2526   : > { %v7395_v22 = vpop.f32.mrb[60].mxu0 }
0x2527   : > { %v7396_v51 = vadd.f32 %v9955_v19, %v7395_v22  ;;  %v11616_v36 = vpop.f32.mrb[61].mxu0 }
0x2528   : > { %v7398_v33 = vpop.f32.mrb[62].mxu0 }
0x2529   : > { %v7506_v55 = vpack.c.bf16 %v7396_v51, %v7396_v51  ;;  %v11617_v50 = vpop.f32.mrb[63].mxu0  ;;  %v9989_v33 = vld [vmem:[%s14850_s8 + $0x2] ss:$0 sm:$0xff] }
0x252b   : > { %v7511_v62 = vsel %vm1991_vm6, %v7506_v55, 0  ;;  %11621 = vmatmul.mubr.msk.bf16.vlgmr.msra.gmra.mrb[24].mxu1 %vm1779_vm5, %v9959_v6 }
0x252c   : > { %11625 = vmatpush3.bf16.xpose.msra.mxu1 %v7452_v34  ;;  %11631 = vmatpush3.bf16.msra.mxu0 %v7511_v62 }
0x252d   : > { %11626 = vmatprep.mubr.msk.bf16.mxu1 %vm12608_vm2, %v12606_v0  ;;  %11642 = vmatprep.subr.bf16.mxu1 %v12606_v0 }
0x252e   : > { %11636 = vmatprep.subr.bf16.mxu0 %v12606_v0 }
0x2537   : > { %11627 = vmatmul.mubr.msk.bf16.vlgmr.msra.gmra.mrb[24].mxu1 %vm1779_vm5, %v7403_v27 }
0x2538   : > { %11643 = vmatpush3.bf16.msra.mxu1 %v7607_v37  ;;  %11644 = vmatprep.mubr.msk.bf16.mxu1 %vm12608_vm2, %v12606_v0 }
0x2539   : > { %11656 = vmatprep.subr.bf16.mxu1 %v12606_v0 }
0x253f   : > { %11645 = vmatmul.mubr.msk.bf16.vlgmr.msra.gmra.mrb[28].mxu1 %vm1779_vm5, %v7205_v46 }
0x2540   : > { %11657 = vmatpush3.bf16.msra.mxu1 %v12251_v63  ;;  %11660 = vmatprep.mubr.msk.bf16.mxu1 %vm12608_vm2, %v12606_v0 }
0x2541   : > { %11658 = vmatprep.subr.bf16.mxu1 %v12606_v0 }
0x2544   : > { %11659 = vmatpush3.bf16.msra.mxu1 %v12252_v57  ;;  %v12257_v57 = vld [vmem:[%s14845_s1 + $0x30] sm:$0xff]  }
0x2545   : > { %11672 = vmatprep.subr.bf16.mxu1 %v12606_v0 }
0x2547   : > { %11661 = vmatmul.mubr.msk.bf16.vlgmr.msra.gmra.mrb[32].mxu1 %vm1531_vm4, %v14348_v1 }
0x2548   : > { %11674 = vmatprep.mubr.msk.bf16.mxu1 %vm12608_vm2, %v12606_v0 }
0x260a   : > { %v7488_v31 = vpop.f32.mrb[24].mxu1 }
0x260b   : > { %v11628_v58 = vpop.f32.mrb[25].mxu1  ;;  %v7494_v43 = vsel %vm7142_vm1, %v7488_v31, -inf }
0x260c   : > { %7495 = vmax.xlane.f32.xlu0 %v7494_v43  ;;  %v7491_v2 = vpop.f32.mrb[26].mxu1  ;;  %v12259_v58 = vld [vmem:[%s14847_s5 + $0x30] sm:$0xff]   ;;  %v12260_v43 = vld [vmem:[%s14847_s5 + $0x38] sm:$0xff]   ;;  %s14856_s5 = sld [smem:[#allocation29_spill]] }
0x260d   : > { %v11629_v41 = vpop.f32.mrb[27].mxu1 }
0x2612   : > { %v7643_v47 = vpop.f32.mrb[28].mxu1 }
0x2613   : > { %v11646_v59 = vpop.f32.mrb[29].mxu1 }
0x2614   : > { %v7646_v13 = vpop.f32.mrb[30].mxu1 }
0x2615   : > { %v11647_v61 = vpop.f32.mrb[31].mxu1 }
0x261a   : > { %v7773_v14 = vpop.f32.mrb[32].mxu1 }
0x261b   : > { %v11662_v4 = vpop.f32.mrb[33].mxu1  ;;  %v7774_v51 = vadd.f32 %v9980_v7, %v7773_v14 }
0x261c   : > { %v7776_v44 = vpop.f32.mrb[34].mxu1 }
0x261d   : > { %v11663_v15 = vpop.f32.mrb[35].mxu1  ;;  %v7847_v55 = vpack.c.bf16 %v7774_v51, %v7774_v51 }
0x261e   : > { %v10022_v15 = vld [vmem:[%s14850_s8 + $0x3] ss:$0 sm:$0xff] }
0x261f   : > { %v7895_v63 = vsel %vm1779_vm5, %v7847_v55, 0 }
0x2699   : > { %v7496_v18 = vpop.xlane.xlu0 %7495 }
0x269a   : > { %v7497_v53 = vsub.f32 %v7488_v31, %v7496_v18  ;;  %v12258_v31 = vld [vmem:[%s14845_s1 + $0x38] sm:$0xff]   ;;  %s14853_s1 = sld [smem:[#allocation27_spill]] }
0x269c   : > { %v7498_v42 = vmul.f32 1.442695, %v7497_v53 }
0x269e   : > { %12479 = vpow2.f32 %v7498_v42 }
0x26a8   : > { %v12480_v40 = vpop.eup %12479 }
0x26a9   : > { %v7500_v35 = vsel %vm7142_vm1, %v12480_v40, 0.0 }
0x26aa   : > { %7501 = vadd.xlane.f32.xlu1 %v7500_v35 }
0x2737   : > { %v7502_v16 = vpop.xlane.xlu1 %7501 }
0x2738   : > { %12481 = vrcp.f32 %v7502_v16 }
0x2742   : > { %v12482_v48 = vpop.eup %12481 }
0x2743   : > { %v7504_v11 = vmul.f32 %v12482_v48, %v12480_v40 }
0x2745   : > { %v7505_v24 = vpack.c.bf16 %v7504_v11, %v7504_v11 }
0x2747   : > { %11633 = vmatmul.mubr.msk.bf16.vlgmr.msra.gmra.mrb[64].mxu0 %vm7156_vm3, %v7505_v24 }
0x2748   : > { %11638 = vmatprep.mubr.msk.bf16.mxu0 %vm12608_vm2, %v12606_v0  ;;  %11637 = vmatpush3.bf16.msra.mxu0 %v7561_v56 }
0x2749   : > { %11648 = vmatprep.subr.bf16.mxu0 %v12606_v0 }
0x281a   : > { %v7547_v9 = vpop.f32.mrb[64].mxu0 }
0x281b   : > { %v7553_v29 = vmax.f32 %v7547_v9, 0.0  ;;  %v11634_v52 = vpop.f32.mrb[65].mxu0 }
0x281c   : > { %v7550_v28 = vpop.f32.mrb[66].mxu0 }
0x281d   : > { %v7556_v38 = vpack.c.bf16 %v7553_v29, %v7553_v29  ;;  %v11635_v10 = vpop.f32.mrb[67].mxu0 }
0x281f   : > { %11639 = vmatmul.mubr.msk.bf16.vlgmr.msra.gmra.mrb[68].mxu0 %vm1779_vm5, %v7556_v38  ;;  %v9997_v38 = vld [vmem:[%s14852_s10 + $0x8] sm:$0xf] }
0x2820   : > { %11649 = vmatpush3.bf16.msra.mxu0 %v12253_v20  ;;  %11652 = vmatprep.mubr.msk.bf16.mxu0 %vm12608_vm2, %v12606_v0  ;;  %v8004_v10 = vsel %vm1437_vm0, %v9997_v38, 0 }
0x2821   : > { %11650 = vmatprep.subr.bf16.mxu0 %v12606_v0 }
0x2824   : > { %11651 = vmatpush3.bf16.msra.mxu0 %v12254_v30 }
0x2825   : > { %11664 = vmatprep.subr.bf16.mxu0 %v12606_v0 }
0x2827   : > { %11653 = vmatmul.mubr.msk.bf16.vlgmr.msra.gmra.mrb[72].mxu0 %vm1531_vm4, %v14348_v1 }
0x2828   : > { %11665 = vmatpush3.bf16.msra.mxu0 %v12255_v5  ;;  %11668 = vmatprep.mubr.msk.bf16.mxu0 %vm12608_vm2, %v12606_v0 }
0x2829   : > { %11666 = vmatprep.subr.bf16.mxu0 %v12606_v0 }
0x282c   : > { %11667 = vmatpush3.bf16.msra.mxu0 %v12256_v32 }
0x282d   : > { %11684 = vmatprep.subr.bf16.mxu0 %v12606_v0 }
0x282f   : > { %11669 = vmatmul.mubr.msk.bf16.vlgmr.msra.gmra.mrb[76].mxu0 %vm1531_vm4, %v14348_v1 }
0x2830   : > { %11686 = vmatprep.mubr.msk.bf16.mxu0 %vm12608_vm2, %v12606_v0 }
0x28f2   : > { %v7597_v17 = vpop.f32.mrb[68].mxu0 }
0x28f3   : > { %v14467_v21 = vadd.f32 %v7643_v47, %v7597_v17  ;;  %v11640_v23 = vpop.f32.mrb[69].mxu0 }
0x28f4   : > { %v7600_v49 = vpop.f32.mrb[70].mxu0  ;;  %v12261_v23 = vld [vmem:[%s14846_s3 + $0x30] sm:$0xff]  }
0x28f5   : > { %v11641_v3 = vpop.f32.mrb[71].mxu0 }
0x28fa   : > { %v7708_v27 = vpop.f32.mrb[72].mxu0 }
0x28fb   : > { %v7709_v25 = vadd.f32 %v9971_v39, %v7708_v27  ;;  %v11654_v60 = vpop.f32.mrb[73].mxu0  ;;  %v12262_v39 = vld [vmem:[%s14846_s3 + $0x38] sm:$0xff]   ;;  %v10004_v27 = vld [vmem:[%s14848_s6 + $0x3] ss:$0 sm:$0xff]  ;;  %s14854_s3 = sld [smem:[#allocation28_spill]]  ;;  %s14857_s6 = sld [smem:[#allocation31_spill]] }
0x28fc   : > { %v7711_v19 = vpop.f32.mrb[74].mxu0 }
0x28fd   : > { %v7846_v22 = vpack.c.bf16 %v7709_v25, %v7709_v25  ;;  %v11655_v26 = vpop.f32.mrb[75].mxu0  ;;  %v10026_v19 = vld [vmem:[%s14851_s9 + $0x6] sm:$0x3] }
0x28ff   : > { %v7852_v36 = vsel %vm1779_vm5, %v7846_v22, 0 }
0x2900   : > { %11673 = vmatpush3.bf16.xpose.msra.mxu1 %v7852_v36 }
0x2901   : > { %11678 = vmatprep.subr.bf16.mxu1 %v12606_v0 }
0x2902   : > { %v7838_v6 = vpop.f32.mrb[76].mxu0 }
0x2903   : > { %v7839_v50 = vadd.f32 %v9989_v33, %v7838_v6  ;;  %v11670_v34 = vpop.f32.mrb[77].mxu0  ;;  %v10013_v33 = vld [vmem:[%s14849_s7 + $0x3] ss:$0 sm:$0xff] }
0x2904   : > { %v7841_v62 = vpop.f32.mrb[78].mxu0 }
0x2905   : > { %v7949_v37 = vpack.c.bf16 %v7839_v50, %v7839_v50  ;;  %v11671_v45 = vpop.f32.mrb[79].mxu0 }
0x2907   : > { %v7954_v46 = vsel %vm1991_vm6, %v7949_v37, 0  ;;  %11675 = vmatmul.mubr.msk.bf16.vlgmr.msra.gmra.mrb[36].mxu1 %vm1779_vm5, %v9993_v8 }
0x2908   : > { %11679 = vmatpush3.bf16.xpose.msra.mxu1 %v7895_v63  ;;  %11685 = vmatpush3.bf16.msra.mxu0 %v7954_v46 }
0x2909   : > { %11680 = vmatprep.mubr.msk.bf16.mxu1 %vm12608_vm2, %v12606_v0  ;;  %11696 = vmatprep.subr.bf16.mxu1 %v12606_v0 }
0x290a   : > { %11690 = vmatprep.subr.bf16.mxu0 %v12606_v0 }
0x2913   : > { %11681 = vmatmul.mubr.msk.bf16.vlgmr.msra.gmra.mrb[36].mxu1 %vm1779_vm5, %v7846_v22 }
0x2914   : > { %11697 = vmatpush3.bf16.msra.mxu1 %v12257_v57  ;;  %11700 = vmatprep.mubr.msk.bf16.mxu1 %vm12608_vm2, %v12606_v0 }
0x2915   : > { %11698 = vmatprep.subr.bf16.mxu1 %v12606_v0 }
0x2918   : > { %11699 = vmatpush3.bf16.msra.mxu1 %v12258_v31 }
0x2919   : > { %11712 = vmatprep.subr.bf16.mxu1 %v12606_v0 }
0x291b   : > { %11701 = vmatmul.mubr.msk.bf16.vlgmr.msra.gmra.mrb[40].mxu1 %vm1531_vm4, %v14348_v1 }
0x291c   : > { %11713 = vmatpush3.bf16.msra.mxu1 %v12259_v58  ;;  %11716 = vmatprep.mubr.msk.bf16.mxu1 %vm12608_vm2, %v12606_v0 }
0x291d   : > { %11714 = vmatprep.subr.bf16.mxu1 %v12606_v0 }
0x2920   : > { %11715 = vmatpush3.bf16.msra.mxu1 %v12260_v43 }
0x2921   : > { %11732 = vmatprep.subr.bf16.mxu1 %v12606_v0 }
0x2923   : > { %11717 = vmatmul.mubr.msk.bf16.vlgmr.msra.gmra.mrb[44].mxu1 %vm1531_vm4, %v14348_v1 }
0x2924   : > { %11734 = vmatprep.mubr.msk.bf16.mxu1 %vm12608_vm2, %v12606_v0 }
0x29e6   : > { %v7931_v2 = vpop.f32.mrb[36].mxu1 }
0x29e7   : > { %v11682_v41 = vpop.f32.mrb[37].mxu1  ;;  %v7937_v47 = vsel %vm7142_vm1, %v7931_v2, -inf }
0x29e8   : > { %7938 = vmax.xlane.f32.xlu0 %v7937_v47  ;;  %v7934_v59 = vpop.f32.mrb[38].mxu1 }
0x29e9   : > { %v11683_v13 = vpop.f32.mrb[39].mxu1 }
0x29ee   : > { %v8106_v61 = vpop.f32.mrb[40].mxu1 }
0x29ef   : > { %v11702_v14 = vpop.f32.mrb[41].mxu1  ;;  %v8107_v25 = vadd.f32 %v10004_v27, %v8106_v61 }
0x29f0   : > { %v8109_v4 = vpop.f32.mrb[42].mxu1  ;;  %v10030_v14 = vld [vmem:[%s14852_s10 + $0xc] sm:$0xf] }
0x29f1   : > { %v11703_v44 = vpop.f32.mrb[43].mxu1  ;;  %v8244_v60 = vpack.c.bf16 %v8107_v25, %v8107_v25  ;;  %v8402_v4 = vsel %vm1437_vm0, %v10030_v14, 0  ;;  %v12281_v14 = vld [vmem:[%s14857_s6 + $0x30] sm:$0xff]  }
0x29f2   : > { %v12263_v44 = vld [vmem:[%s14853_s1] sm:$0xff]  }
0x29f3   : > { %v8250_v7 = vsel %vm1779_vm5, %v8244_v60, 0 }
0x29f6   : > { %v8236_v18 = vpop.f32.mrb[44].mxu1 }
0x29f7   : > { %v8237_v53 = vadd.f32 %v10022_v15, %v8236_v18  ;;  %v11718_v42 = vpop.f32.mrb[45].mxu1  ;;  %v12264_v15 = vld [vmem:[%s14853_s1 + $0x8] sm:$0xff]  }
0x29f8   : > { %v8239_v40 = vpop.f32.mrb[46].mxu1 }
0x29f9   : > { %v8347_v35 = vpack.c.bf16 %v8237_v53, %v8237_v53  ;;  %v11719_v16 = vpop.f32.mrb[47].mxu1 }
0x29fb   : > { %v8352_v48 = vsel %vm1991_vm6, %v8347_v35, 0 }
0x29fc   : > { %11733 = vmatpush3.bf16.msra.mxu1 %v8352_v48  ;;  %v12265_v48 = vld [vmem:[%s14853_s1 + $0x10] sm:$0xff]  }
0x29fd   : > { %11738 = vmatprep.subr.bf16.mxu1 %v12606_v0 }
0x2a75   : > { %v7939_v11 = vpop.xlane.xlu0 %7938 }
0x2a76   : > { %v7940_v24 = vsub.f32 %v7931_v2, %v7939_v11  ;;  %v12266_v11 = vld [vmem:[%s14853_s1 + $0x18] sm:$0xff]  }
0x2a78   : > { %v7941_v54 = vmul.f32 1.442695, %v7940_v24  ;;  %v12267_v24 = vld [vmem:[%s14853_s1 + $0x20] sm:$0xff]  }
0x2a7a   : > { %12483 = vpow2.f32 %v7941_v54  ;;  %v12268_v54 = vld [vmem:[%s14853_s1 + $0x28] sm:$0xff]  }
0x2a84   : > { %v12484_v56 = vpop.eup %12483 }
0x2a85   : > { %v7943_v9 = vsel %vm7142_vm1, %v12484_v56, 0.0 }
0x2a86   : > { %7944 = vadd.xlane.f32.xlu1 %v7943_v9  ;;  %v12270_v9 = vld [vmem:[%s14853_s1 + $0x38] sm:$0xff]  }
0x2b13   : > { %v7945_v29 = vpop.xlane.xlu1 %7944 }
0x2b14   : > { %12485 = vrcp.f32 %v7945_v29  ;;  %v12271_v29 = vld [vmem:[%s14854_s3] sm:$0xff]  }
0x2b1e   : > { %v12486_v52 = vpop.eup %12485 }
0x2b1f   : > { %v7947_v28 = vmul.f32 %v12486_v52, %v12484_v56  ;;  %v12269_v56 = vld [vmem:[%s14853_s1 + $0x30] sm:$0xff]   ;;  %s14855_s1 = sld [smem:[#allocation30_spill]] }
0x2b21   : > { %v7948_v20 = vpack.c.bf16 %v7947_v28, %v7947_v28 }
0x2b23   : > { %11687 = vmatmul.mubr.msk.bf16.vlgmr.msra.gmra.mrb[80].mxu0 %vm7156_vm3, %v7948_v20 }
0x2b24   : > { %11692 = vmatprep.mubr.msk.bf16.mxu0 %vm12608_vm2, %v12606_v0  ;;  %11691 = vmatpush3.bf16.msra.mxu0 %v8004_v10 }
0x2b25   : > { %11704 = vmatprep.subr.bf16.mxu0 %v12606_v0 }
0x2bf6   : > { %v7990_v30 = vpop.f32.mrb[80].mxu0 }
0x2bf7   : > { %v7996_v5 = vmax.f32 %v7990_v30, 0.0  ;;  %v11688_v32 = vpop.f32.mrb[81].mxu0 }
0x2bf8   : > { %v7993_v17 = vpop.f32.mrb[82].mxu0 }
0x2bf9   : > { %v7999_v49 = vpack.c.bf16 %v7996_v5, %v7996_v5  ;;  %v11689_v3 = vpop.f32.mrb[83].mxu0 }
0x2bfb   : > { %11693 = vmatmul.mubr.msk.bf16.vlgmr.msra.gmra.mrb[84].mxu0 %vm1779_vm5, %v7999_v49 }
0x2bfc   : > { %11705 = vmatpush3.bf16.msra.mxu0 %v12261_v23  ;;  %11708 = vmatprep.mubr.msk.bf16.mxu0 %vm12608_vm2, %v12606_v0 }
0x2bfd   : > { %11706 = vmatprep.subr.bf16.mxu0 %v12606_v0 }
0x2c00   : > { %11707 = vmatpush3.bf16.msra.mxu0 %v12262_v39 }
0x2c01   : > { %11720 = vmatprep.subr.bf16.mxu0 %v12606_v0 }
0x2c03   : > { %11709 = vmatmul.mubr.msk.bf16.vlgmr.msra.gmra.mrb[88].mxu0 %vm1531_vm4, %v14348_v1 }
0x2c04   : > { %11722 = vmatprep.mubr.msk.bf16.mxu0 %vm12608_vm2, %v12606_v0 }
0x2c09   : > { %11721 = vmatpush3.bf16.xpose.msra.mxu0 %v8250_v7 }
0x2c0a   : > { %11726 = vmatprep.subr.bf16.mxu0 %v12606_v0 }
0x2c10   : > { %11723 = vmatmul.mubr.msk.bf16.vlgmr.msra.gmra.mrb[92].mxu0 %vm1779_vm5, %v10026_v19 }
0x2c11   : > { %11728 = vmatprep.mubr.msk.bf16.mxu0 %vm12608_vm2, %v12606_v0 }
0x2cce   : > { %v8040_v22 = vpop.f32.mrb[84].mxu0 }
0x2ccf   : > { %v14531_v26 = vadd.f32 %v8040_v22, %v14467_v21  ;;  %v11694_v1 = vpop.f32.mrb[85].mxu0 }
0x2cd0   : > { %v8043_v51 = vpop.f32.mrb[86].mxu0 }
0x2cd1   : > { %v11695_v36 = vpop.f32.mrb[87].mxu0 }
0x2cd2   : > { %v12272_v36 = vld [vmem:[%s14854_s3 + $0x8] sm:$0xff]   ;;  %s14860_s3 = sld [smem:[#allocation33_spill]] }
0x2cd6   : > { %v8171_v6 = vpop.f32.mrb[88].mxu0 }
0x2cd7   : > { %v8172_v55 = vadd.f32 %v10013_v33, %v8171_v6  ;;  %v11710_v50 = vpop.f32.mrb[89].mxu0 }
0x2cd8   : > { %v8174_v34 = vpop.f32.mrb[90].mxu0 }
0x2cd9   : > { %v8245_v62 = vpack.c.bf16 %v8172_v55, %v8172_v55  ;;  %v11711_v8 = vpop.f32.mrb[91].mxu0 }
0x2cda   : > { %v12273_v8 = vld [vmem:[%s14855_s1] sm:$0xff]  }
0x2cdb   : > { %v8293_v37 = vsel %vm1779_vm5, %v8245_v62, 0 }
0x2cdc   : > { %11727 = vmatpush3.bf16.xpose.msra.mxu0 %v8293_v37  ;;  %v12274_v37 = vld [vmem:[%s14855_s1 + $0x8] sm:$0xff]   ;;  %s14859_s1 = sld [smem:[#allocation34_spill]] }
0x2cdd   : > { %11744 = vmatprep.subr.bf16.mxu0 %v12606_v0 }
0x2ce3   : > { %11729 = vmatmul.mubr.msk.bf16.vlgmr.msra.gmra.mrb[92].mxu0 %vm1779_vm5, %v8244_v60 }
0x2ce4   : > { %11760 = vmatprep.mubr.msk.bf16.mxu0 %vm12608_vm2, %v12606_v0  ;;  %11745 = vmatpush3.bf16.msra.mxu0 %v12263_v44 }
0x2ce5   : > { %11746 = vmatprep.subr.bf16.mxu0 %v12606_v0 }
0x2ce8   : > { %11747 = vmatpush3.bf16.msra.mxu0 %v12264_v15 }
0x2ce9   : > { %11748 = vmatprep.subr.bf16.mxu0 %v12606_v0 }
0x2cec   : > { %11749 = vmatpush3.bf16.msra.mxu0 %v12265_v48 }
0x2ced   : > { %11750 = vmatprep.subr.bf16.mxu0 %v12606_v0 }
0x2cf0   : > { %11751 = vmatpush3.bf16.msra.mxu0 %v12266_v11 }
0x2cf1   : > { %11752 = vmatprep.subr.bf16.mxu0 %v12606_v0 }
0x2cf4   : > { %11753 = vmatpush3.bf16.msra.mxu0 %v12267_v24 }
0x2cf5   : > { %11754 = vmatprep.subr.bf16.mxu0 %v12606_v0 }
0x2cf8   : > { %11755 = vmatpush3.bf16.msra.mxu0 %v12268_v54 }
0x2cf9   : > { %11756 = vmatprep.subr.bf16.mxu0 %v12606_v0 }
0x2cfc   : > { %11757 = vmatpush3.bf16.msra.mxu0 %v12269_v56 }
0x2cfd   : > { %11758 = vmatprep.subr.bf16.mxu0 %v12606_v0 }
0x2d00   : > { %11759 = vmatpush3.bf16.msra.mxu0 %v12270_v9 }
0x2d01   : > { %11800 = vmatprep.subr.bf16.mxu0 %v12606_v0 }
0x2db6   : > { %v8329_v21 = vpop.f32.mrb[92].mxu0 }
0x2db7   : > { %v11730_v45 = vpop.f32.mrb[93].mxu0  ;;  %v8335_v63 = vsel %vm7142_vm1, %v8329_v21, -inf }
0x2db8   : > { %8336 = vmax.xlane.f32.xlu0 %v8335_v63  ;;  %v8332_v46 = vpop.f32.mrb[94].mxu0 }
0x2db9   : > { %v11731_v57 = vpop.f32.mrb[95].mxu0 }
0x2e45   : > { %v8337_v31 = vpop.xlane.xlu0 %8336 }
0x2e46   : > { %v8338_v58 = vsub.f32 %v8329_v21, %v8337_v31  ;;  %v8573_v21 = vld [vmem:[%s14856_s5] sm:$0x1]  ;;  %s14858_s5 = sld [smem:[#allocation32_spill]] }
0x2e48   : > { %v8339_v43 = vmul.f32 1.442695, %v8338_v58 }
0x2e4a   : > { %12487 = vpow2.f32 %v8339_v43  ;;  %v12275_v43 = vld [vmem:[%s14857_s6] sm:$0xff]  }
0x2e4c   : > { %v12283_v44 = vld [vmem:[%s14858_s5] sm:$0xff]   ;;  %v12284_v48 = vld [vmem:[%s14858_s5 + $0x8] sm:$0xff]   ;;  %s14864_s5 = sld [smem:[#allocation37_spill]] }
0x2e54   : > { %v12488_v2 = vpop.eup %12487 }
0x2e55   : > { %v8341_v41 = vsel %vm7142_vm1, %v12488_v2, 0.0 }
0x2e56   : > { %8342 = vadd.xlane.f32.xlu1 %v8341_v41  ;;  %v12276_v41 = vld [vmem:[%s14857_s6 + $0x8] sm:$0xff]  }
0x2ee3   : > { %v8343_v47 = vpop.xlane.xlu1 %8342 }
0x2ee4   : > { %12489 = vrcp.f32 %v8343_v47  ;;  %v12277_v47 = vld [vmem:[%s14857_s6 + $0x10] sm:$0xff]  }
0x2eee   : > { %v12490_v59 = vpop.eup %12489 }
0x2eef   : > { %v8345_v13 = vmul.f32 %v12490_v59, %v12488_v2  ;;  %v12278_v59 = vld [vmem:[%s14857_s6 + $0x18] sm:$0xff]  }
0x2ef1   : > { %v8346_v61 = vpack.c.bf16 %v8345_v13, %v8345_v13  ;;  %v12279_v13 = vld [vmem:[%s14857_s6 + $0x20] sm:$0xff]  }
0x2ef3   : > { %11735 = vmatmul.mubr.msk.bf16.vlgmr.msra.gmra.mrb[48].mxu1 %vm7156_vm3, %v8346_v61  ;;  %v12280_v61 = vld [vmem:[%s14857_s6 + $0x28] sm:$0xff]  }
0x2ef4   : > { %11740 = vmatprep.mubr.msk.bf16.mxu1 %vm12608_vm2, %v12606_v0  ;;  %11739 = vmatpush3.bf16.msra.mxu1 %v8402_v4  ;;  %v12282_v4 = vld [vmem:[%s14857_s6 + $0x38] sm:$0xff]   ;;  %s14861_s6 = sld [smem:[#allocation35_spill]] }
0x2ef5   : > { %11764 = vmatprep.subr.bf16.mxu1 %v12606_v0 }
0x2fc6   : > { %v8388_v18 = vpop.f32.mrb[48].mxu1 }
0x2fc7   : > { %v8394_v53 = vmax.f32 %v8388_v18, 0.0  ;;  %v11736_v42 = vpop.f32.mrb[49].mxu1 }
0x2fc8   : > { %v8391_v40 = vpop.f32.mrb[50].mxu1 }
0x2fc9   : > { %v8397_v35 = vpack.c.bf16 %v8394_v53, %v8394_v53  ;;  %v11737_v16 = vpop.f32.mrb[51].mxu1 }
0x2fcb   : > { %11741 = vmatmul.mubr.msk.bf16.vlgmr.msra.gmra.mrb[52].mxu1 %vm1779_vm5, %v8397_v35 }
0x2fcc   : > { %11768 = vmatprep.mubr.msk.bf16.mxu1 %vm12608_vm2, %v12606_v0  ;;  %11765 = vmatpush3.bf16.msra.mxu1 %v12271_v29 }
0x2fcd   : > { %11766 = vmatprep.subr.bf16.mxu1 %v12606_v0 }
0x2fd0   : > { %11767 = vmatpush3.bf16.msra.mxu1 %v12272_v36 }
0x2fd1   : > { %11772 = vmatprep.subr.bf16.mxu1 %v12606_v0 }
0x309e   : > { %v8438_v52 = vpop.f32.mrb[52].mxu1 }
0x309f   : > { %v8444_v28 = vadd.f32 %v8438_v52, %v14531_v26  ;;  %v11742_v20 = vpop.f32.mrb[53].mxu1  ;;  %v12285_v52 = vld [vmem:[%s14859_s1] sm:$0xff]  }
0x30a0   : > { %v8441_v38 = vpop.f32.mrb[54].mxu1  ;;  %v8802_v20 = vld [vmem:[%s14860_s3] sm:$0x1]  ;;  %s14862_s3 = sld [smem:[#allocation36_spill]] }
0x30a1   : > { %v8445_v10 = vadd.f32 %v8444_v28, %v14333_v12  ;;  %v11743_v30 = vpop.f32.mrb[55].mxu1  ;;  %v12286_v28 = vld [vmem:[%s14859_s1 + $0x8] sm:$0xff]   ;;  %s14863_s1 = sld [smem:[#allocation38_spill]] }
0x30a3   : > { %v8446_v5 = vmax.f32 %v8445_v10, 0.0 }
0x30a5   : > { %v8447_v32 = vsel %vm1991_vm6, %v8446_v5, -inf  ;;  %v8454_v17 = vsel %vm6704_vm13, %v8446_v5, -inf }
0x30a6   : > { %v8448_v23 = vrot.slane %v8447_v32, 4  ;;  %v8455_v49 = vrot.slane %v8454_v17, 4 }
0x30a8   : > { %v8449_v3 = vmax.f32 %v8447_v32, %v8448_v23  ;;  %v8456_v39 = vmax.f32 %v8454_v17, %v8455_v49  ;;  %v12287_v23 = vld [vmem:[%s14861_s6] sm:$0xff]  }
0x30aa   : > { %v8450_v27 = vrot.slane %v8449_v3, 2  ;;  %v8457_v25 = vrot.slane %v8456_v39, 2 }
0x30ac   : > { %v8451_v60 = vmax.f32 %v8449_v3, %v8450_v27  ;;  %v8458_v7 = vmax.f32 %v8456_v39, %v8457_v25  ;;  %v12288_v3 = vld [vmem:[%s14861_s6 + $0x8] sm:$0xff]   ;;  %v12289_v39 = vld [vmem:[%s14861_s6 + $0x10] sm:$0xff]   ;;  %v12290_v27 = vld [vmem:[%s14861_s6 + $0x18] sm:$0xff]  }
0x30ad   : > { %v12291_v25 = vld [vmem:[%s14861_s6 + $0x20] sm:$0xff]  }
0x30ae   : > { %v8452_v19 = vrot.slane %v8451_v60, 1  ;;  %v8459_v22 = vrot.slane %v8458_v7, 1 }
0x30b0   : > { %v8453_v26 = vmax.f32 %v8451_v60, %v8452_v19  ;;  %v8460_v1 = vmax.f32 %v8458_v7, %v8459_v22  ;;  %v12292_v60 = vld [vmem:[%s14861_s6 + $0x28] sm:$0xff]   ;;  %v12293_v7 = vld [vmem:[%s14861_s6 + $0x30] sm:$0xff]   ;;  %v12294_v19 = vld [vmem:[%s14861_s6 + $0x38] sm:$0xff]   ;;  %s14865_s6 = sld [smem:[#allocation39_spill]] }
0x30b1   : > { %v12295_v22 = vld [vmem:[%s14862_s3] sm:$0xff]  }
0x30b2   : > { %v8461_v12 = vmax.f32 %v8453_v26, %v8460_v1 }
0x30b4   : > { %v8478_v51 = vpack.c.bf16 %v8461_v12, %v8461_v12 }
0x30b6   : > { %11761 = vmatmul.mubr.bf16.vlgmr.msra.gmra.mrb[96].mxu0 %v8478_v51 }
0x30b7   : > { %11804 = vmatprep.mubr.msk.bf16.mxu0 %vm12608_vm2, %v12606_v0  ;;  %11801 = vmatpush3.bf16.msra.mxu0 %v12283_v44  ;;  %v12304_v44 = vld [vmem:[%s14865_s6 + $0x28] sm:$0xff]  }
0x30b8   : > { %11802 = vmatprep.subr.bf16.mxu0 %v12606_v0 }
0x30bb   : > { %11803 = vmatpush3.bf16.msra.mxu0 %v12284_v48  ;;  %v12312_v48 = vld [vmem:[%s14828_s4 + $0x28] sm:$0xff]  }
0x30bc   : > { %11808 = vmatprep.subr.bf16.mxu0 %v12606_v0 }
0x3189   : > { %v8561_v33 = vpop.f32.mrb[96].mxu0 }
0x318a   : > { %v8567_v6 = vmax.f32 %v8561_v33, 0.0  ;;  %v11762_v55 = vpop.f32.mrb[97].mxu0 }
0x318b   : > { %v8564_v50 = vpop.f32.mrb[98].mxu0  ;;  %v12296_v55 = vld [vmem:[%s14862_s3 + $0x8] sm:$0xff]  }
0x318c   : > { %v8572_v34 = vpack.c.bf16 %v8567_v6, %v8567_v6  ;;  %v11763_v62 = vpop.f32.mrb[99].mxu0 }
0x318e   : > { %11769 = vmatmul.mubr.msk.bf16.vlgmr.msra.gmra.mrb[56].mxu1 %vm1531_vm4, %v8572_v34 }
0x318f   : > { %11776 = vmatprep.mubr.msk.bf16.mxu1 %vm12608_vm2, %v12606_v0  ;;  %11773 = vmatpush3.bf16.msra.mxu1 %v12273_v8 }
0x3190   : > { %11774 = vmatprep.subr.bf16.mxu1 %v12606_v0 }
0x3193   : > { %11775 = vmatpush3.bf16.msra.mxu1 %v12274_v37 }
0x3194   : > { %11780 = vmatprep.subr.bf16.mxu1 %v12606_v0 }
0x3261   : > { %v8623_v45 = vpop.f32.mrb[56].mxu1 }
0x3262   : > { %v8624_v63 = vadd.f32 %v8623_v45, %v8573_v21  ;;  %v11770_v46 = vpop.f32.mrb[57].mxu1  ;;  %v12297_v45 = vld [vmem:[%s14863_s1] sm:$0xff]  }
0x3263   : > { %v8626_v57 = vpop.f32.mrb[58].mxu1  ;;  %v9031_v46 = vld [vmem:[%s14864_s5] sm:$0x1]  ;;  %s1397_s5 = sand.u32 1, %s12549_s23  }
0x3264   : > { %v8629_v31 = vmax.f32 %v8624_v63, 0.0  ;;  %v11771_v58 = vpop.f32.mrb[59].mxu1  ;;  %v12298_v63 = vld [vmem:[%s14863_s1 + $0x8] sm:$0xff]   ;;  %s10090_s1 = sshll.u32 %s12876_s0, 4  ;;  %s1398_s3 = scalar_lea.vmem [#allocation2], %s1397_s5 }
0x3265   : > { %s9382_s7 = scalar_lea.sflag [#allocation3], %s1397_s5  ;;  %s12609_s0 = smov [#allocation2]  }
0x3266   : > { %v8634_v2 = vpack.c.bf16 %v8629_v31, %v8629_v31  ;;  %s12499_s9 = sshll.u32 %s12609_s0, 4  ;;  %s12500_s9 = int_to_ptr.vmem [resolvable:$false] %s12499_s9 }
0x3267   : > { %s12501_s10 = scalar_lea.vmem %s12500_s9, 32 }
0x3268   : > { %11777 = vmatmul.mubr.msk.bf16.vlgmr.msra.gmra.mrb[60].mxu1 %vm1531_vm4, %v8634_v2 }
0x3269   : > { %11781 = vmatpush3.bf16.msra.mxu1 %v12275_v43  ;;  %11796 = vmatprep.mubr.msk.bf16.mxu1 %vm12608_vm2, %v12606_v0 }
0x326a   : > { %11782 = vmatprep.subr.bf16.mxu1 %v12606_v0 }
0x326d   : > { %11783 = vmatpush3.bf16.msra.mxu1 %v12276_v41 }
0x326e   : > { %11784 = vmatprep.subr.bf16.mxu1 %v12606_v0 }
0x3271   : > { %11785 = vmatpush3.bf16.msra.mxu1 %v12277_v47  ;;  %v12299_v47 = vld [vmem:[%s14865_s6] sm:$0xff]  }
0x3272   : > { %11786 = vmatprep.subr.bf16.mxu1 %v12606_v0 }
0x3275   : > { %11787 = vmatpush3.bf16.msra.mxu1 %v12278_v59 }
0x3276   : > { %11788 = vmatprep.subr.bf16.mxu1 %v12606_v0 }
0x3279   : > { %11789 = vmatpush3.bf16.msra.mxu1 %v12279_v13  ;;  %v12300_v13 = vld [vmem:[%s14865_s6 + $0x8] sm:$0xff]  }
0x327a   : > { %11790 = vmatprep.subr.bf16.mxu1 %v12606_v0 }
0x327d   : > { %11791 = vmatpush3.bf16.msra.mxu1 %v12280_v61  ;;  %v12301_v61 = vld [vmem:[%s14865_s6 + $0x10] sm:$0xff]  }
0x327e   : > { %11792 = vmatprep.subr.bf16.mxu1 %v12606_v0 }
0x3281   : > { %11793 = vmatpush3.bf16.msra.mxu1 %v12281_v14  ;;  %v12302_v14 = vld [vmem:[%s14865_s6 + $0x18] sm:$0xff]  }
0x3282   : > { %11794 = vmatprep.subr.bf16.mxu1 %v12606_v0 }
0x3285   : > { %11795 = vmatpush3.bf16.msra.mxu1 %v12282_v4  ;;  %v12303_v4 = vld [vmem:[%s14865_s6 + $0x20] sm:$0xff]  }
0x3286   : > { %11836 = vmatprep.subr.bf16.mxu1 %v12606_v0 }
0x333b   : > { %v8684_v15 = vpop.f32.mrb[60].mxu1 }
0x333c   : > { %v8685_v18 = vadd.f32 %v8684_v15, %v8461_v12  ;;  %v11778_v53 = vpop.f32.mrb[61].mxu1  ;;  %v12305_v15 = vld [vmem:[%s14865_s6 + $0x30] sm:$0xff]  }
0x333d   : > { %v8687_v42 = vpop.f32.mrb[62].mxu1  ;;  %v12307_v53 = vld [vmem:[%s14828_s4] sm:$0xff]  }
0x333e   : > { %v8690_v40 = vmax.f32 %v8685_v18, 0.0  ;;  %v11779_v35 = vpop.f32.mrb[63].mxu1  ;;  %v12306_v18 = vld [vmem:[%s14865_s6 + $0x38] sm:$0xff]   ;;  %v12308_v42 = vld [vmem:[%s14828_s4 + $0x8] sm:$0xff]   ;;  %s14695_s6 = scalar_lea.hbm %s12853_s20, %s10090_s1 }
0x333f   : > { %v12310_v35 = vld [vmem:[%s14828_s4 + $0x18] sm:$0xff]  }
0x3340   : > { %v8707_v16 = vpack.c.bf16 %v8690_v40, %v8690_v40 }
0x3342   : > { %11797 = vmatmul.mubr.bf16.vlgmr.msra.gmra.mrb[64].mxu1 %v8707_v16  ;;  %v12311_v16 = vld [vmem:[%s14828_s4 + $0x20] sm:$0xff]  }
0x3343   : > { %11840 = vmatprep.mubr.msk.bf16.mxu1 %vm12608_vm2, %v12606_v0  ;;  %11837 = vmatpush3.bf16.msra.mxu1 %v12295_v22 }
0x3344   : > { %11838 = vmatprep.subr.bf16.mxu1 %v12606_v0 }
0x3347   : > { %11839 = vmatpush3.bf16.msra.mxu1 %v12296_v55 }
0x3348   : > { %11844 = vmatprep.subr.bf16.mxu1 %v12606_v0 }
0x3415   : > { %v8790_v11 = vpop.f32.mrb[64].mxu1 }
0x3416   : > { %v8796_v24 = vmax.f32 %v8790_v11, 0.0  ;;  %v11798_v54 = vpop.f32.mrb[65].mxu1 }
0x3417   : > { %v8793_v56 = vpop.f32.mrb[66].mxu1 }
0x3418   : > { %v8801_v9 = vpack.c.bf16 %v8796_v24, %v8796_v24  ;;  %v11799_v29 = vpop.f32.mrb[67].mxu1 }
0x341a   : > { %11805 = vmatmul.mubr.msk.bf16.vlgmr.msra.gmra.mrb[100].mxu0 %vm1531_vm4, %v8801_v9 }
0x341b   : > { %11812 = vmatprep.mubr.msk.bf16.mxu0 %vm12608_vm2, %v12606_v0  ;;  %11809 = vmatpush3.bf16.msra.mxu0 %v12285_v52 }
0x341c   : > { %11810 = vmatprep.subr.bf16.mxu0 %v12606_v0 }
0x341f   : > { %11811 = vmatpush3.bf16.msra.mxu0 %v12286_v28 }
0x3420   : > { %11816 = vmatprep.subr.bf16.mxu0 %v12606_v0 }
0x34ed   : > { %v8852_v38 = vpop.f32.mrb[100].mxu0 }
0x34ee   : > { %v8853_v10 = vadd.f32 %v8852_v38, %v8802_v20  ;;  %v11806_v30 = vpop.f32.mrb[101].mxu0  ;;  %v12313_v38 = vld [vmem:[%s14828_s4 + $0x30] sm:$0xff]  }
0x34ef   : > { %v8855_v5 = vpop.f32.mrb[102].mxu0  ;;  %v9169_v30 = vld [vmem:[%s12838_s27] sm:$0x1] }
0x34f0   : > { %v8858_v32 = vmax.f32 %v8853_v10, 0.0  ;;  %v11807_v17 = vpop.f32.mrb[103].mxu0  ;;  %v12314_v10 = vld [vmem:[%s14828_s4 + $0x38] sm:$0xff]  }
0x34f2   : > { %v8863_v49 = vpack.c.bf16 %v8858_v32, %v8858_v32 }
0x34f4   : > { %11813 = vmatmul.mubr.msk.bf16.vlgmr.msra.gmra.mrb[104].mxu0 %vm1531_vm4, %v8863_v49 }
0x34f5   : > { %11817 = vmatpush3.bf16.msra.mxu0 %v12287_v23  ;;  %11832 = vmatprep.mubr.msk.bf16.mxu0 %vm12608_vm2, %v12606_v0 }
0x34f6   : > { %11818 = vmatprep.subr.bf16.mxu0 %v12606_v0 }
0x34f9   : > { %11819 = vmatpush3.bf16.msra.mxu0 %v12288_v3 }
0x34fa   : > { %11820 = vmatprep.subr.bf16.mxu0 %v12606_v0 }
0x34fd   : > { %11821 = vmatpush3.bf16.msra.mxu0 %v12289_v39 }
0x34fe   : > { %11822 = vmatprep.subr.bf16.mxu0 %v12606_v0 }
0x3501   : > { %11823 = vmatpush3.bf16.msra.mxu0 %v12290_v27 }
0x3502   : > { %11824 = vmatprep.subr.bf16.mxu0 %v12606_v0 }
0x3505   : > { %11825 = vmatpush3.bf16.msra.mxu0 %v12291_v25  ;;  %v9278_v25 = vld [vmem:[%s12848_s12] sm:$0x1] }
0x3506   : > { %11826 = vmatprep.subr.bf16.mxu0 %v12606_v0 }
0x3509   : > { %11827 = vmatpush3.bf16.msra.mxu0 %v12292_v60 }
0x350a   : > { %11828 = vmatprep.subr.bf16.mxu0 %v12606_v0 }
0x350d   : > { %11829 = vmatpush3.bf16.msra.mxu0 %v12293_v7 }
0x350e   : > { %11830 = vmatprep.subr.bf16.mxu0 %v12606_v0 }
0x3511   : > { %11831 = vmatpush3.bf16.msra.mxu0 %v12294_v19 }
0x3512   : > { %11872 = vmatprep.subr.bf16.mxu0 %v12606_v0 }
0x35c7   : > { %v8913_v26 = vpop.f32.mrb[104].mxu0 }
0x35c8   : > { %v8914_v1 = vadd.f32 %v8913_v26, %v8690_v40  ;;  %v11814_v12 = vpop.f32.mrb[105].mxu0  ;;  %v12309_v40 = vld [vmem:[%s14828_s4 + $0x10] sm:$0xff]   ;;  %s9394_s4 = sshll.u32 %s1398_s3, 4  ;;  %s14697_s4 = int_to_ptr.vmem [resolvable:$true] %s9394_s4 }
0x35c9   : > { %v8916_v51 = vpop.f32.mrb[106].mxu0  ;;  %s12495_s8 = scalar_lea.vmem %s14697_s4, 16  ;;  %p12502_p0 = scmp.lt.s32.totalorder %s14697_s4, %s12500_s9 }
0x35ca   : > { %v14638_v36 = vmax.f32 %v8914_v1, 0.0  ;;  %v11815_v33 = vpop.f32.mrb[107].mxu0  ;;  %p12496_p11 = scmp.ne.s32.totalorder %s14697_s4, %s12495_s8  ;;  %p12503_p1 = scmp.lt.s32.totalorder %s12501_s10, %s12495_s8 }
0x35cc   : > { %v8936_v6 = vpack.c.bf16 %v14638_v36, %v14638_v36  ;;  %p12497_p12 = pnand %p12496_p11, %p12893_p5  ;;  %p12504_p2 = por %p12503_p1, %p12502_p0 }
0x35ce   : > { %11833 = vmatmul.mubr.bf16.vlgmr.msra.gmra.mrb[108].mxu0 %v8936_v6  ;;  %p12498_p13 = pneg %p12497_p12 }
0x35cf   : > { %11888 = vmatprep.mubr.msk.bf16.mxu0 %vm12608_vm2, %v12606_v0  ;;  %11873 = vmatpush3.bf16.msra.mxu0 %v12307_v53 }
0x35d0   : > { %11874 = vmatprep.subr.bf16.mxu0 %v12606_v0  ;;  %p12505_p3 = pnand %p12504_p2, %p12498_p13 }
0x35d3   : > { %11875 = vmatpush3.bf16.msra.mxu0 %v12308_v42 }
0x35d4   : > { %11876 = vmatprep.subr.bf16.mxu0 %v12606_v0 }
0x35d7   : > { %11877 = vmatpush3.bf16.msra.mxu0 %v12309_v40 }
0x35d8   : > { %11878 = vmatprep.subr.bf16.mxu0 %v12606_v0 }
0x35db   : > { %11879 = vmatpush3.bf16.msra.mxu0 %v12310_v35 }
0x35dc   : > { %11880 = vmatprep.subr.bf16.mxu0 %v12606_v0 }
0x35df   : > { %11881 = vmatpush3.bf16.msra.mxu0 %v12311_v16 }
0x35e0   : > { %11882 = vmatprep.subr.bf16.mxu0 %v12606_v0 }
0x35e3   : > { %11883 = vmatpush3.bf16.msra.mxu0 %v12312_v48 }
0x35e4   : > { %11884 = vmatprep.subr.bf16.mxu0 %v12606_v0 }
0x35e7   : > { %11885 = vmatpush3.bf16.msra.mxu0 %v12313_v38 }
0x35e8   : > { %11886 = vmatprep.subr.bf16.mxu0 %v12606_v0 }
0x35eb   : > { %11887 = vmatpush3.bf16.msra.mxu0 %v12314_v10 }
0x36a1   : > { %v9019_v50 = vpop.f32.mrb[108].mxu0 }
0x36a2   : > { %v9025_v34 = vmax.f32 %v9019_v50, 0.0  ;;  %v11834_v62 = vpop.f32.mrb[109].mxu0 }
0x36a3   : > { %v9022_v8 = vpop.f32.mrb[110].mxu0 }
0x36a4   : > { %v9030_v37 = vpack.c.bf16 %v9025_v34, %v9025_v34  ;;  %v11835_v21 = vpop.f32.mrb[111].mxu0 }
0x36a6   : > { %11841 = vmatmul.mubr.msk.bf16.vlgmr.msra.gmra.mrb[68].mxu1 %vm1531_vm4, %v9030_v37 }
0x36a7   : > { %11848 = vmatprep.mubr.msk.bf16.mxu1 %vm12608_vm2, %v12606_v0  ;;  %11845 = vmatpush3.bf16.msra.mxu1 %v12297_v45 }
0x36a8   : > { %11846 = vmatprep.subr.bf16.mxu1 %v12606_v0 }
0x36ab   : > { %11847 = vmatpush3.bf16.msra.mxu1 %v12298_v63 }
0x36ac   : > { %11852 = vmatprep.subr.bf16.mxu1 %v12606_v0 }
0x3779   : > { %v9081_v57 = vpop.f32.mrb[68].mxu1 }
0x377a   : > { %v9082_v31 = vadd.f32 %v9081_v57, %v9031_v46  ;;  %v11842_v58 = vpop.f32.mrb[69].mxu1 }
0x377b   : > { %v9084_v43 = vpop.f32.mrb[70].mxu1 }
0x377c   : > { %v9087_v2 = vmax.f32 %v9082_v31, 0.0  ;;  %v11843_v41 = vpop.f32.mrb[71].mxu1 }
0x377e   : > { %v9092_v59 = vpack.c.bf16 %v9087_v2, %v9087_v2 }
0x3780   : > { %11849 = vmatmul.mubr.msk.bf16.vlgmr.msra.gmra.mrb[72].mxu1 %vm1531_vm4, %v9092_v59  ;;  %vm9367_vm4 = vcmask 8192  }
0x3781   : > { %11853 = vmatpush3.bf16.msra.mxu1 %v12299_v47  ;;  %11868 = vmatprep.mubr.msk.bf16.mxu1 %vm12608_vm2, %v12606_v0 }
0x3782   : > { %11854 = vmatprep.subr.bf16.mxu1 %v12606_v0 }
0x3785   : > { %11855 = vmatpush3.bf16.msra.mxu1 %v12300_v13 }
0x3786   : > { %11856 = vmatprep.subr.bf16.mxu1 %v12606_v0 }
0x3789   : > { %11857 = vmatpush3.bf16.msra.mxu1 %v12301_v61 }
0x378a   : > { %11858 = vmatprep.subr.bf16.mxu1 %v12606_v0 }
0x378d   : > { %11859 = vmatpush3.bf16.msra.mxu1 %v12302_v14 }
0x378e   : > { %11860 = vmatprep.subr.bf16.mxu1 %v12606_v0 }
0x3791   : > { %11861 = vmatpush3.bf16.msra.mxu1 %v12303_v4 }
0x3792   : > { %11862 = vmatprep.subr.bf16.mxu1 %v12606_v0 }
0x3795   : > { %11863 = vmatpush3.bf16.msra.mxu1 %v12304_v44 }
0x3796   : > { %11864 = vmatprep.subr.bf16.mxu1 %v12606_v0 }
0x3799   : > { %11865 = vmatpush3.bf16.msra.mxu1 %v12305_v15 }
0x379a   : > { %11866 = vmatprep.subr.bf16.mxu1 %v12606_v0 }
0x379d   : > { %11867 = vmatpush3.bf16.msra.mxu1 %v12306_v18 }
0x3853   : > { %v9142_v11 = vpop.f32.mrb[72].mxu1 }
0x3854   : > { %v9143_v24 = vadd.f32 %v9142_v11, %v14638_v36  ;;  %v11850_v54 = vpop.f32.mrb[73].mxu1 }
0x3855   : > { %v9145_v56 = vpop.f32.mrb[74].mxu1 }
0x3856   : > { %v9148_v9 = vmax.f32 %v9143_v24, 0.0  ;;  %v11851_v29 = vpop.f32.mrb[75].mxu1 }
0x3858   : > { %vm9149_vm0 = vcmp.ge.f32.partialorder %v9148_v9, 0.0  ;;  %v9150_v52 = vmul.f32 0.01, %v9148_v9 }
0x385a   : > { %v9151_v28 = vsel %vm9149_vm0, %v9148_v9, %v9150_v52 }
0x385b   : > { %v9168_v20 = vpack.c.bf16 %v9151_v28, %v9151_v28 }
0x385d   : > { %11869 = vmatmul.mubr.bf16.vlgmr.msra.gmra.mrb[88].mxu1 %v9168_v20 }
0x3930   : > { %v9252_v5 = vpop.f32.mrb[88].mxu1 }
0x3931   : > { %v9253_v32 = vadd.f32 %v9252_v5, %v9169_v30  ;;  %v11870_v17 = vpop.f32.mrb[89].mxu1 }
0x3932   : > { %v9255_v23 = vpop.f32.mrb[90].mxu1 }
0x3933   : > { %vm9258_vm2 = vcmp.ge.f32.partialorder %v9253_v32, 0.0  ;;  %v9259_v49 = vmul.f32 0.01, %v9253_v32  ;;  %v11871_v3 = vpop.f32.mrb[91].mxu1 }
0x3935   : > { %v9260_v39 = vsel %vm9258_vm2, %v9253_v32, %v9259_v49 }
0x3936   : > { %v9277_v27 = vpack.c.bf16 %v9260_v39, %v9260_v39 }
0x3938   : > { %11889 = vmatmul.mubr.bf16.vlgmr.msra.gmra.mrb[112].mxu0 %v9277_v27 }
0x3a0b   : > { %v9361_v60 = vpop.f32.mrb[112].mxu0 }
0x3a0c   : > { %v9362_v7 = vadd.f32 %v9361_v60, %v9278_v25  ;;  %v11890_v19 = vpop.f32.mrb[113].mxu0 }
0x3a0d   : > { %v9364_v0 = vpop.f32.mrb[114].mxu0 }
0x3a0e   : > { %v11891_v22 = vpop.f32.mrb[115].mxu0  ;;  %v9368_v26 = vsel %vm9367_vm4, %v9362_v7, -inf }
0x3a0f   : > { %9369 = vmax.xlane.f32.xlu0 %v9368_v26 }
0x3a9c   : > { %v9370_v1 = vpop.xlane.xlu0 %9369 }
0x3a9d   : > { %v9371_v12 = vsub.f32 %v9362_v7, %v9370_v1 }
0x3a9f   : > { %v9372_v51 = vmul.f32 1.442695, %v9371_v12 }
0x3aa1   : > { %12491 = vpow2.f32 %v9372_v51 }
0x3aab   : > { %v12492_v36 = vpop.eup %12491 }
0x3aac   : > { %v9374_v33 = vsel %vm9367_vm4, %v12492_v36, 0.0 }
0x3aad   : > { %9375 = vadd.xlane.f32.xlu1 %v9374_v33 }
0x3b3a   : > { %v9376_v6 = vpop.xlane.xlu1 %9375 }
0x3b3b   : > { %12493 = vlog2.f32 %v9376_v6 }
0x3b45   : > { %v12494_v55 = vpop.eup %12493 }
0x3b46   : > { %v9378_v50 = vmul.f32 0.6931472, %v12494_v55 }
0x3b48   : > { %v9379_v34 = vsub.f32 %v9371_v12, %v9378_v50 }
0x3b4a   : > { %9380 = vst.msk [vmem:[%s1398_s3] sm:$0x1] %vm9367_vm4, %v9379_v34 }
0x3b4b   : > { %12508 = shalt.err (!%p12505_p3)
}
0x3b4c   : > { %s12509_s1 = scalar_lea.hbm %s14695_s6, 16  ;;  %s12513_s3 = scalar_lea.hbm %s12853_s20, 32 }
0x3b4d   : > { %p12510_p4 = scmp.ne.s32.totalorder %s14695_s6, %s12509_s1  ;;  %p12514_p9 = scmp.lt.u32.totalorder %s14695_s6, %s12853_s20 }
0x3b4e   : > { %p12515_p10 = scmp.lt.u32.totalorder %s12513_s3, %s12509_s1  ;;  %p12517_p12 = scmp.lt.u32.totalorder %s12509_s1, %s14695_s6 }
0x3b4f   : > { %p12511_p7 = pnand %p12510_p4, %p12893_p5 }
0x3b50   : > { %p12516_p11 = por %p12515_p10, %p12514_p9 }
0x3b51   : > { %p12512_p8 = pneg %p12511_p7 }
0x3b52   : > { %p12518_p0 = por %p12517_p12, %p12516_p11 }
0x3b54   : > { %p12519_p13 = pnand %p12518_p0, %p12512_p8 }
0x3b56   : > { %12522 = shalt.err (!%p12519_p13)
}
0x3b57   : > { %12060 = dma.vmem_to_hbm [thread:$0]  (%p12893_p5), %s14697_s4, 16, %s14695_s6, %s9382_s7  }
0x3b58 PF: > { %p12066_p1 = scmp.ge.s32.totalorder %s12557_s28, 2  ;;  %s9406_s9 = sand.u32 1, %s12545_s22  }
0x3b59   : > { %s9407_s8 = scalar_lea.sflag [#allocation3], %s9406_s9 }
0x3b5a   : > { %p12063_p2 = pnand %p12066_p1, %p12897_p6 }
0x3b5c   : > { %12540 = dma.done.wait (!%p12063_p2), %s9407_s8, 16  }
0x3b5d   : > { %12542 = vsyncadd (!%p12063_p2), %s9407_s8, 4294967280  ;;  %p105_p3 = scmp.ge.s32.totalorder %s12880_s2, 4   ;;  %s14866_s22 = smov %s12549_s23 }
0x3b5e   : > { %s14867_s23 = smov %s12553_s26  ;;  %s14868_s26 = smov %s12891_s11 }
0x3b5f   : > { %s14869_s28 = smov %s12880_s2  ;;  %107 = sbr.rel (!%p105_p3) target bundleno = 103 (0x67), region = 362 }
0x3b66   :  { %9411 = vsyncpa [#allocation3], 1 }
0x3b67   :  { %9413 = vsyncpa [#allocation3 + $0x1], 1 }

</bundles_post_ra>
